<compile_context>
chip_gen: v6e
topology: v6e:2x2x1
jax: 0.10.0
libtpu: 0.0.40
codegen_flags: <defaults>
</compile_context>

<pallas_src>
import functools
import math

import jax
import jax.numpy as jnp
from jax.experimental import pallas as pl
from jax.experimental.pallas import tpu as pltpu

_VMEM_LIMIT = 32 * 1024 * 1024  # fused footprint is ~5 MB; well inside v5e/v6e/v7x scoped VMEM


def _const_spec(shape):
    nd = len(shape)
    return pl.BlockSpec(shape, lambda b, _nd=nd: (0,) * _nd)


def _sel_mat(l_out, l_in, stride):
    """One-hot (l_out, l_in) decimation matrix selecting rows 0, stride, 2*stride, ...
    Built once at init (host side) and passed as an input -> no in-kernel iota/compare."""
    rows = jnp.arange(l_out)[:, None]
    cols = jnp.arange(l_in)[None, :]
    return (rows * stride == cols).astype(jnp.float32)


# ----------------------------------------------------------------------------- in-kernel helpers

def _pad_rows(x, pad):
    # Single zero-pad per conv; taps become static row slices of the padded value.
    z = jnp.zeros((pad, x.shape[1]), x.dtype)
    return jnp.concatenate([z, x, z], axis=0)


def _mm(a, b):
    return jnp.dot(a, b, preferred_element_type=jnp.float32)


# ----------------------------------------------------------------------------- fused kernel

def _fused_kernel(*refs, cfg):
    o_ref = refs[-1]
    it = iter(refs[:-1])
    x_ref = next(it)

    # ---- stem: conv1d(k=7, s=2, p=3) + folded BN + ReLU + maxpool1d(k=3, s=2, p=1)
    stem_w, stem_sh, sel_stem, sel_pool = next(it), next(it), next(it), next(it)
    x32 = x_ref[0]                                   # (L0, Cin) f32, channels-last
    L0 = x32.shape[0]
    xb = _pad_rows(x32.astype(jnp.bfloat16), 3)      # (L0+6, Cin) bf16
    acc = _mm(xb[0:L0], stem_w[0])
    for t in range(1, 7):
        acc = acc + _mm(xb[t:t + L0], stem_w[t])     # stride-1 conv at all positions, f32 acc
    y = jnp.maximum(_mm(sel_stem[...], acc) + stem_sh[...], 0.0)    # decimate to stride-2 grid
    Lc = y.shape[0]
    yp = _pad_rows(y, 1)                             # zero pad valid: y >= 0 post-ReLU
    m = jnp.maximum(jnp.maximum(yp[0:Lc], yp[1:Lc + 1]), yp[2:Lc + 2])
    x = _mm(sel_pool[...], m)                        # (Lp, 16) f32

    # ---- 4 fused ResNet bottleneck stages, fully unrolled, all weights VMEM-resident
    for st in cfg["stages"]:
        w1s, w2s, w3s, wd, shp, shc = (next(it) for _ in range(6))
        sel = next(it)[...] if st["stride"] != 1 else None
        nb, p = st["nb"], st["p"]
        for i in range(nb):
            stride = st["stride"] if i == 0 else 1
            a, b = st["w1_off"][i]
            s12 = shp[i]                             # (2, p) f32: [shift1; shift2]
            xb16 = x.astype(jnp.bfloat16)
            # conv1 (1x1) + folded BN + ReLU
            y1 = jnp.maximum(_mm(xb16, w1s[a:b, :]) + s12[0:1], 0.0)
            # conv2 (k=3, pad=1, stride) + folded BN + ReLU via tap-shifted matmuls
            L = y1.shape[0]
            y1p = _pad_rows(y1.astype(jnp.bfloat16), 1)
            acc = (_mm(y1p[0:L], w2s[3 * i + 0])
                   + _mm(y1p[1:L + 1], w2s[3 * i + 1])
                   + _mm(y1p[2:L + 2], w2s[3 * i + 2]))
            if stride != 1:
                acc = _mm(sel, acc)
            y2 = jnp.maximum(acc + s12[1:2], 0.0)
            # conv3 (1x1) + folded BN; residual add + ReLU fused
            y3 = _mm(y2.astype(jnp.bfloat16), w3s[i * p:(i + 1) * p, :]) + shc[i]
            if st["down"][i]:
                idn = x if stride == 1 else _mm(sel, x)
                idn = _mm(idn.astype(jnp.bfloat16), wd[...]) + shc[nb]
            else:
                idn = x
            x = jnp.maximum(y3 + idn, 0.0)

    # ---- head: global-average-pool + 3 stacked GRU cells (seq_len==1, h0==0) + fc2
    h = jnp.mean(x, axis=0, keepdims=True)           # (1, 512) f32
    hd = cfg["hidden"]
    for _ in range(cfg["gru_layers"]):
        wg, bg, bhn = next(it), next(it), next(it)
        g = _mm(h.astype(jnp.bfloat16), wg[...]) + bg[...]      # (1, 3*hidden), merged gates
        r = jax.nn.sigmoid(g[:, 0:hd])
        z = jax.nn.sigmoid(g[:, hd:2 * hd])
        n = jnp.tanh(g[:, 2 * hd:3 * hd] + r * bhn[...])
        h = (1.0 - z) * n                            # h' = (1-z)*n + z*h_prev, h_prev == 0
    wf, bf = next(it), next(it)
    o_ref[0] = _mm(h.astype(jnp.bfloat16), wf[...]) + bf[...]


# ----------------------------------------------------------------------------- forward wrapper

def forward(x_ncl, params):
    x = jnp.transpose(x_ncl, (0, 2, 1))              # NCL -> channels-last (B, L, C), once
    B, L, Cin = x.shape
    refs, cfg = params["refs"], params["cfg"]
    n_out = cfg["n_classes"]
    in_specs = [pl.BlockSpec((1, L, Cin), lambda b: (b, 0, 0))]
    in_specs += [_const_spec(r.shape) for r in refs]
    out = pl.pallas_call(
        functools.partial(_fused_kernel, cfg=cfg),
        grid=(B,),
        in_specs=in_specs,
        out_specs=pl.BlockSpec((1, 1, n_out), lambda b: (b, 0, 0)),
        out_shape=jax.ShapeDtypeStruct((B, 1, n_out), jnp.float32),
        compiler_params=pltpu.CompilerParams(
            dimension_semantics=("parallel",),
            vmem_limit_bytes=_VMEM_LIMIT),
    )(x, *refs)
    return out[:, 0, :]


# ----------------------------------------------------------------------------- deterministic init

def _conv_bn_init(key, cin, cout, k):
    """Channels-last conv weight with eval-mode BN scale folded in; returns (w, shift)."""
    k1, k2, k3, k4, k5 = jax.random.split(key, 5)
    w = jax.random.normal(k1, (cout, cin, k), jnp.float32) * math.sqrt(2.0 / (cin * k))
    gamma = 1.0 + 0.1 * jax.random.normal(k2, (cout,), jnp.float32)
    beta = 0.1 * jax.random.normal(k3, (cout,), jnp.float32)
    mean = 0.1 * jax.random.normal(k4, (cout,), jnp.float32)
    var = 1.0 + 0.1 * jnp.abs(jax.random.normal(k5, (cout,), jnp.float32))
    scale = gamma / jnp.sqrt(var + 1e-5)
    shift = beta - mean * scale
    w_cl = jnp.transpose(w, (2, 1, 0)) * scale[None, None, :]   # (k, cin, cout), BN scale folded
    if k == 1:
        w_cl = w_cl[0]                                          # (cin, cout)
    return w_cl, shift[None, :]                                 # shift: (1, cout)


def init_model(key, length_single_mouse_traj=64, num_features=11, hidden=25, n_classes=2):
    keys = iter(jax.random.split(key, 64))
    bf16 = jnp.bfloat16
    inplanes = 16

    # Stem conv(k=7,s=2,p=3) -> maxpool(k=3,s=2,p=1).
    stem_w, stem_sh = _conv_bn_init(next(keys), num_features, inplanes, 7)
    L0 = length_single_mouse_traj
    Lc = (L0 + 2 * 3 - 7) // 2 + 1
    Lp = (Lc + 2 - 3) // 2 + 1
    refs = [stem_w.astype(bf16), stem_sh, _sel_mat(Lc, L0, 2), _sel_mat(Lp, Lc, 2)]

    # ResNet-50-1D bottleneck stages (planes scaled so final features == 512).
    planes, nblocks, layer_strides, expansion = [16, 32, 64, 128], [3, 4, 6, 3], [1, 2, 2, 2], 4
    L = Lp
    stage_cfgs = []
    for p, nb, st in zip(planes, nblocks, layer_strides):
        cout = p * expansion
        cin0 = inplanes
        w1_list, w2_list, w3_list, shp_list, shc_list, w1_off = [], [], [], [], [], []
        off = 0
        for i in range(nb):
            cin = cin0 if i == 0 else cout
            w1, s1 = _conv_bn_init(next(keys), cin, p, 1)
            w2, s2 = _conv_bn_init(next(keys), p, p, 3)
            w3, s3 = _conv_bn_init(next(keys), p, cout, 1)
            w1_list.append(w1); w1_off.append((off, off + cin)); off += cin
            w2_list.append(w2)
            w3_list.append(w3)
            shp_list.append(jnp.concatenate([s1, s2], axis=0))   # (2, p)
            shc_list.append(s3)                                  # (1, cout)
        wd, sd = _conv_bn_init(next(keys), cin0, cout, 1)
        shc_list.append(sd)
        stage_refs = [
            jnp.concatenate(w1_list, axis=0).astype(bf16),       # (sum cin_i, p)    bf16
            jnp.concatenate(w2_list, axis=0).astype(bf16),       # (3*nb, p, p)      bf16
            jnp.concatenate(w3_list, axis=0).astype(bf16),       # (nb*p, cout)      bf16
            wd.astype(bf16),                                     # (cin0, cout)      bf16
            jnp.stack(shp_list, axis=0),                         # (nb, 2, p)        f32
            jnp.stack(shc_list, axis=0),                         # (nb+1, 1, cout)   f32
        ]
        L_out = (L + 2 - 3) // st + 1
        if st != 1:
            stage_refs.append(_sel_mat(L_out, L, st))            # stride-2 decimation, f32
        refs += stage_refs
        stage_cfgs.append({"nb": nb, "p": p, "cout": cout, "stride": st,
                           "w1_off": tuple(w1_off),
                           "down": (True,) + (False,) * (nb - 1)})
        inplanes, L = cout, L_out

    # GRU(input=512, hidden=25, layers=3) with merged gate weights + fc2(25, 2).
    in_dim, bound = inplanes, 1.0 / math.sqrt(hidden)
    for _ in range(3):
        kw, kb1, kb2 = jax.random.split(next(keys), 3)
        w_ih = jax.random.uniform(kw, (3 * hidden, in_dim), jnp.float32, -bound, bound)
        b_ih = jax.random.uniform(kb1, (3 * hidden,), jnp.float32, -bound, bound)
        b_hh = jax.random.uniform(kb2, (3 * hidden,), jnp.float32, -bound, bound)
        wg = jnp.concatenate([w_ih[:hidden].T, w_ih[hidden:2 * hidden].T,
                              w_ih[2 * hidden:].T], axis=1)             # (in_dim, 3*hidden)
        bg = jnp.concatenate([b_ih[:hidden] + b_hh[:hidden],
                              b_ih[hidden:2 * hidden] + b_hh[hidden:2 * hidden],
                              b_ih[2 * hidden:]], axis=0)[None, :]      # (1, 3*hidden)
        bhn = b_hh[2 * hidden:][None, :]                                # (1, hidden)
        refs += [wg.astype(bf16), bg, bhn]
        in_dim = hidden
    kw, kb = jax.random.split(next(keys), 2)
    wfc = jax.random.uniform(kw, (n_classes, hidden), jnp.float32, -bound, bound).T
    bfc = jax.random.uniform(kb, (n_classes,), jnp.float32, -bound, bound)[None, :]
    refs += [wfc.astype(bf16), bfc]

    cfg = {"stages": tuple(stage_cfgs), "hidden": hidden, "gru_layers": 3,
           "n_classes": n_classes}
    return {"refs": refs, "cfg": cfg}


# ----------------------------------------------------------------------------- main

if __name__ == "__main__":
    key = jax.random.PRNGKey(0)
    kp, kx = jax.random.split(key)

    params = init_model(kp, length_single_mouse_traj=64, num_features=11, hidden=25)

    # layout: NCL — (batch=2, num_features=11, length_single_mouse_traj=64)
    x = jax.random.normal(kx, (2, 11, 64), jnp.float32)

    fwd = jax.jit(lambda inp: forward(inp, params))
    out = fwd(x)
    jax.block_until_ready(out)

    assert out.shape == (2, 2) and out.dtype == jnp.float32
    assert bool(jnp.all(jnp.isfinite(out)))
    print("KERNEL_OK")
</pallas_src>

<mosaic_0001>
module attributes {stable_mosaic.version = 11 : i64} {
  func.func @_fused_kernel(%arg0: i32, %arg1: memref<1x64x11xf32, #tpu.memory_space<vmem>>, %arg2: memref<7x11x16xbf16, #tpu.memory_space<vmem>>, %arg3: memref<1x16xf32, #tpu.memory_space<vmem>>, %arg4: memref<32x64xf32, #tpu.memory_space<vmem>>, %arg5: memref<16x32xf32, #tpu.memory_space<vmem>>, %arg6: memref<144x16xbf16, #tpu.memory_space<vmem>>, %arg7: memref<9x16x16xbf16, #tpu.memory_space<vmem>>, %arg8: memref<48x64xbf16, #tpu.memory_space<vmem>>, %arg9: memref<16x64xbf16, #tpu.memory_space<vmem>>, %arg10: memref<3x2x16xf32, #tpu.memory_space<vmem>>, %arg11: memref<4x1x64xf32, #tpu.memory_space<vmem>>, %arg12: memref<448x32xbf16, #tpu.memory_space<vmem>>, %arg13: memref<12x32x32xbf16, #tpu.memory_space<vmem>>, %arg14: memref<128x128xbf16, #tpu.memory_space<vmem>>, %arg15: memref<64x128xbf16, #tpu.memory_space<vmem>>, %arg16: memref<4x2x32xf32, #tpu.memory_space<vmem>>, %arg17: memref<5x1x128xf32, #tpu.memory_space<vmem>>, %arg18: memref<8x16xf32, #tpu.memory_space<vmem>>, %arg19: memref<1408x64xbf16, #tpu.memory_space<vmem>>, %arg20: memref<18x64x64xbf16, #tpu.memory_space<vmem>>, %arg21: memref<384x256xbf16, #tpu.memory_space<vmem>>, %arg22: memref<128x256xbf16, #tpu.memory_space<vmem>>, %arg23: memref<6x2x64xf32, #tpu.memory_space<vmem>>, %arg24: memref<7x1x256xf32, #tpu.memory_space<vmem>>, %arg25: memref<4x8xf32, #tpu.memory_space<vmem>>, %arg26: memref<1280x128xbf16, #tpu.memory_space<vmem>>, %arg27: memref<9x128x128xbf16, #tpu.memory_space<vmem>>, %arg28: memref<384x512xbf16, #tpu.memory_space<vmem>>, %arg29: memref<256x512xbf16, #tpu.memory_space<vmem>>, %arg30: memref<3x2x128xf32, #tpu.memory_space<vmem>>, %arg31: memref<4x1x512xf32, #tpu.memory_space<vmem>>, %arg32: memref<2x4xf32, #tpu.memory_space<vmem>>, %arg33: memref<512x75xbf16, #tpu.memory_space<vmem>>, %arg34: memref<1x75xf32, #tpu.memory_space<vmem>>, %arg35: memref<1x25xf32, #tpu.memory_space<vmem>>, %arg36: memref<25x75xbf16, #tpu.memory_space<vmem>>, %arg37: memref<1x75xf32, #tpu.memory_space<vmem>>, %arg38: memref<1x25xf32, #tpu.memory_space<vmem>>, %arg39: memref<25x75xbf16, #tpu.memory_space<vmem>>, %arg40: memref<1x75xf32, #tpu.memory_space<vmem>>, %arg41: memref<1x25xf32, #tpu.memory_space<vmem>>, %arg42: memref<25x2xbf16, #tpu.memory_space<vmem>>, %arg43: memref<1x2xf32, #tpu.memory_space<vmem>>, %arg44: memref<1x1x2xf32, #tpu.memory_space<vmem>>) attributes {dimension_semantics = [#tpu.dimension_semantics<parallel>], iteration_bounds = array<i64: 2>, scalar_prefetch = 0 : i64, scratch_operands = 0 : i64, tpu.core_type = #tpu.core_type<tc>, window_params = [{transform_indices = @transform_0, window_bounds = array<i64: 1, 64, 11>}, {pipeline_mode = #tpu.pipeline_mode<synchronous>, transform_indices = @transform_1, window_bounds = array<i64: 7, 11, 16>}, {pipeline_mode = #tpu.pipeline_mode<synchronous>, transform_indices = @transform_2, window_bounds = array<i64: 1, 16>}, {pipeline_mode = #tpu.pipeline_mode<synchronous>, transform_indices = @transform_3, window_bounds = array<i64: 32, 64>}, {pipeline_mode = #tpu.pipeline_mode<synchronous>, transform_indices = @transform_4, window_bounds = array<i64: 16, 32>}, {pipeline_mode = #tpu.pipeline_mode<synchronous>, transform_indices = @transform_5, window_bounds = array<i64: 144, 16>}, {pipeline_mode = #tpu.pipeline_mode<synchronous>, transform_indices = @transform_6, window_bounds = array<i64: 9, 16, 16>}, {pipeline_mode = #tpu.pipeline_mode<synchronous>, transform_indices = @transform_7, window_bounds = array<i64: 48, 64>}, {pipeline_mode = #tpu.pipeline_mode<synchronous>, transform_indices = @transform_8, window_bounds = array<i64: 16, 64>}, {pipeline_mode = #tpu.pipeline_mode<synchronous>, transform_indices = @transform_9, window_bounds = array<i64: 3, 2, 16>}, {pipeline_mode = #tpu.pipeline_mode<synchronous>, transform_indices = @transform_10, window_bounds = array<i64: 4, 1, 64>}, {pipeline_mode = #tpu.pipeline_mode<synchronous>, transform_indices = @transform_11, window_bounds = array<i64: 448, 32>}, {pipeline_mode = #tpu.pipeline_mode<synchronous>, transform_indices = @transform_12, window_bounds = array<i64: 12, 32, 32>}, {pipeline_mode = #tpu.pipeline_mode<synchronous>, transform_indices = @transform_13, window_bounds = array<i64: 128, 128>}, {pipeline_mode = #tpu.pipeline_mode<synchronous>, transform_indices = @transform_14, window_bounds = array<i64: 64, 128>}, {pipeline_mode = #tpu.pipeline_mode<synchronous>, transform_indices = @transform_15, window_bounds = array<i64: 4, 2, 32>}, {pipeline_mode = #tpu.pipeline_mode<synchronous>, transform_indices = @transform_16, window_bounds = array<i64: 5, 1, 128>}, {pipeline_mode = #tpu.pipeline_mode<synchronous>, transform_indices = @transform_17, window_bounds = array<i64: 8, 16>}, {pipeline_mode = #tpu.pipeline_mode<synchronous>, transform_indices = @transform_18, window_bounds = array<i64: 1408, 64>}, {pipeline_mode = #tpu.pipeline_mode<synchronous>, transform_indices = @transform_19, window_bounds = array<i64: 18, 64, 64>}, {pipeline_mode = #tpu.pipeline_mode<synchronous>, transform_indices = @transform_20, window_bounds = array<i64: 384, 256>}, {pipeline_mode = #tpu.pipeline_mode<synchronous>, transform_indices = @transform_21, window_bounds = array<i64: 128, 256>}, {pipeline_mode = #tpu.pipeline_mode<synchronous>, transform_indices = @transform_22, window_bounds = array<i64: 6, 2, 64>}, {pipeline_mode = #tpu.pipeline_mode<synchronous>, transform_indices = @transform_23, window_bounds = array<i64: 7, 1, 256>}, {pipeline_mode = #tpu.pipeline_mode<synchronous>, transform_indices = @transform_24, window_bounds = array<i64: 4, 8>}, {pipeline_mode = #tpu.pipeline_mode<synchronous>, transform_indices = @transform_25, window_bounds = array<i64: 1280, 128>}, {pipeline_mode = #tpu.pipeline_mode<synchronous>, transform_indices = @transform_26, window_bounds = array<i64: 9, 128, 128>}, {pipeline_mode = #tpu.pipeline_mode<synchronous>, transform_indices = @transform_27, window_bounds = array<i64: 384, 512>}, {pipeline_mode = #tpu.pipeline_mode<synchronous>, transform_indices = @transform_28, window_bounds = array<i64: 256, 512>}, {pipeline_mode = #tpu.pipeline_mode<synchronous>, transform_indices = @transform_29, window_bounds = array<i64: 3, 2, 128>}, {pipeline_mode = #tpu.pipeline_mode<synchronous>, transform_indices = @transform_30, window_bounds = array<i64: 4, 1, 512>}, {pipeline_mode = #tpu.pipeline_mode<synchronous>, transform_indices = @transform_31, window_bounds = array<i64: 2, 4>}, {pipeline_mode = #tpu.pipeline_mode<synchronous>, transform_indices = @transform_32, window_bounds = array<i64: 512, 75>}, {pipeline_mode = #tpu.pipeline_mode<synchronous>, transform_indices = @transform_33, window_bounds = array<i64: 1, 75>}, {pipeline_mode = #tpu.pipeline_mode<synchronous>, transform_indices = @transform_34, window_bounds = array<i64: 1, 25>}, {pipeline_mode = #tpu.pipeline_mode<synchronous>, transform_indices = @transform_35, window_bounds = array<i64: 25, 75>}, {pipeline_mode = #tpu.pipeline_mode<synchronous>, transform_indices = @transform_36, window_bounds = array<i64: 1, 75>}, {pipeline_mode = #tpu.pipeline_mode<synchronous>, transform_indices = @transform_37, window_bounds = array<i64: 1, 25>}, {pipeline_mode = #tpu.pipeline_mode<synchronous>, transform_indices = @transform_38, window_bounds = array<i64: 25, 75>}, {pipeline_mode = #tpu.pipeline_mode<synchronous>, transform_indices = @transform_39, window_bounds = array<i64: 1, 75>}, {pipeline_mode = #tpu.pipeline_mode<synchronous>, transform_indices = @transform_40, window_bounds = array<i64: 1, 25>}, {pipeline_mode = #tpu.pipeline_mode<synchronous>, transform_indices = @transform_41, window_bounds = array<i64: 25, 2>}, {pipeline_mode = #tpu.pipeline_mode<synchronous>, transform_indices = @transform_42, window_bounds = array<i64: 1, 2>}, {transform_indices = @transform_43, window_bounds = array<i64: 1, 1, 2>}]} {
    %c0 = arith.constant 0 : index
    %c0_0 = arith.constant 0 : index
    %c0_1 = arith.constant 0 : index
    %0 = vector.load %arg1[%c0, %c0_0, %c0_1] : memref<1x64x11xf32, #tpu.memory_space<vmem>>, vector<1x64x11xf32>
    %1 = vector.shape_cast %0 : vector<1x64x11xf32> to vector<64x11xf32>
    %2 = arith.truncf %1 : vector<64x11xf32> to vector<64x11xbf16>
    %cst = arith.constant 0.000000e+00 : bf16
    %3 = vector.broadcast %cst : bf16 to vector<3x11xbf16>
    %4 = tpu.concatenate %3, %2, %3 in 0 : vector<3x11xbf16>, vector<64x11xbf16>, vector<3x11xbf16> -> vector<70x11xbf16>
    %5 = vector.extract_strided_slice %4 {offsets = [0, 0], sizes = [64, 11], strides = [1, 1]} : vector<70x11xbf16> to vector<64x11xbf16>
    %c0_2 = arith.constant 0 : index
    %c0_3 = arith.constant 0 : index
    %c0_4 = arith.constant 0 : index
    %6 = vector.load %arg2[%c0_2, %c0_3, %c0_4] : memref<7x11x16xbf16, #tpu.memory_space<vmem>>, vector<1x11x16xbf16>
    %7 = vector.shape_cast %6 : vector<1x11x16xbf16> to vector<11x16xbf16>
    %cst_5 = arith.constant dense<0.000000e+00> : vector<64x16xf32>
    %8 = tpu.matmul %5, %7, %cst_5 {dimension_numbers = #tpu.dot_dimension_numbers<[1], [0], [0], [1], [0, 0, 1, 1], [], []>} : vector<64x11xbf16>, vector<11x16xbf16>, vector<64x16xf32> -> vector<64x16xf32>
    %9 = vector.extract_strided_slice %4 {offsets = [1, 0], sizes = [64, 11], strides = [1, 1]} : vector<70x11xbf16> to vector<64x11xbf16>
    %c1 = arith.constant 1 : index
    %c0_6 = arith.constant 0 : index
    %c0_7 = arith.constant 0 : index
    %10 = vector.load %arg2[%c1, %c0_6, %c0_7] : memref<7x11x16xbf16, #tpu.memory_space<vmem>>, vector<1x11x16xbf16>
    %11 = vector.shape_cast %10 : vector<1x11x16xbf16> to vector<11x16xbf16>
    %cst_8 = arith.constant dense<0.000000e+00> : vector<64x16xf32>
    %12 = tpu.matmul %9, %11, %cst_8 {dimension_numbers = #tpu.dot_dimension_numbers<[1], [0], [0], [1], [0, 0, 1, 1], [], []>} : vector<64x11xbf16>, vector<11x16xbf16>, vector<64x16xf32> -> vector<64x16xf32>
    %13 = arith.addf %8, %12 : vector<64x16xf32>
    %14 = vector.extract_strided_slice %4 {offsets = [2, 0], sizes = [64, 11], strides = [1, 1]} : vector<70x11xbf16> to vector<64x11xbf16>
    %c2 = arith.constant 2 : index
    %c0_9 = arith.constant 0 : index
    %c0_10 = arith.constant 0 : index
    %15 = vector.load %arg2[%c2, %c0_9, %c0_10] : memref<7x11x16xbf16, #tpu.memory_space<vmem>>, vector<1x11x16xbf16>
    %16 = vector.shape_cast %15 : vector<1x11x16xbf16> to vector<11x16xbf16>
    %cst_11 = arith.constant dense<0.000000e+00> : vector<64x16xf32>
    %17 = tpu.matmul %14, %16, %cst_11 {dimension_numbers = #tpu.dot_dimension_numbers<[1], [0], [0], [1], [0, 0, 1, 1], [], []>} : vector<64x11xbf16>, vector<11x16xbf16>, vector<64x16xf32> -> vector<64x16xf32>
    %18 = arith.addf %13, %17 : vector<64x16xf32>
    %19 = vector.extract_strided_slice %4 {offsets = [3, 0], sizes = [64, 11], strides = [1, 1]} : vector<70x11xbf16> to vector<64x11xbf16>
    %c3 = arith.constant 3 : index
    %c0_12 = arith.constant 0 : index
    %c0_13 = arith.constant 0 : index
    %20 = vector.load %arg2[%c3, %c0_12, %c0_13] : memref<7x11x16xbf16, #tpu.memory_space<vmem>>, vector<1x11x16xbf16>
    %21 = vector.shape_cast %20 : vector<1x11x16xbf16> to vector<11x16xbf16>
    %cst_14 = arith.constant dense<0.000000e+00> : vector<64x16xf32>
    %22 = tpu.matmul %19, %21, %cst_14 {dimension_numbers = #tpu.dot_dimension_numbers<[1], [0], [0], [1], [0, 0, 1, 1], [], []>} : vector<64x11xbf16>, vector<11x16xbf16>, vector<64x16xf32> -> vector<64x16xf32>
    %23 = arith.addf %18, %22 : vector<64x16xf32>
    %24 = vector.extract_strided_slice %4 {offsets = [4, 0], sizes = [64, 11], strides = [1, 1]} : vector<70x11xbf16> to vector<64x11xbf16>
    %c4 = arith.constant 4 : index
    %c0_15 = arith.constant 0 : index
    %c0_16 = arith.constant 0 : index
    %25 = vector.load %arg2[%c4, %c0_15, %c0_16] : memref<7x11x16xbf16, #tpu.memory_space<vmem>>, vector<1x11x16xbf16>
    %26 = vector.shape_cast %25 : vector<1x11x16xbf16> to vector<11x16xbf16>
    %cst_17 = arith.constant dense<0.000000e+00> : vector<64x16xf32>
    %27 = tpu.matmul %24, %26, %cst_17 {dimension_numbers = #tpu.dot_dimension_numbers<[1], [0], [0], [1], [0, 0, 1, 1], [], []>} : vector<64x11xbf16>, vector<11x16xbf16>, vector<64x16xf32> -> vector<64x16xf32>
    %28 = arith.addf %23, %27 : vector<64x16xf32>
    %29 = vector.extract_strided_slice %4 {offsets = [5, 0], sizes = [64, 11], strides = [1, 1]} : vector<70x11xbf16> to vector<64x11xbf16>
    %c5 = arith.constant 5 : index
    %c0_18 = arith.constant 0 : index
    %c0_19 = arith.constant 0 : index
    %30 = vector.load %arg2[%c5, %c0_18, %c0_19] : memref<7x11x16xbf16, #tpu.memory_space<vmem>>, vector<1x11x16xbf16>
    %31 = vector.shape_cast %30 : vector<1x11x16xbf16> to vector<11x16xbf16>
    %cst_20 = arith.constant dense<0.000000e+00> : vector<64x16xf32>
    %32 = tpu.matmul %29, %31, %cst_20 {dimension_numbers = #tpu.dot_dimension_numbers<[1], [0], [0], [1], [0, 0, 1, 1], [], []>} : vector<64x11xbf16>, vector<11x16xbf16>, vector<64x16xf32> -> vector<64x16xf32>
    %33 = arith.addf %28, %32 : vector<64x16xf32>
    %34 = vector.extract_strided_slice %4 {offsets = [6, 0], sizes = [64, 11], strides = [1, 1]} : vector<70x11xbf16> to vector<64x11xbf16>
    %c6 = arith.constant 6 : index
    %c0_21 = arith.constant 0 : index
    %c0_22 = arith.constant 0 : index
    %35 = vector.load %arg2[%c6, %c0_21, %c0_22] : memref<7x11x16xbf16, #tpu.memory_space<vmem>>, vector<1x11x16xbf16>
    %36 = vector.shape_cast %35 : vector<1x11x16xbf16> to vector<11x16xbf16>
    %cst_23 = arith.constant dense<0.000000e+00> : vector<64x16xf32>
    %37 = tpu.matmul %34, %36, %cst_23 {dimension_numbers = #tpu.dot_dimension_numbers<[1], [0], [0], [1], [0, 0, 1, 1], [], []>} : vector<64x11xbf16>, vector<11x16xbf16>, vector<64x16xf32> -> vector<64x16xf32>
    %38 = arith.addf %33, %37 : vector<64x16xf32>
    %c0_24 = arith.constant 0 : index
    %c0_25 = arith.constant 0 : index
    %39 = vector.load %arg4[%c0_24, %c0_25] : memref<32x64xf32, #tpu.memory_space<vmem>>, vector<32x64xf32>
    %cst_26 = arith.constant dense<0.000000e+00> : vector<32x16xf32>
    %40 = tpu.matmul %39, %38, %cst_26 {dimension_numbers = #tpu.dot_dimension_numbers<[1], [0], [0], [1], [0, 0, 1, 1], [], []>} : vector<32x64xf32>, vector<64x16xf32>, vector<32x16xf32> -> vector<32x16xf32>
    %c0_27 = arith.constant 0 : index
    %c0_28 = arith.constant 0 : index
    %41 = vector.load %arg3[%c0_27, %c0_28] : memref<1x16xf32, #tpu.memory_space<vmem>>, vector<1x16xf32>
    %42 = vector.broadcast %41 : vector<1x16xf32> to vector<32x16xf32>
    %43 = arith.addf %40, %42 : vector<32x16xf32>
    %cst_29 = arith.constant 0.000000e+00 : f32
    %44 = vector.broadcast %cst_29 : f32 to vector<32x16xf32>
    %45 = arith.maximumf %43, %44 : vector<32x16xf32>
    %cst_30 = arith.constant 0.000000e+00 : f32
    %46 = vector.broadcast %cst_30 : f32 to vector<1x16xf32>
    %47 = tpu.concatenate %46, %45, %46 in 0 : vector<1x16xf32>, vector<32x16xf32>, vector<1x16xf32> -> vector<34x16xf32>
    %48 = vector.extract_strided_slice %47 {offsets = [0, 0], sizes = [32, 16], strides = [1, 1]} : vector<34x16xf32> to vector<32x16xf32>
    %49 = vector.extract_strided_slice %47 {offsets = [1, 0], sizes = [32, 16], strides = [1, 1]} : vector<34x16xf32> to vector<32x16xf32>
    %50 = arith.maximumf %48, %49 : vector<32x16xf32>
    %51 = vector.extract_strided_slice %47 {offsets = [2, 0], sizes = [32, 16], strides = [1, 1]} : vector<34x16xf32> to vector<32x16xf32>
    %52 = arith.maximumf %50, %51 : vector<32x16xf32>
    %c0_31 = arith.constant 0 : index
    %c0_32 = arith.constant 0 : index
    %53 = vector.load %arg5[%c0_31, %c0_32] : memref<16x32xf32, #tpu.memory_space<vmem>>, vector<16x32xf32>
    %cst_33 = arith.constant dense<0.000000e+00> : vector<16x16xf32>
    %54 = tpu.matmul %53, %52, %cst_33 {dimension_numbers = #tpu.dot_dimension_numbers<[1], [0], [0], [1], [0, 0, 1, 1], [], []>} : vector<16x32xf32>, vector<32x16xf32>, vector<16x16xf32> -> vector<16x16xf32>
    %c0_34 = arith.constant 0 : index
    %c0_35 = arith.constant 0 : index
    %c0_36 = arith.constant 0 : index
    %55 = vector.load %arg10[%c0_34, %c0_35, %c0_36] : memref<3x2x16xf32, #tpu.memory_space<vmem>>, vector<1x2x16xf32>
    %56 = vector.shape_cast %55 : vector<1x2x16xf32> to vector<2x16xf32>
    %57 = arith.truncf %54 : vector<16x16xf32> to vector<16x16xbf16>
    %c0_37 = arith.constant 0 : index
    %c0_38 = arith.constant 0 : index
    %58 = vector.load %arg6[%c0_37, %c0_38] : memref<144x16xbf16, #tpu.memory_space<vmem>>, vector<16x16xbf16>
    %cst_39 = arith.constant dense<0.000000e+00> : vector<16x16xf32>
    %59 = tpu.matmul %57, %58, %cst_39 {dimension_numbers = #tpu.dot_dimension_numbers<[1], [0], [0], [1], [0, 0, 1, 1], [], []>} : vector<16x16xbf16>, vector<16x16xbf16>, vector<16x16xf32> -> vector<16x16xf32>
    %60 = vector.extract_strided_slice %56 {offsets = [0, 0], sizes = [1, 16], strides = [1, 1]} : vector<2x16xf32> to vector<1x16xf32>
    %61 = vector.broadcast %60 : vector<1x16xf32> to vector<16x16xf32>
    %62 = arith.addf %59, %61 : vector<16x16xf32>
    %cst_40 = arith.constant 0.000000e+00 : f32
    %63 = vector.broadcast %cst_40 : f32 to vector<16x16xf32>
    %64 = arith.maximumf %62, %63 : vector<16x16xf32>
    %65 = arith.truncf %64 : vector<16x16xf32> to vector<16x16xbf16>
    %cst_41 = arith.constant 0.000000e+00 : bf16
    %66 = vector.broadcast %cst_41 : bf16 to vector<1x16xbf16>
    %67 = tpu.concatenate %66, %65, %66 in 0 : vector<1x16xbf16>, vector<16x16xbf16>, vector<1x16xbf16> -> vector<18x16xbf16>
    %68 = vector.extract_strided_slice %67 {offsets = [0, 0], sizes = [16, 16], strides = [1, 1]} : vector<18x16xbf16> to vector<16x16xbf16>
    %c0_42 = arith.constant 0 : index
    %c0_43 = arith.constant 0 : index
    %c0_44 = arith.constant 0 : index
    %69 = vector.load %arg7[%c0_42, %c0_43, %c0_44] : memref<9x16x16xbf16, #tpu.memory_space<vmem>>, vector<1x16x16xbf16>
    %70 = vector.shape_cast %69 : vector<1x16x16xbf16> to vector<16x16xbf16>
    %cst_45 = arith.constant dense<0.000000e+00> : vector<16x16xf32>
    %71 = tpu.matmul %68, %70, %cst_45 {dimension_numbers = #tpu.dot_dimension_numbers<[1], [0], [0], [1], [0, 0, 1, 1], [], []>} : vector<16x16xbf16>, vector<16x16xbf16>, vector<16x16xf32> -> vector<16x16xf32>
    %72 = vector.extract_strided_slice %67 {offsets = [1, 0], sizes = [16, 16], strides = [1, 1]} : vector<18x16xbf16> to vector<16x16xbf16>
    %c1_46 = arith.constant 1 : index
    %c0_47 = arith.constant 0 : index
    %c0_48 = arith.constant 0 : index
    %73 = vector.load %arg7[%c1_46, %c0_47, %c0_48] : memref<9x16x16xbf16, #tpu.memory_space<vmem>>, vector<1x16x16xbf16>
    %74 = vector.shape_cast %73 : vector<1x16x16xbf16> to vector<16x16xbf16>
    %cst_49 = arith.constant dense<0.000000e+00> : vector<16x16xf32>
    %75 = tpu.matmul %72, %74, %cst_49 {dimension_numbers = #tpu.dot_dimension_numbers<[1], [0], [0], [1], [0, 0, 1, 1], [], []>} : vector<16x16xbf16>, vector<16x16xbf16>, vector<16x16xf32> -> vector<16x16xf32>
    %76 = arith.addf %71, %75 : vector<16x16xf32>
    %77 = vector.extract_strided_slice %67 {offsets = [2, 0], sizes = [16, 16], strides = [1, 1]} : vector<18x16xbf16> to vector<16x16xbf16>
    %c2_50 = arith.constant 2 : index
    %c0_51 = arith.constant 0 : index
    %c0_52 = arith.constant 0 : index
    %78 = vector.load %arg7[%c2_50, %c0_51, %c0_52] : memref<9x16x16xbf16, #tpu.memory_space<vmem>>, vector<1x16x16xbf16>
    %79 = vector.shape_cast %78 : vector<1x16x16xbf16> to vector<16x16xbf16>
    %cst_53 = arith.constant dense<0.000000e+00> : vector<16x16xf32>
    %80 = tpu.matmul %77, %79, %cst_53 {dimension_numbers = #tpu.dot_dimension_numbers<[1], [0], [0], [1], [0, 0, 1, 1], [], []>} : vector<16x16xbf16>, vector<16x16xbf16>, vector<16x16xf32> -> vector<16x16xf32>
    %81 = arith.addf %76, %80 : vector<16x16xf32>
    %82 = vector.extract_strided_slice %56 {offsets = [1, 0], sizes = [1, 16], strides = [1, 1]} : vector<2x16xf32> to vector<1x16xf32>
    %83 = vector.broadcast %82 : vector<1x16xf32> to vector<16x16xf32>
    %84 = arith.addf %81, %83 : vector<16x16xf32>
    %cst_54 = arith.constant 0.000000e+00 : f32
    %85 = vector.broadcast %cst_54 : f32 to vector<16x16xf32>
    %86 = arith.maximumf %84, %85 : vector<16x16xf32>
    %87 = arith.truncf %86 : vector<16x16xf32> to vector<16x16xbf16>
    %c0_55 = arith.constant 0 : index
    %c0_56 = arith.constant 0 : index
    %88 = vector.load %arg8[%c0_55, %c0_56] : memref<48x64xbf16, #tpu.memory_space<vmem>>, vector<16x64xbf16>
    %cst_57 = arith.constant dense<0.000000e+00> : vector<16x64xf32>
    %89 = tpu.matmul %87, %88, %cst_57 {dimension_numbers = #tpu.dot_dimension_numbers<[1], [0], [0], [1], [0, 0, 1, 1], [], []>} : vector<16x16xbf16>, vector<16x64xbf16>, vector<16x64xf32> -> vector<16x64xf32>
    %c0_58 = arith.constant 0 : index
    %c0_59 = arith.constant 0 : index
    %c0_60 = arith.constant 0 : index
    %90 = vector.load %arg11[%c0_58, %c0_59, %c0_60] : memref<4x1x64xf32, #tpu.memory_space<vmem>>, vector<1x1x64xf32>
    %91 = vector.shape_cast %90 : vector<1x1x64xf32> to vector<1x64xf32>
    %92 = vector.broadcast %91 : vector<1x64xf32> to vector<16x64xf32>
    %93 = arith.addf %89, %92 : vector<16x64xf32>
    %94 = arith.truncf %54 : vector<16x16xf32> to vector<16x16xbf16>
    %c0_61 = arith.constant 0 : index
    %c0_62 = arith.constant 0 : index
    %95 = vector.load %arg9[%c0_61, %c0_62] : memref<16x64xbf16, #tpu.memory_space<vmem>>, vector<16x64xbf16>
    %cst_63 = arith.constant dense<0.000000e+00> : vector<16x64xf32>
    %96 = tpu.matmul %94, %95, %cst_63 {dimension_numbers = #tpu.dot_dimension_numbers<[1], [0], [0], [1], [0, 0, 1, 1], [], []>} : vector<16x16xbf16>, vector<16x64xbf16>, vector<16x64xf32> -> vector<16x64xf32>
    %c3_64 = arith.constant 3 : index
    %c0_65 = arith.constant 0 : index
    %c0_66 = arith.constant 0 : index
    %97 = vector.load %arg11[%c3_64, %c0_65, %c0_66] : memref<4x1x64xf32, #tpu.memory_space<vmem>>, vector<1x1x64xf32>
    %98 = vector.shape_cast %97 : vector<1x1x64xf32> to vector<1x64xf32>
    %99 = vector.broadcast %98 : vector<1x64xf32> to vector<16x64xf32>
    %100 = arith.addf %96, %99 : vector<16x64xf32>
    %101 = arith.addf %93, %100 : vector<16x64xf32>
    %cst_67 = arith.constant 0.000000e+00 : f32
    %102 = vector.broadcast %cst_67 : f32 to vector<16x64xf32>
    %103 = arith.maximumf %101, %102 : vector<16x64xf32>
    %c1_68 = arith.constant 1 : index
    %c0_69 = arith.constant 0 : index
    %c0_70 = arith.constant 0 : index
    %104 = vector.load %arg10[%c1_68, %c0_69, %c0_70] : memref<3x2x16xf32, #tpu.memory_space<vmem>>, vector<1x2x16xf32>
    %105 = vector.shape_cast %104 : vector<1x2x16xf32> to vector<2x16xf32>
    %106 = arith.truncf %103 : vector<16x64xf32> to vector<16x64xbf16>
    %c16 = arith.constant 16 : index
    %c0_71 = arith.constant 0 : index
    %107 = vector.load %arg6[%c16, %c0_71] : memref<144x16xbf16, #tpu.memory_space<vmem>>, vector<64x16xbf16>
    %cst_72 = arith.constant dense<0.000000e+00> : vector<16x16xf32>
    %108 = tpu.matmul %106, %107, %cst_72 {dimension_numbers = #tpu.dot_dimension_numbers<[1], [0], [0], [1], [0, 0, 1, 1], [], []>} : vector<16x64xbf16>, vector<64x16xbf16>, vector<16x16xf32> -> vector<16x16xf32>
    %109 = vector.extract_strided_slice %105 {offsets = [0, 0], sizes = [1, 16], strides = [1, 1]} : vector<2x16xf32> to vector<1x16xf32>
    %110 = vector.broadcast %109 : vector<1x16xf32> to vector<16x16xf32>
    %111 = arith.addf %108, %110 : vector<16x16xf32>
    %cst_73 = arith.constant 0.000000e+00 : f32
    %112 = vector.broadcast %cst_73 : f32 to vector<16x16xf32>
    %113 = arith.maximumf %111, %112 : vector<16x16xf32>
    %114 = arith.truncf %113 : vector<16x16xf32> to vector<16x16xbf16>
    %cst_74 = arith.constant 0.000000e+00 : bf16
    %115 = vector.broadcast %cst_74 : bf16 to vector<1x16xbf16>
    %116 = tpu.concatenate %115, %114, %115 in 0 : vector<1x16xbf16>, vector<16x16xbf16>, vector<1x16xbf16> -> vector<18x16xbf16>
    %117 = vector.extract_strided_slice %116 {offsets = [0, 0], sizes = [16, 16], strides = [1, 1]} : vector<18x16xbf16> to vector<16x16xbf16>
    %c3_75 = arith.constant 3 : index
    %c0_76 = arith.constant 0 : index
    %c0_77 = arith.constant 0 : index
    %118 = vector.load %arg7[%c3_75, %c0_76, %c0_77] : memref<9x16x16xbf16, #tpu.memory_space<vmem>>, vector<1x16x16xbf16>
    %119 = vector.shape_cast %118 : vector<1x16x16xbf16> to vector<16x16xbf16>
    %cst_78 = arith.constant dense<0.000000e+00> : vector<16x16xf32>
    %120 = tpu.matmul %117, %119, %cst_78 {dimension_numbers = #tpu.dot_dimension_numbers<[1], [0], [0], [1], [0, 0, 1, 1], [], []>} : vector<16x16xbf16>, vector<16x16xbf16>, vector<16x16xf32> -> vector<16x16xf32>
    %121 = vector.extract_strided_slice %116 {offsets = [1, 0], sizes = [16, 16], strides = [1, 1]} : vector<18x16xbf16> to vector<16x16xbf16>
    %c4_79 = arith.constant 4 : index
    %c0_80 = arith.constant 0 : index
    %c0_81 = arith.constant 0 : index
    %122 = vector.load %arg7[%c4_79, %c0_80, %c0_81] : memref<9x16x16xbf16, #tpu.memory_space<vmem>>, vector<1x16x16xbf16>
    %123 = vector.shape_cast %122 : vector<1x16x16xbf16> to vector<16x16xbf16>
    %cst_82 = arith.constant dense<0.000000e+00> : vector<16x16xf32>
    %124 = tpu.matmul %121, %123, %cst_82 {dimension_numbers = #tpu.dot_dimension_numbers<[1], [0], [0], [1], [0, 0, 1, 1], [], []>} : vector<16x16xbf16>, vector<16x16xbf16>, vector<16x16xf32> -> vector<16x16xf32>
    %125 = arith.addf %120, %124 : vector<16x16xf32>
    %126 = vector.extract_strided_slice %116 {offsets = [2, 0], sizes = [16, 16], strides = [1, 1]} : vector<18x16xbf16> to vector<16x16xbf16>
    %c5_83 = arith.constant 5 : index
    %c0_84 = arith.constant 0 : index
    %c0_85 = arith.constant 0 : index
    %127 = vector.load %arg7[%c5_83, %c0_84, %c0_85] : memref<9x16x16xbf16, #tpu.memory_space<vmem>>, vector<1x16x16xbf16>
    %128 = vector.shape_cast %127 : vector<1x16x16xbf16> to vector<16x16xbf16>
    %cst_86 = arith.constant dense<0.000000e+00> : vector<16x16xf32>
    %129 = tpu.matmul %126, %128, %cst_86 {dimension_numbers = #tpu.dot_dimension_numbers<[1], [0], [0], [1], [0, 0, 1, 1], [], []>} : vector<16x16xbf16>, vector<16x16xbf16>, vector<16x16xf32> -> vector<16x16xf32>
    %130 = arith.addf %125, %129 : vector<16x16xf32>
    %131 = vector.extract_strided_slice %105 {offsets = [1, 0], sizes = [1, 16], strides = [1, 1]} : vector<2x16xf32> to vector<1x16xf32>
    %132 = vector.broadcast %131 : vector<1x16xf32> to vector<16x16xf32>
    %133 = arith.addf %130, %132 : vector<16x16xf32>
    %cst_87 = arith.constant 0.000000e+00 : f32
    %134 = vector.broadcast %cst_87 : f32 to vector<16x16xf32>
    %135 = arith.maximumf %133, %134 : vector<16x16xf32>
    %136 = arith.truncf %135 : vector<16x16xf32> to vector<16x16xbf16>
    %c16_88 = arith.constant 16 : index
    %c0_89 = arith.constant 0 : index
    %137 = vector.load %arg8[%c16_88, %c0_89] : memref<48x64xbf16, #tpu.memory_space<vmem>>, vector<16x64xbf16>
    %cst_90 = arith.constant dense<0.000000e+00> : vector<16x64xf32>
    %138 = tpu.matmul %136, %137, %cst_90 {dimension_numbers = #tpu.dot_dimension_numbers<[1], [0], [0], [1], [0, 0, 1, 1], [], []>} : vector<16x16xbf16>, vector<16x64xbf16>, vector<16x64xf32> -> vector<16x64xf32>
    %c1_91 = arith.constant 1 : index
    %c0_92 = arith.constant 0 : index
    %c0_93 = arith.constant 0 : index
    %139 = vector.load %arg11[%c1_91, %c0_92, %c0_93] : memref<4x1x64xf32, #tpu.memory_space<vmem>>, vector<1x1x64xf32>
    %140 = vector.shape_cast %139 : vector<1x1x64xf32> to vector<1x64xf32>
    %141 = vector.broadcast %140 : vector<1x64xf32> to vector<16x64xf32>
    %142 = arith.addf %138, %141 : vector<16x64xf32>
    %143 = arith.addf %142, %103 : vector<16x64xf32>
    %cst_94 = arith.constant 0.000000e+00 : f32
    %144 = vector.broadcast %cst_94 : f32 to vector<16x64xf32>
    %145 = arith.maximumf %143, %144 : vector<16x64xf32>
    %c2_95 = arith.constant 2 : index
    %c0_96 = arith.constant 0 : index
    %c0_97 = arith.constant 0 : index
    %146 = vector.load %arg10[%c2_95, %c0_96, %c0_97] : memref<3x2x16xf32, #tpu.memory_space<vmem>>, vector<1x2x16xf32>
    %147 = vector.shape_cast %146 : vector<1x2x16xf32> to vector<2x16xf32>
    %148 = arith.truncf %145 : vector<16x64xf32> to vector<16x64xbf16>
    %c80 = arith.constant 80 : index
    %c0_98 = arith.constant 0 : index
    %149 = vector.load %arg6[%c80, %c0_98] : memref<144x16xbf16, #tpu.memory_space<vmem>>, vector<64x16xbf16>
    %cst_99 = arith.constant dense<0.000000e+00> : vector<16x16xf32>
    %150 = tpu.matmul %148, %149, %cst_99 {dimension_numbers = #tpu.dot_dimension_numbers<[1], [0], [0], [1], [0, 0, 1, 1], [], []>} : vector<16x64xbf16>, vector<64x16xbf16>, vector<16x16xf32> -> vector<16x16xf32>
    %151 = vector.extract_strided_slice %147 {offsets = [0, 0], sizes = [1, 16], strides = [1, 1]} : vector<2x16xf32> to vector<1x16xf32>
    %152 = vector.broadcast %151 : vector<1x16xf32> to vector<16x16xf32>
    %153 = arith.addf %150, %152 : vector<16x16xf32>
    %cst_100 = arith.constant 0.000000e+00 : f32
    %154 = vector.broadcast %cst_100 : f32 to vector<16x16xf32>
    %155 = arith.maximumf %153, %154 : vector<16x16xf32>
    %156 = arith.truncf %155 : vector<16x16xf32> to vector<16x16xbf16>
    %cst_101 = arith.constant 0.000000e+00 : bf16
    %157 = vector.broadcast %cst_101 : bf16 to vector<1x16xbf16>
    %158 = tpu.concatenate %157, %156, %157 in 0 : vector<1x16xbf16>, vector<16x16xbf16>, vector<1x16xbf16> -> vector<18x16xbf16>
    %159 = vector.extract_strided_slice %158 {offsets = [0, 0], sizes = [16, 16], strides = [1, 1]} : vector<18x16xbf16> to vector<16x16xbf16>
    %c6_102 = arith.constant 6 : index
    %c0_103 = arith.constant 0 : index
    %c0_104 = arith.constant 0 : index
    %160 = vector.load %arg7[%c6_102, %c0_103, %c0_104] : memref<9x16x16xbf16, #tpu.memory_space<vmem>>, vector<1x16x16xbf16>
    %161 = vector.shape_cast %160 : vector<1x16x16xbf16> to vector<16x16xbf16>
    %cst_105 = arith.constant dense<0.000000e+00> : vector<16x16xf32>
    %162 = tpu.matmul %159, %161, %cst_105 {dimension_numbers = #tpu.dot_dimension_numbers<[1], [0], [0], [1], [0, 0, 1, 1], [], []>} : vector<16x16xbf16>, vector<16x16xbf16>, vector<16x16xf32> -> vector<16x16xf32>
    %163 = vector.extract_strided_slice %158 {offsets = [1, 0], sizes = [16, 16], strides = [1, 1]} : vector<18x16xbf16> to vector<16x16xbf16>
    %c7 = arith.constant 7 : index
    %c0_106 = arith.constant 0 : index
    %c0_107 = arith.constant 0 : index
    %164 = vector.load %arg7[%c7, %c0_106, %c0_107] : memref<9x16x16xbf16, #tpu.memory_space<vmem>>, vector<1x16x16xbf16>
    %165 = vector.shape_cast %164 : vector<1x16x16xbf16> to vector<16x16xbf16>
    %cst_108 = arith.constant dense<0.000000e+00> : vector<16x16xf32>
    %166 = tpu.matmul %163, %165, %cst_108 {dimension_numbers = #tpu.dot_dimension_numbers<[1], [0], [0], [1], [0, 0, 1, 1], [], []>} : vector<16x16xbf16>, vector<16x16xbf16>, vector<16x16xf32> -> vector<16x16xf32>
    %167 = arith.addf %162, %166 : vector<16x16xf32>
    %168 = vector.extract_strided_slice %158 {offsets = [2, 0], sizes = [16, 16], strides = [1, 1]} : vector<18x16xbf16> to vector<16x16xbf16>
    %c8 = arith.constant 8 : index
    %c0_109 = arith.constant 0 : index
    %c0_110 = arith.constant 0 : index
    %169 = vector.load %arg7[%c8, %c0_109, %c0_110] : memref<9x16x16xbf16, #tpu.memory_space<vmem>>, vector<1x16x16xbf16>
    %170 = vector.shape_cast %169 : vector<1x16x16xbf16> to vector<16x16xbf16>
    %cst_111 = arith.constant dense<0.000000e+00> : vector<16x16xf32>
    %171 = tpu.matmul %168, %170, %cst_111 {dimension_numbers = #tpu.dot_dimension_numbers<[1], [0], [0], [1], [0, 0, 1, 1], [], []>} : vector<16x16xbf16>, vector<16x16xbf16>, vector<16x16xf32> -> vector<16x16xf32>
    %172 = arith.addf %167, %171 : vector<16x16xf32>
    %173 = vector.extract_strided_slice %147 {offsets = [1, 0], sizes = [1, 16], strides = [1, 1]} : vector<2x16xf32> to vector<1x16xf32>
    %174 = vector.broadcast %173 : vector<1x16xf32> to vector<16x16xf32>
    %175 = arith.addf %172, %174 : vector<16x16xf32>
    %cst_112 = arith.constant 0.000000e+00 : f32
    %176 = vector.broadcast %cst_112 : f32 to vector<16x16xf32>
    %177 = arith.maximumf %175, %176 : vector<16x16xf32>
    %178 = arith.truncf %177 : vector<16x16xf32> to vector<16x16xbf16>
    %c32 = arith.constant 32 : index
    %c0_113 = arith.constant 0 : index
    %179 = vector.load %arg8[%c32, %c0_113] : memref<48x64xbf16, #tpu.memory_space<vmem>>, vector<16x64xbf16>
    %cst_114 = arith.constant dense<0.000000e+00> : vector<16x64xf32>
    %180 = tpu.matmul %178, %179, %cst_114 {dimension_numbers = #tpu.dot_dimension_numbers<[1], [0], [0], [1], [0, 0, 1, 1], [], []>} : vector<16x16xbf16>, vector<16x64xbf16>, vector<16x64xf32> -> vector<16x64xf32>
    %c2_115 = arith.constant 2 : index
    %c0_116 = arith.constant 0 : index
    %c0_117 = arith.constant 0 : index
    %181 = vector.load %arg11[%c2_115, %c0_116, %c0_117] : memref<4x1x64xf32, #tpu.memory_space<vmem>>, vector<1x1x64xf32>
    %182 = vector.shape_cast %181 : vector<1x1x64xf32> to vector<1x64xf32>
    %183 = vector.broadcast %182 : vector<1x64xf32> to vector<16x64xf32>
    %184 = arith.addf %180, %183 : vector<16x64xf32>
    %185 = arith.addf %184, %145 : vector<16x64xf32>
    %cst_118 = arith.constant 0.000000e+00 : f32
    %186 = vector.broadcast %cst_118 : f32 to vector<16x64xf32>
    %187 = arith.maximumf %185, %186 : vector<16x64xf32>
    %c0_119 = arith.constant 0 : index
    %c0_120 = arith.constant 0 : index
    %188 = vector.load %arg18[%c0_119, %c0_120] : memref<8x16xf32, #tpu.memory_space<vmem>>, vector<8x16xf32>
    %c0_121 = arith.constant 0 : index
    %c0_122 = arith.constant 0 : index
    %c0_123 = arith.constant 0 : index
    %189 = vector.load %arg16[%c0_121, %c0_122, %c0_123] : memref<4x2x32xf32, #tpu.memory_space<vmem>>, vector<1x2x32xf32>
    %190 = vector.shape_cast %189 : vector<1x2x32xf32> to vector<2x32xf32>
    %191 = arith.truncf %187 : vector<16x64xf32> to vector<16x64xbf16>
    %c0_124 = arith.constant 0 : index
    %c0_125 = arith.constant 0 : index
    %192 = vector.load %arg12[%c0_124, %c0_125] : memref<448x32xbf16, #tpu.memory_space<vmem>>, vector<64x32xbf16>
    %cst_126 = arith.constant dense<0.000000e+00> : vector<16x32xf32>
    %193 = tpu.matmul %191, %192, %cst_126 {dimension_numbers = #tpu.dot_dimension_numbers<[1], [0], [0], [1], [0, 0, 1, 1], [], []>} : vector<16x64xbf16>, vector<64x32xbf16>, vector<16x32xf32> -> vector<16x32xf32>
    %194 = vector.extract_strided_slice %190 {offsets = [0, 0], sizes = [1, 32], strides = [1, 1]} : vector<2x32xf32> to vector<1x32xf32>
    %195 = vector.broadcast %194 : vector<1x32xf32> to vector<16x32xf32>
    %196 = arith.addf %193, %195 : vector<16x32xf32>
    %cst_127 = arith.constant 0.000000e+00 : f32
    %197 = vector.broadcast %cst_127 : f32 to vector<16x32xf32>
    %198 = arith.maximumf %196, %197 : vector<16x32xf32>
    %199 = arith.truncf %198 : vector<16x32xf32> to vector<16x32xbf16>
    %cst_128 = arith.constant 0.000000e+00 : bf16
    %200 = vector.broadcast %cst_128 : bf16 to vector<1x32xbf16>
    %201 = tpu.concatenate %200, %199, %200 in 0 : vector<1x32xbf16>, vector<16x32xbf16>, vector<1x32xbf16> -> vector<18x32xbf16>
    %202 = vector.extract_strided_slice %201 {offsets = [0, 0], sizes = [16, 32], strides = [1, 1]} : vector<18x32xbf16> to vector<16x32xbf16>
    %c0_129 = arith.constant 0 : index
    %c0_130 = arith.constant 0 : index
    %c0_131 = arith.constant 0 : index
    %203 = vector.load %arg13[%c0_129, %c0_130, %c0_131] : memref<12x32x32xbf16, #tpu.memory_space<vmem>>, vector<1x32x32xbf16>
    %204 = vector.shape_cast %203 : vector<1x32x32xbf16> to vector<32x32xbf16>
    %cst_132 = arith.constant dense<0.000000e+00> : vector<16x32xf32>
    %205 = tpu.matmul %202, %204, %cst_132 {dimension_numbers = #tpu.dot_dimension_numbers<[1], [0], [0], [1], [0, 0, 1, 1], [], []>} : vector<16x32xbf16>, vector<32x32xbf16>, vector<16x32xf32> -> vector<16x32xf32>
    %206 = vector.extract_strided_slice %201 {offsets = [1, 0], sizes = [16, 32], strides = [1, 1]} : vector<18x32xbf16> to vector<16x32xbf16>
    %c1_133 = arith.constant 1 : index
    %c0_134 = arith.constant 0 : index
    %c0_135 = arith.constant 0 : index
    %207 = vector.load %arg13[%c1_133, %c0_134, %c0_135] : memref<12x32x32xbf16, #tpu.memory_space<vmem>>, vector<1x32x32xbf16>
    %208 = vector.shape_cast %207 : vector<1x32x32xbf16> to vector<32x32xbf16>
    %cst_136 = arith.constant dense<0.000000e+00> : vector<16x32xf32>
    %209 = tpu.matmul %206, %208, %cst_136 {dimension_numbers = #tpu.dot_dimension_numbers<[1], [0], [0], [1], [0, 0, 1, 1], [], []>} : vector<16x32xbf16>, vector<32x32xbf16>, vector<16x32xf32> -> vector<16x32xf32>
    %210 = arith.addf %205, %209 : vector<16x32xf32>
    %211 = vector.extract_strided_slice %201 {offsets = [2, 0], sizes = [16, 32], strides = [1, 1]} : vector<18x32xbf16> to vector<16x32xbf16>
    %c2_137 = arith.constant 2 : index
    %c0_138 = arith.constant 0 : index
    %c0_139 = arith.constant 0 : index
    %212 = vector.load %arg13[%c2_137, %c0_138, %c0_139] : memref<12x32x32xbf16, #tpu.memory_space<vmem>>, vector<1x32x32xbf16>
    %213 = vector.shape_cast %212 : vector<1x32x32xbf16> to vector<32x32xbf16>
    %cst_140 = arith.constant dense<0.000000e+00> : vector<16x32xf32>
    %214 = tpu.matmul %211, %213, %cst_140 {dimension_numbers = #tpu.dot_dimension_numbers<[1], [0], [0], [1], [0, 0, 1, 1], [], []>} : vector<16x32xbf16>, vector<32x32xbf16>, vector<16x32xf32> -> vector<16x32xf32>
    %215 = arith.addf %210, %214 : vector<16x32xf32>
    %cst_141 = arith.constant dense<0.000000e+00> : vector<8x32xf32>
    %216 = tpu.matmul %188, %215, %cst_141 {dimension_numbers = #tpu.dot_dimension_numbers<[1], [0], [0], [1], [0, 0, 1, 1], [], []>} : vector<8x16xf32>, vector<16x32xf32>, vector<8x32xf32> -> vector<8x32xf32>
    %217 = vector.extract_strided_slice %190 {offsets = [1, 0], sizes = [1, 32], strides = [1, 1]} : vector<2x32xf32> to vector<1x32xf32>
    %218 = vector.broadcast %217 : vector<1x32xf32> to vector<8x32xf32>
    %219 = arith.addf %216, %218 : vector<8x32xf32>
    %cst_142 = arith.constant 0.000000e+00 : f32
    %220 = vector.broadcast %cst_142 : f32 to vector<8x32xf32>
    %221 = arith.maximumf %219, %220 : vector<8x32xf32>
    %222 = arith.truncf %221 : vector<8x32xf32> to vector<8x32xbf16>
    %c0_143 = arith.constant 0 : index
    %c0_144 = arith.constant 0 : index
    %223 = vector.load %arg14[%c0_143, %c0_144] : memref<128x128xbf16, #tpu.memory_space<vmem>>, vector<32x128xbf16>
    %cst_145 = arith.constant dense<0.000000e+00> : vector<8x128xf32>
    %224 = tpu.matmul %222, %223, %cst_145 {dimension_numbers = #tpu.dot_dimension_numbers<[1], [0], [0], [1], [0, 0, 1, 1], [], []>} : vector<8x32xbf16>, vector<32x128xbf16>, vector<8x128xf32> -> vector<8x128xf32>
    %c0_146 = arith.constant 0 : index
    %c0_147 = arith.constant 0 : index
    %c0_148 = arith.constant 0 : index
    %225 = vector.load %arg17[%c0_146, %c0_147, %c0_148] : memref<5x1x128xf32, #tpu.memory_space<vmem>>, vector<1x1x128xf32>
    %226 = vector.shape_cast %225 : vector<1x1x128xf32> to vector<1x128xf32>
    %227 = vector.broadcast %226 : vector<1x128xf32> to vector<8x128xf32>
    %228 = arith.addf %224, %227 : vector<8x128xf32>
    %cst_149 = arith.constant dense<0.000000e+00> : vector<8x64xf32>
    %229 = tpu.matmul %188, %187, %cst_149 {dimension_numbers = #tpu.dot_dimension_numbers<[1], [0], [0], [1], [0, 0, 1, 1], [], []>} : vector<8x16xf32>, vector<16x64xf32>, vector<8x64xf32> -> vector<8x64xf32>
    %230 = arith.truncf %229 : vector<8x64xf32> to vector<8x64xbf16>
    %c0_150 = arith.constant 0 : index
    %c0_151 = arith.constant 0 : index
    %231 = vector.load %arg15[%c0_150, %c0_151] : memref<64x128xbf16, #tpu.memory_space<vmem>>, vector<64x128xbf16>
    %cst_152 = arith.constant dense<0.000000e+00> : vector<8x128xf32>
    %232 = tpu.matmul %230, %231, %cst_152 {dimension_numbers = #tpu.dot_dimension_numbers<[1], [0], [0], [1], [0, 0, 1, 1], [], []>} : vector<8x64xbf16>, vector<64x128xbf16>, vector<8x128xf32> -> vector<8x128xf32>
    %c4_153 = arith.constant 4 : index
    %c0_154 = arith.constant 0 : index
    %c0_155 = arith.constant 0 : index
    %233 = vector.load %arg17[%c4_153, %c0_154, %c0_155] : memref<5x1x128xf32, #tpu.memory_space<vmem>>, vector<1x1x128xf32>
    %234 = vector.shape_cast %233 : vector<1x1x128xf32> to vector<1x128xf32>
    %235 = vector.broadcast %234 : vector<1x128xf32> to vector<8x128xf32>
    %236 = arith.addf %232, %235 : vector<8x128xf32>
    %237 = arith.addf %228, %236 : vector<8x128xf32>
    %cst_156 = arith.constant 0.000000e+00 : f32
    %238 = vector.broadcast %cst_156 : f32 to vector<8x128xf32>
    %239 = arith.maximumf %237, %238 : vector<8x128xf32>
    %c1_157 = arith.constant 1 : index
    %c0_158 = arith.constant 0 : index
    %c0_159 = arith.constant 0 : index
    %240 = vector.load %arg16[%c1_157, %c0_158, %c0_159] : memref<4x2x32xf32, #tpu.memory_space<vmem>>, vector<1x2x32xf32>
    %241 = vector.shape_cast %240 : vector<1x2x32xf32> to vector<2x32xf32>
    %242 = arith.truncf %239 : vector<8x128xf32> to vector<8x128xbf16>
    %c64 = arith.constant 64 : index
    %c0_160 = arith.constant 0 : index
    %243 = vector.load %arg12[%c64, %c0_160] : memref<448x32xbf16, #tpu.memory_space<vmem>>, vector<128x32xbf16>
    %cst_161 = arith.constant dense<0.000000e+00> : vector<8x32xf32>
    %244 = tpu.matmul %242, %243, %cst_161 {dimension_numbers = #tpu.dot_dimension_numbers<[1], [0], [0], [1], [0, 0, 1, 1], [], []>} : vector<8x128xbf16>, vector<128x32xbf16>, vector<8x32xf32> -> vector<8x32xf32>
    %245 = vector.extract_strided_slice %241 {offsets = [0, 0], sizes = [1, 32], strides = [1, 1]} : vector<2x32xf32> to vector<1x32xf32>
    %246 = vector.broadcast %245 : vector<1x32xf32> to vector<8x32xf32>
    %247 = arith.addf %244, %246 : vector<8x32xf32>
    %cst_162 = arith.constant 0.000000e+00 : f32
    %248 = vector.broadcast %cst_162 : f32 to vector<8x32xf32>
    %249 = arith.maximumf %247, %248 : vector<8x32xf32>
    %250 = arith.truncf %249 : vector<8x32xf32> to vector<8x32xbf16>
    %cst_163 = arith.constant 0.000000e+00 : bf16
    %251 = vector.broadcast %cst_163 : bf16 to vector<1x32xbf16>
    %252 = tpu.concatenate %251, %250, %251 in 0 : vector<1x32xbf16>, vector<8x32xbf16>, vector<1x32xbf16> -> vector<10x32xbf16>
    %253 = vector.extract_strided_slice %252 {offsets = [0, 0], sizes = [8, 32], strides = [1, 1]} : vector<10x32xbf16> to vector<8x32xbf16>
    %c3_164 = arith.constant 3 : index
    %c0_165 = arith.constant 0 : index
    %c0_166 = arith.constant 0 : index
    %254 = vector.load %arg13[%c3_164, %c0_165, %c0_166] : memref<12x32x32xbf16, #tpu.memory_space<vmem>>, vector<1x32x32xbf16>
    %255 = vector.shape_cast %254 : vector<1x32x32xbf16> to vector<32x32xbf16>
    %cst_167 = arith.constant dense<0.000000e+00> : vector<8x32xf32>
    %256 = tpu.matmul %253, %255, %cst_167 {dimension_numbers = #tpu.dot_dimension_numbers<[1], [0], [0], [1], [0, 0, 1, 1], [], []>} : vector<8x32xbf16>, vector<32x32xbf16>, vector<8x32xf32> -> vector<8x32xf32>
    %257 = vector.extract_strided_slice %252 {offsets = [1, 0], sizes = [8, 32], strides = [1, 1]} : vector<10x32xbf16> to vector<8x32xbf16>
    %c4_168 = arith.constant 4 : index
    %c0_169 = arith.constant 0 : index
    %c0_170 = arith.constant 0 : index
    %258 = vector.load %arg13[%c4_168, %c0_169, %c0_170] : memref<12x32x32xbf16, #tpu.memory_space<vmem>>, vector<1x32x32xbf16>
    %259 = vector.shape_cast %258 : vector<1x32x32xbf16> to vector<32x32xbf16>
    %cst_171 = arith.constant dense<0.000000e+00> : vector<8x32xf32>
    %260 = tpu.matmul %257, %259, %cst_171 {dimension_numbers = #tpu.dot_dimension_numbers<[1], [0], [0], [1], [0, 0, 1, 1], [], []>} : vector<8x32xbf16>, vector<32x32xbf16>, vector<8x32xf32> -> vector<8x32xf32>
    %261 = arith.addf %256, %260 : vector<8x32xf32>
    %262 = vector.extract_strided_slice %252 {offsets = [2, 0], sizes = [8, 32], strides = [1, 1]} : vector<10x32xbf16> to vector<8x32xbf16>
    %c5_172 = arith.constant 5 : index
    %c0_173 = arith.constant 0 : index
    %c0_174 = arith.constant 0 : index
    %263 = vector.load %arg13[%c5_172, %c0_173, %c0_174] : memref<12x32x32xbf16, #tpu.memory_space<vmem>>, vector<1x32x32xbf16>
    %264 = vector.shape_cast %263 : vector<1x32x32xbf16> to vector<32x32xbf16>
    %cst_175 = arith.constant dense<0.000000e+00> : vector<8x32xf32>
    %265 = tpu.matmul %262, %264, %cst_175 {dimension_numbers = #tpu.dot_dimension_numbers<[1], [0], [0], [1], [0, 0, 1, 1], [], []>} : vector<8x32xbf16>, vector<32x32xbf16>, vector<8x32xf32> -> vector<8x32xf32>
    %266 = arith.addf %261, %265 : vector<8x32xf32>
    %267 = vector.extract_strided_slice %241 {offsets = [1, 0], sizes = [1, 32], strides = [1, 1]} : vector<2x32xf32> to vector<1x32xf32>
    %268 = vector.broadcast %267 : vector<1x32xf32> to vector<8x32xf32>
    %269 = arith.addf %266, %268 : vector<8x32xf32>
    %cst_176 = arith.constant 0.000000e+00 : f32
    %270 = vector.broadcast %cst_176 : f32 to vector<8x32xf32>
    %271 = arith.maximumf %269, %270 : vector<8x32xf32>
    %272 = arith.truncf %271 : vector<8x32xf32> to vector<8x32xbf16>
    %c32_177 = arith.constant 32 : index
    %c0_178 = arith.constant 0 : index
    %273 = vector.load %arg14[%c32_177, %c0_178] : memref<128x128xbf16, #tpu.memory_space<vmem>>, vector<32x128xbf16>
    %cst_179 = arith.constant dense<0.000000e+00> : vector<8x128xf32>
    %274 = tpu.matmul %272, %273, %cst_179 {dimension_numbers = #tpu.dot_dimension_numbers<[1], [0], [0], [1], [0, 0, 1, 1], [], []>} : vector<8x32xbf16>, vector<32x128xbf16>, vector<8x128xf32> -> vector<8x128xf32>
    %c1_180 = arith.constant 1 : index
    %c0_181 = arith.constant 0 : index
    %c0_182 = arith.constant 0 : index
    %275 = vector.load %arg17[%c1_180, %c0_181, %c0_182] : memref<5x1x128xf32, #tpu.memory_space<vmem>>, vector<1x1x128xf32>
    %276 = vector.shape_cast %275 : vector<1x1x128xf32> to vector<1x128xf32>
    %277 = vector.broadcast %276 : vector<1x128xf32> to vector<8x128xf32>
    %278 = arith.addf %274, %277 : vector<8x128xf32>
    %279 = arith.addf %278, %239 : vector<8x128xf32>
    %cst_183 = arith.constant 0.000000e+00 : f32
    %280 = vector.broadcast %cst_183 : f32 to vector<8x128xf32>
    %281 = arith.maximumf %279, %280 : vector<8x128xf32>
    %c2_184 = arith.constant 2 : index
    %c0_185 = arith.constant 0 : index
    %c0_186 = arith.constant 0 : index
    %282 = vector.load %arg16[%c2_184, %c0_185, %c0_186] : memref<4x2x32xf32, #tpu.memory_space<vmem>>, vector<1x2x32xf32>
    %283 = vector.shape_cast %282 : vector<1x2x32xf32> to vector<2x32xf32>
    %284 = arith.truncf %281 : vector<8x128xf32> to vector<8x128xbf16>
    %c192 = arith.constant 192 : index
    %c0_187 = arith.constant 0 : index
    %285 = vector.load %arg12[%c192, %c0_187] : memref<448x32xbf16, #tpu.memory_space<vmem>>, vector<128x32xbf16>
    %cst_188 = arith.constant dense<0.000000e+00> : vector<8x32xf32>
    %286 = tpu.matmul %284, %285, %cst_188 {dimension_numbers = #tpu.dot_dimension_numbers<[1], [0], [0], [1], [0, 0, 1, 1], [], []>} : vector<8x128xbf16>, vector<128x32xbf16>, vector<8x32xf32> -> vector<8x32xf32>
    %287 = vector.extract_strided_slice %283 {offsets = [0, 0], sizes = [1, 32], strides = [1, 1]} : vector<2x32xf32> to vector<1x32xf32>
    %288 = vector.broadcast %287 : vector<1x32xf32> to vector<8x32xf32>
    %289 = arith.addf %286, %288 : vector<8x32xf32>
    %cst_189 = arith.constant 0.000000e+00 : f32
    %290 = vector.broadcast %cst_189 : f32 to vector<8x32xf32>
    %291 = arith.maximumf %289, %290 : vector<8x32xf32>
    %292 = arith.truncf %291 : vector<8x32xf32> to vector<8x32xbf16>
    %cst_190 = arith.constant 0.000000e+00 : bf16
    %293 = vector.broadcast %cst_190 : bf16 to vector<1x32xbf16>
    %294 = tpu.concatenate %293, %292, %293 in 0 : vector<1x32xbf16>, vector<8x32xbf16>, vector<1x32xbf16> -> vector<10x32xbf16>
    %295 = vector.extract_strided_slice %294 {offsets = [0, 0], sizes = [8, 32], strides = [1, 1]} : vector<10x32xbf16> to vector<8x32xbf16>
    %c6_191 = arith.constant 6 : index
    %c0_192 = arith.constant 0 : index
    %c0_193 = arith.constant 0 : index
    %296 = vector.load %arg13[%c6_191, %c0_192, %c0_193] : memref<12x32x32xbf16, #tpu.memory_space<vmem>>, vector<1x32x32xbf16>
    %297 = vector.shape_cast %296 : vector<1x32x32xbf16> to vector<32x32xbf16>
    %cst_194 = arith.constant dense<0.000000e+00> : vector<8x32xf32>
    %298 = tpu.matmul %295, %297, %cst_194 {dimension_numbers = #tpu.dot_dimension_numbers<[1], [0], [0], [1], [0, 0, 1, 1], [], []>} : vector<8x32xbf16>, vector<32x32xbf16>, vector<8x32xf32> -> vector<8x32xf32>
    %299 = vector.extract_strided_slice %294 {offsets = [1, 0], sizes = [8, 32], strides = [1, 1]} : vector<10x32xbf16> to vector<8x32xbf16>
    %c7_195 = arith.constant 7 : index
    %c0_196 = arith.constant 0 : index
    %c0_197 = arith.constant 0 : index
    %300 = vector.load %arg13[%c7_195, %c0_196, %c0_197] : memref<12x32x32xbf16, #tpu.memory_space<vmem>>, vector<1x32x32xbf16>
    %301 = vector.shape_cast %300 : vector<1x32x32xbf16> to vector<32x32xbf16>
    %cst_198 = arith.constant dense<0.000000e+00> : vector<8x32xf32>
    %302 = tpu.matmul %299, %301, %cst_198 {dimension_numbers = #tpu.dot_dimension_numbers<[1], [0], [0], [1], [0, 0, 1, 1], [], []>} : vector<8x32xbf16>, vector<32x32xbf16>, vector<8x32xf32> -> vector<8x32xf32>
    %303 = arith.addf %298, %302 : vector<8x32xf32>
    %304 = vector.extract_strided_slice %294 {offsets = [2, 0], sizes = [8, 32], strides = [1, 1]} : vector<10x32xbf16> to vector<8x32xbf16>
    %c8_199 = arith.constant 8 : index
    %c0_200 = arith.constant 0 : index
    %c0_201 = arith.constant 0 : index
    %305 = vector.load %arg13[%c8_199, %c0_200, %c0_201] : memref<12x32x32xbf16, #tpu.memory_space<vmem>>, vector<1x32x32xbf16>
    %306 = vector.shape_cast %305 : vector<1x32x32xbf16> to vector<32x32xbf16>
    %cst_202 = arith.constant dense<0.000000e+00> : vector<8x32xf32>
    %307 = tpu.matmul %304, %306, %cst_202 {dimension_numbers = #tpu.dot_dimension_numbers<[1], [0], [0], [1], [0, 0, 1, 1], [], []>} : vector<8x32xbf16>, vector<32x32xbf16>, vector<8x32xf32> -> vector<8x32xf32>
    %308 = arith.addf %303, %307 : vector<8x32xf32>
    %309 = vector.extract_strided_slice %283 {offsets = [1, 0], sizes = [1, 32], strides = [1, 1]} : vector<2x32xf32> to vector<1x32xf32>
    %310 = vector.broadcast %309 : vector<1x32xf32> to vector<8x32xf32>
    %311 = arith.addf %308, %310 : vector<8x32xf32>
    %cst_203 = arith.constant 0.000000e+00 : f32
    %312 = vector.broadcast %cst_203 : f32 to vector<8x32xf32>
    %313 = arith.maximumf %311, %312 : vector<8x32xf32>
    %314 = arith.truncf %313 : vector<8x32xf32> to vector<8x32xbf16>
    %c64_204 = arith.constant 64 : index
    %c0_205 = arith.constant 0 : index
    %315 = vector.load %arg14[%c64_204, %c0_205] : memref<128x128xbf16, #tpu.memory_space<vmem>>, vector<32x128xbf16>
    %cst_206 = arith.constant dense<0.000000e+00> : vector<8x128xf32>
    %316 = tpu.matmul %314, %315, %cst_206 {dimension_numbers = #tpu.dot_dimension_numbers<[1], [0], [0], [1], [0, 0, 1, 1], [], []>} : vector<8x32xbf16>, vector<32x128xbf16>, vector<8x128xf32> -> vector<8x128xf32>
    %c2_207 = arith.constant 2 : index
    %c0_208 = arith.constant 0 : index
    %c0_209 = arith.constant 0 : index
    %317 = vector.load %arg17[%c2_207, %c0_208, %c0_209] : memref<5x1x128xf32, #tpu.memory_space<vmem>>, vector<1x1x128xf32>
    %318 = vector.shape_cast %317 : vector<1x1x128xf32> to vector<1x128xf32>
    %319 = vector.broadcast %318 : vector<1x128xf32> to vector<8x128xf32>
    %320 = arith.addf %316, %319 : vector<8x128xf32>
    %321 = arith.addf %320, %281 : vector<8x128xf32>
    %cst_210 = arith.constant 0.000000e+00 : f32
    %322 = vector.broadcast %cst_210 : f32 to vector<8x128xf32>
    %323 = arith.maximumf %321, %322 : vector<8x128xf32>
    %c3_211 = arith.constant 3 : index
    %c0_212 = arith.constant 0 : index
    %c0_213 = arith.constant 0 : index
    %324 = vector.load %arg16[%c3_211, %c0_212, %c0_213] : memref<4x2x32xf32, #tpu.memory_space<vmem>>, vector<1x2x32xf32>
    %325 = vector.shape_cast %324 : vector<1x2x32xf32> to vector<2x32xf32>
    %326 = arith.truncf %323 : vector<8x128xf32> to vector<8x128xbf16>
    %c320 = arith.constant 320 : index
    %c0_214 = arith.constant 0 : index
    %327 = vector.load %arg12[%c320, %c0_214] : memref<448x32xbf16, #tpu.memory_space<vmem>>, vector<128x32xbf16>
    %cst_215 = arith.constant dense<0.000000e+00> : vector<8x32xf32>
    %328 = tpu.matmul %326, %327, %cst_215 {dimension_numbers = #tpu.dot_dimension_numbers<[1], [0], [0], [1], [0, 0, 1, 1], [], []>} : vector<8x128xbf16>, vector<128x32xbf16>, vector<8x32xf32> -> vector<8x32xf32>
    %329 = vector.extract_strided_slice %325 {offsets = [0, 0], sizes = [1, 32], strides = [1, 1]} : vector<2x32xf32> to vector<1x32xf32>
    %330 = vector.broadcast %329 : vector<1x32xf32> to vector<8x32xf32>
    %331 = arith.addf %328, %330 : vector<8x32xf32>
    %cst_216 = arith.constant 0.000000e+00 : f32
    %332 = vector.broadcast %cst_216 : f32 to vector<8x32xf32>
    %333 = arith.maximumf %331, %332 : vector<8x32xf32>
    %334 = arith.truncf %333 : vector<8x32xf32> to vector<8x32xbf16>
    %cst_217 = arith.constant 0.000000e+00 : bf16
    %335 = vector.broadcast %cst_217 : bf16 to vector<1x32xbf16>
    %336 = tpu.concatenate %335, %334, %335 in 0 : vector<1x32xbf16>, vector<8x32xbf16>, vector<1x32xbf16> -> vector<10x32xbf16>
    %337 = vector.extract_strided_slice %336 {offsets = [0, 0], sizes = [8, 32], strides = [1, 1]} : vector<10x32xbf16> to vector<8x32xbf16>
    %c9 = arith.constant 9 : index
    %c0_218 = arith.constant 0 : index
    %c0_219 = arith.constant 0 : index
    %338 = vector.load %arg13[%c9, %c0_218, %c0_219] : memref<12x32x32xbf16, #tpu.memory_space<vmem>>, vector<1x32x32xbf16>
    %339 = vector.shape_cast %338 : vector<1x32x32xbf16> to vector<32x32xbf16>
    %cst_220 = arith.constant dense<0.000000e+00> : vector<8x32xf32>
    %340 = tpu.matmul %337, %339, %cst_220 {dimension_numbers = #tpu.dot_dimension_numbers<[1], [0], [0], [1], [0, 0, 1, 1], [], []>} : vector<8x32xbf16>, vector<32x32xbf16>, vector<8x32xf32> -> vector<8x32xf32>
    %341 = vector.extract_strided_slice %336 {offsets = [1, 0], sizes = [8, 32], strides = [1, 1]} : vector<10x32xbf16> to vector<8x32xbf16>
    %c10 = arith.constant 10 : index
    %c0_221 = arith.constant 0 : index
    %c0_222 = arith.constant 0 : index
    %342 = vector.load %arg13[%c10, %c0_221, %c0_222] : memref<12x32x32xbf16, #tpu.memory_space<vmem>>, vector<1x32x32xbf16>
    %343 = vector.shape_cast %342 : vector<1x32x32xbf16> to vector<32x32xbf16>
    %cst_223 = arith.constant dense<0.000000e+00> : vector<8x32xf32>
    %344 = tpu.matmul %341, %343, %cst_223 {dimension_numbers = #tpu.dot_dimension_numbers<[1], [0], [0], [1], [0, 0, 1, 1], [], []>} : vector<8x32xbf16>, vector<32x32xbf16>, vector<8x32xf32> -> vector<8x32xf32>
    %345 = arith.addf %340, %344 : vector<8x32xf32>
    %346 = vector.extract_strided_slice %336 {offsets = [2, 0], sizes = [8, 32], strides = [1, 1]} : vector<10x32xbf16> to vector<8x32xbf16>
    %c11 = arith.constant 11 : index
    %c0_224 = arith.constant 0 : index
    %c0_225 = arith.constant 0 : index
    %347 = vector.load %arg13[%c11, %c0_224, %c0_225] : memref<12x32x32xbf16, #tpu.memory_space<vmem>>, vector<1x32x32xbf16>
    %348 = vector.shape_cast %347 : vector<1x32x32xbf16> to vector<32x32xbf16>
    %cst_226 = arith.constant dense<0.000000e+00> : vector<8x32xf32>
    %349 = tpu.matmul %346, %348, %cst_226 {dimension_numbers = #tpu.dot_dimension_numbers<[1], [0], [0], [1], [0, 0, 1, 1], [], []>} : vector<8x32xbf16>, vector<32x32xbf16>, vector<8x32xf32> -> vector<8x32xf32>
    %350 = arith.addf %345, %349 : vector<8x32xf32>
    %351 = vector.extract_strided_slice %325 {offsets = [1, 0], sizes = [1, 32], strides = [1, 1]} : vector<2x32xf32> to vector<1x32xf32>
    %352 = vector.broadcast %351 : vector<1x32xf32> to vector<8x32xf32>
    %353 = arith.addf %350, %352 : vector<8x32xf32>
    %cst_227 = arith.constant 0.000000e+00 : f32
    %354 = vector.broadcast %cst_227 : f32 to vector<8x32xf32>
    %355 = arith.maximumf %353, %354 : vector<8x32xf32>
    %356 = arith.truncf %355 : vector<8x32xf32> to vector<8x32xbf16>
    %c96 = arith.constant 96 : index
    %c0_228 = arith.constant 0 : index
    %357 = vector.load %arg14[%c96, %c0_228] : memref<128x128xbf16, #tpu.memory_space<vmem>>, vector<32x128xbf16>
    %cst_229 = arith.constant dense<0.000000e+00> : vector<8x128xf32>
    %358 = tpu.matmul %356, %357, %cst_229 {dimension_numbers = #tpu.dot_dimension_numbers<[1], [0], [0], [1], [0, 0, 1, 1], [], []>} : vector<8x32xbf16>, vector<32x128xbf16>, vector<8x128xf32> -> vector<8x128xf32>
    %c3_230 = arith.constant 3 : index
    %c0_231 = arith.constant 0 : index
    %c0_232 = arith.constant 0 : index
    %359 = vector.load %arg17[%c3_230, %c0_231, %c0_232] : memref<5x1x128xf32, #tpu.memory_space<vmem>>, vector<1x1x128xf32>
    %360 = vector.shape_cast %359 : vector<1x1x128xf32> to vector<1x128xf32>
    %361 = vector.broadcast %360 : vector<1x128xf32> to vector<8x128xf32>
    %362 = arith.addf %358, %361 : vector<8x128xf32>
    %363 = arith.addf %362, %323 : vector<8x128xf32>
    %cst_233 = arith.constant 0.000000e+00 : f32
    %364 = vector.broadcast %cst_233 : f32 to vector<8x128xf32>
    %365 = arith.maximumf %363, %364 : vector<8x128xf32>
    %c0_234 = arith.constant 0 : index
    %c0_235 = arith.constant 0 : index
    %366 = vector.load %arg25[%c0_234, %c0_235] : memref<4x8xf32, #tpu.memory_space<vmem>>, vector<4x8xf32>
    %c0_236 = arith.constant 0 : index
    %c0_237 = arith.constant 0 : index
    %c0_238 = arith.constant 0 : index
    %367 = vector.load %arg23[%c0_236, %c0_237, %c0_238] : memref<6x2x64xf32, #tpu.memory_space<vmem>>, vector<1x2x64xf32>
    %368 = vector.shape_cast %367 : vector<1x2x64xf32> to vector<2x64xf32>
    %369 = arith.truncf %365 : vector<8x128xf32> to vector<8x128xbf16>
    %c0_239 = arith.constant 0 : index
    %c0_240 = arith.constant 0 : index
    %370 = vector.load %arg19[%c0_239, %c0_240] : memref<1408x64xbf16, #tpu.memory_space<vmem>>, vector<128x64xbf16>
    %cst_241 = arith.constant dense<0.000000e+00> : vector<8x64xf32>
    %371 = tpu.matmul %369, %370, %cst_241 {dimension_numbers = #tpu.dot_dimension_numbers<[1], [0], [0], [1], [0, 0, 1, 1], [], []>} : vector<8x128xbf16>, vector<128x64xbf16>, vector<8x64xf32> -> vector<8x64xf32>
    %372 = vector.extract_strided_slice %368 {offsets = [0, 0], sizes = [1, 64], strides = [1, 1]} : vector<2x64xf32> to vector<1x64xf32>
    %373 = vector.broadcast %372 : vector<1x64xf32> to vector<8x64xf32>
    %374 = arith.addf %371, %373 : vector<8x64xf32>
    %cst_242 = arith.constant 0.000000e+00 : f32
    %375 = vector.broadcast %cst_242 : f32 to vector<8x64xf32>
    %376 = arith.maximumf %374, %375 : vector<8x64xf32>
    %377 = arith.truncf %376 : vector<8x64xf32> to vector<8x64xbf16>
    %cst_243 = arith.constant 0.000000e+00 : bf16
    %378 = vector.broadcast %cst_243 : bf16 to vector<1x64xbf16>
    %379 = tpu.concatenate %378, %377, %378 in 0 : vector<1x64xbf16>, vector<8x64xbf16>, vector<1x64xbf16> -> vector<10x64xbf16>
    %380 = vector.extract_strided_slice %379 {offsets = [0, 0], sizes = [8, 64], strides = [1, 1]} : vector<10x64xbf16> to vector<8x64xbf16>
    %c0_244 = arith.constant 0 : index
    %c0_245 = arith.constant 0 : index
    %c0_246 = arith.constant 0 : index
    %381 = vector.load %arg20[%c0_244, %c0_245, %c0_246] : memref<18x64x64xbf16, #tpu.memory_space<vmem>>, vector<1x64x64xbf16>
    %382 = vector.shape_cast %381 : vector<1x64x64xbf16> to vector<64x64xbf16>
    %cst_247 = arith.constant dense<0.000000e+00> : vector<8x64xf32>
    %383 = tpu.matmul %380, %382, %cst_247 {dimension_numbers = #tpu.dot_dimension_numbers<[1], [0], [0], [1], [0, 0, 1, 1], [], []>} : vector<8x64xbf16>, vector<64x64xbf16>, vector<8x64xf32> -> vector<8x64xf32>
    %384 = vector.extract_strided_slice %379 {offsets = [1, 0], sizes = [8, 64], strides = [1, 1]} : vector<10x64xbf16> to vector<8x64xbf16>
    %c1_248 = arith.constant 1 : index
    %c0_249 = arith.constant 0 : index
    %c0_250 = arith.constant 0 : index
    %385 = vector.load %arg20[%c1_248, %c0_249, %c0_250] : memref<18x64x64xbf16, #tpu.memory_space<vmem>>, vector<1x64x64xbf16>
    %386 = vector.shape_cast %385 : vector<1x64x64xbf16> to vector<64x64xbf16>
    %cst_251 = arith.constant dense<0.000000e+00> : vector<8x64xf32>
    %387 = tpu.matmul %384, %386, %cst_251 {dimension_numbers = #tpu.dot_dimension_numbers<[1], [0], [0], [1], [0, 0, 1, 1], [], []>} : vector<8x64xbf16>, vector<64x64xbf16>, vector<8x64xf32> -> vector<8x64xf32>
    %388 = arith.addf %383, %387 : vector<8x64xf32>
    %389 = vector.extract_strided_slice %379 {offsets = [2, 0], sizes = [8, 64], strides = [1, 1]} : vector<10x64xbf16> to vector<8x64xbf16>
    %c2_252 = arith.constant 2 : index
    %c0_253 = arith.constant 0 : index
    %c0_254 = arith.constant 0 : index
    %390 = vector.load %arg20[%c2_252, %c0_253, %c0_254] : memref<18x64x64xbf16, #tpu.memory_space<vmem>>, vector<1x64x64xbf16>
    %391 = vector.shape_cast %390 : vector<1x64x64xbf16> to vector<64x64xbf16>
    %cst_255 = arith.constant dense<0.000000e+00> : vector<8x64xf32>
    %392 = tpu.matmul %389, %391, %cst_255 {dimension_numbers = #tpu.dot_dimension_numbers<[1], [0], [0], [1], [0, 0, 1, 1], [], []>} : vector<8x64xbf16>, vector<64x64xbf16>, vector<8x64xf32> -> vector<8x64xf32>
    %393 = arith.addf %388, %392 : vector<8x64xf32>
    %cst_256 = arith.constant dense<0.000000e+00> : vector<4x64xf32>
    %394 = tpu.matmul %366, %393, %cst_256 {dimension_numbers = #tpu.dot_dimension_numbers<[1], [0], [0], [1], [0, 0, 1, 1], [], []>} : vector<4x8xf32>, vector<8x64xf32>, vector<4x64xf32> -> vector<4x64xf32>
    %395 = vector.extract_strided_slice %368 {offsets = [1, 0], sizes = [1, 64], strides = [1, 1]} : vector<2x64xf32> to vector<1x64xf32>
    %396 = vector.broadcast %395 : vector<1x64xf32> to vector<4x64xf32>
    %397 = arith.addf %394, %396 : vector<4x64xf32>
    %cst_257 = arith.constant 0.000000e+00 : f32
    %398 = vector.broadcast %cst_257 : f32 to vector<4x64xf32>
    %399 = arith.maximumf %397, %398 : vector<4x64xf32>
    %400 = arith.truncf %399 : vector<4x64xf32> to vector<4x64xbf16>
    %c0_258 = arith.constant 0 : index
    %c0_259 = arith.constant 0 : index
    %401 = vector.load %arg21[%c0_258, %c0_259] : memref<384x256xbf16, #tpu.memory_space<vmem>>, vector<64x256xbf16>
    %cst_260 = arith.constant dense<0.000000e+00> : vector<4x256xf32>
    %402 = tpu.matmul %400, %401, %cst_260 {dimension_numbers = #tpu.dot_dimension_numbers<[1], [0], [0], [1], [0, 0, 1, 1], [], []>} : vector<4x64xbf16>, vector<64x256xbf16>, vector<4x256xf32> -> vector<4x256xf32>
    %c0_261 = arith.constant 0 : index
    %c0_262 = arith.constant 0 : index
    %c0_263 = arith.constant 0 : index
    %403 = vector.load %arg24[%c0_261, %c0_262, %c0_263] : memref<7x1x256xf32, #tpu.memory_space<vmem>>, vector<1x1x256xf32>
    %404 = vector.shape_cast %403 : vector<1x1x256xf32> to vector<1x256xf32>
    %405 = vector.broadcast %404 : vector<1x256xf32> to vector<4x256xf32>
    %406 = arith.addf %402, %405 : vector<4x256xf32>
    %cst_264 = arith.constant dense<0.000000e+00> : vector<4x128xf32>
    %407 = tpu.matmul %366, %365, %cst_264 {dimension_numbers = #tpu.dot_dimension_numbers<[1], [0], [0], [1], [0, 0, 1, 1], [], []>} : vector<4x8xf32>, vector<8x128xf32>, vector<4x128xf32> -> vector<4x128xf32>
    %408 = arith.truncf %407 : vector<4x128xf32> to vector<4x128xbf16>
    %c0_265 = arith.constant 0 : index
    %c0_266 = arith.constant 0 : index
    %409 = vector.load %arg22[%c0_265, %c0_266] : memref<128x256xbf16, #tpu.memory_space<vmem>>, vector<128x256xbf16>
    %cst_267 = arith.constant dense<0.000000e+00> : vector<4x256xf32>
    %410 = tpu.matmul %408, %409, %cst_267 {dimension_numbers = #tpu.dot_dimension_numbers<[1], [0], [0], [1], [0, 0, 1, 1], [], []>} : vector<4x128xbf16>, vector<128x256xbf16>, vector<4x256xf32> -> vector<4x256xf32>
    %c6_268 = arith.constant 6 : index
    %c0_269 = arith.constant 0 : index
    %c0_270 = arith.constant 0 : index
    %411 = vector.load %arg24[%c6_268, %c0_269, %c0_270] : memref<7x1x256xf32, #tpu.memory_space<vmem>>, vector<1x1x256xf32>
    %412 = vector.shape_cast %411 : vector<1x1x256xf32> to vector<1x256xf32>
    %413 = vector.broadcast %412 : vector<1x256xf32> to vector<4x256xf32>
    %414 = arith.addf %410, %413 : vector<4x256xf32>
    %415 = arith.addf %406, %414 : vector<4x256xf32>
    %cst_271 = arith.constant 0.000000e+00 : f32
    %416 = vector.broadcast %cst_271 : f32 to vector<4x256xf32>
    %417 = arith.maximumf %415, %416 : vector<4x256xf32>
    %c1_272 = arith.constant 1 : index
    %c0_273 = arith.constant 0 : index
    %c0_274 = arith.constant 0 : index
    %418 = vector.load %arg23[%c1_272, %c0_273, %c0_274] : memref<6x2x64xf32, #tpu.memory_space<vmem>>, vector<1x2x64xf32>
    %419 = vector.shape_cast %418 : vector<1x2x64xf32> to vector<2x64xf32>
    %420 = arith.truncf %417 : vector<4x256xf32> to vector<4x256xbf16>
    %c128 = arith.constant 128 : index
    %c0_275 = arith.constant 0 : index
    %421 = vector.load %arg19[%c128, %c0_275] : memref<1408x64xbf16, #tpu.memory_space<vmem>>, vector<256x64xbf16>
    %cst_276 = arith.constant dense<0.000000e+00> : vector<4x64xf32>
    %422 = tpu.matmul %420, %421, %cst_276 {dimension_numbers = #tpu.dot_dimension_numbers<[1], [0], [0], [1], [0, 0, 1, 1], [], []>} : vector<4x256xbf16>, vector<256x64xbf16>, vector<4x64xf32> -> vector<4x64xf32>
    %423 = vector.extract_strided_slice %419 {offsets = [0, 0], sizes = [1, 64], strides = [1, 1]} : vector<2x64xf32> to vector<1x64xf32>
    %424 = vector.broadcast %423 : vector<1x64xf32> to vector<4x64xf32>
    %425 = arith.addf %422, %424 : vector<4x64xf32>
    %cst_277 = arith.constant 0.000000e+00 : f32
    %426 = vector.broadcast %cst_277 : f32 to vector<4x64xf32>
    %427 = arith.maximumf %425, %426 : vector<4x64xf32>
    %428 = arith.truncf %427 : vector<4x64xf32> to vector<4x64xbf16>
    %cst_278 = arith.constant 0.000000e+00 : bf16
    %429 = vector.broadcast %cst_278 : bf16 to vector<1x64xbf16>
    %430 = tpu.concatenate %429, %428, %429 in 0 : vector<1x64xbf16>, vector<4x64xbf16>, vector<1x64xbf16> -> vector<6x64xbf16>
    %431 = vector.extract_strided_slice %430 {offsets = [0, 0], sizes = [4, 64], strides = [1, 1]} : vector<6x64xbf16> to vector<4x64xbf16>
    %c3_279 = arith.constant 3 : index
    %c0_280 = arith.constant 0 : index
    %c0_281 = arith.constant 0 : index
    %432 = vector.load %arg20[%c3_279, %c0_280, %c0_281] : memref<18x64x64xbf16, #tpu.memory_space<vmem>>, vector<1x64x64xbf16>
    %433 = vector.shape_cast %432 : vector<1x64x64xbf16> to vector<64x64xbf16>
    %cst_282 = arith.constant dense<0.000000e+00> : vector<4x64xf32>
    %434 = tpu.matmul %431, %433, %cst_282 {dimension_numbers = #tpu.dot_dimension_numbers<[1], [0], [0], [1], [0, 0, 1, 1], [], []>} : vector<4x64xbf16>, vector<64x64xbf16>, vector<4x64xf32> -> vector<4x64xf32>
    %435 = vector.extract_strided_slice %430 {offsets = [1, 0], sizes = [4, 64], strides = [1, 1]} : vector<6x64xbf16> to vector<4x64xbf16>
    %c4_283 = arith.constant 4 : index
    %c0_284 = arith.constant 0 : index
    %c0_285 = arith.constant 0 : index
    %436 = vector.load %arg20[%c4_283, %c0_284, %c0_285] : memref<18x64x64xbf16, #tpu.memory_space<vmem>>, vector<1x64x64xbf16>
    %437 = vector.shape_cast %436 : vector<1x64x64xbf16> to vector<64x64xbf16>
    %cst_286 = arith.constant dense<0.000000e+00> : vector<4x64xf32>
    %438 = tpu.matmul %435, %437, %cst_286 {dimension_numbers = #tpu.dot_dimension_numbers<[1], [0], [0], [1], [0, 0, 1, 1], [], []>} : vector<4x64xbf16>, vector<64x64xbf16>, vector<4x64xf32> -> vector<4x64xf32>
    %439 = arith.addf %434, %438 : vector<4x64xf32>
    %440 = vector.extract_strided_slice %430 {offsets = [2, 0], sizes = [4, 64], strides = [1, 1]} : vector<6x64xbf16> to vector<4x64xbf16>
    %c5_287 = arith.constant 5 : index
    %c0_288 = arith.constant 0 : index
    %c0_289 = arith.constant 0 : index
    %441 = vector.load %arg20[%c5_287, %c0_288, %c0_289] : memref<18x64x64xbf16, #tpu.memory_space<vmem>>, vector<1x64x64xbf16>
    %442 = vector.shape_cast %441 : vector<1x64x64xbf16> to vector<64x64xbf16>
    %cst_290 = arith.constant dense<0.000000e+00> : vector<4x64xf32>
    %443 = tpu.matmul %440, %442, %cst_290 {dimension_numbers = #tpu.dot_dimension_numbers<[1], [0], [0], [1], [0, 0, 1, 1], [], []>} : vector<4x64xbf16>, vector<64x64xbf16>, vector<4x64xf32> -> vector<4x64xf32>
    %444 = arith.addf %439, %443 : vector<4x64xf32>
    %445 = vector.extract_strided_slice %419 {offsets = [1, 0], sizes = [1, 64], strides = [1, 1]} : vector<2x64xf32> to vector<1x64xf32>
    %446 = vector.broadcast %445 : vector<1x64xf32> to vector<4x64xf32>
    %447 = arith.addf %444, %446 : vector<4x64xf32>
    %cst_291 = arith.constant 0.000000e+00 : f32
    %448 = vector.broadcast %cst_291 : f32 to vector<4x64xf32>
    %449 = arith.maximumf %447, %448 : vector<4x64xf32>
    %450 = arith.truncf %449 : vector<4x64xf32> to vector<4x64xbf16>
    %c64_292 = arith.constant 64 : index
    %c0_293 = arith.constant 0 : index
    %451 = vector.load %arg21[%c64_292, %c0_293] : memref<384x256xbf16, #tpu.memory_space<vmem>>, vector<64x256xbf16>
    %cst_294 = arith.constant dense<0.000000e+00> : vector<4x256xf32>
    %452 = tpu.matmul %450, %451, %cst_294 {dimension_numbers = #tpu.dot_dimension_numbers<[1], [0], [0], [1], [0, 0, 1, 1], [], []>} : vector<4x64xbf16>, vector<64x256xbf16>, vector<4x256xf32> -> vector<4x256xf32>
    %c1_295 = arith.constant 1 : index
    %c0_296 = arith.constant 0 : index
    %c0_297 = arith.constant 0 : index
    %453 = vector.load %arg24[%c1_295, %c0_296, %c0_297] : memref<7x1x256xf32, #tpu.memory_space<vmem>>, vector<1x1x256xf32>
    %454 = vector.shape_cast %453 : vector<1x1x256xf32> to vector<1x256xf32>
    %455 = vector.broadcast %454 : vector<1x256xf32> to vector<4x256xf32>
    %456 = arith.addf %452, %455 : vector<4x256xf32>
    %457 = arith.addf %456, %417 : vector<4x256xf32>
    %cst_298 = arith.constant 0.000000e+00 : f32
    %458 = vector.broadcast %cst_298 : f32 to vector<4x256xf32>
    %459 = arith.maximumf %457, %458 : vector<4x256xf32>
    %c2_299 = arith.constant 2 : index
    %c0_300 = arith.constant 0 : index
    %c0_301 = arith.constant 0 : index
    %460 = vector.load %arg23[%c2_299, %c0_300, %c0_301] : memref<6x2x64xf32, #tpu.memory_space<vmem>>, vector<1x2x64xf32>
    %461 = vector.shape_cast %460 : vector<1x2x64xf32> to vector<2x64xf32>
    %462 = arith.truncf %459 : vector<4x256xf32> to vector<4x256xbf16>
    %c384 = arith.constant 384 : index
    %c0_302 = arith.constant 0 : index
    %463 = vector.load %arg19[%c384, %c0_302] : memref<1408x64xbf16, #tpu.memory_space<vmem>>, vector<256x64xbf16>
    %cst_303 = arith.constant dense<0.000000e+00> : vector<4x64xf32>
    %464 = tpu.matmul %462, %463, %cst_303 {dimension_numbers = #tpu.dot_dimension_numbers<[1], [0], [0], [1], [0, 0, 1, 1], [], []>} : vector<4x256xbf16>, vector<256x64xbf16>, vector<4x64xf32> -> vector<4x64xf32>
    %465 = vector.extract_strided_slice %461 {offsets = [0, 0], sizes = [1, 64], strides = [1, 1]} : vector<2x64xf32> to vector<1x64xf32>
    %466 = vector.broadcast %465 : vector<1x64xf32> to vector<4x64xf32>
    %467 = arith.addf %464, %466 : vector<4x64xf32>
    %cst_304 = arith.constant 0.000000e+00 : f32
    %468 = vector.broadcast %cst_304 : f32 to vector<4x64xf32>
    %469 = arith.maximumf %467, %468 : vector<4x64xf32>
    %470 = arith.truncf %469 : vector<4x64xf32> to vector<4x64xbf16>
    %cst_305 = arith.constant 0.000000e+00 : bf16
    %471 = vector.broadcast %cst_305 : bf16 to vector<1x64xbf16>
    %472 = tpu.concatenate %471, %470, %471 in 0 : vector<1x64xbf16>, vector<4x64xbf16>, vector<1x64xbf16> -> vector<6x64xbf16>
    %473 = vector.extract_strided_slice %472 {offsets = [0, 0], sizes = [4, 64], strides = [1, 1]} : vector<6x64xbf16> to vector<4x64xbf16>
    %c6_306 = arith.constant 6 : index
    %c0_307 = arith.constant 0 : index
    %c0_308 = arith.constant 0 : index
    %474 = vector.load %arg20[%c6_306, %c0_307, %c0_308] : memref<18x64x64xbf16, #tpu.memory_space<vmem>>, vector<1x64x64xbf16>
    %475 = vector.shape_cast %474 : vector<1x64x64xbf16> to vector<64x64xbf16>
    %cst_309 = arith.constant dense<0.000000e+00> : vector<4x64xf32>
    %476 = tpu.matmul %473, %475, %cst_309 {dimension_numbers = #tpu.dot_dimension_numbers<[1], [0], [0], [1], [0, 0, 1, 1], [], []>} : vector<4x64xbf16>, vector<64x64xbf16>, vector<4x64xf32> -> vector<4x64xf32>
    %477 = vector.extract_strided_slice %472 {offsets = [1, 0], sizes = [4, 64], strides = [1, 1]} : vector<6x64xbf16> to vector<4x64xbf16>
    %c7_310 = arith.constant 7 : index
    %c0_311 = arith.constant 0 : index
    %c0_312 = arith.constant 0 : index
    %478 = vector.load %arg20[%c7_310, %c0_311, %c0_312] : memref<18x64x64xbf16, #tpu.memory_space<vmem>>, vector<1x64x64xbf16>
    %479 = vector.shape_cast %478 : vector<1x64x64xbf16> to vector<64x64xbf16>
    %cst_313 = arith.constant dense<0.000000e+00> : vector<4x64xf32>
    %480 = tpu.matmul %477, %479, %cst_313 {dimension_numbers = #tpu.dot_dimension_numbers<[1], [0], [0], [1], [0, 0, 1, 1], [], []>} : vector<4x64xbf16>, vector<64x64xbf16>, vector<4x64xf32> -> vector<4x64xf32>
    %481 = arith.addf %476, %480 : vector<4x64xf32>
    %482 = vector.extract_strided_slice %472 {offsets = [2, 0], sizes = [4, 64], strides = [1, 1]} : vector<6x64xbf16> to vector<4x64xbf16>
    %c8_314 = arith.constant 8 : index
    %c0_315 = arith.constant 0 : index
    %c0_316 = arith.constant 0 : index
    %483 = vector.load %arg20[%c8_314, %c0_315, %c0_316] : memref<18x64x64xbf16, #tpu.memory_space<vmem>>, vector<1x64x64xbf16>
    %484 = vector.shape_cast %483 : vector<1x64x64xbf16> to vector<64x64xbf16>
    %cst_317 = arith.constant dense<0.000000e+00> : vector<4x64xf32>
    %485 = tpu.matmul %482, %484, %cst_317 {dimension_numbers = #tpu.dot_dimension_numbers<[1], [0], [0], [1], [0, 0, 1, 1], [], []>} : vector<4x64xbf16>, vector<64x64xbf16>, vector<4x64xf32> -> vector<4x64xf32>
    %486 = arith.addf %481, %485 : vector<4x64xf32>
    %487 = vector.extract_strided_slice %461 {offsets = [1, 0], sizes = [1, 64], strides = [1, 1]} : vector<2x64xf32> to vector<1x64xf32>
    %488 = vector.broadcast %487 : vector<1x64xf32> to vector<4x64xf32>
    %489 = arith.addf %486, %488 : vector<4x64xf32>
    %cst_318 = arith.constant 0.000000e+00 : f32
    %490 = vector.broadcast %cst_318 : f32 to vector<4x64xf32>
    %491 = arith.maximumf %489, %490 : vector<4x64xf32>
    %492 = arith.truncf %491 : vector<4x64xf32> to vector<4x64xbf16>
    %c128_319 = arith.constant 128 : index
    %c0_320 = arith.constant 0 : index
    %493 = vector.load %arg21[%c128_319, %c0_320] : memref<384x256xbf16, #tpu.memory_space<vmem>>, vector<64x256xbf16>
    %cst_321 = arith.constant dense<0.000000e+00> : vector<4x256xf32>
    %494 = tpu.matmul %492, %493, %cst_321 {dimension_numbers = #tpu.dot_dimension_numbers<[1], [0], [0], [1], [0, 0, 1, 1], [], []>} : vector<4x64xbf16>, vector<64x256xbf16>, vector<4x256xf32> -> vector<4x256xf32>
    %c2_322 = arith.constant 2 : index
    %c0_323 = arith.constant 0 : index
    %c0_324 = arith.constant 0 : index
    %495 = vector.load %arg24[%c2_322, %c0_323, %c0_324] : memref<7x1x256xf32, #tpu.memory_space<vmem>>, vector<1x1x256xf32>
    %496 = vector.shape_cast %495 : vector<1x1x256xf32> to vector<1x256xf32>
    %497 = vector.broadcast %496 : vector<1x256xf32> to vector<4x256xf32>
    %498 = arith.addf %494, %497 : vector<4x256xf32>
    %499 = arith.addf %498, %459 : vector<4x256xf32>
    %cst_325 = arith.constant 0.000000e+00 : f32
    %500 = vector.broadcast %cst_325 : f32 to vector<4x256xf32>
    %501 = arith.maximumf %499, %500 : vector<4x256xf32>
    %c3_326 = arith.constant 3 : index
    %c0_327 = arith.constant 0 : index
    %c0_328 = arith.constant 0 : index
    %502 = vector.load %arg23[%c3_326, %c0_327, %c0_328] : memref<6x2x64xf32, #tpu.memory_space<vmem>>, vector<1x2x64xf32>
    %503 = vector.shape_cast %502 : vector<1x2x64xf32> to vector<2x64xf32>
    %504 = arith.truncf %501 : vector<4x256xf32> to vector<4x256xbf16>
    %c640 = arith.constant 640 : index
    %c0_329 = arith.constant 0 : index
    %505 = vector.load %arg19[%c640, %c0_329] : memref<1408x64xbf16, #tpu.memory_space<vmem>>, vector<256x64xbf16>
    %cst_330 = arith.constant dense<0.000000e+00> : vector<4x64xf32>
    %506 = tpu.matmul %504, %505, %cst_330 {dimension_numbers = #tpu.dot_dimension_numbers<[1], [0], [0], [1], [0, 0, 1, 1], [], []>} : vector<4x256xbf16>, vector<256x64xbf16>, vector<4x64xf32> -> vector<4x64xf32>
    %507 = vector.extract_strided_slice %503 {offsets = [0, 0], sizes = [1, 64], strides = [1, 1]} : vector<2x64xf32> to vector<1x64xf32>
    %508 = vector.broadcast %507 : vector<1x64xf32> to vector<4x64xf32>
    %509 = arith.addf %506, %508 : vector<4x64xf32>
    %cst_331 = arith.constant 0.000000e+00 : f32
    %510 = vector.broadcast %cst_331 : f32 to vector<4x64xf32>
    %511 = arith.maximumf %509, %510 : vector<4x64xf32>
    %512 = arith.truncf %511 : vector<4x64xf32> to vector<4x64xbf16>
    %cst_332 = arith.constant 0.000000e+00 : bf16
    %513 = vector.broadcast %cst_332 : bf16 to vector<1x64xbf16>
    %514 = tpu.concatenate %513, %512, %513 in 0 : vector<1x64xbf16>, vector<4x64xbf16>, vector<1x64xbf16> -> vector<6x64xbf16>
    %515 = vector.extract_strided_slice %514 {offsets = [0, 0], sizes = [4, 64], strides = [1, 1]} : vector<6x64xbf16> to vector<4x64xbf16>
    %c9_333 = arith.constant 9 : index
    %c0_334 = arith.constant 0 : index
    %c0_335 = arith.constant 0 : index
    %516 = vector.load %arg20[%c9_333, %c0_334, %c0_335] : memref<18x64x64xbf16, #tpu.memory_space<vmem>>, vector<1x64x64xbf16>
    %517 = vector.shape_cast %516 : vector<1x64x64xbf16> to vector<64x64xbf16>
    %cst_336 = arith.constant dense<0.000000e+00> : vector<4x64xf32>
    %518 = tpu.matmul %515, %517, %cst_336 {dimension_numbers = #tpu.dot_dimension_numbers<[1], [0], [0], [1], [0, 0, 1, 1], [], []>} : vector<4x64xbf16>, vector<64x64xbf16>, vector<4x64xf32> -> vector<4x64xf32>
    %519 = vector.extract_strided_slice %514 {offsets = [1, 0], sizes = [4, 64], strides = [1, 1]} : vector<6x64xbf16> to vector<4x64xbf16>
    %c10_337 = arith.constant 10 : index
    %c0_338 = arith.constant 0 : index
    %c0_339 = arith.constant 0 : index
    %520 = vector.load %arg20[%c10_337, %c0_338, %c0_339] : memref<18x64x64xbf16, #tpu.memory_space<vmem>>, vector<1x64x64xbf16>
    %521 = vector.shape_cast %520 : vector<1x64x64xbf16> to vector<64x64xbf16>
    %cst_340 = arith.constant dense<0.000000e+00> : vector<4x64xf32>
    %522 = tpu.matmul %519, %521, %cst_340 {dimension_numbers = #tpu.dot_dimension_numbers<[1], [0], [0], [1], [0, 0, 1, 1], [], []>} : vector<4x64xbf16>, vector<64x64xbf16>, vector<4x64xf32> -> vector<4x64xf32>
    %523 = arith.addf %518, %522 : vector<4x64xf32>
    %524 = vector.extract_strided_slice %514 {offsets = [2, 0], sizes = [4, 64], strides = [1, 1]} : vector<6x64xbf16> to vector<4x64xbf16>
    %c11_341 = arith.constant 11 : index
    %c0_342 = arith.constant 0 : index
    %c0_343 = arith.constant 0 : index
    %525 = vector.load %arg20[%c11_341, %c0_342, %c0_343] : memref<18x64x64xbf16, #tpu.memory_space<vmem>>, vector<1x64x64xbf16>
    %526 = vector.shape_cast %525 : vector<1x64x64xbf16> to vector<64x64xbf16>
    %cst_344 = arith.constant dense<0.000000e+00> : vector<4x64xf32>
    %527 = tpu.matmul %524, %526, %cst_344 {dimension_numbers = #tpu.dot_dimension_numbers<[1], [0], [0], [1], [0, 0, 1, 1], [], []>} : vector<4x64xbf16>, vector<64x64xbf16>, vector<4x64xf32> -> vector<4x64xf32>
    %528 = arith.addf %523, %527 : vector<4x64xf32>
    %529 = vector.extract_strided_slice %503 {offsets = [1, 0], sizes = [1, 64], strides = [1, 1]} : vector<2x64xf32> to vector<1x64xf32>
    %530 = vector.broadcast %529 : vector<1x64xf32> to vector<4x64xf32>
    %531 = arith.addf %528, %530 : vector<4x64xf32>
    %cst_345 = arith.constant 0.000000e+00 : f32
    %532 = vector.broadcast %cst_345 : f32 to vector<4x64xf32>
    %533 = arith.maximumf %531, %532 : vector<4x64xf32>
    %534 = arith.truncf %533 : vector<4x64xf32> to vector<4x64xbf16>
    %c192_346 = arith.constant 192 : index
    %c0_347 = arith.constant 0 : index
    %535 = vector.load %arg21[%c192_346, %c0_347] : memref<384x256xbf16, #tpu.memory_space<vmem>>, vector<64x256xbf16>
    %cst_348 = arith.constant dense<0.000000e+00> : vector<4x256xf32>
    %536 = tpu.matmul %534, %535, %cst_348 {dimension_numbers = #tpu.dot_dimension_numbers<[1], [0], [0], [1], [0, 0, 1, 1], [], []>} : vector<4x64xbf16>, vector<64x256xbf16>, vector<4x256xf32> -> vector<4x256xf32>
    %c3_349 = arith.constant 3 : index
    %c0_350 = arith.constant 0 : index
    %c0_351 = arith.constant 0 : index
    %537 = vector.load %arg24[%c3_349, %c0_350, %c0_351] : memref<7x1x256xf32, #tpu.memory_space<vmem>>, vector<1x1x256xf32>
    %538 = vector.shape_cast %537 : vector<1x1x256xf32> to vector<1x256xf32>
    %539 = vector.broadcast %538 : vector<1x256xf32> to vector<4x256xf32>
    %540 = arith.addf %536, %539 : vector<4x256xf32>
    %541 = arith.addf %540, %501 : vector<4x256xf32>
    %cst_352 = arith.constant 0.000000e+00 : f32
    %542 = vector.broadcast %cst_352 : f32 to vector<4x256xf32>
    %543 = arith.maximumf %541, %542 : vector<4x256xf32>
    %c4_353 = arith.constant 4 : index
    %c0_354 = arith.constant 0 : index
    %c0_355 = arith.constant 0 : index
    %544 = vector.load %arg23[%c4_353, %c0_354, %c0_355] : memref<6x2x64xf32, #tpu.memory_space<vmem>>, vector<1x2x64xf32>
    %545 = vector.shape_cast %544 : vector<1x2x64xf32> to vector<2x64xf32>
    %546 = arith.truncf %543 : vector<4x256xf32> to vector<4x256xbf16>
    %c896 = arith.constant 896 : index
    %c0_356 = arith.constant 0 : index
    %547 = vector.load %arg19[%c896, %c0_356] : memref<1408x64xbf16, #tpu.memory_space<vmem>>, vector<256x64xbf16>
    %cst_357 = arith.constant dense<0.000000e+00> : vector<4x64xf32>
    %548 = tpu.matmul %546, %547, %cst_357 {dimension_numbers = #tpu.dot_dimension_numbers<[1], [0], [0], [1], [0, 0, 1, 1], [], []>} : vector<4x256xbf16>, vector<256x64xbf16>, vector<4x64xf32> -> vector<4x64xf32>
    %549 = vector.extract_strided_slice %545 {offsets = [0, 0], sizes = [1, 64], strides = [1, 1]} : vector<2x64xf32> to vector<1x64xf32>
    %550 = vector.broadcast %549 : vector<1x64xf32> to vector<4x64xf32>
    %551 = arith.addf %548, %550 : vector<4x64xf32>
    %cst_358 = arith.constant 0.000000e+00 : f32
    %552 = vector.broadcast %cst_358 : f32 to vector<4x64xf32>
    %553 = arith.maximumf %551, %552 : vector<4x64xf32>
    %554 = arith.truncf %553 : vector<4x64xf32> to vector<4x64xbf16>
    %cst_359 = arith.constant 0.000000e+00 : bf16
    %555 = vector.broadcast %cst_359 : bf16 to vector<1x64xbf16>
    %556 = tpu.concatenate %555, %554, %555 in 0 : vector<1x64xbf16>, vector<4x64xbf16>, vector<1x64xbf16> -> vector<6x64xbf16>
    %557 = vector.extract_strided_slice %556 {offsets = [0, 0], sizes = [4, 64], strides = [1, 1]} : vector<6x64xbf16> to vector<4x64xbf16>
    %c12 = arith.constant 12 : index
    %c0_360 = arith.constant 0 : index
    %c0_361 = arith.constant 0 : index
    %558 = vector.load %arg20[%c12, %c0_360, %c0_361] : memref<18x64x64xbf16, #tpu.memory_space<vmem>>, vector<1x64x64xbf16>
    %559 = vector.shape_cast %558 : vector<1x64x64xbf16> to vector<64x64xbf16>
    %cst_362 = arith.constant dense<0.000000e+00> : vector<4x64xf32>
    %560 = tpu.matmul %557, %559, %cst_362 {dimension_numbers = #tpu.dot_dimension_numbers<[1], [0], [0], [1], [0, 0, 1, 1], [], []>} : vector<4x64xbf16>, vector<64x64xbf16>, vector<4x64xf32> -> vector<4x64xf32>
    %561 = vector.extract_strided_slice %556 {offsets = [1, 0], sizes = [4, 64], strides = [1, 1]} : vector<6x64xbf16> to vector<4x64xbf16>
    %c13 = arith.constant 13 : index
    %c0_363 = arith.constant 0 : index
    %c0_364 = arith.constant 0 : index
    %562 = vector.load %arg20[%c13, %c0_363, %c0_364] : memref<18x64x64xbf16, #tpu.memory_space<vmem>>, vector<1x64x64xbf16>
    %563 = vector.shape_cast %562 : vector<1x64x64xbf16> to vector<64x64xbf16>
    %cst_365 = arith.constant dense<0.000000e+00> : vector<4x64xf32>
    %564 = tpu.matmul %561, %563, %cst_365 {dimension_numbers = #tpu.dot_dimension_numbers<[1], [0], [0], [1], [0, 0, 1, 1], [], []>} : vector<4x64xbf16>, vector<64x64xbf16>, vector<4x64xf32> -> vector<4x64xf32>
    %565 = arith.addf %560, %564 : vector<4x64xf32>
    %566 = vector.extract_strided_slice %556 {offsets = [2, 0], sizes = [4, 64], strides = [1, 1]} : vector<6x64xbf16> to vector<4x64xbf16>
    %c14 = arith.constant 14 : index
    %c0_366 = arith.constant 0 : index
    %c0_367 = arith.constant 0 : index
    %567 = vector.load %arg20[%c14, %c0_366, %c0_367] : memref<18x64x64xbf16, #tpu.memory_space<vmem>>, vector<1x64x64xbf16>
    %568 = vector.shape_cast %567 : vector<1x64x64xbf16> to vector<64x64xbf16>
    %cst_368 = arith.constant dense<0.000000e+00> : vector<4x64xf32>
    %569 = tpu.matmul %566, %568, %cst_368 {dimension_numbers = #tpu.dot_dimension_numbers<[1], [0], [0], [1], [0, 0, 1, 1], [], []>} : vector<4x64xbf16>, vector<64x64xbf16>, vector<4x64xf32> -> vector<4x64xf32>
    %570 = arith.addf %565, %569 : vector<4x64xf32>
    %571 = vector.extract_strided_slice %545 {offsets = [1, 0], sizes = [1, 64], strides = [1, 1]} : vector<2x64xf32> to vector<1x64xf32>
    %572 = vector.broadcast %571 : vector<1x64xf32> to vector<4x64xf32>
    %573 = arith.addf %570, %572 : vector<4x64xf32>
    %cst_369 = arith.constant 0.000000e+00 : f32
    %574 = vector.broadcast %cst_369 : f32 to vector<4x64xf32>
    %575 = arith.maximumf %573, %574 : vector<4x64xf32>
    %576 = arith.truncf %575 : vector<4x64xf32> to vector<4x64xbf16>
    %c256 = arith.constant 256 : index
    %c0_370 = arith.constant 0 : index
    %577 = vector.load %arg21[%c256, %c0_370] : memref<384x256xbf16, #tpu.memory_space<vmem>>, vector<64x256xbf16>
    %cst_371 = arith.constant dense<0.000000e+00> : vector<4x256xf32>
    %578 = tpu.matmul %576, %577, %cst_371 {dimension_numbers = #tpu.dot_dimension_numbers<[1], [0], [0], [1], [0, 0, 1, 1], [], []>} : vector<4x64xbf16>, vector<64x256xbf16>, vector<4x256xf32> -> vector<4x256xf32>
    %c4_372 = arith.constant 4 : index
    %c0_373 = arith.constant 0 : index
    %c0_374 = arith.constant 0 : index
    %579 = vector.load %arg24[%c4_372, %c0_373, %c0_374] : memref<7x1x256xf32, #tpu.memory_space<vmem>>, vector<1x1x256xf32>
    %580 = vector.shape_cast %579 : vector<1x1x256xf32> to vector<1x256xf32>
    %581 = vector.broadcast %580 : vector<1x256xf32> to vector<4x256xf32>
    %582 = arith.addf %578, %581 : vector<4x256xf32>
    %583 = arith.addf %582, %543 : vector<4x256xf32>
    %cst_375 = arith.constant 0.000000e+00 : f32
    %584 = vector.broadcast %cst_375 : f32 to vector<4x256xf32>
    %585 = arith.maximumf %583, %584 : vector<4x256xf32>
    %c5_376 = arith.constant 5 : index
    %c0_377 = arith.constant 0 : index
    %c0_378 = arith.constant 0 : index
    %586 = vector.load %arg23[%c5_376, %c0_377, %c0_378] : memref<6x2x64xf32, #tpu.memory_space<vmem>>, vector<1x2x64xf32>
    %587 = vector.shape_cast %586 : vector<1x2x64xf32> to vector<2x64xf32>
    %588 = arith.truncf %585 : vector<4x256xf32> to vector<4x256xbf16>
    %c1152 = arith.constant 1152 : index
    %c0_379 = arith.constant 0 : index
    %589 = vector.load %arg19[%c1152, %c0_379] : memref<1408x64xbf16, #tpu.memory_space<vmem>>, vector<256x64xbf16>
    %cst_380 = arith.constant dense<0.000000e+00> : vector<4x64xf32>
    %590 = tpu.matmul %588, %589, %cst_380 {dimension_numbers = #tpu.dot_dimension_numbers<[1], [0], [0], [1], [0, 0, 1, 1], [], []>} : vector<4x256xbf16>, vector<256x64xbf16>, vector<4x64xf32> -> vector<4x64xf32>
    %591 = vector.extract_strided_slice %587 {offsets = [0, 0], sizes = [1, 64], strides = [1, 1]} : vector<2x64xf32> to vector<1x64xf32>
    %592 = vector.broadcast %591 : vector<1x64xf32> to vector<4x64xf32>
    %593 = arith.addf %590, %592 : vector<4x64xf32>
    %cst_381 = arith.constant 0.000000e+00 : f32
    %594 = vector.broadcast %cst_381 : f32 to vector<4x64xf32>
    %595 = arith.maximumf %593, %594 : vector<4x64xf32>
    %596 = arith.truncf %595 : vector<4x64xf32> to vector<4x64xbf16>
    %cst_382 = arith.constant 0.000000e+00 : bf16
    %597 = vector.broadcast %cst_382 : bf16 to vector<1x64xbf16>
    %598 = tpu.concatenate %597, %596, %597 in 0 : vector<1x64xbf16>, vector<4x64xbf16>, vector<1x64xbf16> -> vector<6x64xbf16>
    %599 = vector.extract_strided_slice %598 {offsets = [0, 0], sizes = [4, 64], strides = [1, 1]} : vector<6x64xbf16> to vector<4x64xbf16>
    %c15 = arith.constant 15 : index
    %c0_383 = arith.constant 0 : index
    %c0_384 = arith.constant 0 : index
    %600 = vector.load %arg20[%c15, %c0_383, %c0_384] : memref<18x64x64xbf16, #tpu.memory_space<vmem>>, vector<1x64x64xbf16>
    %601 = vector.shape_cast %600 : vector<1x64x64xbf16> to vector<64x64xbf16>
    %cst_385 = arith.constant dense<0.000000e+00> : vector<4x64xf32>
    %602 = tpu.matmul %599, %601, %cst_385 {dimension_numbers = #tpu.dot_dimension_numbers<[1], [0], [0], [1], [0, 0, 1, 1], [], []>} : vector<4x64xbf16>, vector<64x64xbf16>, vector<4x64xf32> -> vector<4x64xf32>
    %603 = vector.extract_strided_slice %598 {offsets = [1, 0], sizes = [4, 64], strides = [1, 1]} : vector<6x64xbf16> to vector<4x64xbf16>
    %c16_386 = arith.constant 16 : index
    %c0_387 = arith.constant 0 : index
    %c0_388 = arith.constant 0 : index
    %604 = vector.load %arg20[%c16_386, %c0_387, %c0_388] : memref<18x64x64xbf16, #tpu.memory_space<vmem>>, vector<1x64x64xbf16>
    %605 = vector.shape_cast %604 : vector<1x64x64xbf16> to vector<64x64xbf16>
    %cst_389 = arith.constant dense<0.000000e+00> : vector<4x64xf32>
    %606 = tpu.matmul %603, %605, %cst_389 {dimension_numbers = #tpu.dot_dimension_numbers<[1], [0], [0], [1], [0, 0, 1, 1], [], []>} : vector<4x64xbf16>, vector<64x64xbf16>, vector<4x64xf32> -> vector<4x64xf32>
    %607 = arith.addf %602, %606 : vector<4x64xf32>
    %608 = vector.extract_strided_slice %598 {offsets = [2, 0], sizes = [4, 64], strides = [1, 1]} : vector<6x64xbf16> to vector<4x64xbf16>
    %c17 = arith.constant 17 : index
    %c0_390 = arith.constant 0 : index
    %c0_391 = arith.constant 0 : index
    %609 = vector.load %arg20[%c17, %c0_390, %c0_391] : memref<18x64x64xbf16, #tpu.memory_space<vmem>>, vector<1x64x64xbf16>
    %610 = vector.shape_cast %609 : vector<1x64x64xbf16> to vector<64x64xbf16>
    %cst_392 = arith.constant dense<0.000000e+00> : vector<4x64xf32>
    %611 = tpu.matmul %608, %610, %cst_392 {dimension_numbers = #tpu.dot_dimension_numbers<[1], [0], [0], [1], [0, 0, 1, 1], [], []>} : vector<4x64xbf16>, vector<64x64xbf16>, vector<4x64xf32> -> vector<4x64xf32>
    %612 = arith.addf %607, %611 : vector<4x64xf32>
    %613 = vector.extract_strided_slice %587 {offsets = [1, 0], sizes = [1, 64], strides = [1, 1]} : vector<2x64xf32> to vector<1x64xf32>
    %614 = vector.broadcast %613 : vector<1x64xf32> to vector<4x64xf32>
    %615 = arith.addf %612, %614 : vector<4x64xf32>
    %cst_393 = arith.constant 0.000000e+00 : f32
    %616 = vector.broadcast %cst_393 : f32 to vector<4x64xf32>
    %617 = arith.maximumf %615, %616 : vector<4x64xf32>
    %618 = arith.truncf %617 : vector<4x64xf32> to vector<4x64xbf16>
    %c320_394 = arith.constant 320 : index
    %c0_395 = arith.constant 0 : index
    %619 = vector.load %arg21[%c320_394, %c0_395] : memref<384x256xbf16, #tpu.memory_space<vmem>>, vector<64x256xbf16>
    %cst_396 = arith.constant dense<0.000000e+00> : vector<4x256xf32>
    %620 = tpu.matmul %618, %619, %cst_396 {dimension_numbers = #tpu.dot_dimension_numbers<[1], [0], [0], [1], [0, 0, 1, 1], [], []>} : vector<4x64xbf16>, vector<64x256xbf16>, vector<4x256xf32> -> vector<4x256xf32>
    %c5_397 = arith.constant 5 : index
    %c0_398 = arith.constant 0 : index
    %c0_399 = arith.constant 0 : index
    %621 = vector.load %arg24[%c5_397, %c0_398, %c0_399] : memref<7x1x256xf32, #tpu.memory_space<vmem>>, vector<1x1x256xf32>
    %622 = vector.shape_cast %621 : vector<1x1x256xf32> to vector<1x256xf32>
    %623 = vector.broadcast %622 : vector<1x256xf32> to vector<4x256xf32>
    %624 = arith.addf %620, %623 : vector<4x256xf32>
    %625 = arith.addf %624, %585 : vector<4x256xf32>
    %cst_400 = arith.constant 0.000000e+00 : f32
    %626 = vector.broadcast %cst_400 : f32 to vector<4x256xf32>
    %627 = arith.maximumf %625, %626 : vector<4x256xf32>
    %c0_401 = arith.constant 0 : index
    %c0_402 = arith.constant 0 : index
    %628 = vector.load %arg32[%c0_401, %c0_402] : memref<2x4xf32, #tpu.memory_space<vmem>>, vector<2x4xf32>
    %c0_403 = arith.constant 0 : index
    %c0_404 = arith.constant 0 : index
    %c0_405 = arith.constant 0 : index
    %629 = vector.load %arg30[%c0_403, %c0_404, %c0_405] : memref<3x2x128xf32, #tpu.memory_space<vmem>>, vector<1x2x128xf32>
    %630 = vector.shape_cast %629 : vector<1x2x128xf32> to vector<2x128xf32>
    %631 = arith.truncf %627 : vector<4x256xf32> to vector<4x256xbf16>
    %c0_406 = arith.constant 0 : index
    %c0_407 = arith.constant 0 : index
    %632 = vector.load %arg26[%c0_406, %c0_407] : memref<1280x128xbf16, #tpu.memory_space<vmem>>, vector<256x128xbf16>
    %cst_408 = arith.constant dense<0.000000e+00> : vector<4x128xf32>
    %633 = tpu.matmul %631, %632, %cst_408 {dimension_numbers = #tpu.dot_dimension_numbers<[1], [0], [0], [1], [0, 0, 1, 1], [], []>} : vector<4x256xbf16>, vector<256x128xbf16>, vector<4x128xf32> -> vector<4x128xf32>
    %634 = vector.extract_strided_slice %630 {offsets = [0, 0], sizes = [1, 128], strides = [1, 1]} : vector<2x128xf32> to vector<1x128xf32>
    %635 = vector.broadcast %634 : vector<1x128xf32> to vector<4x128xf32>
    %636 = arith.addf %633, %635 : vector<4x128xf32>
    %cst_409 = arith.constant 0.000000e+00 : f32
    %637 = vector.broadcast %cst_409 : f32 to vector<4x128xf32>
    %638 = arith.maximumf %636, %637 : vector<4x128xf32>
    %639 = arith.truncf %638 : vector<4x128xf32> to vector<4x128xbf16>
    %cst_410 = arith.constant 0.000000e+00 : bf16
    %640 = vector.broadcast %cst_410 : bf16 to vector<1x128xbf16>
    %641 = tpu.concatenate %640, %639, %640 in 0 : vector<1x128xbf16>, vector<4x128xbf16>, vector<1x128xbf16> -> vector<6x128xbf16>
    %642 = vector.extract_strided_slice %641 {offsets = [0, 0], sizes = [4, 128], strides = [1, 1]} : vector<6x128xbf16> to vector<4x128xbf16>
    %c0_411 = arith.constant 0 : index
    %c0_412 = arith.constant 0 : index
    %c0_413 = arith.constant 0 : index
    %643 = vector.load %arg27[%c0_411, %c0_412, %c0_413] : memref<9x128x128xbf16, #tpu.memory_space<vmem>>, vector<1x128x128xbf16>
    %644 = vector.shape_cast %643 : vector<1x128x128xbf16> to vector<128x128xbf16>
    %cst_414 = arith.constant dense<0.000000e+00> : vector<4x128xf32>
    %645 = tpu.matmul %642, %644, %cst_414 {dimension_numbers = #tpu.dot_dimension_numbers<[1], [0], [0], [1], [0, 0, 1, 1], [], []>} : vector<4x128xbf16>, vector<128x128xbf16>, vector<4x128xf32> -> vector<4x128xf32>
    %646 = vector.extract_strided_slice %641 {offsets = [1, 0], sizes = [4, 128], strides = [1, 1]} : vector<6x128xbf16> to vector<4x128xbf16>
    %c1_415 = arith.constant 1 : index
    %c0_416 = arith.constant 0 : index
    %c0_417 = arith.constant 0 : index
    %647 = vector.load %arg27[%c1_415, %c0_416, %c0_417] : memref<9x128x128xbf16, #tpu.memory_space<vmem>>, vector<1x128x128xbf16>
    %648 = vector.shape_cast %647 : vector<1x128x128xbf16> to vector<128x128xbf16>
    %cst_418 = arith.constant dense<0.000000e+00> : vector<4x128xf32>
    %649 = tpu.matmul %646, %648, %cst_418 {dimension_numbers = #tpu.dot_dimension_numbers<[1], [0], [0], [1], [0, 0, 1, 1], [], []>} : vector<4x128xbf16>, vector<128x128xbf16>, vector<4x128xf32> -> vector<4x128xf32>
    %650 = arith.addf %645, %649 : vector<4x128xf32>
    %651 = vector.extract_strided_slice %641 {offsets = [2, 0], sizes = [4, 128], strides = [1, 1]} : vector<6x128xbf16> to vector<4x128xbf16>
    %c2_419 = arith.constant 2 : index
    %c0_420 = arith.constant 0 : index
    %c0_421 = arith.constant 0 : index
    %652 = vector.load %arg27[%c2_419, %c0_420, %c0_421] : memref<9x128x128xbf16, #tpu.memory_space<vmem>>, vector<1x128x128xbf16>
    %653 = vector.shape_cast %652 : vector<1x128x128xbf16> to vector<128x128xbf16>
    %cst_422 = arith.constant dense<0.000000e+00> : vector<4x128xf32>
    %654 = tpu.matmul %651, %653, %cst_422 {dimension_numbers = #tpu.dot_dimension_numbers<[1], [0], [0], [1], [0, 0, 1, 1], [], []>} : vector<4x128xbf16>, vector<128x128xbf16>, vector<4x128xf32> -> vector<4x128xf32>
    %655 = arith.addf %650, %654 : vector<4x128xf32>
    %cst_423 = arith.constant dense<0.000000e+00> : vector<2x128xf32>
    %656 = tpu.matmul %628, %655, %cst_423 {dimension_numbers = #tpu.dot_dimension_numbers<[1], [0], [0], [1], [0, 0, 1, 1], [], []>} : vector<2x4xf32>, vector<4x128xf32>, vector<2x128xf32> -> vector<2x128xf32>
    %657 = vector.extract_strided_slice %630 {offsets = [1, 0], sizes = [1, 128], strides = [1, 1]} : vector<2x128xf32> to vector<1x128xf32>
    %658 = vector.broadcast %657 : vector<1x128xf32> to vector<2x128xf32>
    %659 = arith.addf %656, %658 : vector<2x128xf32>
    %cst_424 = arith.constant 0.000000e+00 : f32
    %660 = vector.broadcast %cst_424 : f32 to vector<2x128xf32>
    %661 = arith.maximumf %659, %660 : vector<2x128xf32>
    %662 = arith.truncf %661 : vector<2x128xf32> to vector<2x128xbf16>
    %c0_425 = arith.constant 0 : index
    %c0_426 = arith.constant 0 : index
    %663 = vector.load %arg28[%c0_425, %c0_426] : memref<384x512xbf16, #tpu.memory_space<vmem>>, vector<128x512xbf16>
    %cst_427 = arith.constant dense<0.000000e+00> : vector<2x512xf32>
    %664 = tpu.matmul %662, %663, %cst_427 {dimension_numbers = #tpu.dot_dimension_numbers<[1], [0], [0], [1], [0, 0, 1, 1], [], []>} : vector<2x128xbf16>, vector<128x512xbf16>, vector<2x512xf32> -> vector<2x512xf32>
    %c0_428 = arith.constant 0 : index
    %c0_429 = arith.constant 0 : index
    %c0_430 = arith.constant 0 : index
    %665 = vector.load %arg31[%c0_428, %c0_429, %c0_430] : memref<4x1x512xf32, #tpu.memory_space<vmem>>, vector<1x1x512xf32>
    %666 = vector.shape_cast %665 : vector<1x1x512xf32> to vector<1x512xf32>
    %667 = vector.broadcast %666 : vector<1x512xf32> to vector<2x512xf32>
    %668 = arith.addf %664, %667 : vector<2x512xf32>
    %cst_431 = arith.constant dense<0.000000e+00> : vector<2x256xf32>
    %669 = tpu.matmul %628, %627, %cst_431 {dimension_numbers = #tpu.dot_dimension_numbers<[1], [0], [0], [1], [0, 0, 1, 1], [], []>} : vector<2x4xf32>, vector<4x256xf32>, vector<2x256xf32> -> vector<2x256xf32>
    %670 = arith.truncf %669 : vector<2x256xf32> to vector<2x256xbf16>
    %c0_432 = arith.constant 0 : index
    %c0_433 = arith.constant 0 : index
    %671 = vector.load %arg29[%c0_432, %c0_433] : memref<256x512xbf16, #tpu.memory_space<vmem>>, vector<256x512xbf16>
    %cst_434 = arith.constant dense<0.000000e+00> : vector<2x512xf32>
    %672 = tpu.matmul %670, %671, %cst_434 {dimension_numbers = #tpu.dot_dimension_numbers<[1], [0], [0], [1], [0, 0, 1, 1], [], []>} : vector<2x256xbf16>, vector<256x512xbf16>, vector<2x512xf32> -> vector<2x512xf32>
    %c3_435 = arith.constant 3 : index
    %c0_436 = arith.constant 0 : index
    %c0_437 = arith.constant 0 : index
    %673 = vector.load %arg31[%c3_435, %c0_436, %c0_437] : memref<4x1x512xf32, #tpu.memory_space<vmem>>, vector<1x1x512xf32>
    %674 = vector.shape_cast %673 : vector<1x1x512xf32> to vector<1x512xf32>
    %675 = vector.broadcast %674 : vector<1x512xf32> to vector<2x512xf32>
    %676 = arith.addf %672, %675 : vector<2x512xf32>
    %677 = arith.addf %668, %676 : vector<2x512xf32>
    %cst_438 = arith.constant 0.000000e+00 : f32
    %678 = vector.broadcast %cst_438 : f32 to vector<2x512xf32>
    %679 = arith.maximumf %677, %678 : vector<2x512xf32>
    %c1_439 = arith.constant 1 : index
    %c0_440 = arith.constant 0 : index
    %c0_441 = arith.constant 0 : index
    %680 = vector.load %arg30[%c1_439, %c0_440, %c0_441] : memref<3x2x128xf32, #tpu.memory_space<vmem>>, vector<1x2x128xf32>
    %681 = vector.shape_cast %680 : vector<1x2x128xf32> to vector<2x128xf32>
    %682 = arith.truncf %679 : vector<2x512xf32> to vector<2x512xbf16>
    %c256_442 = arith.constant 256 : index
    %c0_443 = arith.constant 0 : index
    %683 = vector.load %arg26[%c256_442, %c0_443] : memref<1280x128xbf16, #tpu.memory_space<vmem>>, vector<512x128xbf16>
    %cst_444 = arith.constant dense<0.000000e+00> : vector<2x128xf32>
    %684 = tpu.matmul %682, %683, %cst_444 {dimension_numbers = #tpu.dot_dimension_numbers<[1], [0], [0], [1], [0, 0, 1, 1], [], []>} : vector<2x512xbf16>, vector<512x128xbf16>, vector<2x128xf32> -> vector<2x128xf32>
    %685 = vector.extract_strided_slice %681 {offsets = [0, 0], sizes = [1, 128], strides = [1, 1]} : vector<2x128xf32> to vector<1x128xf32>
    %686 = vector.broadcast %685 : vector<1x128xf32> to vector<2x128xf32>
    %687 = arith.addf %684, %686 : vector<2x128xf32>
    %cst_445 = arith.constant 0.000000e+00 : f32
    %688 = vector.broadcast %cst_445 : f32 to vector<2x128xf32>
    %689 = arith.maximumf %687, %688 : vector<2x128xf32>
    %690 = arith.truncf %689 : vector<2x128xf32> to vector<2x128xbf16>
    %cst_446 = arith.constant 0.000000e+00 : bf16
    %691 = vector.broadcast %cst_446 : bf16 to vector<1x128xbf16>
    %692 = tpu.concatenate %691, %690, %691 in 0 : vector<1x128xbf16>, vector<2x128xbf16>, vector<1x128xbf16> -> vector<4x128xbf16>
    %693 = vector.extract_strided_slice %692 {offsets = [0, 0], sizes = [2, 128], strides = [1, 1]} : vector<4x128xbf16> to vector<2x128xbf16>
    %c3_447 = arith.constant 3 : index
    %c0_448 = arith.constant 0 : index
    %c0_449 = arith.constant 0 : index
    %694 = vector.load %arg27[%c3_447, %c0_448, %c0_449] : memref<9x128x128xbf16, #tpu.memory_space<vmem>>, vector<1x128x128xbf16>
    %695 = vector.shape_cast %694 : vector<1x128x128xbf16> to vector<128x128xbf16>
    %cst_450 = arith.constant dense<0.000000e+00> : vector<2x128xf32>
    %696 = tpu.matmul %693, %695, %cst_450 {dimension_numbers = #tpu.dot_dimension_numbers<[1], [0], [0], [1], [0, 0, 1, 1], [], []>} : vector<2x128xbf16>, vector<128x128xbf16>, vector<2x128xf32> -> vector<2x128xf32>
    %697 = vector.extract_strided_slice %692 {offsets = [1, 0], sizes = [2, 128], strides = [1, 1]} : vector<4x128xbf16> to vector<2x128xbf16>
    %c4_451 = arith.constant 4 : index
    %c0_452 = arith.constant 0 : index
    %c0_453 = arith.constant 0 : index
    %698 = vector.load %arg27[%c4_451, %c0_452, %c0_453] : memref<9x128x128xbf16, #tpu.memory_space<vmem>>, vector<1x128x128xbf16>
    %699 = vector.shape_cast %698 : vector<1x128x128xbf16> to vector<128x128xbf16>
    %cst_454 = arith.constant dense<0.000000e+00> : vector<2x128xf32>
    %700 = tpu.matmul %697, %699, %cst_454 {dimension_numbers = #tpu.dot_dimension_numbers<[1], [0], [0], [1], [0, 0, 1, 1], [], []>} : vector<2x128xbf16>, vector<128x128xbf16>, vector<2x128xf32> -> vector<2x128xf32>
    %701 = arith.addf %696, %700 : vector<2x128xf32>
    %702 = vector.extract_strided_slice %692 {offsets = [2, 0], sizes = [2, 128], strides = [1, 1]} : vector<4x128xbf16> to vector<2x128xbf16>
    %c5_455 = arith.constant 5 : index
    %c0_456 = arith.constant 0 : index
    %c0_457 = arith.constant 0 : index
    %703 = vector.load %arg27[%c5_455, %c0_456, %c0_457] : memref<9x128x128xbf16, #tpu.memory_space<vmem>>, vector<1x128x128xbf16>
    %704 = vector.shape_cast %703 : vector<1x128x128xbf16> to vector<128x128xbf16>
    %cst_458 = arith.constant dense<0.000000e+00> : vector<2x128xf32>
    %705 = tpu.matmul %702, %704, %cst_458 {dimension_numbers = #tpu.dot_dimension_numbers<[1], [0], [0], [1], [0, 0, 1, 1], [], []>} : vector<2x128xbf16>, vector<128x128xbf16>, vector<2x128xf32> -> vector<2x128xf32>
    %706 = arith.addf %701, %705 : vector<2x128xf32>
    %707 = vector.extract_strided_slice %681 {offsets = [1, 0], sizes = [1, 128], strides = [1, 1]} : vector<2x128xf32> to vector<1x128xf32>
    %708 = vector.broadcast %707 : vector<1x128xf32> to vector<2x128xf32>
    %709 = arith.addf %706, %708 : vector<2x128xf32>
    %cst_459 = arith.constant 0.000000e+00 : f32
    %710 = vector.broadcast %cst_459 : f32 to vector<2x128xf32>
    %711 = arith.maximumf %709, %710 : vector<2x128xf32>
    %712 = arith.truncf %711 : vector<2x128xf32> to vector<2x128xbf16>
    %c128_460 = arith.constant 128 : index
    %c0_461 = arith.constant 0 : index
    %713 = vector.load %arg28[%c128_460, %c0_461] : memref<384x512xbf16, #tpu.memory_space<vmem>>, vector<128x512xbf16>
    %cst_462 = arith.constant dense<0.000000e+00> : vector<2x512xf32>
    %714 = tpu.matmul %712, %713, %cst_462 {dimension_numbers = #tpu.dot_dimension_numbers<[1], [0], [0], [1], [0, 0, 1, 1], [], []>} : vector<2x128xbf16>, vector<128x512xbf16>, vector<2x512xf32> -> vector<2x512xf32>
    %c1_463 = arith.constant 1 : index
    %c0_464 = arith.constant 0 : index
    %c0_465 = arith.constant 0 : index
    %715 = vector.load %arg31[%c1_463, %c0_464, %c0_465] : memref<4x1x512xf32, #tpu.memory_space<vmem>>, vector<1x1x512xf32>
    %716 = vector.shape_cast %715 : vector<1x1x512xf32> to vector<1x512xf32>
    %717 = vector.broadcast %716 : vector<1x512xf32> to vector<2x512xf32>
    %718 = arith.addf %714, %717 : vector<2x512xf32>
    %719 = arith.addf %718, %679 : vector<2x512xf32>
    %cst_466 = arith.constant 0.000000e+00 : f32
    %720 = vector.broadcast %cst_466 : f32 to vector<2x512xf32>
    %721 = arith.maximumf %719, %720 : vector<2x512xf32>
    %c2_467 = arith.constant 2 : index
    %c0_468 = arith.constant 0 : index
    %c0_469 = arith.constant 0 : index
    %722 = vector.load %arg30[%c2_467, %c0_468, %c0_469] : memref<3x2x128xf32, #tpu.memory_space<vmem>>, vector<1x2x128xf32>
    %723 = vector.shape_cast %722 : vector<1x2x128xf32> to vector<2x128xf32>
    %724 = arith.truncf %721 : vector<2x512xf32> to vector<2x512xbf16>
    %c768 = arith.constant 768 : index
    %c0_470 = arith.constant 0 : index
    %725 = vector.load %arg26[%c768, %c0_470] : memref<1280x128xbf16, #tpu.memory_space<vmem>>, vector<512x128xbf16>
    %cst_471 = arith.constant dense<0.000000e+00> : vector<2x128xf32>
    %726 = tpu.matmul %724, %725, %cst_471 {dimension_numbers = #tpu.dot_dimension_numbers<[1], [0], [0], [1], [0, 0, 1, 1], [], []>} : vector<2x512xbf16>, vector<512x128xbf16>, vector<2x128xf32> -> vector<2x128xf32>
    %727 = vector.extract_strided_slice %723 {offsets = [0, 0], sizes = [1, 128], strides = [1, 1]} : vector<2x128xf32> to vector<1x128xf32>
    %728 = vector.broadcast %727 : vector<1x128xf32> to vector<2x128xf32>
    %729 = arith.addf %726, %728 : vector<2x128xf32>
    %cst_472 = arith.constant 0.000000e+00 : f32
    %730 = vector.broadcast %cst_472 : f32 to vector<2x128xf32>
    %731 = arith.maximumf %729, %730 : vector<2x128xf32>
    %732 = arith.truncf %731 : vector<2x128xf32> to vector<2x128xbf16>
    %cst_473 = arith.constant 0.000000e+00 : bf16
    %733 = vector.broadcast %cst_473 : bf16 to vector<1x128xbf16>
    %734 = tpu.concatenate %733, %732, %733 in 0 : vector<1x128xbf16>, vector<2x128xbf16>, vector<1x128xbf16> -> vector<4x128xbf16>
    %735 = vector.extract_strided_slice %734 {offsets = [0, 0], sizes = [2, 128], strides = [1, 1]} : vector<4x128xbf16> to vector<2x128xbf16>
    %c6_474 = arith.constant 6 : index
    %c0_475 = arith.constant 0 : index
    %c0_476 = arith.constant 0 : index
    %736 = vector.load %arg27[%c6_474, %c0_475, %c0_476] : memref<9x128x128xbf16, #tpu.memory_space<vmem>>, vector<1x128x128xbf16>
    %737 = vector.shape_cast %736 : vector<1x128x128xbf16> to vector<128x128xbf16>
    %cst_477 = arith.constant dense<0.000000e+00> : vector<2x128xf32>
    %738 = tpu.matmul %735, %737, %cst_477 {dimension_numbers = #tpu.dot_dimension_numbers<[1], [0], [0], [1], [0, 0, 1, 1], [], []>} : vector<2x128xbf16>, vector<128x128xbf16>, vector<2x128xf32> -> vector<2x128xf32>
    %739 = vector.extract_strided_slice %734 {offsets = [1, 0], sizes = [2, 128], strides = [1, 1]} : vector<4x128xbf16> to vector<2x128xbf16>
    %c7_478 = arith.constant 7 : index
    %c0_479 = arith.constant 0 : index
    %c0_480 = arith.constant 0 : index
    %740 = vector.load %arg27[%c7_478, %c0_479, %c0_480] : memref<9x128x128xbf16, #tpu.memory_space<vmem>>, vector<1x128x128xbf16>
    %741 = vector.shape_cast %740 : vector<1x128x128xbf16> to vector<128x128xbf16>
    %cst_481 = arith.constant dense<0.000000e+00> : vector<2x128xf32>
    %742 = tpu.matmul %739, %741, %cst_481 {dimension_numbers = #tpu.dot_dimension_numbers<[1], [0], [0], [1], [0, 0, 1, 1], [], []>} : vector<2x128xbf16>, vector<128x128xbf16>, vector<2x128xf32> -> vector<2x128xf32>
    %743 = arith.addf %738, %742 : vector<2x128xf32>
    %744 = vector.extract_strided_slice %734 {offsets = [2, 0], sizes = [2, 128], strides = [1, 1]} : vector<4x128xbf16> to vector<2x128xbf16>
    %c8_482 = arith.constant 8 : index
    %c0_483 = arith.constant 0 : index
    %c0_484 = arith.constant 0 : index
    %745 = vector.load %arg27[%c8_482, %c0_483, %c0_484] : memref<9x128x128xbf16, #tpu.memory_space<vmem>>, vector<1x128x128xbf16>
    %746 = vector.shape_cast %745 : vector<1x128x128xbf16> to vector<128x128xbf16>
    %cst_485 = arith.constant dense<0.000000e+00> : vector<2x128xf32>
    %747 = tpu.matmul %744, %746, %cst_485 {dimension_numbers = #tpu.dot_dimension_numbers<[1], [0], [0], [1], [0, 0, 1, 1], [], []>} : vector<2x128xbf16>, vector<128x128xbf16>, vector<2x128xf32> -> vector<2x128xf32>
    %748 = arith.addf %743, %747 : vector<2x128xf32>
    %749 = vector.extract_strided_slice %723 {offsets = [1, 0], sizes = [1, 128], strides = [1, 1]} : vector<2x128xf32> to vector<1x128xf32>
    %750 = vector.broadcast %749 : vector<1x128xf32> to vector<2x128xf32>
    %751 = arith.addf %748, %750 : vector<2x128xf32>
    %cst_486 = arith.constant 0.000000e+00 : f32
    %752 = vector.broadcast %cst_486 : f32 to vector<2x128xf32>
    %753 = arith.maximumf %751, %752 : vector<2x128xf32>
    %754 = arith.truncf %753 : vector<2x128xf32> to vector<2x128xbf16>
    %c256_487 = arith.constant 256 : index
    %c0_488 = arith.constant 0 : index
    %755 = vector.load %arg28[%c256_487, %c0_488] : memref<384x512xbf16, #tpu.memory_space<vmem>>, vector<128x512xbf16>
    %cst_489 = arith.constant dense<0.000000e+00> : vector<2x512xf32>
    %756 = tpu.matmul %754, %755, %cst_489 {dimension_numbers = #tpu.dot_dimension_numbers<[1], [0], [0], [1], [0, 0, 1, 1], [], []>} : vector<2x128xbf16>, vector<128x512xbf16>, vector<2x512xf32> -> vector<2x512xf32>
    %c2_490 = arith.constant 2 : index
    %c0_491 = arith.constant 0 : index
    %c0_492 = arith.constant 0 : index
    %757 = vector.load %arg31[%c2_490, %c0_491, %c0_492] : memref<4x1x512xf32, #tpu.memory_space<vmem>>, vector<1x1x512xf32>
    %758 = vector.shape_cast %757 : vector<1x1x512xf32> to vector<1x512xf32>
    %759 = vector.broadcast %758 : vector<1x512xf32> to vector<2x512xf32>
    %760 = arith.addf %756, %759 : vector<2x512xf32>
    %761 = arith.addf %760, %721 : vector<2x512xf32>
    %cst_493 = arith.constant 0.000000e+00 : f32
    %762 = vector.broadcast %cst_493 : f32 to vector<2x512xf32>
    %763 = arith.maximumf %761, %762 : vector<2x512xf32>
    %cst_494 = arith.constant dense<0.000000e+00> : vector<512xf32>
    %764 = vector.multi_reduction <add>, %763, %cst_494 [0] : vector<2x512xf32> to vector<512xf32>
    %765 = vector.shape_cast %764 : vector<512xf32> to vector<1x512xf32>
    %cst_495 = arith.constant 2.000000e+00 : f32
    %766 = vector.broadcast %cst_495 : f32 to vector<1x512xf32>
    %767 = arith.divf %765, %766 : vector<1x512xf32>
    %768 = arith.truncf %767 : vector<1x512xf32> to vector<1x512xbf16>
    %c0_496 = arith.constant 0 : index
    %c0_497 = arith.constant 0 : index
    %769 = vector.load %arg33[%c0_496, %c0_497] : memref<512x75xbf16, #tpu.memory_space<vmem>>, vector<512x75xbf16>
    %cst_498 = arith.constant dense<0.000000e+00> : vector<1x75xf32>
    %770 = tpu.matmul %768, %769, %cst_498 {dimension_numbers = #tpu.dot_dimension_numbers<[1], [0], [0], [1], [0, 0, 1, 1], [], []>} : vector<1x512xbf16>, vector<512x75xbf16>, vector<1x75xf32> -> vector<1x75xf32>
    %c0_499 = arith.constant 0 : index
    %c0_500 = arith.constant 0 : index
    %771 = vector.load %arg34[%c0_499, %c0_500] : memref<1x75xf32, #tpu.memory_space<vmem>>, vector<1x75xf32>
    %772 = arith.addf %770, %771 : vector<1x75xf32>
    %773 = vector.extract_strided_slice %772 {offsets = [0, 0], sizes = [1, 25], strides = [1, 1]} : vector<1x75xf32> to vector<1x25xf32>
    %774 = arith.negf %773 : vector<1x25xf32>
    %775 = math.exp %774 : vector<1x25xf32>
    %cst_501 = arith.constant 1.000000e+00 : f32
    %776 = vector.broadcast %cst_501 : f32 to vector<1x25xf32>
    %777 = arith.addf %776, %775 : vector<1x25xf32>
    %778 = arith.divf %776, %777 : vector<1x25xf32>
    %779 = vector.extract_strided_slice %772 {offsets = [0, 25], sizes = [1, 25], strides = [1, 1]} : vector<1x75xf32> to vector<1x25xf32>
    %780 = arith.negf %779 : vector<1x25xf32>
    %781 = math.exp %780 : vector<1x25xf32>
    %cst_502 = arith.constant 1.000000e+00 : f32
    %782 = vector.broadcast %cst_502 : f32 to vector<1x25xf32>
    %783 = arith.addf %782, %781 : vector<1x25xf32>
    %784 = arith.divf %782, %783 : vector<1x25xf32>
    %785 = vector.extract_strided_slice %772 {offsets = [0, 50], sizes = [1, 25], strides = [1, 1]} : vector<1x75xf32> to vector<1x25xf32>
    %c0_503 = arith.constant 0 : index
    %c0_504 = arith.constant 0 : index
    %786 = vector.load %arg35[%c0_503, %c0_504] : memref<1x25xf32, #tpu.memory_space<vmem>>, vector<1x25xf32>
    %787 = arith.mulf %778, %786 : vector<1x25xf32>
    %788 = arith.addf %785, %787 : vector<1x25xf32>
    %789 = math.tanh %788 : vector<1x25xf32>
    %cst_505 = arith.constant 1.000000e+00 : f32
    %790 = vector.broadcast %cst_505 : f32 to vector<1x25xf32>
    %791 = arith.subf %790, %784 : vector<1x25xf32>
    %792 = arith.mulf %791, %789 : vector<1x25xf32>
    %793 = arith.truncf %792 : vector<1x25xf32> to vector<1x25xbf16>
    %c0_506 = arith.constant 0 : index
    %c0_507 = arith.constant 0 : index
    %794 = vector.load %arg36[%c0_506, %c0_507] : memref<25x75xbf16, #tpu.memory_space<vmem>>, vector<25x75xbf16>
    %cst_508 = arith.constant dense<0.000000e+00> : vector<1x75xf32>
    %795 = tpu.matmul %793, %794, %cst_508 {dimension_numbers = #tpu.dot_dimension_numbers<[1], [0], [0], [1], [0, 0, 1, 1], [], []>} : vector<1x25xbf16>, vector<25x75xbf16>, vector<1x75xf32> -> vector<1x75xf32>
    %c0_509 = arith.constant 0 : index
    %c0_510 = arith.constant 0 : index
    %796 = vector.load %arg37[%c0_509, %c0_510] : memref<1x75xf32, #tpu.memory_space<vmem>>, vector<1x75xf32>
    %797 = arith.addf %795, %796 : vector<1x75xf32>
    %798 = vector.extract_strided_slice %797 {offsets = [0, 0], sizes = [1, 25], strides = [1, 1]} : vector<1x75xf32> to vector<1x25xf32>
    %799 = arith.negf %798 : vector<1x25xf32>
    %800 = math.exp %799 : vector<1x25xf32>
    %cst_511 = arith.constant 1.000000e+00 : f32
    %801 = vector.broadcast %cst_511 : f32 to vector<1x25xf32>
    %802 = arith.addf %801, %800 : vector<1x25xf32>
    %803 = arith.divf %801, %802 : vector<1x25xf32>
    %804 = vector.extract_strided_slice %797 {offsets = [0, 25], sizes = [1, 25], strides = [1, 1]} : vector<1x75xf32> to vector<1x25xf32>
    %805 = arith.negf %804 : vector<1x25xf32>
    %806 = math.exp %805 : vector<1x25xf32>
    %cst_512 = arith.constant 1.000000e+00 : f32
    %807 = vector.broadcast %cst_512 : f32 to vector<1x25xf32>
    %808 = arith.addf %807, %806 : vector<1x25xf32>
    %809 = arith.divf %807, %808 : vector<1x25xf32>
    %810 = vector.extract_strided_slice %797 {offsets = [0, 50], sizes = [1, 25], strides = [1, 1]} : vector<1x75xf32> to vector<1x25xf32>
    %c0_513 = arith.constant 0 : index
    %c0_514 = arith.constant 0 : index
    %811 = vector.load %arg38[%c0_513, %c0_514] : memref<1x25xf32, #tpu.memory_space<vmem>>, vector<1x25xf32>
    %812 = arith.mulf %803, %811 : vector<1x25xf32>
    %813 = arith.addf %810, %812 : vector<1x25xf32>
    %814 = math.tanh %813 : vector<1x25xf32>
    %cst_515 = arith.constant 1.000000e+00 : f32
    %815 = vector.broadcast %cst_515 : f32 to vector<1x25xf32>
    %816 = arith.subf %815, %809 : vector<1x25xf32>
    %817 = arith.mulf %816, %814 : vector<1x25xf32>
    %818 = arith.truncf %817 : vector<1x25xf32> to vector<1x25xbf16>
    %c0_516 = arith.constant 0 : index
    %c0_517 = arith.constant 0 : index
    %819 = vector.load %arg39[%c0_516, %c0_517] : memref<25x75xbf16, #tpu.memory_space<vmem>>, vector<25x75xbf16>
    %cst_518 = arith.constant dense<0.000000e+00> : vector<1x75xf32>
    %820 = tpu.matmul %818, %819, %cst_518 {dimension_numbers = #tpu.dot_dimension_numbers<[1], [0], [0], [1], [0, 0, 1, 1], [], []>} : vector<1x25xbf16>, vector<25x75xbf16>, vector<1x75xf32> -> vector<1x75xf32>
    %c0_519 = arith.constant 0 : index
    %c0_520 = arith.constant 0 : index
    %821 = vector.load %arg40[%c0_519, %c0_520] : memref<1x75xf32, #tpu.memory_space<vmem>>, vector<1x75xf32>
    %822 = arith.addf %820, %821 : vector<1x75xf32>
    %823 = vector.extract_strided_slice %822 {offsets = [0, 0], sizes = [1, 25], strides = [1, 1]} : vector<1x75xf32> to vector<1x25xf32>
    %824 = arith.negf %823 : vector<1x25xf32>
    %825 = math.exp %824 : vector<1x25xf32>
    %cst_521 = arith.constant 1.000000e+00 : f32
    %826 = vector.broadcast %cst_521 : f32 to vector<1x25xf32>
    %827 = arith.addf %826, %825 : vector<1x25xf32>
    %828 = arith.divf %826, %827 : vector<1x25xf32>
    %829 = vector.extract_strided_slice %822 {offsets = [0, 25], sizes = [1, 25], strides = [1, 1]} : vector<1x75xf32> to vector<1x25xf32>
    %830 = arith.negf %829 : vector<1x25xf32>
    %831 = math.exp %830 : vector<1x25xf32>
    %cst_522 = arith.constant 1.000000e+00 : f32
    %832 = vector.broadcast %cst_522 : f32 to vector<1x25xf32>
    %833 = arith.addf %832, %831 : vector<1x25xf32>
    %834 = arith.divf %832, %833 : vector<1x25xf32>
    %835 = vector.extract_strided_slice %822 {offsets = [0, 50], sizes = [1, 25], strides = [1, 1]} : vector<1x75xf32> to vector<1x25xf32>
    %c0_523 = arith.constant 0 : index
    %c0_524 = arith.constant 0 : index
    %836 = vector.load %arg41[%c0_523, %c0_524] : memref<1x25xf32, #tpu.memory_space<vmem>>, vector<1x25xf32>
    %837 = arith.mulf %828, %836 : vector<1x25xf32>
    %838 = arith.addf %835, %837 : vector<1x25xf32>
    %839 = math.tanh %838 : vector<1x25xf32>
    %cst_525 = arith.constant 1.000000e+00 : f32
    %840 = vector.broadcast %cst_525 : f32 to vector<1x25xf32>
    %841 = arith.subf %840, %834 : vector<1x25xf32>
    %842 = arith.mulf %841, %839 : vector<1x25xf32>
    %843 = arith.truncf %842 : vector<1x25xf32> to vector<1x25xbf16>
    %c0_526 = arith.constant 0 : index
    %c0_527 = arith.constant 0 : index
    %844 = vector.load %arg42[%c0_526, %c0_527] : memref<25x2xbf16, #tpu.memory_space<vmem>>, vector<25x2xbf16>
    %cst_528 = arith.constant dense<0.000000e+00> : vector<1x2xf32>
    %845 = tpu.matmul %843, %844, %cst_528 {dimension_numbers = #tpu.dot_dimension_numbers<[1], [0], [0], [1], [0, 0, 1, 1], [], []>} : vector<1x25xbf16>, vector<25x2xbf16>, vector<1x2xf32> -> vector<1x2xf32>
    %c0_529 = arith.constant 0 : index
    %c0_530 = arith.constant 0 : index
    %846 = vector.load %arg43[%c0_529, %c0_530] : memref<1x2xf32, #tpu.memory_space<vmem>>, vector<1x2xf32>
    %847 = arith.addf %845, %846 : vector<1x2xf32>
    %c0_531 = arith.constant 0 : index
    %c0_532 = arith.constant 0 : index
    %c0_533 = arith.constant 0 : index
    %848 = vector.load %arg44[%c0_531, %c0_532, %c0_533] : memref<1x1x2xf32, #tpu.memory_space<vmem>>, vector<1x1x2xf32>
    %849 = vector.shape_cast %848 : vector<1x1x2xf32> to vector<1x2xf32>
    %850 = vector.shape_cast %847 : vector<1x2xf32> to vector<1x1x2xf32>
    tpu.vector_store %arg44[%c0_531, %c0_532, %c0_533], %850 {strides = array<i32>} : memref<1x1x2xf32, #tpu.memory_space<vmem>>, vector<1x1x2xf32>,
    return
  }
  func.func @transform_0(%arg0: i32) -> (i32, i32, i32) {
    %c0_i32 = arith.constant 0 : i32
    %c0_i32_0 = arith.constant 0 : i32
    %c0_i32_1 = arith.constant 0 : i32
    return %arg0, %c0_i32, %c0_i32_0 : i32, i32, i32
  }
  func.func @transform_1(%arg0: i32) -> (i32, i32, i32) {
    %c0_i32 = arith.constant 0 : i32
    %c0_i32_0 = arith.constant 0 : i32
    %c0_i32_1 = arith.constant 0 : i32
    %c0_i32_2 = arith.constant 0 : i32
    return %c0_i32, %c0_i32_0, %c0_i32_1 : i32, i32, i32
  }
  func.func @transform_2(%arg0: i32) -> (i32, i32) {
    %c0_i32 = arith.constant 0 : i32
    %c0_i32_0 = arith.constant 0 : i32
    %c0_i32_1 = arith.constant 0 : i32
    return %c0_i32, %c0_i32_0 : i32, i32
  }
  func.func @transform_3(%arg0: i32) -> (i32, i32) {
    %c0_i32 = arith.constant 0 : i32
    %c0_i32_0 = arith.constant 0 : i32
    %c0_i32_1 = arith.constant 0 : i32
    return %c0_i32, %c0_i32_0 : i32, i32
  }
  func.func @transform_4(%arg0: i32) -> (i32, i32) {
    %c0_i32 = arith.constant 0 : i32
    %c0_i32_0 = arith.constant 0 : i32
    %c0_i32_1 = arith.constant 0 : i32
    return %c0_i32, %c0_i32_0 : i32, i32
  }
  func.func @transform_5(%arg0: i32) -> (i32, i32) {
    %c0_i32 = arith.constant 0 : i32
    %c0_i32_0 = arith.constant 0 : i32
    %c0_i32_1 = arith.constant 0 : i32
    return %c0_i32, %c0_i32_0 : i32, i32
  }
  func.func @transform_6(%arg0: i32) -> (i32, i32, i32) {
    %c0_i32 = arith.constant 0 : i32
    %c0_i32_0 = arith.constant 0 : i32
    %c0_i32_1 = arith.constant 0 : i32
    %c0_i32_2 = arith.constant 0 : i32
    return %c0_i32, %c0_i32_0, %c0_i32_1 : i32, i32, i32
  }
  func.func @transform_7(%arg0: i32) -> (i32, i32) {
    %c0_i32 = arith.constant 0 : i32
    %c0_i32_0 = arith.constant 0 : i32
    %c0_i32_1 = arith.constant 0 : i32
    return %c0_i32, %c0_i32_0 : i32, i32
  }
  func.func @transform_8(%arg0: i32) -> (i32, i32) {
    %c0_i32 = arith.constant 0 : i32
    %c0_i32_0 = arith.constant 0 : i32
    %c0_i32_1 = arith.constant 0 : i32
    return %c0_i32, %c0_i32_0 : i32, i32
  }
  func.func @transform_9(%arg0: i32) -> (i32, i32, i32) {
    %c0_i32 = arith.constant 0 : i32
    %c0_i32_0 = arith.constant 0 : i32
    %c0_i32_1 = arith.constant 0 : i32
    %c0_i32_2 = arith.constant 0 : i32
    return %c0_i32, %c0_i32_0, %c0_i32_1 : i32, i32, i32
  }
  func.func @transform_10(%arg0: i32) -> (i32, i32, i32) {
    %c0_i32 = arith.constant 0 : i32
    %c0_i32_0 = arith.constant 0 : i32
    %c0_i32_1 = arith.constant 0 : i32
    %c0_i32_2 = arith.constant 0 : i32
    return %c0_i32, %c0_i32_0, %c0_i32_1 : i32, i32, i32
  }
  func.func @transform_11(%arg0: i32) -> (i32, i32) {
    %c0_i32 = arith.constant 0 : i32
    %c0_i32_0 = arith.constant 0 : i32
    %c0_i32_1 = arith.constant 0 : i32
    return %c0_i32, %c0_i32_0 : i32, i32
  }
  func.func @transform_12(%arg0: i32) -> (i32, i32, i32) {
    %c0_i32 = arith.constant 0 : i32
    %c0_i32_0 = arith.constant 0 : i32
    %c0_i32_1 = arith.constant 0 : i32
    %c0_i32_2 = arith.constant 0 : i32
    return %c0_i32, %c0_i32_0, %c0_i32_1 : i32, i32, i32
  }
  func.func @transform_13(%arg0: i32) -> (i32, i32) {
    %c0_i32 = arith.constant 0 : i32
    %c0_i32_0 = arith.constant 0 : i32
    %c0_i32_1 = arith.constant 0 : i32
    return %c0_i32, %c0_i32_0 : i32, i32
  }
  func.func @transform_14(%arg0: i32) -> (i32, i32) {
    %c0_i32 = arith.constant 0 : i32
    %c0_i32_0 = arith.constant 0 : i32
    %c0_i32_1 = arith.constant 0 : i32
    return %c0_i32, %c0_i32_0 : i32, i32
  }
  func.func @transform_15(%arg0: i32) -> (i32, i32, i32) {
    %c0_i32 = arith.constant 0 : i32
    %c0_i32_0 = arith.constant 0 : i32
    %c0_i32_1 = arith.constant 0 : i32
    %c0_i32_2 = arith.constant 0 : i32
    return %c0_i32, %c0_i32_0, %c0_i32_1 : i32, i32, i32
  }
  func.func @transform_16(%arg0: i32) -> (i32, i32, i32) {
    %c0_i32 = arith.constant 0 : i32
    %c0_i32_0 = arith.constant 0 : i32
    %c0_i32_1 = arith.constant 0 : i32
    %c0_i32_2 = arith.constant 0 : i32
    return %c0_i32, %c0_i32_0, %c0_i32_1 : i32, i32, i32
  }
  func.func @transform_17(%arg0: i32) -> (i32, i32) {
    %c0_i32 = arith.constant 0 : i32
    %c0_i32_0 = arith.constant 0 : i32
    %c0_i32_1 = arith.constant 0 : i32
    return %c0_i32, %c0_i32_0 : i32, i32
  }
  func.func @transform_18(%arg0: i32) -> (i32, i32) {
    %c0_i32 = arith.constant 0 : i32
    %c0_i32_0 = arith.constant 0 : i32
    %c0_i32_1 = arith.constant 0 : i32
    return %c0_i32, %c0_i32_0 : i32, i32
  }
  func.func @transform_19(%arg0: i32) -> (i32, i32, i32) {
    %c0_i32 = arith.constant 0 : i32
    %c0_i32_0 = arith.constant 0 : i32
    %c0_i32_1 = arith.constant 0 : i32
    %c0_i32_2 = arith.constant 0 : i32
    return %c0_i32, %c0_i32_0, %c0_i32_1 : i32, i32, i32
  }
  func.func @transform_20(%arg0: i32) -> (i32, i32) {
    %c0_i32 = arith.constant 0 : i32
    %c0_i32_0 = arith.constant 0 : i32
    %c0_i32_1 = arith.constant 0 : i32
    return %c0_i32, %c0_i32_0 : i32, i32
  }
  func.func @transform_21(%arg0: i32) -> (i32, i32) {
    %c0_i32 = arith.constant 0 : i32
    %c0_i32_0 = arith.constant 0 : i32
    %c0_i32_1 = arith.constant 0 : i32
    return %c0_i32, %c0_i32_0 : i32, i32
  }
  func.func @transform_22(%arg0: i32) -> (i32, i32, i32) {
    %c0_i32 = arith.constant 0 : i32
    %c0_i32_0 = arith.constant 0 : i32
    %c0_i32_1 = arith.constant 0 : i32
    %c0_i32_2 = arith.constant 0 : i32
    return %c0_i32, %c0_i32_0, %c0_i32_1 : i32, i32, i32
  }
  func.func @transform_23(%arg0: i32) -> (i32, i32, i32) {
    %c0_i32 = arith.constant 0 : i32
    %c0_i32_0 = arith.constant 0 : i32
    %c0_i32_1 = arith.constant 0 : i32
    %c0_i32_2 = arith.constant 0 : i32
    return %c0_i32, %c0_i32_0, %c0_i32_1 : i32, i32, i32
  }
  func.func @transform_24(%arg0: i32) -> (i32, i32) {
    %c0_i32 = arith.constant 0 : i32
    %c0_i32_0 = arith.constant 0 : i32
    %c0_i32_1 = arith.constant 0 : i32
    return %c0_i32, %c0_i32_0 : i32, i32
  }
  func.func @transform_25(%arg0: i32) -> (i32, i32) {
    %c0_i32 = arith.constant 0 : i32
    %c0_i32_0 = arith.constant 0 : i32
    %c0_i32_1 = arith.constant 0 : i32
    return %c0_i32, %c0_i32_0 : i32, i32
  }
  func.func @transform_26(%arg0: i32) -> (i32, i32, i32) {
    %c0_i32 = arith.constant 0 : i32
    %c0_i32_0 = arith.constant 0 : i32
    %c0_i32_1 = arith.constant 0 : i32
    %c0_i32_2 = arith.constant 0 : i32
    return %c0_i32, %c0_i32_0, %c0_i32_1 : i32, i32, i32
  }
  func.func @transform_27(%arg0: i32) -> (i32, i32) {
    %c0_i32 = arith.constant 0 : i32
    %c0_i32_0 = arith.constant 0 : i32
    %c0_i32_1 = arith.constant 0 : i32
    return %c0_i32, %c0_i32_0 : i32, i32
  }
  func.func @transform_28(%arg0: i32) -> (i32, i32) {
    %c0_i32 = arith.constant 0 : i32
    %c0_i32_0 = arith.constant 0 : i32
    %c0_i32_1 = arith.constant 0 : i32
    return %c0_i32, %c0_i32_0 : i32, i32
  }
  func.func @transform_29(%arg0: i32) -> (i32, i32, i32) {
    %c0_i32 = arith.constant 0 : i32
    %c0_i32_0 = arith.constant 0 : i32
    %c0_i32_1 = arith.constant 0 : i32
    %c0_i32_2 = arith.constant 0 : i32
    return %c0_i32, %c0_i32_0, %c0_i32_1 : i32, i32, i32
  }
  func.func @transform_30(%arg0: i32) -> (i32, i32, i32) {
    %c0_i32 = arith.constant 0 : i32
    %c0_i32_0 = arith.constant 0 : i32
    %c0_i32_1 = arith.constant 0 : i32
    %c0_i32_2 = arith.constant 0 : i32
    return %c0_i32, %c0_i32_0, %c0_i32_1 : i32, i32, i32
  }
  func.func @transform_31(%arg0: i32) -> (i32, i32) {
    %c0_i32 = arith.constant 0 : i32
    %c0_i32_0 = arith.constant 0 : i32
    %c0_i32_1 = arith.constant 0 : i32
    return %c0_i32, %c0_i32_0 : i32, i32
  }
  func.func @transform_32(%arg0: i32) -> (i32, i32) {
    %c0_i32 = arith.constant 0 : i32
    %c0_i32_0 = arith.constant 0 : i32
    %c0_i32_1 = arith.constant 0 : i32
    return %c0_i32, %c0_i32_0 : i32, i32
  }
  func.func @transform_33(%arg0: i32) -> (i32, i32) {
    %c0_i32 = arith.constant 0 : i32
    %c0_i32_0 = arith.constant 0 : i32
    %c0_i32_1 = arith.constant 0 : i32
    return %c0_i32, %c0_i32_0 : i32, i32
  }
  func.func @transform_34(%arg0: i32) -> (i32, i32) {
    %c0_i32 = arith.constant 0 : i32
    %c0_i32_0 = arith.constant 0 : i32
    %c0_i32_1 = arith.constant 0 : i32
    return %c0_i32, %c0_i32_0 : i32, i32
  }
  func.func @transform_35(%arg0: i32) -> (i32, i32) {
    %c0_i32 = arith.constant 0 : i32
    %c0_i32_0 = arith.constant 0 : i32
    %c0_i32_1 = arith.constant 0 : i32
    return %c0_i32, %c0_i32_0 : i32, i32
  }
  func.func @transform_36(%arg0: i32) -> (i32, i32) {
    %c0_i32 = arith.constant 0 : i32
    %c0_i32_0 = arith.constant 0 : i32
    %c0_i32_1 = arith.constant 0 : i32
    return %c0_i32, %c0_i32_0 : i32, i32
  }
  func.func @transform_37(%arg0: i32) -> (i32, i32) {
    %c0_i32 = arith.constant 0 : i32
    %c0_i32_0 = arith.constant 0 : i32
    %c0_i32_1 = arith.constant 0 : i32
    return %c0_i32, %c0_i32_0 : i32, i32
  }
  func.func @transform_38(%arg0: i32) -> (i32, i32) {
    %c0_i32 = arith.constant 0 : i32
    %c0_i32_0 = arith.constant 0 : i32
    %c0_i32_1 = arith.constant 0 : i32
    return %c0_i32, %c0_i32_0 : i32, i32
  }
  func.func @transform_39(%arg0: i32) -> (i32, i32) {
    %c0_i32 = arith.constant 0 : i32
    %c0_i32_0 = arith.constant 0 : i32
    %c0_i32_1 = arith.constant 0 : i32
    return %c0_i32, %c0_i32_0 : i32, i32
  }
  func.func @transform_40(%arg0: i32) -> (i32, i32) {
    %c0_i32 = arith.constant 0 : i32
    %c0_i32_0 = arith.constant 0 : i32
    %c0_i32_1 = arith.constant 0 : i32
    return %c0_i32, %c0_i32_0 : i32, i32
  }
  func.func @transform_41(%arg0: i32) -> (i32, i32) {
    %c0_i32 = arith.constant 0 : i32
    %c0_i32_0 = arith.constant 0 : i32
    %c0_i32_1 = arith.constant 0 : i32
    return %c0_i32, %c0_i32_0 : i32, i32
  }
  func.func @transform_42(%arg0: i32) -> (i32, i32) {
    %c0_i32 = arith.constant 0 : i32
    %c0_i32_0 = arith.constant 0 : i32
    %c0_i32_1 = arith.constant 0 : i32
    return %c0_i32, %c0_i32_0 : i32, i32
  }
  func.func @transform_43(%arg0: i32) -> (i32, i32, i32) {
    %c0_i32 = arith.constant 0 : i32
    %c0_i32_0 = arith.constant 0 : i32
    %c0_i32_1 = arith.constant 0 : i32
    return %arg0, %c0_i32, %c0_i32_0 : i32, i32, i32
  }
}

</mosaic_0001>

<bundles_post_ra>
// kernel: _lambda_.1
= control target key start
LH: loop header
LB: loop body
LE: loop exit
PB: predicated region body
PF: predicated region fallthrough
CT: control target
= control target key end

     0   :  { %s18244_s6 = smov 1   ;;  %s18245_s10 = smov 2   ;;  %s20149_s0 = inlined_call_operand.smem [shape: u32[44], index: -1, kind: input, shape index: {}] }
   0x1   :  { %s18346_s5 = sld [smem:[%s20149_s0]]   ;;  %s18246_s14 = smov 3  }
   0x2   :  { %s18351_s9 = sld [smem:[%s20149_s0 + %s18244_s6]]   ;;  %s18247_s18 = smov 4  }
   0x3   :  { %s18356_s13 = sld [smem:[%s20149_s0 + %s18245_s10]]   ;;  %s18248_s22 = smov 5  }
   0x4   :  { %s18361_s17 = sld [smem:[%s20149_s0 + %s18246_s14]]   ;;  %s18249_s26 = smov 6  }
   0x5   :  { %s18366_s21 = sld [smem:[%s20149_s0 + %s18247_s18]]   ;;  %s18250_s30 = smov 7  }
   0x6   :  { %s18371_s25 = sld [smem:[%s20149_s0 + %s18248_s22]]   ;;  %s18251_s4 = smov 8  }
   0x7   :  { %20175 = sst [smem:[#allocation76_spill]] %s18346_s5  ;;  %s18252_s10 = smov 9  }
   0x8   :  { %20176 = sst [smem:[#allocation77_spill]] %s18351_s9  ;;  %s18253_s15 = smov 10  }
   0x9   :  { %20177 = sst [smem:[#allocation78_spill]] %s18356_s13  ;;  %s18254_s20 = smov 11  }
   0xa   :  { %20178 = sst [smem:[#allocation79_spill]] %s18361_s17  ;;  %s18256_s1 = smov 13  }
   0xb   :  { %20179 = sst [smem:[#allocation80_spill]] %s18366_s21  ;;  %s18257_s7 = smov 14  }
   0xc   :  { %s18376_s29 = sld [smem:[%s20149_s0 + %s18249_s26]]   ;;  %s18255_s26 = smov 12  }
   0xd   :  { %s18381_s3 = sld [smem:[%s20149_s0 + %s18250_s30]]   ;;  %s18259_s22 = smov 16  }
   0xe   :  { %s18386_s8 = sld [smem:[%s20149_s0 + %s18251_s4]]   ;;  %s18260_s28 = smov 17  }
   0xf   :  { %s18391_s14 = sld [smem:[%s20149_s0 + %s18252_s10]]  }
  0x10   :  { %s18396_s19 = sld [smem:[%s20149_s0 + %s18253_s15]]   ;;  %s18258_s15 = smov 15  }
  0x11   :  { %s18401_s24 = sld [smem:[%s20149_s0 + %s18254_s20]]  }
  0x12   :  { %20180 = sst [smem:[#allocation81_spill]] %s18376_s29 }
  0x13   :  { %20181 = sst [smem:[#allocation82_spill]] %s18381_s3 }
  0x14   :  { %20182 = sst [smem:[#allocation83_spill]] %s18386_s8 }
  0x15   :  { %20183 = sst [smem:[#allocation84_spill]] %s18391_s14 }
  0x16   :  { %20184 = sst [smem:[#allocation85_spill]] %s18396_s19 }
  0x17   :  { %s18406_s30 = sld [smem:[%s20149_s0 + %s18255_s26]]  }
  0x18   :  { %s18411_s6 = sld [smem:[%s20149_s0 + %s18256_s1]]  }
  0x19   :  { %s18416_s12 = sld [smem:[%s20149_s0 + %s18257_s7]]   ;;  %s18261_s7 = smov 18  }
  0x1a   :  { %s18421_s20 = sld [smem:[%s20149_s0 + %s18258_s15]]   ;;  %s18262_s15 = smov 19  }
  0x1b   :  { %s18426_s27 = sld [smem:[%s20149_s0 + %s18259_s22]]   ;;  %s18263_s22 = smov 20  }
  0x1c   :  { %s18431_s4 = sld [smem:[%s20149_s0 + %s18260_s28]]   ;;  %s18264_s28 = smov 21  }
  0x1d   :  { %20185 = sst [smem:[#allocation86_spill]] %s18406_s30 }
  0x1e   :  { %20186 = sst [smem:[#allocation87_spill]] %s18411_s6 }
  0x1f   :  { %20187 = sst [smem:[#allocation88_spill]] %s18416_s12 }
  0x20   :  { %s18436_s9 = sld [smem:[%s20149_s0 + %s18261_s7]]   ;;  %s18265_s7 = smov 22  }
  0x21   :  { %20188 = sst [smem:[#allocation89_spill]] %s18426_s27 }
  0x22   :  { %20189 = sst [smem:[#allocation90_spill]] %s18431_s4 }
  0x23   :  { %s18441_s5 = sld [smem:[%s20149_s0 + %s18262_s15]]   ;;  %s18266_s15 = smov 23  }
  0x24   :  { %s18446_s27 = sld [smem:[%s20149_s0 + %s18263_s22]]   ;;  %s18267_s22 = smov 24  }
  0x25   :  { %s18451_s12 = sld [smem:[%s20149_s0 + %s18264_s28]]   ;;  %s18268_s28 = smov 25  }
  0x26   :  { %20190 = sst [smem:[#allocation91_spill]] %s18436_s9 }
  0x27   :  { %s18456_s9 = sld [smem:[%s20149_s0 + %s18265_s7]]   ;;  %s18269_s7 = smov 26  }
  0x28   :  { %s18461_s30 = sld [smem:[%s20149_s0 + %s18266_s15]]   ;;  %s18270_s15 = smov 27  }
  0x29   :  { %20191 = sst [smem:[#allocation92_spill]] %s18441_s5 }
  0x2a   :  { %20192 = sst [smem:[#allocation93_spill]] %s18446_s27 }
  0x2b   :  { %20193 = sst [smem:[#allocation94_spill]] %s18451_s12 }
  0x2c   :  { %s18466_s27 = sld [smem:[%s20149_s0 + %s18267_s22]]   ;;  %s18271_s22 = smov 28  }
  0x2d   :  { %20194 = sst [smem:[#allocation95_spill]] %s18456_s9 }
  0x2e   :  { %20195 = sst [smem:[#allocation96_spill]] %s18461_s30 }
  0x2f   :  { %s18471_s12 = sld [smem:[%s20149_s0 + %s18268_s28]]   ;;  %s18272_s28 = smov 29  }
  0x30   :  { %s18476_s19 = sld [smem:[%s20149_s0 + %s18269_s7]]   ;;  %s18273_s7 = smov 30  }
  0x31   :  { %s18481_s30 = sld [smem:[%s20149_s0 + %s18270_s15]]   ;;  %s18274_s15 = smov 31  }
  0x32   :  { %s18486_s8 = sld [smem:[%s20149_s0 + %s18271_s22]]   ;;  %s18275_s22 = smov 32  }
  0x33   :  { %s18496_s29 = sld [smem:[%s20149_s0 + %s18273_s7]]   ;;  %s18277_s7 = smov 34  }
  0x34   :  { %s18506_s21 = sld [smem:[%s20149_s0 + %s18275_s22]]   ;;  %s18279_s22 = smov 36  }
  0x35   :  { %20196 = sst [smem:[#allocation97_spill]] %s18471_s12 }
  0x36   :  { %s18491_s12 = sld [smem:[%s20149_s0 + %s18272_s28]]   ;;  %s18276_s28 = smov 33  }
  0x37   :  { %20197 = sst [smem:[#allocation98_spill]] %s18481_s30 }
  0x38   :  { %20198 = sst [smem:[#allocation99_spill]] %s18486_s8 }
  0x39   :  { %s18501_s30 = sld [smem:[%s20149_s0 + %s18274_s15]]   ;;  %s18278_s15 = smov 35  }
  0x3a   :  { %20201 = sst [smem:[#allocation102_spill]] %s18506_s21 }
  0x3b   :  { %s18516_s13 = sld [smem:[%s20149_s0 + %s18277_s7]]   ;;  %s18281_s7 = smov 38  }
  0x3c   :  { %20199 = sst [smem:[#allocation100_spill]] %s18491_s12 }
  0x3d   :  { %s18511_s12 = sld [smem:[%s20149_s0 + %s18276_s28]]   ;;  %s18280_s28 = smov 37  }
  0x3e   :  { %s18526_s21 = sld [smem:[%s20149_s0 + %s18279_s22]]   ;;  %s18283_s22 = smov 40  }
  0x3f   :  { %20200 = sst [smem:[#allocation101_spill]] %s18501_s30 }
  0x40   :  { %s18521_s30 = sld [smem:[%s20149_s0 + %s18278_s15]]   ;;  %s18282_s15 = smov 39  }
  0x41   :  { %20203 = sst [smem:[#allocation104_spill]] %s18516_s13 }
  0x42   :  { %s18536_s13 = sld [smem:[%s20149_s0 + %s18281_s7]]   ;;  %s18285_s7 = smov 42  }
  0x43   :  { %20202 = sst [smem:[#allocation103_spill]] %s18511_s12 }
  0x44   :  { %20205 = sst [smem:[#allocation106_spill]] %s18526_s21 }
  0x45   :  { %s18531_s12 = sld [smem:[%s20149_s0 + %s18280_s28]]   ;;  %s18284_s28 = smov 41  }
  0x46   :  { %20204 = sst [smem:[#allocation105_spill]] %s18521_s30 }
  0x47   :  { %s18541_s30 = sld [smem:[%s20149_s0 + %s18282_s15]]   ;;  %s18286_s15 = smov 43  }
  0x48   :  { %20207 = sst [smem:[#allocation108_spill]] %s18536_s13 }
  0x49   :  { %s18546_s21 = sld [smem:[%s20149_s0 + %s18283_s22]]  }
  0x4a   :  { %s18556_s13 = sld [smem:[%s20149_s0 + %s18285_s7]]  }
  0x4b   :  { %20206 = sst [smem:[#allocation107_spill]] %s18531_s12 }
  0x4c   :  { %s18551_s12 = sld [smem:[%s20149_s0 + %s18284_s28]]  }
  0x4d   :  { %20208 = sst [smem:[#allocation109_spill]] %s18541_s30 }
  0x4e   :  { %s18561_s30 = sld [smem:[%s20149_s0 + %s18286_s15]]  }
  0x4f   :  { %92 = vsyncpa [#allocation3], 0 }
  0x50   :  { %93 = vsyncpa [#allocation6], 0 }
  0x51   :  { %94 = vsyncpa [#allocation9], 0 }
  0x52   :  { %95 = vsyncpa [#allocation12], 0 }
  0x53   :  { %96 = vsyncpa [#allocation15], 0 }
  0x54   :  { %97 = vsyncpa [#allocation18], 0 }
  0x55   :  { %98 = vsyncpa [#allocation21], 0 }
  0x56   :  { %99 = vsyncpa [#allocation24], 0 }
  0x57   :  { %100 = vsyncpa [#allocation27], 0 }
  0x58   :  { %101 = vsyncpa [#allocation30], 0 }
  0x59   :  { %102 = vsyncpa [#allocation33], 0 }
  0x5a   :  { %103 = vsyncpa [#allocation36], 0 }
  0x5b   :  { %104 = vsyncpa [#allocation39], 0 }
  0x5c   :  { %105 = vsyncpa [#allocation42], 0 }
  0x5d   :  { %106 = vsyncpa [#allocation45], 0 }
  0x5e   :  { %107 = vsyncpa [#allocation48], 0 }
  0x5f   :  { %108 = vsyncpa [#allocation51], 0 }
  0x60   :  { %109 = vsyncpa [#allocation54], 0 }
  0x61   :  { %110 = vsyncpa [#allocation4], 0 }
  0x62   :  { %112 = vsyncpa [#allocation4 + $0x1], 0  ;;  %s18563_s0 = smov 0   ;;  %s18565_s22 = smov 0  }
  0x63   :  { %s18567_s23 = smov 0   ;;  %s18569_s26 = smov 0  }
  0x64 LB: > { %20209 = sst [smem:[#allocation110_spill]] %s18230_s0  ;;  %s18584_s28 = sadd.s32 4294967295, %s18242_s26   ;;  %s18242_s26 = sphi %s18569_s26, %s20273_s26   ;;  %s18238_s23 = sphi %s18567_s23, %s20275_s23   ;;  %s18234_s22 = sphi %s18565_s22, %s20277_s22   ;;  %s18230_s0 = sphi %s18563_s0, %s20276_s0  }
  0x65   : > { %20210 = sst [smem:[#allocation111_spill]] %s18238_s23  ;;  %s13722_s1 = sadd.s32 4294967294, %s18242_s26  }
  0x66   : > { %s18588_s2 = sadd.s32 1, %s18242_s26   ;;  %s1033_s7 = sadd.s32 1, %s18238_s23 }
  0x67   : > { %20211 = sst [smem:[#allocation112_spill]] %s18588_s2  ;;  %s1030_s10 = ssub.s32 %s18242_s26, %s18588_s2 }
  0x68   : > { %p1043_p0 = scmp.ne.s32.totalorder %s18238_s23, %s18234_s22  ;;  %p1031_p1 = scmp.eq.s32.totalorder %s1030_s10, 0 }
  0x69   : > { %p1044_p2 = scmp.eq.s32.totalorder %s18584_s28, 1  ;;  %p1049_p3 = scmp.ne.s32.totalorder %s18234_s22, %s18230_s0 }
  0x6a   : > { %p1050_p4 = scmp.eq.s32.totalorder %s13722_s1, 1  ;;  %p13723_p7 = scmp.ge.s32.totalorder %s18242_s26, 1 }
  0x6b   : > { %s18599_s11 = scalar_select %p1031_p1, %s18238_s23, %s1033_s7  }
  0x6c   : > { %p18601_p5 = por %p1044_p2, %p1043_p0  ;;  %p18605_p6 = por %p1050_p4, %p1049_p3 }
  0x6d   : > { %20212 = sst [smem:[#allocation113_spill]] %s18599_s11  ;;  %p1057_p8 = scmp.lt.s32.totalorder %s18242_s26, 3 }
  0x6e   : > { %s20213_s15 = scalar_select %p18601_p5, 1, 0 }
  0x6f   : > { %s20214_s16 = scalar_select %p18605_p6, 1, 0 }
  0x70   : > { %p18611_p9 = pnand %p13723_p7, %p1057_p8 }
  0x71   : > { %20215 = sst [smem:[#allocation114_spill]] %s20214_s16  ;;  %p16277_p10 = scmp.eq.s32.totalorder (!%p18611_p9), %s18584_s28, 0 }
  0x72   : > { %1061 = sbr.rel (%p18611_p9) target bundleno = 531 (0x213), region = 12  ;;  %s18287_s1 = smov (!%p18611_p9), [#allocation5]  }
  0x73   : > { %s1083_s7 = sshll.u32 (!%p18611_p9), %s18287_s1, 4  ;;  %s1084_s7 = int_to_ptr.vmem [resolvable:$true] %s1083_s7 }
  0x74   : > { %s17280_s10 = scalar_lea.vmem (!%p18611_p9), %s1084_s7, 512  ;;  %p17287_p0 = scmp.lt.s32.totalorder (!%p18611_p9), %s1084_s7, %s1084_s7 }
  0x75   : > { %p17281_p11 = scmp.ne.s32.totalorder (!%p18611_p9), %s1084_s7, %s17280_s10  ;;  %p17288_p1 = scmp.lt.s32.totalorder (!%p18611_p9), %s17280_s10, %s17280_s10 }
  0x77   : > { %p17282_p12 = pnand %p17281_p11, %p16277_p10  ;;  %p17289_p2 = por %p17288_p1, %p17287_p0 }
  0x79   : > { %p17283_p13 = pneg %p17282_p12 }
  0x7b   : > { %p17290_p3 = pnand %p17289_p2, %p17283_p13 }
  0x7d   : > { %17293 = shalt.err (!%p17290_p3)
}
  0x7e   : > { %s20158_s11 = smov 128   ;;  %s20217_s17 = sld [smem:[#allocation79_spill]] }
  0x7f   : > { %s20160_s23 = smov 8   ;;  %s18290_s1 = smov [#allocation8]  }
  0x80   : > { %s1109_s2 = sshll.u32 %s18290_s1, 4  ;;  %s1110_s2 = int_to_ptr.vmem [resolvable:$true] %s1109_s2 }
  0x81   : > { %s17304_s16 = scalar_lea.vmem %s1110_s2, 1152  ;;  %p17311_p11 = scmp.lt.s32.totalorder %s1110_s2, %s1110_s2 }
  0x82   : > { %p17305_p4 = scmp.ne.s32.totalorder %s1110_s2, %s17304_s16  ;;  %p17312_p12 = scmp.lt.s32.totalorder %s17304_s16, %s17304_s16 }
  0x84   : > { %16134 = dma.hbm_to_vmem [thread:$0]  (%p16277_p10), %s20217_s17, 512, %s1084_s7, [#allocation6], %s20158_s11, %s20158_s11, %s20160_s23  }
  0x85   : > { %p17306_p7 = pnand %p17305_p4, %p16277_p10  ;;  %p17313_p13 = por %p17312_p12, %p17311_p11 }
  0x87   : > { %p17307_p8 = pneg %p17306_p7 }
  0x89   : > { %p17314_p0 = pnand %p17313_p13, %p17307_p8 }
  0x8b   : > { %17317 = shalt.err (!%p17314_p0)
}
  0x8c   : > { %s20162_s10 = smov 64   ;;  %s20164_s0 = smov 4  }
  0x8d   : > { %16138 = dma.hbm_to_vmem [thread:$0]  (%p16277_p10), %s18371_s25, 1152, %s1110_s2, [#allocation9], %s20162_s10, %s20162_s10, %s20164_s0  }
  0x8e   : > { %s18293_s7 = smov [#allocation11]   ;;  %s18294_s11 = smov [#allocation14]  }
  0x8f   : > { %s1135_s1 = sshll.u32 %s18293_s7, 4  ;;  %s1161_s23 = sshll.u32 %s18294_s11, 4  ;;  %s1136_s1 = int_to_ptr.vmem [resolvable:$true] %s1135_s1  ;;  %s1162_s23 = int_to_ptr.vmem [resolvable:$true] %s1161_s23 }
  0x90   : > { %s17328_s17 = scalar_lea.vmem %s1136_s1, 384  ;;  %p17335_p4 = scmp.lt.s32.totalorder %s1136_s1, %s1136_s1 }
  0x91   : > { %p17329_p1 = scmp.ne.s32.totalorder %s1136_s1, %s17328_s17  ;;  %p17336_p7 = scmp.lt.s32.totalorder %s17328_s17, %s17328_s17 }
  0x93   : > { %p17330_p2 = pnand %p17329_p1, %p16277_p10  ;;  %p17337_p8 = por %p17336_p7, %p17335_p4 }
  0x95   : > { %p17331_p3 = pneg %p17330_p2 }
  0x97   : > { %p17338_p11 = pnand %p17337_p8, %p17331_p3 }
  0x99   : > { %17341 = shalt.err (!%p17338_p11)
}
  0x9a   : > { %s20218_s3 = sld [smem:[#allocation82_spill]]  ;;  %s17352_s2 = scalar_lea.vmem %s1162_s23, 96 }
  0x9b   : > { %p17353_p12 = scmp.ne.s32.totalorder %s1162_s23, %s17352_s2  ;;  %p17359_p1 = scmp.lt.s32.totalorder %s1162_s23, %s1162_s23 }
  0x9c   : > { %p17360_p2 = scmp.lt.s32.totalorder %s17352_s2, %s17352_s2 }
  0x9d   : > { %p17354_p13 = pnand %p17353_p12, %p16277_p10 }
  0x9e   : > { %p17361_p6 = por %p17360_p2, %p17359_p1 }
  0x9f   : > { %p17355_p0 = pneg %p17354_p13 }
  0xa0   : > { %16142 = dma.hbm_to_vmem [thread:$0]  (%p16277_p10), %s20218_s3, 384, %s1136_s1, [#allocation12], %s20162_s10, %s20162_s10, %s20164_s0  }
  0xa1   : > { %p17362_p4 = pnand %p17361_p6, %p17355_p0 }
  0xa3   : > { %17365 = shalt.err (!%p17362_p4)
}
  0xa4   : > { %s20166_s17 = smov 32   ;;  %s20219_s14 = sld [smem:[#allocation84_spill]] }
  0xa5   : > { %s20168_s11 = smov 2   ;;  %s18297_s16 = smov [#allocation17]  }
  0xa6   : > { %s1187_s7 = sshll.u32 %s18297_s16, 4  ;;  %s18298_s1 = smov [#allocation20]   ;;  %s1188_s7 = int_to_ptr.vmem [resolvable:$true] %s1187_s7 }
  0xa7   : > { %s1213_s10 = sshll.u32 %s18298_s1, 4  ;;  %s17376_s0 = scalar_lea.vmem %s1188_s7, 3584  ;;  %s1214_s10 = int_to_ptr.vmem [resolvable:$true] %s1213_s10 }
  0xa8   : > { %p17377_p3 = scmp.ne.s32.totalorder %s1188_s7, %s17376_s0  ;;  %p17383_p8 = scmp.lt.s32.totalorder %s1188_s7, %s1188_s7 }
  0xa9   : > { %p17384_p11 = scmp.lt.s32.totalorder %s17376_s0, %s17376_s0 }
  0xaa   : > { %16146 = dma.hbm_to_vmem [thread:$0]  (%p16277_p10), %s20219_s14, 96, %s1162_s23, [#allocation15], %s20166_s17, %s20166_s17, %s20168_s11  }
  0xab   : > { %p17378_p6 = pnand %p17377_p3, %p16277_p10  ;;  %p17385_p12 = por %p17384_p11, %p17383_p8 }
  0xad   : > { %p17379_p7 = pneg %p17378_p6 }
  0xaf   : > { %p17386_p13 = pnand %p17385_p12, %p17379_p7 }
  0xb1   : > { %17389 = shalt.err (!%p17386_p13)
}
  0xb2   : > { %s20220_s2 = smov 4   ;;  %s20221_s3 = smov 64  }
  0xb3   : > { %16150 = dma.hbm_to_vmem [thread:$0]  (%p16277_p10), %s18401_s24, 3584, %s1188_s7, [#allocation18], %s20221_s3, %s20221_s3, %s20220_s2  }
  0xb4   : > { %s17400_s23 = scalar_lea.vmem %s1214_s10, 1024  ;;  %p17407_p4 = scmp.lt.s32.totalorder %s1214_s10, %s1214_s10 }
  0xb5   : > { %p17401_p0 = scmp.ne.s32.totalorder %s1214_s10, %s17400_s23  ;;  %p17408_p3 = scmp.lt.s32.totalorder %s17400_s23, %s17400_s23 }
  0xb7   : > { %p17402_p1 = pnand %p17401_p0, %p16277_p10  ;;  %p17409_p6 = por %p17408_p3, %p17407_p4 }
  0xb9   : > { %p17403_p2 = pneg %p17402_p1 }
  0xbb   : > { %p17410_p8 = pnand %p17409_p6, %p17403_p2 }
  0xbd   : > { %17413 = shalt.err (!%p17410_p8)
}
  0xbe   : > { %s20222_s6 = sld [smem:[#allocation87_spill]]  ;;  %s18299_s0 = smov [#allocation23]  }
  0xbf   : > { %s1239_s16 = sshll.u32 %s18299_s0, 4  ;;  %s18300_s7 = smov [#allocation26]   ;;  %s1240_s16 = int_to_ptr.vmem [resolvable:$true] %s1239_s16 }
  0xc0   : > { %s1266_s1 = sshll.u32 %s18300_s7, 4  ;;  %s17424_s17 = scalar_lea.vmem %s1240_s16, 128  ;;  %s1267_s1 = int_to_ptr.vmem [resolvable:$true] %s1266_s1 }
  0xc1   : > { %p17425_p7 = scmp.ne.s32.totalorder %s1240_s16, %s17424_s17  ;;  %p17431_p13 = scmp.lt.s32.totalorder %s1240_s16, %s1240_s16 }
  0xc2   : > { %p17432_p0 = scmp.lt.s32.totalorder %s17424_s17, %s17424_s17 }
  0xc3   : > { %p17426_p11 = pnand %p17425_p7, %p16277_p10 }
  0xc4   : > { %16154 = dma.hbm_to_vmem [thread:$0]  (%p16277_p10), %s20222_s6, 1024, %s1214_s10, [#allocation21], %s20221_s3, %s20221_s3, %s20220_s2  }
  0xc5   : > { %p17427_p12 = pneg %p17426_p11  ;;  %p17433_p1 = por %p17432_p0, %p17431_p13 }
  0xc7   : > { %p17434_p2 = pnand %p17433_p1, %p17427_p12 }
  0xc9   : > { %17437 = shalt.err (!%p17434_p2)
}
  0xca   : > { %s20223_s23 = smov 32   ;;  %s17448_s10 = scalar_lea.vmem %s1267_s1, 128 }
  0xcb   : > { %16158 = dma.hbm_to_vmem [thread:$0]  (%p16277_p10), %s18421_s20, 128, %s1240_s16, [#allocation24], %s20223_s23, %s20223_s23, %s20168_s11  }
  0xcc   : > { %p17449_p4 = scmp.ne.s32.totalorder %s1267_s1, %s17448_s10  ;;  %p17455_p8 = scmp.lt.s32.totalorder %s1267_s1, %s1267_s1 }
  0xcd   : > { %p17456_p7 = scmp.lt.s32.totalorder %s17448_s10, %s17448_s10 }
  0xce   : > { %p17450_p3 = pnand %p17449_p4, %p16277_p10 }
  0xcf   : > { %p17457_p11 = por %p17456_p7, %p17455_p8 }
  0xd0   : > { %p17451_p6 = pneg %p17450_p3 }
  0xd2   : > { %p17458_p13 = pnand %p17457_p11, %p17451_p6 }
  0xd4   : > { %17461 = shalt.err (!%p17458_p13)
}
  0xd5   : > { %s20224_s4 = sld [smem:[#allocation90_spill]]  ;;  %s18301_s17 = smov [#allocation29]  }
  0xd6   : > { %s1289_s0 = sshll.u32 %s18301_s17, 4  ;;  %s18302_s16 = smov [#allocation32]   ;;  %s1290_s0 = int_to_ptr.vmem [resolvable:$true] %s1289_s0 }
  0xd7   : > { %s1318_s7 = sshll.u32 %s18302_s16, 4  ;;  %s17472_s11 = scalar_lea.vmem %s1290_s0, 9216  ;;  %s1319_s7 = int_to_ptr.vmem [resolvable:$true] %s1318_s7 }
  0xd8   : > { %p17473_p12 = scmp.ne.s32.totalorder %s1290_s0, %s17472_s11  ;;  %p17479_p2 = scmp.lt.s32.totalorder %s1290_s0, %s1290_s0 }
  0xd9   : > { %p17480_p4 = scmp.lt.s32.totalorder %s17472_s11, %s17472_s11 }
  0xda   : > { %p17474_p0 = pnand %p17473_p12, %p16277_p10 }
  0xdb   : > { %16162 = dma.hbm_to_vmem [thread:$0]  (%p16277_p10), %s20224_s4, 128, %s1267_s1, [#allocation27]  }
  0xdc   : > { %p17475_p1 = pneg %p17474_p0  ;;  %p17481_p3 = por %p17480_p4, %p17479_p2 }
  0xde   : > { %p17482_p6 = pnand %p17481_p3, %p17475_p1 }
  0xe0   : > { %17485 = shalt.err (!%p17482_p6)
}
  0xe1   : > { %s20225_s5 = sld [smem:[#allocation92_spill]]  ;;  %s17496_s1 = scalar_lea.vmem %s1319_s7, 192 }
  0xe2   : > { %p17497_p8 = scmp.ne.s32.totalorder %s1319_s7, %s17496_s1  ;;  %p17503_p13 = scmp.lt.s32.totalorder %s1319_s7, %s1319_s7 }
  0xe3   : > { %p17504_p12 = scmp.lt.s32.totalorder %s17496_s1, %s17496_s1 }
  0xe4   : > { %p17498_p7 = pnand %p17497_p8, %p16277_p10 }
  0xe5   : > { %p17505_p0 = por %p17504_p12, %p17503_p13 }
  0xe6   : > { %p17499_p11 = pneg %p17498_p7 }
  0xe7   : > { %16166 = dma.hbm_to_vmem [thread:$0]  (%p16277_p10), %s20225_s5, 9216, %s1290_s0, [#allocation30], %s20221_s3, %s20221_s3, %s20220_s2  }
  0xe8   : > { %p17506_p2 = pnand %p17505_p0, %p17499_p11 }
  0xea   : > { %17509 = shalt.err (!%p17506_p2)
}
  0xeb   : > { %s20226_s11 = smov 2   ;;  %s20227_s9 = sld [smem:[#allocation95_spill]] }
  0xec   : > { %s18303_s10 = smov [#allocation35]   ;;  %s18304_s0 = smov [#allocation38]  }
  0xed   : > { %s1345_s17 = sshll.u32 %s18303_s10, 4  ;;  %s1368_s16 = sshll.u32 %s18304_s0, 4  ;;  %s1346_s17 = int_to_ptr.vmem [resolvable:$true] %s1345_s17  ;;  %s1369_s16 = int_to_ptr.vmem [resolvable:$true] %s1368_s16 }
  0xee   : > { %s17520_s4 = scalar_lea.vmem %s1346_s17, 64  ;;  %p17527_p6 = scmp.lt.s32.totalorder %s1346_s17, %s1346_s17 }
  0xef   : > { %p17521_p1 = scmp.ne.s32.totalorder %s1346_s17, %s17520_s4  ;;  %p17528_p8 = scmp.lt.s32.totalorder %s17520_s4, %s17520_s4 }
  0xf1   : > { %16170 = dma.hbm_to_vmem [thread:$0]  (%p16277_p10), %s20227_s9, 192, %s1319_s7, [#allocation33], %s20223_s23, %s20223_s23, %s20226_s11  }
  0xf2   : > { %p17522_p4 = pnand %p17521_p1, %p16277_p10  ;;  %p17529_p7 = por %p17528_p8, %p17527_p6 }
  0xf4   : > { %p17523_p3 = pneg %p17522_p4 }
  0xf6   : > { %p17530_p11 = pnand %p17529_p7, %p17523_p3 }
  0xf8   : > { %17533 = shalt.err (!%p17530_p11)
}
  0xf9   : > { %16174 = dma.hbm_to_vmem [thread:$0]  (%p16277_p10), %s18466_s27, 64, %s1346_s17, [#allocation36]  }
  0xfa   : > { %s17544_s7 = scalar_lea.vmem %s1369_s16, 9216  ;;  %p17551_p2 = scmp.lt.s32.totalorder %s1369_s16, %s1369_s16 }
  0xfb   : > { %p17545_p13 = scmp.ne.s32.totalorder %s1369_s16, %s17544_s7  ;;  %p17552_p5 = scmp.lt.s32.totalorder %s17544_s7, %s17544_s7 }
  0xfd   : > { %p17546_p12 = pnand %p17545_p13, %p16277_p10  ;;  %p17553_p1 = por %p17552_p5, %p17551_p2 }
  0xff   : > { %p17547_p0 = pneg %p17546_p12 }
 0x101   : > { %p17554_p4 = pnand %p17553_p1, %p17547_p0 }
 0x103   : > { %17557 = shalt.err (!%p17554_p4)
}
 0x104   : > { %16178 = dma.hbm_to_vmem [thread:$0]  (%p16277_p10), %s18476_s19, 9216, %s1369_s16, [#allocation39], %s20221_s3, %s20221_s3, %s20220_s2  }
 0x105   : > { %s18305_s4 = smov [#allocation41]   ;;  %s18306_s10 = smov [#allocation44]  }
 0x106   : > { %s1394_s1 = sshll.u32 %s18305_s4, 4  ;;  %s1420_s17 = sshll.u32 %s18306_s10, 4  ;;  %s1395_s1 = int_to_ptr.vmem [resolvable:$true] %s1394_s1  ;;  %s1421_s17 = int_to_ptr.vmem [resolvable:$true] %s1420_s17 }
 0x107   : > { %s17568_s0 = scalar_lea.vmem %s1395_s1, 8192  ;;  %p17575_p8 = scmp.lt.s32.totalorder %s1395_s1, %s1395_s1 }
 0x108   : > { %p17569_p3 = scmp.ne.s32.totalorder %s1395_s1, %s17568_s0  ;;  %p17576_p7 = scmp.lt.s32.totalorder %s17568_s0, %s17568_s0 }
 0x10a   : > { %p17570_p6 = pnand %p17569_p3, %p16277_p10  ;;  %p17577_p11 = por %p17576_p7, %p17575_p8 }
 0x10c   : > { %p17571_p5 = pneg %p17570_p6 }
 0x10e   : > { %p17578_p13 = pnand %p17577_p11, %p17571_p5 }
 0x110   : > { %17581 = shalt.err (!%p17578_p13)
}
 0x111   : > { %s20171_s7 = smov 256   ;;  %s20228_s8 = sld [smem:[#allocation99_spill]] }
 0x112   : > { %s20172_s16 = smov 16   ;;  %s17592_s4 = scalar_lea.vmem %s1421_s17, 256 }
 0x113   : > { %p17593_p12 = scmp.ne.s32.totalorder %s1421_s17, %s17592_s4  ;;  %p17599_p1 = scmp.lt.s32.totalorder %s1421_s17, %s1421_s17 }
 0x114   : > { %p17600_p4 = scmp.lt.s32.totalorder %s17592_s4, %s17592_s4 }
 0x115   : > { %p17594_p0 = pnand %p17593_p12, %p16277_p10 }
 0x116   : > { %p17601_p3 = por %p17600_p4, %p17599_p1 }
 0x117   : > { %16182 = dma.hbm_to_vmem [thread:$0]  (%p16277_p10), %s20228_s8, 8192, %s1395_s1, [#allocation42], %s20171_s7, %s20171_s7, %s20172_s16  }
 0x118   : > { %p17595_p2 = pneg %p17594_p0 }
 0x11a   : > { %p17602_p6 = pnand %p17601_p3, %p17595_p2 }
 0x11c   : > { %17605 = shalt.err (!%p17602_p6)
}
 0x11d   : > { %16186 = dma.hbm_to_vmem [thread:$0]  (%p16277_p10), %s18496_s29, 256, %s1421_s17, [#allocation45], %s20221_s3, %s20221_s3, %s20220_s2  }
 0x11e   : > { %s18309_s1 = smov [#allocation47]   ;;  %s18310_s0 = smov [#allocation50]  }
 0x11f   : > { %s1444_s10 = sshll.u32 %s18309_s1, 4  ;;  %s1469_s7 = sshll.u32 %s18310_s0, 4  ;;  %s1445_s10 = int_to_ptr.vmem [resolvable:$true] %s1444_s10  ;;  %s1470_s7 = int_to_ptr.vmem [resolvable:$true] %s1469_s7 }
 0x120   : > { %s17616_s16 = scalar_lea.vmem %s1445_s10, 4096  ;;  %p17623_p11 = scmp.lt.s32.totalorder %s1445_s10, %s1445_s10 }
 0x121   : > { %p17617_p5 = scmp.ne.s32.totalorder %s1445_s10, %s17616_s16  ;;  %p17624_p13 = scmp.lt.s32.totalorder %s17616_s16, %s17616_s16 }
 0x123   : > { %p17618_p8 = pnand %p17617_p5, %p16277_p10  ;;  %p17625_p12 = por %p17624_p13, %p17623_p11 }
 0x125   : > { %p17619_p7 = pneg %p17618_p8 }
 0x127   : > { %p17626_p0 = pnand %p17625_p12, %p17619_p7 }
 0x129   : > { %17629 = shalt.err (!%p17626_p0)
}
 0x12a   : > { %s20229_s17 = sld [smem:[#allocation102_spill]]  ;;  %s17640_s4 = scalar_lea.vmem %s1470_s7, 16 }
 0x12b   : > { %p17641_p2 = scmp.ne.s32.totalorder %s1470_s7, %s17640_s4  ;;  %s17646_s1 = scalar_lea.vmem %s1470_s7, 32 }
 0x12c   : > { %p17647_p3 = scmp.lt.s32.totalorder %s1470_s7, %s1470_s7  ;;  %p17648_p6 = scmp.lt.s32.totalorder %s17646_s1, %s17640_s4 }
 0x12d   : > { %p17642_p1 = pnand %p17641_p2, %p16277_p10 }
 0x12e   : > { %p17649_p5 = por %p17648_p6, %p17647_p3 }
 0x12f   : > { %p17643_p4 = pneg %p17642_p1 }
 0x130   : > { %16190 = dma.hbm_to_vmem [thread:$0]  (%p16277_p10), %s20229_s17, 4096, %s1445_s10, [#allocation48], %s20221_s3, %s20221_s3, %s20220_s2  }
 0x131   : > { %p17650_p8 = pnand %p17649_p5, %p17643_p4 }
 0x133   : > { %17653 = shalt.err (!%p17650_p8)
}
 0x134   : > { %s20230_s16 = sld [smem:[#allocation104_spill]]  ;;  %s18311_s0 = smov [#allocation53]  }
 0x135   : > { %s1493_s5 = sshll.u32 %s18311_s0, 4  ;;  %s1494_s5 = int_to_ptr.vmem [resolvable:$true] %s1493_s5 }
 0x136   : > { %s17664_s10 = scalar_lea.vmem %s1494_s5, 16  ;;  %s17670_s17 = scalar_lea.vmem %s1494_s5, 32 }
 0x137   : > { %p17665_p7 = scmp.ne.s32.totalorder %s1494_s5, %s17664_s10  ;;  %p17671_p12 = scmp.lt.s32.totalorder %s1494_s5, %s1494_s5 }
 0x138   : > { %p17672_p0 = scmp.lt.s32.totalorder %s17670_s17, %s17664_s10 }
 0x139   : > { %p17666_p11 = pnand %p17665_p7, %p16277_p10 }
 0x13a   : > { %16194 = dma.hbm_to_vmem [thread:$0]  (%p16277_p10), %s20230_s16, 16, %s1470_s7, [#allocation51]  }
 0x13b   : > { %p17667_p13 = pneg %p17666_p11  ;;  %p17673_p2 = por %p17672_p0, %p17671_p12 }
 0x13d   : > { %p17674_p1 = pnand %p17673_p2, %p17667_p13 }
 0x13f   : > { %17677 = shalt.err (!%p17674_p1)
}
 0x140   : > { %s20231_s4 = sld [smem:[#allocation106_spill]]  ;;  %s18312_s7 = smov [#allocation2]  }
 0x141   : > { %s1073_s1 = sshll.u32 %s18312_s7, 4  ;;  %s18313_s16 = smov [#allocation7]   ;;  %s1074_s1 = int_to_ptr.vmem [resolvable:$true] %s1073_s1 }
 0x142   : > { %s1096_s0 = sshll.u32 %s18313_s16, 4  ;;  %s17688_s6 = scalar_lea.vmem %s1074_s1, 16  ;;  %s1097_s0 = int_to_ptr.vmem [resolvable:$true] %s1096_s0 }
 0x143   : > { %p17689_p4 = scmp.ne.s32.totalorder %s1074_s1, %s17688_s6  ;;  %s17694_s8 = scalar_lea.vmem %s1074_s1, 32 }
 0x144   : > { %p17695_p5 = scmp.lt.s32.totalorder %s1074_s1, %s1074_s1  ;;  %p17696_p8 = scmp.lt.s32.totalorder %s17694_s8, %s17688_s6 }
 0x145   : > { %p17690_p3 = pnand %p17689_p4, %p16277_p10 }
 0x146   : > { %16198 = dma.hbm_to_vmem [thread:$0]  (%p16277_p10), %s20231_s4, 16, %s1494_s5, [#allocation54]  }
 0x147   : > { %p17691_p6 = pneg %p17690_p3  ;;  %p17697_p7 = por %p17696_p8, %p17695_p5 }
 0x149   : > { %p17698_p11 = pnand %p17697_p7, %p17691_p6 }
 0x14b   : > { %17701 = shalt.err (!%p17698_p11)
}
 0x14c   : > { %s20232_s10 = sld [smem:[#allocation78_spill]]  ;;  %s17712_s5 = scalar_lea.vmem %s1097_s0, 256 }
 0x14d   : > { %p17713_p13 = scmp.ne.s32.totalorder %s1097_s0, %s17712_s5  ;;  %p17719_p2 = scmp.lt.s32.totalorder %s1097_s0, %s1097_s0 }
 0x14e   : > { %p17720_p1 = scmp.lt.s32.totalorder %s17712_s5, %s17712_s5 }
 0x14f   : > { %p17714_p12 = pnand %p17713_p13, %p16277_p10 }
 0x150   : > { %p17721_p4 = por %p17720_p1, %p17719_p2 }
 0x151   : > { %p17715_p0 = pneg %p17714_p12 }
 0x152   : > { %16132 = dma.hbm_to_vmem [thread:$0]  (%p16277_p10), %s20232_s10, 16, %s1074_s1, [#allocation3]  }
 0x153   : > { %p17722_p3 = pnand %p17721_p4, %p17715_p0 }
 0x155   : > { %17725 = shalt.err (!%p17722_p3)
}
 0x156   : > { %s20233_s8 = smov 8   ;;  %s20234_s6 = smov 128  }
 0x157   : > { %s20235_s17 = sld [smem:[#allocation80_spill]]  ;;  %s18314_s4 = smov [#allocation10]  }
 0x158   : > { %s1122_s7 = sshll.u32 %s18314_s4, 4  ;;  %s18315_s1 = smov [#allocation13]   ;;  %s1123_s7 = int_to_ptr.vmem [resolvable:$true] %s1122_s7 }
 0x159   : > { %s1148_s16 = sshll.u32 %s18315_s1, 4  ;;  %s17736_s10 = scalar_lea.vmem %s1123_s7, 1152  ;;  %s1149_s16 = int_to_ptr.vmem [resolvable:$true] %s1148_s16 }
 0x15a   : > { %p17737_p6 = scmp.ne.s32.totalorder %s1123_s7, %s17736_s10  ;;  %p17743_p7 = scmp.lt.s32.totalorder %s1123_s7, %s1123_s7 }
 0x15b   : > { %p17744_p11 = scmp.lt.s32.totalorder %s17736_s10, %s17736_s10 }
 0x15c   : > { %p17738_p5 = pnand %p17737_p6, %p16277_p10 }
 0x15d   : > { %16136 = dma.hbm_to_vmem [thread:$0]  (%p16277_p10), %s20235_s17, 256, %s1097_s0, [#allocation6], %s20234_s6, %s20234_s6, %s20233_s8  }
 0x15e   : > { %p17739_p8 = pneg %p17738_p5  ;;  %p17745_p13 = por %p17744_p11, %p17743_p7 }
 0x160   : > { %p17746_p12 = pnand %p17745_p13, %p17739_p8 }
 0x162   : > { %17749 = shalt.err (!%p17746_p12)
}
 0x163   : > { %s20236_s0 = sld [smem:[#allocation81_spill]]  ;;  %s17760_s5 = scalar_lea.vmem %s1149_s16, 128 }
 0x164   : > { %p17761_p0 = scmp.ne.s32.totalorder %s1149_s16, %s17760_s5  ;;  %p17767_p4 = scmp.lt.s32.totalorder %s1149_s16, %s1149_s16 }
 0x165   : > { %p17768_p3 = scmp.lt.s32.totalorder %s17760_s5, %s17760_s5 }
 0x166   : > { %p17762_p2 = pnand %p17761_p0, %p16277_p10 }
 0x167   : > { %p17769_p6 = por %p17768_p3, %p17767_p4 }
 0x168   : > { %p17763_p1 = pneg %p17762_p2 }
 0x169   : > { %16140 = dma.hbm_to_vmem [thread:$0]  (%p16277_p10), %s20236_s0, 1152, %s1123_s7, [#allocation9], %s20221_s3, %s20221_s3, %s20220_s2  }
 0x16a   : > { %p17770_p5 = pnand %p17769_p6, %p17763_p1 }
 0x16c   : > { %17773 = shalt.err (!%p17770_p5)
}
 0x16d   : > { %s20237_s17 = sld [smem:[#allocation83_spill]]  ;;  %s18316_s4 = smov [#allocation16]  }
 0x16e   : > { %s1174_s7 = sshll.u32 %s18316_s4, 4  ;;  %s1175_s7 = int_to_ptr.vmem [resolvable:$true] %s1174_s7 }
 0x16f   : > { %s17784_s1 = scalar_lea.vmem %s1175_s7, 64  ;;  %p17791_p13 = scmp.lt.s32.totalorder %s1175_s7, %s1175_s7 }
 0x170   : > { %p17785_p8 = scmp.ne.s32.totalorder %s1175_s7, %s17784_s1  ;;  %p17792_p12 = scmp.lt.s32.totalorder %s17784_s1, %s17784_s1 }
 0x172   : > { %p17786_p7 = pnand %p17785_p8, %p16277_p10  ;;  %p17793_p0 = por %p17792_p12, %p17791_p13 }
 0x173   : > { %16144 = dma.hbm_to_vmem [thread:$0]  (%p16277_p10), %s20237_s17, 128, %s1149_s16, [#allocation12], %s20221_s3, %s20221_s3, %s20220_s2  }
 0x174   : > { %p17787_p11 = pneg %p17786_p7 }
 0x176   : > { %p17794_p2 = pnand %p17793_p0, %p17787_p11 }
 0x178   : > { %17797 = shalt.err (!%p17794_p2)
}
 0x179   : > { %s18317_s10 = smov 1   ;;  %s20238_s0 = smov 16  }
 0x17a   : > { %s20239_s16 = sld [smem:[#allocation85_spill]]  ;;  %s18318_s5 = smov [#allocation19]  }
 0x17b   : > { %s1200_s17 = sshll.u32 %s18318_s5, 4  ;;  %s18319_s4 = smov [#allocation22]   ;;  %s1201_s17 = int_to_ptr.vmem [resolvable:$true] %s1200_s17 }
 0x17c   : > { %s1226_s9 = sshll.u32 %s18319_s4, 4  ;;  %s17808_s14 = scalar_lea.vmem %s1201_s17, 3072  ;;  %s1227_s9 = int_to_ptr.vmem [resolvable:$true] %s1226_s9 }
 0x17d   : > { %p17809_p1 = scmp.ne.s32.totalorder %s1201_s17, %s17808_s14  ;;  %p17815_p6 = scmp.lt.s32.totalorder %s1201_s17, %s1201_s17 }
 0x17e   : > { %p17816_p5 = scmp.lt.s32.totalorder %s17808_s14, %s17808_s14 }
 0x17f   : > { %p17810_p4 = pnand %p17809_p1, %p16277_p10 }
 0x180   : > { %16148 = dma.hbm_to_vmem [thread:$0]  (%p16277_p10), %s20239_s16, 64, %s1175_s7, [#allocation15], %s20238_s0, %s20238_s0, %s18317_s10  }
 0x181   : > { %p17811_p3 = pneg %p17810_p4  ;;  %p17817_p8 = por %p17816_p5, %p17815_p6 }
 0x183   : > { %p17818_p7 = pnand %p17817_p8, %p17811_p3 }
 0x185   : > { %17821 = shalt.err (!%p17818_p7)
}
 0x186   : > { %s20240_s7 = sld [smem:[#allocation86_spill]]  ;;  %s17832_s1 = scalar_lea.vmem %s1227_s9, 512 }
 0x187   : > { %p17833_p11 = scmp.ne.s32.totalorder %s1227_s9, %s17832_s1  ;;  %p17839_p0 = scmp.lt.s32.totalorder %s1227_s9, %s1227_s9 }
 0x188   : > { %p17840_p2 = scmp.lt.s32.totalorder %s17832_s1, %s17832_s1 }
 0x189   : > { %p17834_p13 = pnand %p17833_p11, %p16277_p10 }
 0x18a   : > { %p17841_p1 = por %p17840_p2, %p17839_p0 }
 0x18b   : > { %p17835_p12 = pneg %p17834_p13 }
 0x18c   : > { %16152 = dma.hbm_to_vmem [thread:$0]  (%p16277_p10), %s20240_s7, 3072, %s1201_s17, [#allocation18], %s20221_s3, %s20221_s3, %s20220_s2  }
 0x18d   : > { %p17842_p4 = pnand %p17841_p1, %p17835_p12 }
 0x18f   : > { %17845 = shalt.err (!%p17842_p4)
}
 0x190   : > { %s20241_s14 = sld [smem:[#allocation88_spill]]  ;;  %s18320_s16 = smov [#allocation25]  }
 0x191   : > { %s1252_s5 = sshll.u32 %s18320_s16, 4  ;;  %s18321_s17 = smov [#allocation28]   ;;  %s1253_s5 = int_to_ptr.vmem [resolvable:$true] %s1252_s5 }
 0x192   : > { %s1276_s4 = sshll.u32 %s18321_s17, 4  ;;  %s17856_s7 = scalar_lea.vmem %s1253_s5, 80  ;;  %s1277_s4 = int_to_ptr.vmem [resolvable:$true] %s1276_s4 }
 0x193   : > { %p17857_p3 = scmp.ne.s32.totalorder %s1253_s5, %s17856_s7  ;;  %s17862_s1 = scalar_lea.vmem %s1253_s5, 96 }
 0x194   : > { %p17863_p8 = scmp.lt.s32.totalorder %s1253_s5, %s1253_s5  ;;  %p17864_p7 = scmp.lt.s32.totalorder %s17862_s1, %s17856_s7 }
 0x195   : > { %p17858_p6 = pnand %p17857_p3, %p16277_p10 }
 0x196   : > { %16156 = dma.hbm_to_vmem [thread:$0]  (%p16277_p10), %s20241_s14, 512, %s1227_s9, [#allocation21], %s20221_s3, %s20221_s3, %s20220_s2  }
 0x197   : > { %p17859_p5 = pneg %p17858_p6  ;;  %p17865_p11 = por %p17864_p7, %p17863_p8 }
 0x199   : > { %p17866_p13 = pnand %p17865_p11, %p17859_p5 }
 0x19b   : > { %17869 = shalt.err (!%p17866_p13)
}
 0x19c   : > { %s20242_s9 = sld [smem:[#allocation89_spill]]  ;;  %s17880_s14 = scalar_lea.vmem %s1277_s4, 11264 }
 0x19d   : > { %p17881_p12 = scmp.ne.s32.totalorder %s1277_s4, %s17880_s14  ;;  %p17887_p1 = scmp.lt.s32.totalorder %s1277_s4, %s1277_s4 }
 0x19e   : > { %p17888_p4 = scmp.lt.s32.totalorder %s17880_s14, %s17880_s14 }
 0x19f   : > { %p17882_p0 = pnand %p17881_p12, %p16277_p10 }
 0x1a0   : > { %p17889_p3 = por %p17888_p4, %p17887_p1 }
 0x1a1   : > { %p17883_p2 = pneg %p17882_p0 }
 0x1a2   : > { %16160 = dma.hbm_to_vmem [thread:$0]  (%p16277_p10), %s20242_s9, 80, %s1253_s5, [#allocation24], %s20238_s0, %s20238_s0, %s18317_s10  }
 0x1a3   : > { %p17890_p6 = pnand %p17889_p3, %p17883_p2 }
 0x1a5   : > { %17893 = shalt.err (!%p17890_p6)
}
 0x1a6   : > { %s20243_s16 = sld [smem:[#allocation91_spill]]  ;;  %s18322_s10 = smov [#allocation31]  }
 0x1a7   : > { %s1302_s5 = sshll.u32 %s18322_s10, 4  ;;  %s18323_s17 = smov [#allocation34]   ;;  %s1303_s5 = int_to_ptr.vmem [resolvable:$true] %s1302_s5 }
 0x1a8   : > { %s1331_s7 = sshll.u32 %s18323_s17, 4  ;;  %s17904_s1 = scalar_lea.vmem %s1303_s5, 6144  ;;  %s1332_s7 = int_to_ptr.vmem [resolvable:$true] %s1331_s7 }
 0x1a9   : > { %p17905_p5 = scmp.ne.s32.totalorder %s1303_s5, %s17904_s1  ;;  %p17911_p11 = scmp.lt.s32.totalorder %s1303_s5, %s1303_s5 }
 0x1aa   : > { %p17912_p13 = scmp.lt.s32.totalorder %s17904_s1, %s17904_s1 }
 0x1ab   : > { %p17906_p8 = pnand %p17905_p5, %p16277_p10 }
 0x1ac   : > { %16164 = dma.hbm_to_vmem [thread:$0]  (%p16277_p10), %s20243_s16, 11264, %s1277_s4, [#allocation27], %s20221_s3, %s20221_s3, %s20220_s2  }
 0x1ad   : > { %p17907_p7 = pneg %p17906_p8  ;;  %p17913_p12 = por %p17912_p13, %p17911_p11 }
 0x1af   : > { %p17914_p0 = pnand %p17913_p12, %p17907_p7 }
 0x1b1   : > { %17917 = shalt.err (!%p17914_p0)
}
 0x1b2   : > { %s20244_s4 = sld [smem:[#allocation93_spill]]  ;;  %s17928_s9 = scalar_lea.vmem %s1332_s7, 224 }
 0x1b3   : > { %p17929_p2 = scmp.ne.s32.totalorder %s1332_s7, %s17928_s9  ;;  %p17935_p3 = scmp.lt.s32.totalorder %s1332_s7, %s1332_s7 }
 0x1b4   : > { %p17936_p6 = scmp.lt.s32.totalorder %s17928_s9, %s17928_s9 }
 0x1b5   : > { %p17930_p1 = pnand %p17929_p2, %p16277_p10 }
 0x1b6   : > { %p17937_p5 = por %p17936_p6, %p17935_p3 }
 0x1b7   : > { %p17931_p4 = pneg %p17930_p1 }
 0x1b8   : > { %16168 = dma.hbm_to_vmem [thread:$0]  (%p16277_p10), %s20244_s4, 6144, %s1303_s5, [#allocation30], %s20234_s6, %s20234_s6, %s20233_s8  }
 0x1b9   : > { %p17938_p8 = pnand %p17937_p5, %p17931_p4 }
 0x1bb   : > { %17941 = shalt.err (!%p17938_p8)
}
 0x1bc   : > { %s20245_s14 = sld [smem:[#allocation96_spill]]  ;;  %s18324_s8 = smov [#allocation37]  }
 0x1bd   : > { %s1355_s6 = sshll.u32 %s18324_s8, 4  ;;  %s18325_s16 = smov [#allocation40]   ;;  %s1356_s6 = int_to_ptr.vmem [resolvable:$true] %s1355_s6 }
 0x1be   : > { %s1381_s10 = sshll.u32 %s18325_s16, 4  ;;  %s17952_s5 = scalar_lea.vmem %s1356_s6, 10240  ;;  %s1382_s10 = int_to_ptr.vmem [resolvable:$true] %s1381_s10 }
 0x1bf   : > { %p17953_p7 = scmp.ne.s32.totalorder %s1356_s6, %s17952_s5  ;;  %p17959_p12 = scmp.lt.s32.totalorder %s1356_s6, %s1356_s6 }
 0x1c0   : > { %p17960_p0 = scmp.lt.s32.totalorder %s17952_s5, %s17952_s5 }
 0x1c1   : > { %p17954_p11 = pnand %p17953_p7, %p16277_p10 }
 0x1c2   : > { %16172 = dma.hbm_to_vmem [thread:$0]  (%p16277_p10), %s20245_s14, 224, %s1332_s7, [#allocation33], %s20223_s23, %s20223_s23, %s20226_s11  }
 0x1c3   : > { %p17955_p13 = pneg %p17954_p11  ;;  %p17961_p2 = por %p17960_p0, %p17959_p12 }
 0x1c5   : > { %p17962_p1 = pnand %p17961_p2, %p17955_p13 }
 0x1c7   : > { %17965 = shalt.err (!%p17962_p1)
}
 0x1c8   : > { %s20246_s17 = sld [smem:[#allocation97_spill]]  ;;  %s17976_s7 = scalar_lea.vmem %s1382_s10, 12288 }
 0x1c9   : > { %p17977_p4 = scmp.ne.s32.totalorder %s1382_s10, %s17976_s7  ;;  %p17983_p5 = scmp.lt.s32.totalorder %s1382_s10, %s1382_s10 }
 0x1ca   : > { %p17984_p8 = scmp.lt.s32.totalorder %s17976_s7, %s17976_s7 }
 0x1cb   : > { %p17978_p3 = pnand %p17977_p4, %p16277_p10 }
 0x1cc   : > { %p17985_p7 = por %p17984_p8, %p17983_p5 }
 0x1cd   : > { %p17979_p6 = pneg %p17978_p3 }
 0x1ce   : > { %16176 = dma.hbm_to_vmem [thread:$0]  (%p16277_p10), %s20246_s17, 10240, %s1356_s6, [#allocation36], %s20221_s3, %s20221_s3, %s20220_s2  }
 0x1cf   : > { %p17986_p11 = pnand %p17985_p7, %p17979_p6 }
 0x1d1   : > { %17989 = shalt.err (!%p17986_p11)
}
 0x1d2   : > { %s20247_s1 = smov 256   ;;  %s20248_s4 = sld [smem:[#allocation98_spill]] }
 0x1d3   : > { %s18326_s9 = smov [#allocation43]   ;;  %s18327_s8 = smov [#allocation46]  }
 0x1d4   : > { %s1407_s14 = sshll.u32 %s18326_s9, 4  ;;  %s1434_s6 = sshll.u32 %s18327_s8, 4  ;;  %s1408_s14 = int_to_ptr.vmem [resolvable:$true] %s1407_s14  ;;  %s1435_s6 = int_to_ptr.vmem [resolvable:$true] %s1434_s6 }
 0x1d5   : > { %s18000_s16 = scalar_lea.vmem %s1408_s14, 96  ;;  %p18007_p2 = scmp.lt.s32.totalorder %s1408_s14, %s1408_s14 }
 0x1d6   : > { %p18001_p13 = scmp.ne.s32.totalorder %s1408_s14, %s18000_s16  ;;  %p18008_p1 = scmp.lt.s32.totalorder %s18000_s16, %s18000_s16 }
 0x1d8   : > { %16180 = dma.hbm_to_vmem [thread:$0]  (%p16277_p10), %s20248_s4, 12288, %s1382_s10, [#allocation39], %s20247_s1, %s20247_s1, %s20238_s0  }
 0x1d9   : > { %p18002_p12 = pnand %p18001_p13, %p16277_p10  ;;  %p18009_p4 = por %p18008_p1, %p18007_p2 }
 0x1db   : > { %p18003_p0 = pneg %p18002_p12 }
 0x1dd   : > { %p18010_p3 = pnand %p18009_p4, %p18003_p0 }
 0x1df   : > { %18013 = shalt.err (!%p18010_p3)
}
 0x1e0   : > { %s20249_s0 = sld [smem:[#allocation100_spill]]  ;;  %s18024_s10 = scalar_lea.vmem %s1435_s6, 32 }
 0x1e1   : > { %p18025_p6 = scmp.ne.s32.totalorder %s1435_s6, %s18024_s10  ;;  %p18031_p7 = scmp.lt.s32.totalorder %s1435_s6, %s1435_s6 }
 0x1e2   : > { %p18032_p11 = scmp.lt.s32.totalorder %s18024_s10, %s18024_s10 }
 0x1e3   : > { %p18026_p5 = pnand %p18025_p6, %p16277_p10 }
 0x1e4   : > { %p18033_p13 = por %p18032_p11, %p18031_p7 }
 0x1e5   : > { %p18027_p8 = pneg %p18026_p5 }
 0x1e6   : > { %16184 = dma.hbm_to_vmem [thread:$0]  (%p16277_p10), %s20249_s0, 96, %s1408_s14, [#allocation42], %s20223_s23, %s20223_s23, %s20226_s11  }
 0x1e7   : > { %p18034_p12 = pnand %p18033_p13, %p18027_p8 }
 0x1e9   : > { %18037 = shalt.err (!%p18034_p12)
}
 0x1ea   : > { %s20250_s5 = sld [smem:[#allocation101_spill]]  ;;  %s18328_s17 = smov [#allocation49]  }
 0x1eb   : > { %s1458_s7 = sshll.u32 %s18328_s17, 4  ;;  %s18329_s23 = smov [#allocation52]   ;;  %s1459_s7 = int_to_ptr.vmem [resolvable:$true] %s1458_s7 }
 0x1ec   : > { %s1479_s11 = sshll.u32 %s18329_s23, 4  ;;  %s18048_s1 = scalar_lea.vmem %s1459_s7, 16  ;;  %s1480_s11 = int_to_ptr.vmem [resolvable:$true] %s1479_s11 }
 0x1ed   : > { %p18049_p0 = scmp.ne.s32.totalorder %s1459_s7, %s18048_s1  ;;  %s18054_s4 = scalar_lea.vmem %s1459_s7, 32 }
 0x1ee   : > { %p18055_p4 = scmp.lt.s32.totalorder %s1459_s7, %s1459_s7  ;;  %p18056_p3 = scmp.lt.s32.totalorder %s18054_s4, %s18048_s1 }
 0x1ef   : > { %p18050_p2 = pnand %p18049_p0, %p16277_p10 }
 0x1f0   : > { %16188 = dma.hbm_to_vmem [thread:$0]  (%p16277_p10), %s20250_s5, 32, %s1435_s6, [#allocation45]  }
 0x1f1   : > { %p18051_p1 = pneg %p18050_p2  ;;  %p18057_p6 = por %p18056_p3, %p18055_p4 }
 0x1f3   : > { %p18058_p5 = pnand %p18057_p6, %p18051_p1 }
 0x1f5   : > { %18061 = shalt.err (!%p18058_p5)
}
 0x1f6   : > { %s20251_s9 = sld [smem:[#allocation103_spill]]  ;;  %s18072_s14 = scalar_lea.vmem %s1480_s11, 256 }
 0x1f7   : > { %p18073_p8 = scmp.ne.s32.totalorder %s1480_s11, %s18072_s14  ;;  %p18079_p13 = scmp.lt.s32.totalorder %s1480_s11, %s1480_s11 }
 0x1f8   : > { %p18080_p12 = scmp.lt.s32.totalorder %s18072_s14, %s18072_s14 }
 0x1f9   : > { %p18074_p7 = pnand %p18073_p8, %p16277_p10 }
 0x1fa   : > { %p18081_p0 = por %p18080_p12, %p18079_p13 }
 0x1fb   : > { %p18075_p11 = pneg %p18074_p7 }
 0x1fc   : > { %16192 = dma.hbm_to_vmem [thread:$0]  (%p16277_p10), %s20251_s9, 16, %s1459_s7, [#allocation48]  }
 0x1fd   : > { %p18082_p2 = pnand %p18081_p0, %p18075_p11 }
 0x1ff   : > { %18085 = shalt.err (!%p18082_p2)
}
 0x200   : > { %s20252_s8 = sld [smem:[#allocation105_spill]]  ;;  %s18330_s6 = smov [#allocation55]  }
 0x201   : > { %s1504_s16 = sshll.u32 %s18330_s6, 4  ;;  %s1505_s16 = int_to_ptr.vmem [resolvable:$true] %s1504_s16 }
 0x202   : > { %s18096_s0 = scalar_lea.vmem %s1505_s16, 16  ;;  %s18102_s10 = scalar_lea.vmem %s1505_s16, 32 }
 0x203   : > { %p18097_p1 = scmp.ne.s32.totalorder %s1505_s16, %s18096_s0  ;;  %p18103_p6 = scmp.lt.s32.totalorder %s1505_s16, %s1505_s16 }
 0x204   : > { %p18104_p5 = scmp.lt.s32.totalorder %s18102_s10, %s18096_s0 }
 0x205   : > { %p18098_p4 = pnand %p18097_p1, %p16277_p10 }
 0x206   : > { %16196 = dma.hbm_to_vmem [thread:$0]  (%p16277_p10), %s20252_s8, 256, %s1480_s11, [#allocation51], %s20221_s3, %s20221_s3, %s20220_s2  }
 0x207   : > { %p18099_p3 = pneg %p18098_p4  ;;  %p18105_p8 = por %p18104_p5, %p18103_p6 }
 0x209   : > { %p18106_p7 = pnand %p18105_p8, %p18099_p3 }
 0x20b   : > { %18109 = shalt.err (!%p18106_p7)
}
 0x20c   : > { %s20253_s5 = sld [smem:[#allocation107_spill]] }
 0x212   : > { %16200 = dma.hbm_to_vmem [thread:$0]  (%p16277_p10), %s20253_s5, 16, %s1505_s16, [#allocation54]  }
 0x213 PF: > { %1540 = sbr.rel (%p18611_p9) target bundleno = 14323 (0x37f3), region = 192  ;;  %p16312_p11 = scmp.eq.s32.totalorder (!%p18611_p9), %s18584_s28, 0 }
 0x218   : > { %18153 = dma.done.wait (%p16312_p11), [#allocation3], 16  }
 0x219   : > { %18155 = vsyncadd (%p16312_p11), [#allocation3], 4294967280 }
 0x21a   : > { %18157 = dma.done.wait (%p16312_p11), [#allocation6], 768  }
 0x21b   : > { %18159 = vsyncadd (%p16312_p11), [#allocation6], 4294966528 }
 0x21c   : > { %18161 = dma.done.wait (%p16312_p11), [#allocation9], 2304  }
 0x21d   : > { %18163 = vsyncadd (%p16312_p11), [#allocation9], 4294964992 }
 0x21e   : > { %18165 = dma.done.wait (%p16312_p11), [#allocation12], 512  }
 0x21f   : > { %18167 = vsyncadd (%p16312_p11), [#allocation12], 4294966784 }
 0x220   : > { %18169 = dma.done.wait (%p16312_p11), [#allocation15], 160  }
 0x221   : > { %18171 = vsyncadd (%p16312_p11), [#allocation15], 4294967136 }
 0x222   : > { %18173 = dma.done.wait (%p16312_p11), [#allocation18], 6656  }
 0x223   : > { %18175 = vsyncadd (%p16312_p11), [#allocation18], 4294960640 }
 0x224   : > { %18177 = dma.done.wait (%p16312_p11), [#allocation21], 1536  }
 0x225   : > { %18179 = vsyncadd (%p16312_p11), [#allocation21], 4294965760 }
 0x226   : > { %18181 = dma.done.wait (%p16312_p11), [#allocation24], 208  }
 0x227   : > { %18183 = vsyncadd (%p16312_p11), [#allocation24], 4294967088 }
 0x228   : > { %18185 = dma.done.wait (%p16312_p11), [#allocation27], 11392  }
 0x229   : > { %18187 = vsyncadd (%p16312_p11), [#allocation27], 4294955904 }
 0x22a   : > { %18189 = dma.done.wait (%p16312_p11), [#allocation30], 15360  }
 0x22b   : > { %18191 = vsyncadd (%p16312_p11), [#allocation30], 4294951936 }
 0x22c   : > { %18193 = dma.done.wait (%p16312_p11), [#allocation33], 416  }
 0x22d   : > { %18195 = vsyncadd (%p16312_p11), [#allocation33], 4294966880 }
 0x22e   : > { %18197 = dma.done.wait (%p16312_p11), [#allocation36], 10304  }
 0x22f   : > { %18199 = vsyncadd (%p16312_p11), [#allocation36], 4294956992 }
 0x230   : > { %18201 = dma.done.wait (%p16312_p11), [#allocation39], 21504  }
 0x231   : > { %18203 = vsyncadd (%p16312_p11), [#allocation39], 4294945792 }
 0x232   : > { %18205 = dma.done.wait (%p16312_p11), [#allocation42], 8288  }
 0x233   : > { %18207 = vsyncadd (%p16312_p11), [#allocation42], 4294959008 }
 0x234   : > { %18209 = dma.done.wait (%p16312_p11), [#allocation45], 288  }
 0x235   : > { %18211 = vsyncadd (%p16312_p11), [#allocation45], 4294967008 }
 0x236   : > { %18213 = dma.done.wait (%p16312_p11), [#allocation48], 4112  }
 0x237   : > { %18215 = vsyncadd (%p16312_p11), [#allocation48], 4294963184 }
 0x238   : > { %18217 = dma.done.wait (%p16312_p11), [#allocation51], 272  }
 0x239   : > { %18219 = vsyncadd (%p16312_p11), [#allocation51], 4294967024 }
 0x23a   : > { %18221 = dma.done.wait (%p16312_p11), [#allocation54], 32  }
 0x23b   : > { %18223 = vsyncadd (%p16312_p11), [#allocation54], 4294967264  ;;  %s20254_s3 = sld [smem:[#allocation76_spill]]  ;;  %vm1899_vm0 = vcmask 1044480   ;;  %p1779_p9 = scmp.lt.s32.totalorder %s18584_s28, 1  ;;  %vm1900_vm1 = vcmask 1045504  }
 0x23c   : > { %s20255_s18 = sld [smem:[#allocation77_spill]]  ;;  %v20174_v0 = vmov 65535   ;;  %vm1797_vm2 = vsmask.f32 1280  ;;  %vm1835_vm3 = vcmask 1041408   ;;  %vm1886_vm4 = vcmask 89088  }
 0x23d   : > { %s1780_s2 = scalar_select %p1779_p9, %s18584_s28, 1  ;;  %v1901_v1 = vsel %vm1899_vm0, 4294967295, %v20174_v0  ;;  %vm18968_vm5 = vmand %vm1835_vm3, %vm1797_vm2  ;;  %vm1844_vm6 = vsmask.f32 7424  ;;  %vm2163_vm7 = vsmask.f32 6400 }
 0x23e   : > { %v18954_v2 = vsel %vm1900_vm1, %v1901_v1, 0  ;;  %vm2057_vm8 = vcmask 1046528   ;;  %vm2387_vm9 = vsmask.f32 5376  ;;  %vm2617_vm10 = vcmask 523264   ;;  %s20262_s23 = sld [smem:[#allocation94_spill]] }
 0x23f   : > { %s14597_s17 = sshll.u32 %s1780_s2, 6  ;;  %vm2777_vm11 = vcmask 261120   ;;  %vm2723_vm12 = vcmask 1040384   ;;  %vm18333_vm13 = vmmov 0   ;;  %vm2873_vm14 = vcmask 130048   ;;  %v17161_v32 = vld [vmem:[#allocation38 + $0x220] sm:$0xff]  }
 0x240   : > { %vm2931_vm15 = vsmask.f32 256  ;;  %s18335_s1 = smov 50   ;;  %s18336_s4 = smov 103  }
 0x241   : > { %s1783_s7 = scalar_lea.vmem %s20254_s3, %s14597_s17  ;;  %s20267_s9 = sld [smem:[#allocation108_spill]] }
 0x242   : > { %v16473_v3 = vld [vmem:[%s20255_s18 + $0x8] sm:$0x3f]   ;;  %v16474_v4 = vld [vmem:[%s20255_s18] sm:$0x3f]   ;;  %v1787_v8 = vld [vmem:[%s1783_s7 + $0x10] sm:$0xff]  ;;  %s20268_s14 = sld [smem:[#allocation109_spill]] }
 0x243   : > { %v1904_v5 = vand.u32 %v16473_v3, %v18954_v2  ;;  %v1785_v6 = vld [vmem:[%s1783_s7] sm:$0xff]  ;;  %v1786_v7 = vld [vmem:[%s1783_s7 + $0x8] sm:$0xff]  ;;  %v1985_v9 = vand.u32 %v16474_v4, %v18954_v2  ;;  %v1788_v10 = vld [vmem:[%s1783_s7 + $0x18] sm:$0xff]  ;;  %s1777_s8 = sand.u32 1, %s18234_s22   ;;  %s14594_s6 = sshll.u32 %s18584_s28, 4 }
 0x244   : > { %v1793_v11 = vpack.c.bf16 %v1786_v7, %v1785_v6  ;;  %v1789_v12 = vld [vmem:[%s1783_s7 + $0x20] sm:$0xff]  ;;  %v1790_v13 = vld [vmem:[%s1783_s7 + $0x28] sm:$0xff]  ;;  %v1794_v14 = vpack.c.bf16 %v1788_v10, %v1787_v8  ;;  %v16475_v16 = vld [vmem:[%s20255_s18 + $0x10] sm:$0x3f]   ;;  %s20263_s11 = smov %s20262_s23  ;;  %s1778_s16 = scalar_lea.vmem [#allocation56], %s1777_s8 }
 0x245   : > { %15239 = vmatprep.subr.bf16.mxu0 %v1904_v5  ;;  %v1795_v15 = vpack.c.bf16 %v1790_v13, %v1789_v12  ;;  %15249 = vmatprep.subr.bf16.mxu1 %v1985_v9  ;;  %v1791_v19 = vld [vmem:[%s1783_s7 + $0x30] sm:$0xff]  ;;  %v1792_v20 = vld [vmem:[%s1783_s7 + $0x38] sm:$0xff]  ;;  %v18963_v27 = vand.u32 %v16475_v16, %v18954_v2  ;;  %v16477_v48 = vld [vmem:[%s20255_s18 + $0x20] sm:$0x3f]   ;;  %s13289_s0 = sshll.u32 %s1778_s16, 4  ;;  %s20112_s10 = scalar_lea.hbm %s18561_s30, %s14594_s6  ;;  %s20114_s0 = int_to_ptr.vmem [resolvable:$true] %s13289_s0 }
 0x246   : > { %15240 = vmatpush3.bf16.msra.mxu0 %v1904_v5  ;;  %v1799_v17 = vshrl.u32 %v1793_v11, 16  ;;  %v1802_v18 = vshll.u32 %v1793_v11, 16  ;;  %15250 = vmatpush3.bf16.msra.mxu1 %v1985_v9  ;;  %v1807_v21 = vshrl.u32 %v1794_v14, 16  ;;  %v1810_v22 = vshll.u32 %v1794_v14, 16  ;;  %v16476_v29 = vld [vmem:[%s20255_s18 + $0x18] sm:$0x3f]  }
 0x247   : > { %v1816_v23 = vshrl.u32 %v1795_v15, 16  ;;  %v1819_v24 = vshll.u32 %v1795_v15, 16  ;;  %v1796_v28 = vpack.c.bf16 %v1792_v20, %v1791_v19  ;;  %15259 = vmatprep.subr.bf16.mxu0 %v18963_v27  ;;  %v2203_v38 = vand.u32 %v16476_v29, %v18954_v2  ;;  %v16478_v11 = vld [vmem:[%s20255_s18 + $0x28] sm:$0x3f]   ;;  %s13277_s5 = scalar_lea.sflag [#allocation4], %s1777_s8  ;;  %s18110_s3 = scalar_lea.vmem %s20114_s0, 16 }
 0x248   : > { %v1801_v25 = vrot.slane %v1799_v17, 6  ;;  %v1804_v26 = vrot.slane %v1802_v18, 7  ;;  %v1809_v30 = vrot.slane %v1807_v21, 6  ;;  %v1812_v31 = vrot.slane %v1810_v22, 7  ;;  %p18111_p10 = scmp.ne.s32.totalorder %s20114_s0, %s18110_s3  ;;  %p20269_p13 = scmp.ne.s32.totalorder %s20213_s15, 0 }
 0x249   : > { %v1818_v33 = vrot.slane %v1816_v23, 6  ;;  %v1821_v34 = vrot.slane %v1819_v24, 7  ;;  %v1825_v36 = vshrl.u32 %v1796_v28, 16  ;;  %v1828_v37 = vshll.u32 %v1796_v28, 16  ;;  %15269 = vmatprep.subr.bf16.mxu1 %v2203_v38  ;;  %s18337_s28 = smov [#allocation56]  }
 0x24a   : > { %v1805_v35 = vor.u32 %v1804_v26, %v1801_v25  ;;  %v1813_v39 = vor.u32 %v1812_v31, %v1809_v30  ;;  %v19035_v6 = vand.u32 %v16477_v48, %v18954_v2  ;;  %v2425_v31 = vand.u32 %v16478_v11, %v18954_v2  ;;  %p18112_p12 = pnand %p18111_p10, %p20269_p13  ;;  %s18114_s2 = sshll.u32 %s18337_s28, 4  ;;  %s18115_s2 = int_to_ptr.vmem [resolvable:$false] %s18114_s2 }
 0x24b   : > { %v1822_v40 = vor.u32 %v1821_v34, %v1818_v33  ;;  %v1827_v42 = vrot.slane %v1825_v36, 6  ;;  %v1830_v43 = vrot.slane %v1828_v37, 7  ;;  %s18116_s17 = scalar_lea.vmem %s18115_s2, 32  ;;  %p18117_p2 = scmp.lt.s32.totalorder %s20114_s0, %s18115_s2 }
 0x24c   : > { %v18976_v41 = vsel %vm18968_vm5, 0, %v1805_v35  ;;  %v18979_v44 = vsel %vm1797_vm2, %v1805_v35, %v1813_v39  ;;  %p18113_p0 = pneg %p18112_p12  ;;  %p18118_p1 = scmp.lt.s32.totalorder %s18116_s17, %s18110_s3 }
 0x24d   : > { %v18982_v45 = vshrl.u32 %v18976_v41, 16  ;;  %v18985_v46 = vshll.u32 %v18976_v41, 16  ;;  %15251 = vmatprep.mubr.msk.bf16.mxu1 %vm1886_vm4, %v18976_v41  ;;  %v18990_v47 = vsel %vm1797_vm2, %v1813_v39, %v1822_v40  ;;  %v18994_v49 = vshll.u32 %v18979_v44, 16 }
 0x24e   : > { %v18997_v50 = vshrl.u32 %v18979_v44, 16  ;;  %v19000_v51 = vshll.u32 %v18990_v47, 16  ;;  %15252 = vmatmul.mubr.msk.bf16.vlgmr.msra.gmra.mxu1 %vm1886_vm4, %v18979_v44  ;;  %v1831_v52 = vor.u32 %v1830_v43, %v1827_v42  ;;  %v19006_v54 = vshrl.u32 %v18990_v47, 16  ;;  %p18119_p4 = por %p18118_p1, %p18117_p2 }
 0x24f   : > { %v1850_v53 = vrot.slane %v18985_v46, 1  ;;  %15255 = vmatprep.mubr.msk.bf16.mxu1 %vm1886_vm4, %v18990_v47  ;;  %v2058_v55 = vrot.slane %v18976_v41, 1  ;;  %v2059_v56 = vrot.slane %v18979_v44, 1  ;;  %15270 = vmatpush3.bf16.msra.mxu1 %v2203_v38  ;;  %v1855_v57 = vrot.slane %v18994_v49, 1 }
 0x250   : > { %v1863_v58 = vrot.slane %v19000_v51, 1  ;;  %v19015_v59 = vsel %vm1797_vm2, %v1822_v40, %v1831_v52  ;;  %v19019_v60 = vsel %vm18968_vm5, %v1831_v52, 0  ;;  %v2061_v5 = vrot.slane %v18990_v47, 1  ;;  %15289 = vmatprep.subr.bf16.mxu1 %v2425_v31  ;;  %p18120_p3 = pnand %p18119_p4, %p18113_p0 }
 0x251   : > { %v1851_v61 = vor.u32 %v1850_v53, %v18982_v45  ;;  %v19023_v62 = vshll.u32 %v19015_v59, 16  ;;  %v19026_v63 = vshrl.u32 %v19015_v59, 16  ;;  %v19029_v1 = vshll.u32 %v19019_v60, 16 }
 0x252   : > { %v1859_v3 = vor.u32 %v18997_v50, %v1855_v57  ;;  %v1867_v4 = vor.u32 %v19006_v54, %v1863_v58  ;;  %v2164_v10 = vrot.slane %v18982_v45, 1  ;;  %v2165_v13 = vrot.slane %v18985_v46, 2 }
 0x253   : > { %v1856_v7 = vsel %vm1844_vm6, %v1851_v61, %v1855_v57  ;;  %v1871_v8 = vrot.slane %v19023_v62, 1  ;;  %v1879_v9 = vrot.slane %v19029_v1, 1  ;;  %v2167_v14 = vrot.slane %v18997_v50, 1  ;;  %v16479_v57 = vld [vmem:[%s20255_s18 + $0x30] sm:$0x3f]  }
 0x254   : > { %15241 = vmatprep.mubr.msk.bf16.mxu0 %vm1886_vm4, %v1856_v7  ;;  %v1864_v12 = vsel %vm1844_vm6, %v1859_v3, %v1863_v58  ;;  %v2168_v17 = vrot.slane %v18994_v49, 2  ;;  %v2171_v18 = vrot.slane %v19006_v54, 1  ;;  %v2166_v19 = vor.u32 %v2165_v13, %v2164_v10 }
 0x255   : > { %15242 = vmatmul.mubr.msk.bf16.vlgmr.msra.gmra.mxu0 %vm1886_vm4, %v1864_v12  ;;  %v1872_v15 = vsel %vm1844_vm6, %v1867_v4, %v1871_v8  ;;  %v1875_v16 = vor.u32 %v19026_v63, %v1871_v8  ;;  %v2172_v20 = vrot.slane %v19000_v51, 2  ;;  %v2063_v21 = vrot.slane %v19015_v59, 1 }
 0x256   : > { %15245 = vmatprep.mubr.msk.bf16.mxu0 %vm1886_vm4, %v1872_v15  ;;  %15260 = vmatpush3.bf16.msra.mxu0 %v18963_v27  ;;  %v2065_v22 = vrot.slane %v19019_v60, 1  ;;  %v2169_v23 = vor.u32 %v2168_v17, %v2167_v14  ;;  %v2175_v24 = vrot.slane %v19026_v63, 1  ;;  %v2176_v25 = vrot.slane %v19023_v62, 2 }
 0x257   : > { %15256 = vmatmul.mubr.msk.bf16.gmra.mxu1 %vm1886_vm4, %v19015_v59  ;;  %15279 = vmatprep.subr.bf16.mxu0 %v19035_v6  ;;  %v2173_v26 = vor.u32 %v2172_v20, %v2171_v18  ;;  %v2179_v27 = vshrl.u32 %v19019_v60, 16  ;;  %v2182_v30 = vrot.slane %v19029_v1, 2  ;;  %v1880_v33 = vsel %vm1844_vm6, %v1875_v16, %v1879_v9 }
 0x258   : > { %v2170_v28 = vsel %vm2163_vm7, %v2166_v19, %v2169_v23  ;;  %v2177_v29 = vor.u32 %v2176_v25, %v2175_v24  ;;  %v2282_v35 = vrot.slane %v18976_v41, 2  ;;  %v2283_v36 = vrot.slane %v18979_v44, 2  ;;  %v2606_v19 = vld [vmem:[#allocation5] sm:$0xff] }
 0x259   : > { %15271 = vmatprep.mubr.msk.bf16.mxu1 %vm1886_vm4, %v2170_v28  ;;  %v2181_v34 = vrot.slane %v2179_v27, 1  ;;  %v2060_v37 = vsel %vm2057_vm8, %v2058_v55, %v2059_v56  ;;  %v2285_v38 = vrot.slane %v18990_v47, 2  ;;  %v2388_v39 = vrot.slane %v18982_v45, 2 }
 0x25a   : > { %v2389_v40 = vrot.slane %v18985_v46, 3  ;;  %v2174_v42 = vsel %vm2163_vm7, %v2169_v23, %v2173_v26  ;;  %v2391_v43 = vrot.slane %v18997_v50, 2  ;;  %v2392_v48 = vrot.slane %v18994_v49, 3 }
 0x25b   : > { %v2178_v52 = vsel %vm2163_vm7, %v2173_v26, %v2177_v29  ;;  %v2395_v53 = vrot.slane %v19006_v54, 2  ;;  %v2396_v55 = vrot.slane %v19000_v51, 3  ;;  %v2287_v45 = vrot.slane %v19015_v59, 2 }
 0x25c   : > { %v2289_v46 = vrot.slane %v19019_v60, 2  ;;  %v2399_v50 = vrot.slane %v19026_v63, 2  ;;  %v2400_v49 = vrot.slane %v19023_v62, 3  ;;  %v2183_v58 = vor.u32 %v2182_v30, %v2181_v34 }
 0x25d   : > { %15246 = vmatmul.mubr.msk.bf16.gmra.mxu0 %vm1886_vm4, %v1880_v33  ;;  %v2403_v54 = vrot.slane %v2179_v27, 2  ;;  %v2404_v51 = vrot.slane %v19029_v1, 3  ;;  %v2390_v61 = vor.u32 %v2389_v40, %v2388_v39  ;;  %v2393_v3 = vor.u32 %v2392_v48, %v2391_v43 }
 0x25e   : > { %15261 = vmatprep.mubr.msk.bf16.mxu0 %vm1886_vm4, %v2060_v37  ;;  %v2504_v4 = vrot.slane %v18976_v41, 3  ;;  %v2062_v7 = vsel %vm2057_vm8, %v2059_v56, %v2061_v5  ;;  %v2505_v63 = vrot.slane %v18979_v44, 3  ;;  %v2507_v62 = vrot.slane %v18990_v47, 3 }
 0x25f   : > { %15272 = vmatmul.mubr.msk.bf16.vlgmr.msra.gmra.mxu1 %vm1886_vm4, %v2174_v42  ;;  %v2509_v8 = vrot.slane %v19015_v59, 3  ;;  %v2064_v1 = vsel %vm2057_vm8, %v2061_v5, %v2063_v21  ;;  %v2531_v41 = vand.u32 %v16479_v57, %v18954_v2  ;;  %v2511_v9 = vrot.slane %v19019_v60, 3 }
 0x260   : > { %15275 = vmatprep.mubr.msk.bf16.mxu1 %vm1886_vm4, %v2178_v52  ;;  %15290 = vmatpush3.bf16.msra.mxu1 %v2425_v31  ;;  %v2184_v10 = vsel %vm2163_vm7, %v2177_v29, %v2183_v58  ;;  %v2394_v44 = vsel %vm2387_vm9, %v2390_v61, %v2393_v3  ;;  %v2397_v47 = vor.u32 %v2396_v55, %v2395_v53  ;;  %vm4654_vm2 = vsmask.f32 4352 }
 0x261   : > { %v2401_v56 = vor.u32 %v2400_v49, %v2399_v50  ;;  %v2066_v2 = vsel %vm2057_vm8, %v2063_v21, %v2065_v22  ;;  %v2284_v5 = vsel %vm1900_vm1, %v2282_v35, %v2283_v36  ;;  %v2405_v12 = vor.u32 %v2404_v51, %v2403_v54 }
 0x262   : > { %v2398_v11 = vsel %vm2387_vm9, %v2393_v3, %v2397_v47  ;;  %v2286_v60 = vsel %vm1900_vm1, %v2283_v36, %v2285_v38  ;;  %v2288_v59 = vsel %vm1900_vm1, %v2285_v38, %v2287_v45  ;;  %v2290_v14 = vsel %vm1900_vm1, %v2287_v45, %v2289_v46 }
 0x263   : > { %v2406_v13 = vsel %vm2387_vm9, %v2401_v56, %v2405_v12  ;;  %v2506_v15 = vsel %vm1899_vm0, %v2504_v4, %v2505_v63  ;;  %v2508_v16 = vsel %vm1899_vm0, %v2505_v63, %v2507_v62  ;;  %v2510_v17 = vsel %vm1899_vm0, %v2507_v62, %v2509_v8 }
 0x264   : > { %v2512_v18 = vsel %vm1899_vm0, %v2509_v8, %v2511_v9  ;;  %vm6653_vm7 = vcmask 1042432  }
 0x265   : > { %15262 = vmatmul.mubr.msk.bf16.vlgmr.msra.gmra.mxu0 %vm1886_vm4, %v2062_v7 }
 0x266   : > { %15265 = vmatprep.mubr.msk.bf16.mxu0 %vm1886_vm4, %v2064_v1  ;;  %15280 = vmatpush3.bf16.msra.mxu0 %v19035_v6  ;;  %v2402_v6 = vsel %vm2387_vm9, %v2397_v47, %v2401_v56 }
 0x267   : > { %15276 = vmatmul.mubr.msk.bf16.gmra.mxu1 %vm1886_vm4, %v2184_v10  ;;  %15299 = vmatprep.subr.bf16.mxu0 %v2531_v41 }
 0x268   : > { %15291 = vmatprep.mubr.msk.bf16.mxu1 %vm1886_vm4, %v2394_v44 }
 0x26d   : > { %15266 = vmatmul.mubr.msk.bf16.gmra.mxu0 %vm1886_vm4, %v2066_v2 }
 0x26e   : > { %15281 = vmatprep.mubr.msk.bf16.mxu0 %vm1886_vm4, %v2284_v5 }
 0x26f   : > { %15292 = vmatmul.mubr.msk.bf16.vlgmr.msra.gmra.mxu1 %vm1886_vm4, %v2398_v11 }
 0x270   : > { %15295 = vmatprep.mubr.msk.bf16.mxu1 %vm1886_vm4, %v2402_v6 }
 0x275   : > { %15282 = vmatmul.mubr.msk.bf16.vlgmr.msra.gmra.mxu0 %vm1886_vm4, %v2286_v60 }
 0x276   : > { %15285 = vmatprep.mubr.msk.bf16.mxu0 %vm1886_vm4, %v2288_v59  ;;  %15300 = vmatpush3.bf16.msra.mxu0 %v2531_v41 }
 0x277   : > { %15296 = vmatmul.mubr.msk.bf16.gmra.mxu1 %vm1886_vm4, %v2406_v13 }
 0x278   : > { %15325 = vmatprep.mubr.msk.f32.mxu1 %vm2617_vm10, %v2606_v19 }
 0x27d   : > { %15286 = vmatmul.mubr.msk.bf16.gmra.mxu0 %vm1886_vm4, %v2290_v14 }
 0x27e   : > { %15301 = vmatprep.mubr.msk.bf16.mxu0 %vm1886_vm4, %v2506_v15 }
 0x285   : > { %15302 = vmatmul.mubr.msk.bf16.vlgmr.msra.gmra.mxu0 %vm1886_vm4, %v2508_v16 }
 0x286   : > { %15305 = vmatprep.mubr.msk.bf16.mxu0 %vm1886_vm4, %v2510_v17 }
 0x28d   : > { %15306 = vmatmul.mubr.msk.bf16.gmra.mxu0 %vm1886_vm4, %v2512_v18  ;;  %vm19429_vm4 = vmand %vm1899_vm0, %vm4654_vm2 }
 0x30e   : > { %v19143_v20 = vpop.f32.mrf.mxu1 }
 0x310   : > { %v19145_v21 = vpop.f32.mrf.mxu1 }
 0x312   : > { %v15254_v22 = vpop.f32.mrf.mxu1 }
 0x314   : > { %v19147_v23 = vpop.f32.mrf.mxu1 }
 0x315   : > { %v15243_v24 = vpop.f32.mrf.mxu0 }
 0x317   : > { %v19149_v25 = vpop.f32.mrf.mxu0  ;;  %v15257_v26 = vpop.f32.mrf.mxu1 }
 0x319   : > { %v15244_v27 = vpop.f32.mrf.mxu0  ;;  %v2037_v28 = vpop.f32.mrf.mxu1 }
 0x31a   : > { %v2033_v16 = vadd.f32 %v15254_v22, %v15244_v27  ;;  %v2022_v22 = vadd.f32 %v19145_v21, %v19149_v25 }
 0x31b   : > { %v1943_v29 = vpop.f32.mrf.mxu0  ;;  %v15258_v30 = vpop.f32.mrf.mxu1 }
 0x31d   : > { %v15247_v31 = vpop.f32.mrf.mxu0  ;;  %v2040_v33 = vpop.f32.mrf.mxu1 }
 0x31e   : > { %v2046_v56 = vadd.f32 %v15257_v26, %v15247_v31 }
 0x31f   : > { %v1956_v34 = vpop.f32.mrf.mxu0  ;;  %v19151_v35 = vpop.f32.mrf.mxu1 }
 0x320   : > { %v2038_v59 = vadd.f32 %v2037_v28, %v1956_v34 }
 0x321   : > { %v15248_v36 = vpop.f32.mrf.mxu0  ;;  %v19153_v37 = vpop.f32.mrf.mxu1 }
 0x322   : > { %v2049_v10 = vadd.f32 %v15258_v30, %v15248_v36  ;;  %v2030_v36 = vadd.f32 %v19143_v20, %v15243_v24 }
 0x323   : > { %v1959_v38 = vpop.f32.mrf.mxu0  ;;  %v15274_v39 = vpop.f32.mrf.mxu1 }
 0x324   : > { %v2041_v11 = vadd.f32 %v2040_v33, %v1959_v38  ;;  %v2025_v33 = vadd.f32 %v19147_v23, %v1943_v29 }
 0x325   : > { %v15263_v40 = vpop.f32.mrf.mxu0  ;;  %v19155_v42 = vpop.f32.mrf.mxu1 }
 0x327   : > { %v2121_v43 = vpop.f32.mrf.mxu0  ;;  %v15277_v48 = vpop.f32.mrf.mxu1 }
 0x328   : > { %v2152_v24 = vadd.f32 %v2121_v43, %v2022_v22 }
 0x329   : > { %v15264_v52 = vpop.f32.mrf.mxu0  ;;  %v2255_v53 = vpop.f32.mrf.mxu1 }
 0x32a   : > { %v2155_v26 = vadd.f32 %v15264_v52, %v2033_v16 }
 0x32b   : > { %v2124_v55 = vpop.f32.mrf.mxu0  ;;  %v15278_v45 = vpop.f32.mrf.mxu1 }
 0x32c   : > { %v2153_v27 = vadd.f32 %v2124_v55, %v2025_v33 }
 0x32d   : > { %v15267_v57 = vpop.f32.mrf.mxu0  ;;  %v2258_v49 = vpop.f32.mrf.mxu1 }
 0x32e   : > { %v2158_v6 = vadd.f32 %v15267_v57, %v2046_v56  ;;  %v2154_v57 = vadd.f32 %v15263_v40, %v2030_v36 }
 0x32f   : > { %v2137_v46 = vpop.f32.mrf.mxu0  ;;  %v19157_v51 = vpop.f32.mrf.mxu1 }
 0x330   : > { %v2156_v17 = vadd.f32 %v2137_v46, %v2038_v59  ;;  %v2276_v18 = vadd.f32 %v15277_v48, %v2158_v6  ;;  %v2273_v46 = vadd.f32 %v15274_v39, %v2155_v26  ;;  %v2270_v39 = vadd.f32 %v19153_v37, %v2152_v24 }
 0x331   : > { %v15268_v50 = vpop.f32.mrf.mxu0  ;;  %v19161_v4 = vpop.f32.mrf.mxu1 }
 0x332   : > { %v2159_v2 = vadd.f32 %v15268_v50, %v2049_v10  ;;  %v2274_v10 = vadd.f32 %v2255_v53, %v2156_v17 }
 0x333   : > { %v2140_v58 = vpop.f32.mrf.mxu0  ;;  %v15294_v63 = vpop.f32.mrf.mxu1 }
 0x334   : > { %v2157_v13 = vadd.f32 %v2140_v58, %v2041_v11  ;;  %v2277_v14 = vadd.f32 %v15278_v45, %v2159_v2 }
 0x335   : > { %v15283_v54 = vpop.f32.mrf.mxu0  ;;  %v19163_v1 = vpop.f32.mrf.mxu1 }
 0x336   : > { %v2275_v31 = vadd.f32 %v2258_v49, %v2157_v13  ;;  %v2272_v49 = vadd.f32 %v19151_v35, %v2154_v57 }
 0x337   : > { %v19159_v61 = vpop.f32.mrf.mxu0  ;;  %v15297_v44 = vpop.f32.mrf.mxu1 }
 0x338   : > { %v2378_v53 = vadd.f32 %v15283_v54, %v2272_v49  ;;  %v2376_v35 = vadd.f32 %v19159_v61, %v2270_v39  ;;  %v2608_v61 = vld [vmem:[#allocation5 + $0x10] sm:$0xff] }
 0x339   : > { %v15284_v3 = vpop.f32.mrf.mxu0  ;;  %v2477_v12 = vpop.f32.mrf.mxu1 }
 0x33a   : > { %v2379_v23 = vadd.f32 %v15284_v3, %v2273_v46  ;;  %v2494_v3 = vadd.f32 %v19157_v51, %v2378_v53  ;;  %v2609_v51 = vld [vmem:[#allocation5 + $0x18] sm:$0xff] }
 0x33b   : > { %v2348_v7 = vpop.f32.mrf.mxu0  ;;  %v15298_v0 = vpop.f32.mrf.mxu1 }
 0x33d   : > { %v15287_v62 = vpop.f32.mrf.mxu0  ;;  %v2480_v48 = vpop.f32.mrf.mxu1 }
 0x33e   : > { %v2382_v50 = vadd.f32 %v15287_v62, %v2276_v18  ;;  %v2495_v62 = vadd.f32 %v15294_v63, %v2379_v23 }
 0x33f   : > { %v2361_v8 = vpop.f32.mrf.mxu0 }
 0x340   : > { %v2380_v58 = vadd.f32 %v2361_v8, %v2274_v10 }
 0x341   : > { %v15288_v41 = vpop.f32.mrf.mxu0 }
 0x342   : > { %v2383_v19 = vadd.f32 %v15288_v41, %v2277_v14  ;;  %v2498_v41 = vadd.f32 %v15297_v44, %v2382_v50  ;;  %v2496_v21 = vadd.f32 %v2477_v12, %v2380_v58 }
 0x343   : > { %v2364_v9 = vpop.f32.mrf.mxu0 }
 0x344   : > { %v2381_v28 = vadd.f32 %v2364_v9, %v2275_v31  ;;  %v2499_v34 = vadd.f32 %v15298_v0, %v2383_v19  ;;  %v2271_v0 = vadd.f32 %v19155_v42, %v2153_v27  ;;  %v2492_v9 = vadd.f32 %v19161_v4, %v2376_v35  ;;  %v13845_v4 = vld [vmem:[#allocation2] ss:$0 sm:$0xff] }
 0x345   : > { %v15303_v47 = vpop.f32.mrf.mxu0 }
 0x346   : > { %v2497_v29 = vadd.f32 %v2480_v48, %v2381_v28  ;;  %v2377_v55 = vadd.f32 %v2348_v7, %v2271_v0  ;;  %v2600_v54 = vadd.f32 %v15303_v47, %v2494_v3  ;;  %v2607_v7 = vld [vmem:[#allocation5 + $0x8] sm:$0xff] }
 0x347   : > { %v19165_v5 = vpop.f32.mrf.mxu0 }
 0x348   : > { %v2493_v42 = vadd.f32 %v19163_v1, %v2377_v55  ;;  %v2598_v63 = vadd.f32 %v19165_v5, %v2492_v9  ;;  %v2775_v1 = vld [vmem:[#allocation7] sm:$0xff]  ;;  %v2776_v55 = vld [vmem:[#allocation7 + $0x8] sm:$0xff]  ;;  %v2863_v9 = vlaneseq }
 0x349   : > { %v15304_v60 = vpop.f32.mrf.mxu0 }
 0x34a   : > { %v2601_v8 = vadd.f32 %v15304_v60, %v2495_v62  ;;  %v18332_v62 = vmov 0.0  }
 0x34b   : > { %v2570_v15 = vpop.f32.mrf.mxu0  ;;  %15348 = vmatprep.subr.bf16.mxu0 %v18332_v62  ;;  %15350 = vmatprep.mubr.msk.bf16.mxu0 %vm18333_vm13, %v18332_v62 }
 0x34c   : > { %v2599_v37 = vadd.f32 %v2570_v15, %v2493_v42  ;;  %v16481_v42 = vld [vmem:[#allocation10] sm:$0xff]  }
 0x34d   : > { %v15307_v30 = vpop.f32.mrf.mxu0 }
 0x34e   : > { %v2604_v40 = vadd.f32 %v15307_v30, %v2498_v41 }
 0x34f   : > { %v2583_v38 = vpop.f32.mrf.mxu0 }
 0x350   : > { %v2602_v43 = vadd.f32 %v2583_v38, %v2496_v21 }
 0x351   : > { %v15308_v45 = vpop.f32.mrf.mxu0 }
 0x352   : > { %v2605_v20 = vadd.f32 %v15308_v45, %v2499_v34 }
 0x353   : > { %v2586_v52 = vpop.f32.mrf.mxu0 }
 0x354   : > { %15309 = vmatprep.subr.mxu1 %v2605_v20  ;;  %v2603_v25 = vadd.f32 %v2586_v52, %v2497_v29 }
 0x355   : > { %15310 = vmatpush3.msra.mxu1 %v2605_v20 }
 0x356   : > { %15311 = vmatprep.subr.mxu1 %v2604_v40 }
 0x357   : > { %15312 = vmatpush3.msra.mxu1 %v2604_v40 }
 0x358   : > { %15313 = vmatprep.subr.mxu1 %v2603_v25 }
 0x359   : > { %15314 = vmatpush3.msra.mxu1 %v2603_v25 }
 0x35a   : > { %15315 = vmatprep.subr.mxu1 %v2602_v43 }
 0x35b   : > { %15316 = vmatpush3.msra.mxu1 %v2602_v43  ;;  %v16480_v43 = vld [vmem:[#allocation8] sm:$0xff]  }
 0x35c   : > { %15317 = vmatprep.subr.mxu1 %v2601_v8 }
 0x35d   : > { %15318 = vmatpush3.msra.mxu1 %v2601_v8 }
 0x35e   : > { %15319 = vmatprep.subr.mxu1 %v2600_v54 }
 0x35f   : > { %15320 = vmatpush3.msra.mxu1 %v2600_v54  ;;  %v16482_v54 = vld [vmem:[#allocation10 + $0x8] sm:$0xff]  }
 0x360   : > { %15321 = vmatprep.subr.mxu1 %v2599_v37  ;;  %15349 = vmatpush3.bf16.msra.mxu0 %v16482_v54 }
 0x361   : > { %15322 = vmatpush3.msra.mxu1 %v2599_v37  ;;  %15360 = vmatprep.subr.bf16.mxu0 %v18332_v62  ;;  %v19209_v37 = vshrl.u32 %v2863_v9, 7  ;;  %v16487_v9 = vld [vmem:[#allocation8 + $0x18] sm:$0xff]  }
 0x362   : > { %15323 = vmatprep.subr.mxu1 %v2598_v63 }
 0x363   : > { %15324 = vmatpush3.msra.mxu1 %v2598_v63  ;;  %v2859_v63 = vld [vmem:[#allocation14] sm:$0x3] }
 0x364   : > { %15326 = vmatmul.mubr.msk.f32.vlgmr.msra.gmra.mxu1 %vm2617_vm10, %v2607_v7  ;;  %v19212_v7 = vsub.s32 0, %v19209_v37 }
 0x365   : > { %15328 = vmatprep.mubr.msk.f32.mxu1 %vm2617_vm10, %v2608_v61 }
 0x366   : > { %v2866_v61 = vrot.slane %v2859_v63, %v19212_v7 }
 0x368   : > { %15329 = vmatmul.mubr.msk.f32.gmra.mxu1 %vm2617_vm10, %v2609_v51 }
 0x369   : > { %15339 = vmatprep.mubr.msk.f32.mxu1 %vm2777_vm11, %v2775_v1 }
 0x424   : > { %v15327_v44 = vpop.f32.mrf.mxu1 }
 0x425   : > { %v2702_v47 = vadd.f32 %v15327_v44, %v13845_v4 }
 0x426   : > { %v2696_v56 = vpop.f32.mrf.mxu1 }
 0x427   : > { %v2697_v2 = vadd.f32 %v13845_v4, %v2696_v56  ;;  %v2716_v5 = vmax.f32 %v2702_v47, 0.0 }
 0x428   : > { %v15330_v11 = vpop.f32.mrf.mxu1 }
 0x429   : > { %v2715_v6 = vmax.f32 %v2697_v2, 0.0  ;;  %v2712_v12 = vadd.f32 %v15330_v11, %v13845_v4  ;;  %v2725_v15 = vrot.slane %v2716_v5, 7 }
 0x42a   : > { %v2706_v60 = vpop.f32.mrf.mxu1 }
 0x42b   : > { %v2724_v59 = vrot.slane %v2715_v6, 7  ;;  %v2718_v13 = vmax.f32 %v2712_v12, 0.0  ;;  %v2707_v14 = vadd.f32 %v13845_v4, %v2706_v60  ;;  %v17160_v12 = vld [vmem:[#allocation38 + $0x228] sm:$0xff]  }
 0x42d   : > { %v2729_v16 = vrot.slane %v2718_v13, 7  ;;  %v2717_v17 = vmax.f32 %v2707_v14, 0.0  ;;  %v2726_v18 = vsel %vm2723_vm12, %v2724_v59, %v2725_v15  ;;  %v2736_v19 = vsel %vm2723_vm12, 0.0, %v2724_v59 }
 0x42e   : > { %v2741_v26 = vrot.slane %v2736_v19, 1  ;;  %v2742_v31 = vrot.slane %v2726_v18, 1  ;;  %v2758_v49 = vrot.slane %v2736_v19, 2  ;;  %v2759_v23 = vrot.slane %v2726_v18, 2 }
 0x42f   : > { %v2737_v30 = vsel %vm2723_vm12, %v2729_v16, 0.0  ;;  %v2727_v36 = vrot.slane %v2717_v17, 7 }
 0x430   : > { %v2748_v38 = vrot.slane %v2737_v30, 1  ;;  %v2765_v34 = vrot.slane %v2737_v30, 2  ;;  %v2743_v41 = vsel %vm2057_vm8, %v2741_v26, %v2742_v31  ;;  %v2760_v25 = vsel %vm1900_vm1, %v2758_v49, %v2759_v23  ;;  %v16483_v26 = vld [vmem:[#allocation10 + $0x10] sm:$0xff]  }
 0x431   : > { %v2728_v50 = vsel %vm2723_vm12, %v2725_v15, %v2727_v36  ;;  %v2730_v33 = vsel %vm2723_vm12, %v2727_v36, %v2729_v16  ;;  %v2754_v40 = vmax.f32 %v2736_v19, %v2743_v41 }
 0x432   : > { %v2744_v57 = vrot.slane %v2728_v50, 1  ;;  %v2746_v10 = vrot.slane %v2730_v33, 1  ;;  %v2763_v28 = vrot.slane %v2730_v33, 2  ;;  %v2761_v48 = vrot.slane %v2728_v50, 2 }
 0x433   : > { %v2771_v39 = vmax.f32 %v2754_v40, %v2760_v25 }
 0x434   : > { %v2749_v22 = vsel %vm2057_vm8, %v2746_v10, %v2748_v38  ;;  %v2747_v27 = vsel %vm2057_vm8, %v2744_v57, %v2746_v10  ;;  %v2745_v58 = vsel %vm2057_vm8, %v2742_v31, %v2744_v57  ;;  %v2766_v20 = vsel %vm1900_vm1, %v2763_v28, %v2765_v34  ;;  %v16484_v38 = vld [vmem:[#allocation13] sm:$0xff]   ;;  %v16485_v10 = vld [vmem:[#allocation11] sm:$0xff]  }
 0x435   : > { %v2757_v45 = vmax.f32 %v2730_v33, %v2749_v22  ;;  %v2756_v46 = vmax.f32 %v2728_v50, %v2747_v27  ;;  %v2755_v52 = vmax.f32 %v2726_v18, %v2745_v58  ;;  %v2764_v29 = vsel %vm1900_vm1, %v2761_v48, %v2763_v28 }
 0x436   : > { %v2762_v53 = vsel %vm1900_vm1, %v2759_v23, %v2761_v48  ;;  %vm19216_vm1 = vmand %vm2723_vm12, %vm2931_vm15  ;;  %v19242_v58 = vsub.s32 1, %v19209_v37 }
 0x437   : > { %v2774_v24 = vmax.f32 %v2757_v45, %v2766_v20  ;;  %v2773_v0 = vmax.f32 %v2756_v46, %v2764_v29  ;;  %v2772_v21 = vmax.f32 %v2755_v52, %v2762_v53 }
 0x438   : > { %v3114_v49 = vrot.slane %v2859_v63, %v19242_v58  ;;  %v16488_v63 = vld [vmem:[#allocation8 + $0x10] sm:$0xff]  }
 0x439   : > { %15331 = vmatprep.subr.mxu1 %v2774_v24 }
 0x43a   : > { %15332 = vmatpush3.msra.mxu1 %v2774_v24 }
 0x43b   : > { %15333 = vmatprep.subr.mxu1 %v2773_v0 }
 0x43c   : > { %15334 = vmatpush3.msra.mxu1 %v2773_v0 }
 0x43d   : > { %15335 = vmatprep.subr.mxu1 %v2772_v21 }
 0x43e   : > { %15336 = vmatpush3.msra.mxu1 %v2772_v21 }
 0x43f   : > { %15337 = vmatprep.subr.mxu1 %v2771_v39 }
 0x440   : > { %15338 = vmatpush3.msra.mxu1 %v2771_v39 }
 0x441   : > { %15340 = vmatmul.mubr.msk.f32.vlgmr.msra.gmra.mxu1 %vm2777_vm11, %v2776_v55  ;;  %15342 = vmatprep.subr.bf16.mxu1 %v18332_v62 }
 0x442   : > { %15343 = vmatpush3.bf16.msra.mxu1 %v16480_v43  ;;  %15344 = vmatprep.mubr.msk.bf16.mxu1 %vm18333_vm13, %v18332_v62 }
 0x443   : > { %15354 = vmatprep.subr.bf16.mxu1 %v18332_v62 }
 0x501   : > { %v15341_v35 = vpop.f32.mrf.mxu1 }
 0x503   : > { %v2850_v3 = vpop.f32.mrf.mxu1 }
 0x504   : > { %v2860_v8 = vpack.c.bf16 %v15341_v35, %v2850_v3  ;;  %v16486_v3 = vld [vmem:[#allocation8 + $0x20] sm:$0xff]  }
 0x506   : > { %15345 = vmatmul.mubr.msk.bf16.vlgmr.msra.gmra.mxu1 %vm2873_vm14, %v2860_v8 }
 0x507   : > { %15356 = vmatprep.mubr.msk.bf16.mxu1 %vm18333_vm13, %v18332_v62  ;;  %15355 = vmatpush3.bf16.msra.mxu1 %v16481_v42 }
 0x508   : > { %15366 = vmatprep.subr.bf16.mxu1 %v18332_v62 }
 0x5c6   : > { %v2911_v51 = vpop.f32.mrf.mxu1 }
 0x5c7   : > { %v2912_v4 = vadd.f32 %v2911_v51, %v2866_v61  ;;  %v13860_v51 = vld [vmem:[#allocation16] ss:$0 sm:$0xff] }
 0x5c8   : > { %v15346_v1 = vpop.f32.mrf.mxu1 }
 0x5c9   : > { %v2918_v2 = vmax.f32 %v2912_v4, 0.0  ;;  %v13863_v1 = vld [vmem:[#allocation16 + $0x3] ss:$0 sm:$0xff] }
 0x5ca   : > { %v2914_v44 = vpop.f32.mrf.mxu1 }
 0x5cb   : > { %v2915_v47 = vadd.f32 %v2914_v44, %v2866_v61  ;;  %v16489_v61 = vld [vmem:[#allocation8 + $0x8] sm:$0xff]  }
 0x5cc   : > { %v15347_v56 = vpop.f32.mrf.mxu1 }
 0x5cd   : > { %v2919_v5 = vmax.f32 %v2915_v47, 0.0 }
 0x5cf   : > { %v2920_v11 = vpack.c.bf16 %v2919_v5, %v2918_v2 }
 0x5d1   : > { %v2922_v6 = vshrl.u32 %v2920_v11, 16  ;;  %v2925_v59 = vshll.u32 %v2920_v11, 16 }
 0x5d3   : > { %v2924_v60 = vrot.slane %v2922_v6, 7 }
 0x5d5   : > { %v2927_v13 = vor.u32 %v2925_v59, %v2924_v60  ;;  %v2934_v14 = vsel %vm19216_vm1, %v2924_v60, 0 }
 0x5d6   : > { %v2948_v16 = vshll.u32 %v2934_v14, 16  ;;  %v3057_v33 = vrot.slane %v2934_v14, 1 }
 0x5d7   : > { %v2933_v15 = vsel %vm19216_vm1, 0, %v2927_v13 }
 0x5d8   : > { %v2943_v17 = vshll.u32 %v2933_v15, 16  ;;  %15357 = vmatmul.mubr.msk.bf16.vlgmr.msra.gmra.mxu1 %vm2873_vm14, %v2933_v15  ;;  %v2941_v18 = vshrl.u32 %v2933_v15, 16  ;;  %v2950_v30 = vrot.slane %v2948_v16, 1  ;;  %v3056_v50 = vrot.slane %v2933_v15, 1  ;;  %v16490_v16 = vld [vmem:[#allocation10 + $0x28] sm:$0xff]  }
 0x5d9   : > { %15368 = vmatprep.mubr.msk.bf16.mxu1 %vm18333_vm13, %v18332_v62  ;;  %15367 = vmatpush3.bf16.msra.mxu1 %v16485_v10 }
 0x5da   : > { %v2945_v19 = vrot.slane %v2943_v17, 1  ;;  %v3058_v57 = vsel %vm2057_vm8, %v3056_v50, %v3057_v33  ;;  %15378 = vmatprep.subr.bf16.mxu1 %v18332_v62  ;;  %v16491_v17 = vld [vmem:[#allocation10 + $0x20] sm:$0xff]  }
 0x5dc   : > { %v2946_v36 = vor.u32 %v2945_v19, %v2941_v18  ;;  %v3241_v18 = vld [vmem:[#allocation14 + $0x2] sm:$0x3] }
 0x5dd   : > { %v3254_v19 = vrot.slane %v3241_v18, %v19212_v7 }
 0x5de   : > { %v2951_v31 = vsel %vm1844_vm6, %v2946_v36, %v2950_v30 }
 0x5df   : > { %15351 = vmatmul.mubr.msk.bf16.vlgmr.msra.gmra.mxu0 %vm2873_vm14, %v2951_v31 }
 0x5e0   : > { %15361 = vmatpush3.bf16.msra.mxu0 %v16483_v26  ;;  %15362 = vmatprep.mubr.msk.bf16.mxu0 %vm18333_vm13, %v18332_v62 }
 0x5e1   : > { %15372 = vmatprep.subr.bf16.mxu0 %v18332_v62 }
 0x5e7   : > { %15363 = vmatmul.mubr.msk.bf16.vlgmr.msra.gmra.mxu0 %vm2873_vm14, %v3058_v57 }
 0x5e8   : > { %15373 = vmatpush3.bf16.msra.mxu0 %v16484_v38  ;;  %15374 = vmatprep.mubr.msk.bf16.mxu0 %vm18333_vm13, %v18332_v62 }
 0x5e9   : > { %15390 = vmatprep.subr.bf16.mxu0 %v18332_v62 }
 0x5ef   : > { %15375 = vmatmul.mubr.msk.bf16.vlgmr.msra.gmra.mxu0 %vm2873_vm14, %v2860_v8 }
 0x5f0   : > { %15392 = vmatprep.mubr.msk.bf16.mxu0 %vm18333_vm13, %v18332_v62  ;;  %15391 = vmatpush3.bf16.msra.mxu0 %v16491_v17  ;;  %v16496_v17 = vld [vmem:[#allocation8 + $0x30] sm:$0xff]  }
 0x5f1   : > { %15396 = vmatprep.subr.bf16.mxu0 %v18332_v62 }
 0x698   : > { %v3044_v28 = vpop.f32.mrf.mxu1 }
 0x69a   : > { %v15358_v34 = vpop.f32.mrf.mxu1 }
 0x69c   : > { %v3047_v22 = vpop.f32.mrf.mxu1 }
 0x69e   : > { %v15359_v27 = vpop.f32.mrf.mxu1 }
 0x69f   : > { %v2995_v48 = vpop.f32.mrf.mxu0 }
 0x6a0   : > { %v3045_v20 = vadd.f32 %v3044_v28, %v2995_v48 }
 0x6a1   : > { %v15352_v45 = vpop.f32.mrf.mxu0 }
 0x6a3   : > { %v2998_v46 = vpop.f32.mrf.mxu0 }
 0x6a4   : > { %v3048_v29 = vadd.f32 %v3047_v22, %v2998_v46 }
 0x6a5   : > { %v15353_v41 = vpop.f32.mrf.mxu0 }
 0x6a7   : > { %v3102_v24 = vpop.f32.mrf.mxu0 }
 0x6a8   : > { %v3109_v52 = vadd.f32 %v3102_v24, %v3045_v20 }
 0x6a9   : > { %v15364_v23 = vpop.f32.mrf.mxu0 }
 0x6aa   : > { %v3115_v0 = vadd.f32 %v3114_v49, %v3109_v52 }
 0x6ab   : > { %v3105_v40 = vpop.f32.mrf.mxu0 }
 0x6ac   : > { %v3110_v53 = vadd.f32 %v3105_v40, %v3048_v29  ;;  %v3117_v55 = vmax.f32 %v3115_v0, 0.0  ;;  %v16492_v0 = vld [vmem:[#allocation10 + $0x18] sm:$0xff]  }
 0x6ad   : > { %v15365_v21 = vpop.f32.mrf.mxu0 }
 0x6ae   : > { %v3116_v25 = vadd.f32 %v3114_v49, %v3110_v53  ;;  %v16493_v21 = vld [vmem:[#allocation11 + $0x8] sm:$0xff]  }
 0x6af   : > { %v3229_v39 = vpop.f32.mrf.mxu0 }
 0x6b0   : > { %v3118_v43 = vmax.f32 %v3116_v25, 0.0  ;;  %v3230_v56 = vadd.f32 %v13863_v1, %v3229_v39  ;;  %v16494_v25 = vld [vmem:[#allocation8 + $0x40] sm:$0xff]  }
 0x6b1   : > { %v15376_v35 = vpop.f32.mrf.mxu0 }
 0x6b2   : > { %v3119_v8 = vpack.c.bf16 %v3118_v43, %v3117_v55 }
 0x6b3   : > { %v3232_v42 = vpop.f32.mrf.mxu0 }
 0x6b4   : > { %15369 = vmatmul.mubr.msk.bf16.vlgmr.msra.gmra.mxu1 %vm2873_vm14, %v3119_v8  ;;  %v3233_v5 = vadd.f32 %v13863_v1, %v3232_v42 }
 0x6b5   : > { %v15377_v54 = vpop.f32.mrf.mxu0  ;;  %15379 = vmatpush3.bf16.msra.mxu1 %v16486_v3  ;;  %15386 = vmatprep.mubr.msk.bf16.mxu1 %vm18333_vm13, %v18332_v62 }
 0x6b6   : > { %15380 = vmatprep.subr.bf16.mxu1 %v18332_v62 }
 0x6b9   : > { %15381 = vmatpush3.bf16.msra.mxu1 %v16487_v9 }
 0x6ba   : > { %15382 = vmatprep.subr.bf16.mxu1 %v18332_v62 }
 0x6bd   : > { %15383 = vmatpush3.bf16.msra.mxu1 %v16488_v63 }
 0x6be   : > { %15384 = vmatprep.subr.bf16.mxu1 %v18332_v62 }
 0x6c1   : > { %15385 = vmatpush3.bf16.msra.mxu1 %v16489_v61 }
 0x6c2   : > { %15402 = vmatprep.subr.bf16.mxu1 %v18332_v62 }
 0x774   : > { %v3172_v4 = vpop.f32.mrf.mxu1 }
 0x775   : > { %v3173_v44 = vadd.f32 %v13860_v51, %v3172_v4 }
 0x776   : > { %v15370_v47 = vpop.f32.mrf.mxu1 }
 0x777   : > { %v19252_v11 = vadd.f32 %v3230_v56, %v3173_v44 }
 0x778   : > { %v3175_v2 = vpop.f32.mrf.mxu1 }
 0x779   : > { %v3176_v6 = vadd.f32 %v13860_v51, %v3175_v2  ;;  %v3238_v13 = vmax.f32 %v19252_v11, 0.0  ;;  %v3517_v51 = vrot.slane %v3241_v18, %v19242_v58  ;;  %v16497_v18 = vld [vmem:[#allocation8 + $0x28] sm:$0xff]  }
 0x77a   : > { %v15371_v60 = vpop.f32.mrf.mxu1  ;;  %v16498_v11 = vld [vmem:[#allocation10 + $0x40] sm:$0xff]  }
 0x77b   : > { %v19254_v59 = vadd.f32 %v3233_v5, %v3176_v6 }
 0x77d   : > { %v3239_v14 = vmax.f32 %v19254_v59, 0.0  ;;  %v16499_v59 = vld [vmem:[#allocation10 + $0x38] sm:$0xff]  }
 0x77f   : > { %v3242_v15 = vpack.c.bf16 %v3239_v14, %v3238_v13 }
 0x781   : > { %15387 = vmatmul.mubr.msk.bf16.vlgmr.msra.gmra.mxu1 %vm2617_vm10, %v3242_v15 }
 0x782   : > { %15404 = vmatprep.mubr.msk.bf16.mxu1 %vm18333_vm13, %v18332_v62  ;;  %15403 = vmatpush3.bf16.msra.mxu1 %v16490_v16  ;;  %v16495_v16 = vld [vmem:[#allocation8 + $0x38] sm:$0xff]  }
 0x783   : > { %15414 = vmatprep.subr.bf16.mxu1 %v18332_v62 }
 0x841   : > { %v3316_v30 = vpop.f32.mrf.mxu1 }
 0x842   : > { %v3317_v26 = vadd.f32 %v3316_v30, %v3254_v19 }
 0x843   : > { %v15388_v36 = vpop.f32.mrf.mxu1 }
 0x844   : > { %v3323_v38 = vmax.f32 %v3317_v26, 0.0 }
 0x845   : > { %v3319_v31 = vpop.f32.mrf.mxu1 }
 0x846   : > { %v3320_v50 = vadd.f32 %v3319_v31, %v3254_v19  ;;  %v13877_v19 = vld [vmem:[#allocation16 + $0x1] ss:$0 sm:$0xff] }
 0x847   : > { %v15389_v33 = vpop.f32.mrf.mxu1 }
 0x848   : > { %v3324_v57 = vmax.f32 %v3320_v50, 0.0 }
 0x84a   : > { %v3325_v10 = vpack.c.bf16 %v3324_v57, %v3323_v38 }
 0x84c   : > { %v3327_v28 = vshrl.u32 %v3325_v10, 16  ;;  %v3330_v22 = vshll.u32 %v3325_v10, 16 }
 0x84e   : > { %v3329_v34 = vrot.slane %v3327_v28, 7 }
 0x850   : > { %v3332_v27 = vor.u32 %v3330_v22, %v3329_v34  ;;  %v3336_v48 = vsel %vm19216_vm1, %v3329_v34, 0 }
 0x851   : > { %v3351_v46 = vshll.u32 %v3336_v48, 16  ;;  %v3460_v41 = vrot.slane %v3336_v48, 1 }
 0x852   : > { %v3335_v45 = vsel %vm19216_vm1, 0, %v3332_v27 }
 0x853   : > { %v3459_v20 = vrot.slane %v3335_v45, 1  ;;  %v3346_v24 = vshll.u32 %v3335_v45, 16  ;;  %v3344_v49 = vshrl.u32 %v3335_v45, 16  ;;  %v3353_v29 = vrot.slane %v3351_v46, 1 }
 0x855   : > { %v3461_v52 = vsel %vm2057_vm8, %v3459_v20, %v3460_v41  ;;  %v3348_v23 = vrot.slane %v3346_v24, 1 }
 0x856   : > { %15405 = vmatmul.mubr.msk.bf16.vlgmr.msra.gmra.mxu1 %vm2873_vm14, %v3461_v52 }
 0x857   : > { %v3349_v40 = vor.u32 %v3348_v23, %v3344_v49  ;;  %15422 = vmatprep.mubr.msk.bf16.mxu1 %vm18333_vm13, %v18332_v62  ;;  %15415 = vmatpush3.bf16.msra.mxu1 %v16494_v25 }
 0x858   : > { %15416 = vmatprep.subr.bf16.mxu1 %v18332_v62 }
 0x859   : > { %v3354_v53 = vsel %vm1844_vm6, %v3349_v40, %v3353_v29 }
 0x85a   : > { %15393 = vmatmul.mubr.msk.bf16.vlgmr.msra.gmra.mxu0 %vm2873_vm14, %v3354_v53 }
 0x85b   : > { %15397 = vmatpush3.bf16.msra.mxu0 %v16492_v0  ;;  %15398 = vmatprep.mubr.msk.bf16.mxu0 %vm18333_vm13, %v18332_v62 }
 0x85c   : > { %15408 = vmatprep.subr.bf16.mxu0 %v18332_v62  ;;  %15417 = vmatpush3.bf16.msra.mxu1 %v16495_v16 }
 0x85d   : > { %15418 = vmatprep.subr.bf16.mxu1 %v18332_v62 }
 0x860   : > { %15419 = vmatpush3.bf16.msra.mxu1 %v16496_v17 }
 0x861   : > { %15420 = vmatprep.subr.bf16.mxu1 %v18332_v62 }
 0x862   : > { %15399 = vmatmul.mubr.msk.bf16.vlgmr.msra.gmra.mxu0 %vm2873_vm14, %v3335_v45 }
 0x863   : > { %15410 = vmatprep.mubr.msk.bf16.mxu0 %vm18333_vm13, %v18332_v62  ;;  %15409 = vmatpush3.bf16.msra.mxu0 %v16493_v21 }
 0x864   : > { %15426 = vmatprep.subr.bf16.mxu0 %v18332_v62  ;;  %15421 = vmatpush3.bf16.msra.mxu1 %v16497_v18 }
 0x865   : > { %15438 = vmatprep.subr.bf16.mxu1 %v18332_v62 }
 0x916   : > { %v3505_v39 = vpop.f32.mrf.mxu1 }
 0x918   : > { %v15406_v55 = vpop.f32.mrf.mxu1 }
 0x91a   : > { %v3398_v43 = vpop.f32.mrf.mxu0  ;;  %v3508_v35 = vpop.f32.mrf.mxu1 }
 0x91c   : > { %v15394_v3 = vpop.f32.mrf.mxu0  ;;  %v15407_v8 = vpop.f32.mrf.mxu1 }
 0x91e   : > { %v3401_v42 = vpop.f32.mrf.mxu0 }
 0x920   : > { %v15395_v54 = vpop.f32.mrf.mxu0 }
 0x921   : > { %v16500_v54 = vld [vmem:[#allocation10 + $0x30] sm:$0xff]  }
 0x922   : > { %v3447_v9 = vpop.f32.mrf.mxu0 }
 0x923   : > { %v3448_v63 = vadd.f32 %v3447_v9, %v3398_v43 }
 0x924   : > { %v15400_v61 = vpop.f32.mrf.mxu0 }
 0x925   : > { %v3512_v1 = vadd.f32 %v3505_v39, %v3448_v63  ;;  %v16501_v63 = vld [vmem:[#allocation11 + $0x10] sm:$0xff]   ;;  %v16502_v61 = vld [vmem:[#allocation17 + $0x18] sm:$0xff]  }
 0x926   : > { %v3450_v4 = vpop.f32.mrf.mxu0 }
 0x927   : > { %v3451_v44 = vadd.f32 %v3450_v4, %v3401_v42  ;;  %v3518_v56 = vadd.f32 %v3517_v51, %v3512_v1 }
 0x928   : > { %v15401_v47 = vpop.f32.mrf.mxu0 }
 0x929   : > { %v3513_v2 = vadd.f32 %v3508_v35, %v3451_v44  ;;  %v3520_v6 = vmax.f32 %v3518_v56, 0.0 }
 0x92b   : > { %v3519_v5 = vadd.f32 %v3517_v51, %v3513_v2 }
 0x92d   : > { %v3521_v60 = vmax.f32 %v3519_v5, 0.0 }
 0x92f   : > { %v3522_v15 = vpack.c.bf16 %v3521_v60, %v3520_v6 }
 0x931   : > { %15411 = vmatmul.mubr.msk.bf16.vlgmr.msra.gmra.mxu0 %vm2873_vm14, %v3522_v15 }
 0x932   : > { %15428 = vmatprep.mubr.msk.bf16.mxu0 %vm18333_vm13, %v18332_v62  ;;  %15427 = vmatpush3.bf16.msra.mxu0 %v16499_v59  ;;  %v16504_v59 = vld [vmem:[#allocation17 + $0x8] sm:$0xff]  }
 0x933   : > { %15432 = vmatprep.subr.bf16.mxu0 %v18332_v62 }
 0x9f1   : > { %v3576_v30 = vpop.f32.mrf.mxu0 }
 0x9f2   : > { %v3577_v36 = vadd.f32 %v13877_v19, %v3576_v30 }
 0x9f3   : > { %v15412_v26 = vpop.f32.mrf.mxu0 }
 0x9f4   : > { %v19295_v50 = vadd.f32 %v3577_v36, %v3238_v13  ;;  %v3588_v13 = vld [vmem:[#allocation14 + $0x4] sm:$0x3] }
 0x9f5   : > { %v3579_v31 = vpop.f32.mrf.mxu0  ;;  %v3864_v16 = vrot.slane %v3588_v13, %v19242_v58 }
 0x9f6   : > { %v3580_v33 = vadd.f32 %v13877_v19, %v3579_v31  ;;  %v3585_v10 = vmax.f32 %v19295_v50, 0.0  ;;  %v16506_v50 = vld [vmem:[#allocation19 + $0x28] sm:$0xff]  }
 0x9f7   : > { %v15413_v38 = vpop.f32.mrf.mxu0 }
 0x9f8   : > { %v19299_v57 = vadd.f32 %v3580_v33, %v3239_v14  ;;  %v3601_v14 = vrot.slane %v3588_v13, %v19212_v7  ;;  %v16505_v13 = vld [vmem:[#allocation17] sm:$0xff]  }
 0x9fa   : > { %v3586_v28 = vmax.f32 %v19299_v57, 0.0  ;;  %v16507_v57 = vld [vmem:[#allocation19 + $0x18] sm:$0xff]  }
 0x9fc   : > { %v3589_v34 = vpack.c.bf16 %v3586_v28, %v3585_v10 }
 0x9fe   : > { %15423 = vmatmul.mubr.msk.bf16.vlgmr.msra.gmra.mxu1 %vm2617_vm10, %v3589_v34 }
 0x9ff   : > { %15440 = vmatprep.mubr.msk.bf16.mxu1 %vm18333_vm13, %v18332_v62  ;;  %15439 = vmatpush3.bf16.msra.mxu1 %v16498_v11  ;;  %v16503_v11 = vld [vmem:[#allocation17 + $0x10] sm:$0xff]  }
 0xa00   : > { %15450 = vmatprep.subr.bf16.mxu1 %v18332_v62 }
 0xabe   : > { %v3663_v22 = vpop.f32.mrf.mxu1 }
 0xabf   : > { %v3664_v48 = vadd.f32 %v3663_v22, %v3601_v14 }
 0xac0   : > { %v15424_v27 = vpop.f32.mrf.mxu1 }
 0xac1   : > { %v3670_v20 = vmax.f32 %v3664_v48, 0.0 }
 0xac2   : > { %v3666_v45 = vpop.f32.mrf.mxu1 }
 0xac3   : > { %v3667_v46 = vadd.f32 %v3666_v45, %v3601_v14  ;;  %v13891_v14 = vld [vmem:[#allocation16 + $0x2] ss:$0 sm:$0xff] }
 0xac4   : > { %v15425_v41 = vpop.f32.mrf.mxu1 }
 0xac5   : > { %v3671_v24 = vmax.f32 %v3667_v46, 0.0 }
 0xac7   : > { %v3672_v52 = vpack.c.bf16 %v3671_v24, %v3670_v20 }
 0xac9   : > { %v3674_v49 = vshrl.u32 %v3672_v52, 16  ;;  %v3677_v29 = vshll.u32 %v3672_v52, 16 }
 0xacb   : > { %v3676_v23 = vrot.slane %v3674_v49, 7 }
 0xacd   : > { %v3679_v40 = vor.u32 %v3677_v29, %v3676_v23  ;;  %v3683_v0 = vsel %vm19216_vm1, %v3676_v23, 0  ;;  %v19359_v29 = vld [vmem:[#allocation23] sm:$0x3] }
 0xace   : > { %v3698_v21 = vshll.u32 %v3683_v0, 16  ;;  %v3807_v25 = vrot.slane %v3683_v0, 1 }
 0xacf   : > { %v3682_v53 = vsel %vm19216_vm1, 0, %v3679_v40  ;;  %v3948_v40 = vrot.slane %v19359_v29, %v19212_v7 }
 0xad0   : > { %v3806_v39 = vrot.slane %v3682_v53, 1  ;;  %v3693_v55 = vshll.u32 %v3682_v53, 16  ;;  %v3691_v35 = vshrl.u32 %v3682_v53, 16  ;;  %v3700_v8 = vrot.slane %v3698_v21, 1 }
 0xad2   : > { %v3808_v43 = vsel %vm2057_vm8, %v3806_v39, %v3807_v25  ;;  %v3695_v3 = vrot.slane %v3693_v55, 1 }
 0xad3   : > { %15441 = vmatmul.mubr.msk.bf16.vlgmr.msra.gmra.mxu1 %vm2873_vm14, %v3808_v43 }
 0xad4   : > { %v3696_v42 = vor.u32 %v3695_v3, %v3691_v35  ;;  %15458 = vmatprep.mubr.msk.bf16.mxu1 %vm18333_vm13, %v18332_v62  ;;  %15451 = vmatpush3.bf16.msra.mxu1 %v16502_v61 }
 0xad5   : > { %15452 = vmatprep.subr.bf16.mxu1 %v18332_v62 }
 0xad6   : > { %v3701_v9 = vsel %vm1844_vm6, %v3696_v42, %v3700_v8 }
 0xad7   : > { %15429 = vmatmul.mubr.msk.bf16.vlgmr.msra.gmra.mxu0 %vm2873_vm14, %v3701_v9 }
 0xad8   : > { %15433 = vmatpush3.bf16.msra.mxu0 %v16500_v54  ;;  %15434 = vmatprep.mubr.msk.bf16.mxu0 %vm18333_vm13, %v18332_v62 }
 0xad9   : > { %15444 = vmatprep.subr.bf16.mxu0 %v18332_v62  ;;  %15453 = vmatpush3.bf16.msra.mxu1 %v16503_v11 }
 0xada   : > { %15454 = vmatprep.subr.bf16.mxu1 %v18332_v62 }
 0xadd   : > { %15455 = vmatpush3.bf16.msra.mxu1 %v16504_v59 }
 0xade   : > { %15456 = vmatprep.subr.bf16.mxu1 %v18332_v62 }
 0xadf   : > { %15435 = vmatmul.mubr.msk.bf16.vlgmr.msra.gmra.mxu0 %vm2873_vm14, %v3682_v53 }
 0xae0   : > { %15446 = vmatprep.mubr.msk.bf16.mxu0 %vm18333_vm13, %v18332_v62  ;;  %15445 = vmatpush3.bf16.msra.mxu0 %v16501_v63 }
 0xae1   : > { %15462 = vmatprep.subr.bf16.mxu0 %v18332_v62  ;;  %15457 = vmatpush3.bf16.msra.mxu1 %v16505_v13 }
 0xae2   : > { %15478 = vmatprep.subr.bf16.mxu1 %v18332_v62 }
 0xb93   : > { %v3852_v51 = vpop.f32.mrf.mxu1 }
 0xb95   : > { %v15442_v1 = vpop.f32.mrf.mxu1 }
 0xb97   : > { %v3745_v4 = vpop.f32.mrf.mxu0  ;;  %v3855_v44 = vpop.f32.mrf.mxu1 }
 0xb99   : > { %v15430_v47 = vpop.f32.mrf.mxu0  ;;  %v15443_v56 = vpop.f32.mrf.mxu1 }
 0xb9b   : > { %v3748_v2 = vpop.f32.mrf.mxu0 }
 0xb9d   : > { %v15431_v5 = vpop.f32.mrf.mxu0 }
 0xb9f   : > { %v3794_v6 = vpop.f32.mrf.mxu0 }
 0xba0   : > { %v3795_v60 = vadd.f32 %v3794_v6, %v3745_v4 }
 0xba1   : > { %v15436_v15 = vpop.f32.mrf.mxu0 }
 0xba2   : > { %v3859_v17 = vadd.f32 %v3852_v51, %v3795_v60  ;;  %v16510_v60 = vld [vmem:[#allocation19 + $0x8] sm:$0xff]  }
 0xba3   : > { %v3797_v18 = vpop.f32.mrf.mxu0 }
 0xba4   : > { %v3798_v19 = vadd.f32 %v3797_v18, %v3748_v2  ;;  %v3865_v36 = vadd.f32 %v3864_v16, %v3859_v17 }
 0xba5   : > { %v15437_v30 = vpop.f32.mrf.mxu0 }
 0xba6   : > { %v3860_v26 = vadd.f32 %v3855_v44, %v3798_v19  ;;  %v3867_v33 = vmax.f32 %v3865_v36, 0.0 }
 0xba8   : > { %v3866_v31 = vadd.f32 %v3864_v16, %v3860_v26  ;;  %v16511_v16 = vld [vmem:[#allocation19] sm:$0xff]  }
 0xbaa   : > { %v3868_v38 = vmax.f32 %v3866_v31, 0.0 }
 0xbac   : > { %v3869_v34 = vpack.c.bf16 %v3868_v38, %v3867_v33 }
 0xbae   : > { %15447 = vmatmul.mubr.msk.bf16.vlgmr.msra.gmra.mxu0 %vm2873_vm14, %v3869_v34 }
 0xbaf   : > { %15466 = vmatprep.mubr.msk.bf16.mxu0 %vm18333_vm13, %v18332_v62  ;;  %15463 = vmatpush3.bf16.msra.mxu0 %v16507_v57 }
 0xbb0   : > { %15464 = vmatprep.subr.bf16.mxu0 %v18332_v62 }
 0xc6e   : > { %v3923_v22 = vpop.f32.mrf.mxu0 }
 0xc6f   : > { %v3924_v27 = vadd.f32 %v13891_v14, %v3923_v22 }
 0xc70   : > { %v15448_v48 = vpop.f32.mrf.mxu0 }
 0xc71   : > { %v19340_v46 = vadd.f32 %v3924_v27, %v3585_v10  ;;  %v16508_v10 = vld [vmem:[#allocation19 + $0x20] sm:$0xff]   ;;  %v3934_v48 = vld [vmem:[#allocation26] sm:$0xff] }
 0xc72   : > { %v3926_v45 = vpop.f32.mrf.mxu0 }
 0xc73   : > { %v3927_v41 = vadd.f32 %v13891_v14, %v3926_v45  ;;  %v3932_v52 = vmax.f32 %v19340_v46, 0.0  ;;  %v16512_v45 = vld [vmem:[#allocation22 + $0x18] sm:$0xff]   ;;  %v16516_v46 = vld [vmem:[#allocation20] sm:$0xff]  }
 0xc74   : > { %v15449_v20 = vpop.f32.mrf.mxu0 }
 0xc75   : > { %v19344_v24 = vadd.f32 %v3927_v41, %v3586_v28  ;;  %v16509_v28 = vld [vmem:[#allocation19 + $0x10] sm:$0xff]   ;;  %v16514_v20 = vld [vmem:[#allocation20 + $0x8] sm:$0xff]  }
 0xc76   : > { %15465 = vmatpush3.bf16.msra.mxu0 %v16509_v28  ;;  %v16513_v41 = vld [vmem:[#allocation22 + $0x10] sm:$0xff]  }
 0xc77   : > { %v3933_v49 = vmax.f32 %v19344_v24, 0.0  ;;  %15470 = vmatprep.subr.bf16.mxu0 %v18332_v62  ;;  %v16515_v24 = vld [vmem:[#allocation22 + $0x8] sm:$0xff]  }
 0xc79   : > { %v3936_v23 = vpack.c.bf16 %v3933_v49, %v3932_v52 }
 0xc7b   : > { %15459 = vmatmul.mubr.msk.bf16.vlgmr.msra.gmra.mxu1 %vm2617_vm10, %v3936_v23 }
 0xc7c   : > { %15482 = vmatprep.mubr.msk.bf16.mxu1 %vm18333_vm13, %v18332_v62  ;;  %15479 = vmatpush3.bf16.msra.mxu1 %v16506_v50 }
 0xc7d   : > { %15480 = vmatprep.subr.bf16.mxu1 %v18332_v62 }
 0xc80   : > { %15481 = vmatpush3.bf16.msra.mxu1 %v16508_v10 }
 0xc81   : > { %15493 = vmatprep.subr.bf16.mxu1 %v18332_v62 }
 0xd3b   : > { %v4010_v0 = vpop.f32.mrf.mxu1 }
 0xd3c   : > { %v4011_v21 = vadd.f32 %v4010_v0, %v3948_v40 }
 0xd3d   : > { %v15460_v53 = vpop.f32.mrf.mxu1 }
 0xd3e   : > { %v4017_v43 = vmax.f32 %v4011_v21, 0.0 }
 0xd3f   : > { %v4013_v25 = vpop.f32.mrf.mxu1 }
 0xd40   : > { %v4014_v39 = vadd.f32 %v4013_v25, %v3948_v40  ;;  %v16518_v40 = vld [vmem:[#allocation17 + $0x58] sm:$0xff]   ;;  %v16519_v25 = vld [vmem:[#allocation17 + $0x50] sm:$0xff]  }
 0xd41   : > { %v15461_v55 = vpop.f32.mrf.mxu1 }
 0xd42   : > { %v4018_v35 = vmax.f32 %v4014_v39, 0.0  ;;  %v16521_v39 = vld [vmem:[#allocation17 + $0x40] sm:$0xff]   ;;  %v16522_v55 = vld [vmem:[#allocation17 + $0x38] sm:$0xff]  }
 0xd44   : > { %v4019_v3 = vpack.c.bf16 %v4018_v35, %v4017_v43  ;;  %v16523_v43 = vld [vmem:[#allocation17 + $0x30] sm:$0xff]   ;;  %v16524_v35 = vld [vmem:[#allocation17 + $0x28] sm:$0xff]  }
 0xd46   : > { %v4021_v8 = vshrl.u32 %v4019_v3, 16  ;;  %v4024_v54 = vshll.u32 %v4019_v3, 16  ;;  %v16525_v3 = vld [vmem:[#allocation17 + $0x20] sm:$0xff]  }
 0xd48   : > { %v4023_v42 = vrot.slane %v4021_v8, 7  ;;  %v13909_v8 = vld [vmem:[#allocation25] ss:$0 sm:$0xff] }
 0xd4a   : > { %v4026_v9 = vor.u32 %v4024_v54, %v4023_v42  ;;  %v4030_v63 = vsel %vm19216_vm1, %v4023_v42, 0  ;;  %v13914_v42 = vld [vmem:[#allocation25 + $0x4] ss:$0 sm:$0xff] }
 0xd4b   : > { %v4048_v51 = vshll.u32 %v4030_v63, 16  ;;  %v4171_v1 = vrot.slane %v4030_v63, 1 }
 0xd4c   : > { %v4029_v61 = vsel %vm19216_vm1, 0, %v4026_v9 }
 0xd4d   : > { %v4170_v4 = vrot.slane %v4029_v61, 1  ;;  %v4043_v44 = vshll.u32 %v4029_v61, 16  ;;  %v4041_v56 = vshrl.u32 %v4029_v61, 16  ;;  %v4050_v5 = vrot.slane %v4048_v51, 1 }
 0xd4f   : > { %v4172_v47 = vsel %vm2057_vm8, %v4170_v4, %v4171_v1  ;;  %v4045_v2 = vrot.slane %v4043_v44, 1  ;;  %vm6654_vm8 = vsmask.f32 2304 }
 0xd50   : > { %15483 = vmatmul.mubr.msk.bf16.vlgmr.msra.gmra.mxu1 %vm2777_vm11, %v4172_v47  ;;  %vm19639_vm9 = vmand %vm6653_vm7, %vm6654_vm8 }
 0xd51   : > { %v4046_v6 = vor.u32 %v4045_v2, %v4041_v56  ;;  %15497 = vmatprep.mubr.msk.bf16.mxu1 %vm18333_vm13, %v18332_v62  ;;  %15494 = vmatpush3.bf16.msra.mxu1 %v16514_v20 }
 0xd52   : > { %15495 = vmatprep.subr.bf16.mxu1 %v18332_v62 }
 0xd53   : > { %v4051_v15 = vsel %vm1844_vm6, %v4046_v6, %v4050_v5  ;;  %vm6061_vm6 = vcmask 64512  }
 0xd54   : > { %15467 = vmatmul.mubr.msk.bf16.vlgmr.msra.gmra.mxu0 %vm2777_vm11, %v4051_v15  ;;  %v16527_v15 = vld [vmem:[#allocation19 + $0x40] sm:$0xff]  }
 0xd55   : > { %15471 = vmatpush3.bf16.msra.mxu0 %v16510_v60  ;;  %15474 = vmatprep.mubr.msk.bf16.mxu0 %vm18333_vm13, %v18332_v62  ;;  %v16526_v60 = vld [vmem:[#allocation19 + $0x48] sm:$0xff]  }
 0xd56   : > { %15472 = vmatprep.subr.bf16.mxu0 %v18332_v62  ;;  %15496 = vmatpush3.bf16.msra.mxu1 %v16516_v46  ;;  %v16530_v46 = vld [vmem:[#allocation19 + $0x58] sm:$0xff]  }
 0xd57   : > { %15520 = vmatprep.subr.bf16.mxu1 %v18332_v62 }
 0xd59   : > { %15473 = vmatpush3.bf16.msra.mxu0 %v16511_v16  ;;  %v19424_v16 = vld [vmem:[#allocation23 + $0x2] sm:$0x3] }
 0xd5a   : > { %15486 = vmatprep.subr.mxu0 %v18332_v62 }
 0xd5c   : > { %15475 = vmatmul.mubr.msk.bf16.vlgmr.msra.gmra.mxu0 %vm2777_vm11, %v4029_v61 }
 0xd5d   : > { %15490 = vmatprep.mubr.msk.f32.mxu0 %vm18333_vm13, %v18332_v62 }
 0xe10   : > { %v4222_v17 = vpop.f32.mrf.mxu1 }
 0xe12   : > { %v15484_v18 = vpop.f32.mrf.mxu1 }
 0xe14   : > { %v4101_v19 = vpop.f32.mrf.mxu0  ;;  %v4225_v30 = vpop.f32.mrf.mxu1 }
 0xe16   : > { %v15468_v36 = vpop.f32.mrf.mxu0  ;;  %v15485_v26 = vpop.f32.mrf.mxu1 }
 0xe18   : > { %v4104_v31 = vpop.f32.mrf.mxu0 }
 0xe1a   : > { %v15469_v33 = vpop.f32.mrf.mxu0 }
 0xe1c   : > { %v4156_v38 = vpop.f32.mrf.mxu0 }
 0xe1d   : > { %v4157_v59 = vadd.f32 %v4156_v38, %v4101_v19 }
 0xe1e   : > { %v15476_v34 = vpop.f32.mrf.mxu0 }
 0xe1f   : > { %v4229_v27 = vadd.f32 %v4222_v17, %v4157_v59  ;;  %v4554_v17 = vrot.slane %v19424_v16, %v19212_v7 }
 0xe20   : > { %v4159_v11 = vpop.f32.mrf.mxu0 }
 0xe21   : > { %v4160_v13 = vadd.f32 %v4159_v11, %v4104_v31 }
 0xe22   : > { %v15477_v14 = vpop.f32.mrf.mxu0 }
 0xe23   : > { %v4230_v22 = vadd.f32 %v4225_v30, %v4160_v13  ;;  %v16584_v13 = vld [vmem:[#allocation29 + $0x8] sm:$0xff]  }
 0xe25   : > { %15487 = vmatpush3.msra.mxu0 %v4230_v22 }
 0xe26   : > { %15488 = vmatprep.subr.mxu0 %v18332_v62 }
 0xe27   : > { %15489 = vmatpush3.msra.mxu0 %v4229_v27 }
 0xe28   : > { %15491 = vmatmul.mubr.msk.f32.vlgmr.msra.gmra.mxu0 %vm2873_vm14, %v3934_v48  ;;  %15501 = vmatprep.subr.mxu0 %v18332_v62 }
 0xe29   : > { %15502 = vmatpush3.msra.mxu0 %v3933_v49  ;;  %15505 = vmatprep.mubr.msk.f32.mxu0 %vm18333_vm13, %v18332_v62  ;;  %v4234_v49 = vrot.slane %v19359_v29, %v19242_v58  ;;  %v16520_v29 = vld [vmem:[#allocation17 + $0x48] sm:$0xff]  }
 0xe2a   : > { %15503 = vmatprep.subr.mxu0 %v18332_v62 }
 0xe2b   : > { %15504 = vmatpush3.msra.mxu0 %v3932_v52  ;;  %v16517_v52 = vld [vmem:[#allocation22] sm:$0xff]  }
 0xe2c   : > { %15506 = vmatmul.mubr.msk.f32.vlgmr.msra.gmra.mxu0 %vm2873_vm14, %v3934_v48  ;;  %15508 = vmatprep.subr.bf16.mxu0 %v18332_v62 }
 0xe2d   : > { %15509 = vmatpush3.bf16.msra.mxu0 %v16512_v45  ;;  %15516 = vmatprep.mubr.msk.bf16.mxu0 %vm18333_vm13, %v18332_v62 }
 0xe2e   : > { %15510 = vmatprep.subr.bf16.mxu0 %v18332_v62 }
 0xe31   : > { %15511 = vmatpush3.bf16.msra.mxu0 %v16513_v41  ;;  %v16528_v41 = vld [vmem:[#allocation19 + $0x38] sm:$0xff]  }
 0xe32   : > { %15512 = vmatprep.subr.bf16.mxu0 %v18332_v62 }
 0xe35   : > { %15513 = vmatpush3.bf16.msra.mxu0 %v16515_v24  ;;  %v16529_v24 = vld [vmem:[#allocation19 + $0x30] sm:$0xff]  }
 0xe36   : > { %15514 = vmatprep.subr.bf16.mxu0 %v18332_v62 }
 0xe39   : > { %15515 = vmatpush3.bf16.msra.mxu0 %v16517_v52  ;;  %v16531_v52 = vld [vmem:[#allocation19 + $0x50] sm:$0xff]  }
 0xe3a   : > { %15540 = vmatprep.subr.bf16.mxu0 %v18332_v62 }
 0xee8   : > { %v4304_v23 = vpop.f32.mrf.mxu0 }
 0xee9   : > { %v4305_v50 = vadd.f32 %v4304_v23, %v4234_v49  ;;  %v16532_v23 = vld [vmem:[#allocation20 + $0x18] sm:$0xff]  }
 0xeea   : > { %v15492_v57 = vpop.f32.mrf.mxu0 }
 0xeeb   : > { %v4308_v10 = vmax.f32 %v4305_v50, 0.0  ;;  %v16533_v50 = vld [vmem:[#allocation20 + $0x10] sm:$0xff]   ;;  %v16534_v57 = vld [vmem:[#allocation17 + $0x98] sm:$0xff]  }
 0xeec   : > { %v4442_v28 = vpop.f32.mrf.mxu0 }
 0xeed   : > { %v4309_v0 = vpack.c.bf16 %v4308_v10, %v4308_v10  ;;  %v4446_v53 = vpack.c.bf16 %v4442_v28, %v4442_v28  ;;  %v16535_v10 = vld [vmem:[#allocation17 + $0x90] sm:$0xff]   ;;  %v16536_v28 = vld [vmem:[#allocation17 + $0x88] sm:$0xff]  }
 0xeee   : > { %v15507_v21 = vpop.f32.mrf.mxu0 }
 0xeef   : > { %15498 = vmatmul.mubr.msk.bf16.vlgmr.msra.gmra.mxu1 %vm2777_vm11, %v4309_v0  ;;  %15517 = vmatmul.mubr.msk.bf16.vlgmr.msra.gmra.mxu0 %vm2617_vm10, %v4446_v53  ;;  %v16538_v0 = vld [vmem:[#allocation17 + $0x78] sm:$0xff]   ;;  %v16539_v53 = vld [vmem:[#allocation17 + $0x70] sm:$0xff]  }
 0xef0   : > { %15521 = vmatpush3.bf16.msra.mxu1 %v16518_v40  ;;  %15536 = vmatprep.mubr.msk.bf16.mxu1 %vm18333_vm13, %v18332_v62  ;;  %v16537_v40 = vld [vmem:[#allocation17 + $0x80] sm:$0xff]  }
 0xef1   : > { %15522 = vmatprep.subr.bf16.mxu1 %v18332_v62  ;;  %15544 = vmatprep.mubr.msk.bf16.mxu0 %vm18333_vm13, %v18332_v62 }
 0xef2   : > { %15541 = vmatpush3.bf16.msra.mxu0 %v16526_v60 }
 0xef3   : > { %15542 = vmatprep.subr.bf16.mxu0 %v18332_v62 }
 0xef4   : > { %15523 = vmatpush3.bf16.msra.mxu1 %v16519_v25 }
 0xef5   : > { %15524 = vmatprep.subr.bf16.mxu1 %v18332_v62 }
 0xef6   : > { %15543 = vmatpush3.bf16.msra.mxu0 %v16527_v15 }
 0xef7   : > { %15548 = vmatprep.subr.bf16.mxu0 %v18332_v62 }
 0xef8   : > { %15525 = vmatpush3.bf16.msra.mxu1 %v16520_v29 }
 0xef9   : > { %15526 = vmatprep.subr.bf16.mxu1 %v18332_v62 }
 0xefc   : > { %15527 = vmatpush3.bf16.msra.mxu1 %v16521_v39 }
 0xefd   : > { %15528 = vmatprep.subr.bf16.mxu1 %v18332_v62 }
 0xf00   : > { %15529 = vmatpush3.bf16.msra.mxu1 %v16522_v55 }
 0xf01   : > { %15530 = vmatprep.subr.bf16.mxu1 %v18332_v62 }
 0xf04   : > { %15531 = vmatpush3.bf16.msra.mxu1 %v16523_v43 }
 0xf05   : > { %15532 = vmatprep.subr.bf16.mxu1 %v18332_v62 }
 0xf08   : > { %15533 = vmatpush3.bf16.msra.mxu1 %v16524_v35 }
 0xf09   : > { %15534 = vmatprep.subr.bf16.mxu1 %v18332_v62 }
 0xf0c   : > { %15535 = vmatpush3.bf16.msra.mxu1 %v16525_v3 }
 0xf0d   : > { %15564 = vmatprep.subr.bf16.mxu1 %v18332_v62 }
 0xfaf   : > { %v4370_v54 = vpop.f32.mrf.mxu1  ;;  %v4524_v9 = vpop.f32.mrf.mxu0 }
 0xfb0   : > { %v4371_v63 = vadd.f32 %v13909_v8, %v4370_v54  ;;  %v4525_v61 = vadd.f32 %v13914_v42, %v4524_v9  ;;  %v4849_v42 = vrot.slane %v19424_v16, %v19242_v58 }
 0xfb1   : > { %v15499_v51 = vpop.f32.mrf.mxu1  ;;  %v15518_v1 = vpop.f32.mrf.mxu0 }
 0xfb2   : > { %v4530_v4 = vadd.f32 %v4525_v61, %v4371_v63 }
 0xfb3   : > { %v4373_v44 = vpop.f32.mrf.mxu1  ;;  %v4527_v47 = vpop.f32.mrf.mxu0 }
 0xfb4   : > { %v19416_v56 = vmax.f32 %v4530_v4, 0.0  ;;  %v16540_v47 = vld [vmem:[#allocation17 + $0x68] sm:$0xff]  }
 0xfb5   : > { %v15500_v2 = vpop.f32.mrf.mxu1  ;;  %v15519_v5 = vpop.f32.mrf.mxu0 }
 0xfb6   : > { %v4534_v6 = vpack.c.bf16 %v19416_v56, %v19416_v56  ;;  %v16541_v2 = vld [vmem:[#allocation17 + $0x60] sm:$0xff]   ;;  %v13937_v5 = vld [vmem:[#allocation25 + $0x1] ss:$0 sm:$0xff] }
 0xfb8   : > { %15537 = vmatmul.mubr.bf16.vlgmr.msra.gmra.mxu1 %v4534_v6 }
 0xfb9   : > { %15568 = vmatprep.mubr.msk.bf16.mxu1 %vm18333_vm13, %v18332_v62  ;;  %15565 = vmatpush3.bf16.msra.mxu1 %v16532_v23  ;;  %v16544_v23 = vld [vmem:[#allocation19 + $0x68] sm:$0xff]  }
 0xfba   : > { %15566 = vmatprep.subr.bf16.mxu1 %v18332_v62 }
 0xfbd   : > { %15567 = vmatpush3.bf16.msra.mxu1 %v16533_v50 }
 0xfbe   : > { %15592 = vmatprep.subr.bf16.mxu1 %v18332_v62 }
0x1078   : > { %v4637_v18 = vpop.f32.mrf.mxu1 }
0x1079   : > { %v4638_v19 = vadd.f32 %v4637_v18, %v4554_v17 }
0x107a   : > { %v15538_v30 = vpop.f32.mrf.mxu1 }
0x107b   : > { %v4643_v36 = vmax.f32 %v4638_v19, 0.0 }
0x107c   : > { %v4640_v26 = vpop.f32.mrf.mxu1 }
0x107d   : > { %v4644_v31 = vpack.c.bf16 %v4643_v36, %v4643_v36  ;;  %v16542_v36 = vld [vmem:[#allocation19 + $0x78] sm:$0xff]   ;;  %v16543_v26 = vld [vmem:[#allocation19 + $0x70] sm:$0xff]  }
0x107e   : > { %v15539_v33 = vpop.f32.mrf.mxu1 }
0x107f   : > { %v4646_v38 = vshrl.u32 %v4644_v31, 16  ;;  %v4649_v11 = vshll.u32 %v4644_v31, 16 }
0x1081   : > { %v4648_v34 = vrot.slane %v4646_v38, 7 }
0x1083   : > { %v4651_v59 = vor.u32 %v4649_v11, %v4648_v34 }
0x1085   : > { %v4653_v14 = vsel %vm19216_vm1, 0, %v4651_v59 }
0x1086   : > { %v4656_v22 = vsel %vm19429_vm4, %v4653_v14, 0 }
0x1087   : > { %v4670_v27 = vshll.u32 %v4656_v22, 16  ;;  %v4668_v48 = vshrl.u32 %v4656_v22, 16  ;;  %v4789_v49 = vrot.slane %v4656_v22, 1 }
0x1089   : > { %v4672_v45 = vrot.slane %v4670_v27, 1 }
0x108b   : > { %v4673_v20 = vor.u32 %v4672_v45, %v4668_v48 }
0x108d   : > { %15545 = vmatmul.mubr.msk.bf16.vlgmr.msra.gmra.mxu0 %vm2777_vm11, %v4673_v20 }
0x108e   : > { %15549 = vmatpush3.bf16.msra.mxu0 %v16528_v41  ;;  %15552 = vmatprep.mubr.msk.bf16.mxu0 %vm18333_vm13, %v18332_v62 }
0x108f   : > { %15550 = vmatprep.subr.bf16.mxu0 %v18332_v62 }
0x1092   : > { %15551 = vmatpush3.bf16.msra.mxu0 %v16529_v24 }
0x1093   : > { %15556 = vmatprep.subr.bf16.mxu0 %v18332_v62 }
0x1095   : > { %15553 = vmatmul.mubr.msk.bf16.vlgmr.msra.gmra.mxu0 %vm2777_vm11, %v4656_v22 }
0x1096   : > { %15557 = vmatpush3.bf16.msra.mxu0 %v16530_v46  ;;  %15560 = vmatprep.mubr.msk.bf16.mxu0 %vm18333_vm13, %v18332_v62 }
0x1097   : > { %15558 = vmatprep.subr.bf16.mxu0 %v18332_v62 }
0x109a   : > { %15559 = vmatpush3.bf16.msra.mxu0 %v16531_v52 }
0x109b   : > { %15572 = vmatprep.subr.bf16.mxu0 %v18332_v62 }
0x109d   : > { %15561 = vmatmul.mubr.msk.bf16.vlgmr.msra.gmra.mxu0 %vm2777_vm11, %v4789_v49 }
0x109e   : > { %15588 = vmatprep.mubr.msk.bf16.mxu0 %vm18333_vm13, %v18332_v62  ;;  %15573 = vmatpush3.bf16.msra.mxu0 %v16534_v57  ;;  %v16545_v57 = vld [vmem:[#allocation19 + $0x60] sm:$0xff]  }
0x109f   : > { %15574 = vmatprep.subr.bf16.mxu0 %v18332_v62 }
0x10a2   : > { %15575 = vmatpush3.bf16.msra.mxu0 %v16535_v10  ;;  %v16546_v10 = vld [vmem:[#allocation19 + $0x88] sm:$0xff]  }
0x10a3   : > { %15576 = vmatprep.subr.bf16.mxu0 %v18332_v62 }
0x10a6   : > { %15577 = vmatpush3.bf16.msra.mxu0 %v16536_v28  ;;  %v16547_v28 = vld [vmem:[#allocation19 + $0x80] sm:$0xff]  }
0x10a7   : > { %15578 = vmatprep.subr.bf16.mxu0 %v18332_v62 }
0x10aa   : > { %15579 = vmatpush3.bf16.msra.mxu0 %v16537_v40 }
0x10ab   : > { %15580 = vmatprep.subr.bf16.mxu0 %v18332_v62 }
0x10ae   : > { %15581 = vmatpush3.bf16.msra.mxu0 %v16538_v0  ;;  %v16548_v0 = vld [vmem:[#allocation20 + $0x28] sm:$0xff]  }
0x10af   : > { %15582 = vmatprep.subr.bf16.mxu0 %v18332_v62 }
0x10b2   : > { %15583 = vmatpush3.bf16.msra.mxu0 %v16539_v53  ;;  %v16549_v53 = vld [vmem:[#allocation20 + $0x20] sm:$0xff]  }
0x10b3   : > { %15584 = vmatprep.subr.bf16.mxu0 %v18332_v62 }
0x10b6   : > { %15585 = vmatpush3.bf16.msra.mxu0 %v16540_v47 }
0x10b7   : > { %15586 = vmatprep.subr.bf16.mxu0 %v18332_v62 }
0x10ba   : > { %15587 = vmatpush3.bf16.msra.mxu0 %v16541_v2 }
0x10bb   : > { %15624 = vmatprep.subr.bf16.mxu0 %v18332_v62 }
0x114d   : > { %v4723_v21 = vpop.f32.mrf.mxu0 }
0x114f   : > { %v15546_v25 = vpop.f32.mrf.mxu0 }
0x1150   : > { %v16551_v25 = vld [vmem:[#allocation17 + $0xd0] sm:$0xff]  }
0x1151   : > { %v4726_v29 = vpop.f32.mrf.mxu0 }
0x1152   : > { %v16552_v29 = vld [vmem:[#allocation17 + $0xc8] sm:$0xff]  }
0x1153   : > { %v15547_v39 = vpop.f32.mrf.mxu0 }
0x1154   : > { %v16553_v39 = vld [vmem:[#allocation17 + $0xc0] sm:$0xff]  }
0x1155   : > { %v4777_v55 = vpop.f32.mrf.mxu0 }
0x1156   : > { %v4778_v8 = vadd.f32 %v4777_v55, %v4723_v21  ;;  %v16550_v21 = vld [vmem:[#allocation17 + $0xd8] sm:$0xff]  }
0x1157   : > { %v15554_v43 = vpop.f32.mrf.mxu0  ;;  %v16554_v55 = vld [vmem:[#allocation17 + $0xb8] sm:$0xff]  }
0x1158   : > { %v16555_v43 = vld [vmem:[#allocation17 + $0xb0] sm:$0xff]  }
0x1159   : > { %v4780_v35 = vpop.f32.mrf.mxu0 }
0x115b   : > { %v15555_v3 = vpop.f32.mrf.mxu0 }
0x115d   : > { %v4839_v54 = vpop.f32.mrf.mxu0 }
0x115e   : > { %v4845_v9 = vadd.f32 %v4839_v54, %v4778_v8 }
0x115f   : > { %v15562_v63 = vpop.f32.mrf.mxu0 }
0x1160   : > { %v4850_v61 = vadd.f32 %v4849_v42, %v4845_v9 }
0x1161   : > { %v4842_v51 = vpop.f32.mrf.mxu0 }
0x1162   : > { %v4851_v1 = vmax.f32 %v4850_v61, 0.0 }
0x1163   : > { %v15563_v4 = vpop.f32.mrf.mxu0 }
0x1164   : > { %v4852_v44 = vpack.c.bf16 %v4851_v1, %v4851_v1 }
0x1166   : > { %15569 = vmatmul.mubr.msk.bf16.vlgmr.msra.gmra.mxu1 %vm2777_vm11, %v4852_v44 }
0x1167   : > { %15596 = vmatprep.mubr.msk.bf16.mxu1 %vm18333_vm13, %v18332_v62  ;;  %15593 = vmatpush3.bf16.msra.mxu1 %v16542_v36 }
0x1168   : > { %15594 = vmatprep.subr.bf16.mxu1 %v18332_v62 }
0x116b   : > { %15595 = vmatpush3.bf16.msra.mxu1 %v16543_v26 }
0x116c   : > { %15600 = vmatprep.subr.bf16.mxu1 %v18332_v62 }
0x1226   : > { %v4914_v6 = vpop.f32.mrf.mxu1 }
0x1227   : > { %v4915_v60 = vadd.f32 %v13937_v5, %v4914_v6 }
0x1228   : > { %v15570_v15 = vpop.f32.mrf.mxu1 }
0x1229   : > { %v4920_v16 = vadd.f32 %v4915_v60, %v19416_v56  ;;  %v19474_v56 = vld [vmem:[#allocation23 + $0x4] sm:$0x3] }
0x122a   : > { %v4917_v17 = vpop.f32.mrf.mxu1  ;;  %v4944_v31 = vrot.slane %v19474_v56, %v19212_v7  ;;  %v5237_v1 = vrot.slane %v19474_v56, %v19242_v58 }
0x122b   : > { %v19466_v18 = vmax.f32 %v4920_v16, 0.0  ;;  %v16556_v16 = vld [vmem:[#allocation17 + $0xa8] sm:$0xff]   ;;  %v16557_v17 = vld [vmem:[#allocation17 + $0xa0] sm:$0xff]  }
0x122c   : > { %v15571_v19 = vpop.f32.mrf.mxu1 }
0x122d   : > { %v4924_v30 = vpack.c.bf16 %v19466_v18, %v19466_v18  ;;  %v13958_v19 = vld [vmem:[#allocation25 + $0x2] ss:$0 sm:$0xff] }
0x122f   : > { %15589 = vmatmul.mubr.bf16.vlgmr.msra.gmra.mxu0 %v4924_v30 }
0x1230   : > { %15640 = vmatprep.mubr.msk.bf16.mxu0 %vm18333_vm13, %v18332_v62  ;;  %15625 = vmatpush3.bf16.msra.mxu0 %v16550_v21  ;;  %v16561_v21 = vld [vmem:[#allocation19 + $0x90] sm:$0xff]  }
0x1231   : > { %15626 = vmatprep.subr.bf16.mxu0 %v18332_v62 }
0x1234   : > { %15627 = vmatpush3.bf16.msra.mxu0 %v16551_v25  ;;  %v16562_v25 = vld [vmem:[#allocation19 + $0xb8] sm:$0xff]  }
0x1235   : > { %15628 = vmatprep.subr.bf16.mxu0 %v18332_v62 }
0x1238   : > { %15629 = vmatpush3.bf16.msra.mxu0 %v16552_v29  ;;  %v16563_v29 = vld [vmem:[#allocation19 + $0xb0] sm:$0xff]  }
0x1239   : > { %15630 = vmatprep.subr.bf16.mxu0 %v18332_v62 }
0x123c   : > { %15631 = vmatpush3.bf16.msra.mxu0 %v16553_v39 }
0x123d   : > { %15632 = vmatprep.subr.bf16.mxu0 %v18332_v62 }
0x1240   : > { %15633 = vmatpush3.bf16.msra.mxu0 %v16554_v55  ;;  %v16564_v55 = vld [vmem:[#allocation20 + $0x38] sm:$0xff]  }
0x1241   : > { %15634 = vmatprep.subr.bf16.mxu0 %v18332_v62 }
0x1244   : > { %15635 = vmatpush3.bf16.msra.mxu0 %v16555_v43  ;;  %v16565_v43 = vld [vmem:[#allocation20 + $0x30] sm:$0xff]  }
0x1245   : > { %15636 = vmatprep.subr.bf16.mxu0 %v18332_v62 }
0x1248   : > { %15637 = vmatpush3.bf16.msra.mxu0 %v16556_v16 }
0x1249   : > { %15638 = vmatprep.subr.bf16.mxu0 %v18332_v62 }
0x124c   : > { %15639 = vmatpush3.bf16.msra.mxu0 %v16557_v17 }
0x124d   : > { %15676 = vmatprep.subr.bf16.mxu0 %v18332_v62 }
0x12ef   : > { %v5027_v33 = vpop.f32.mrf.mxu0 }
0x12f0   : > { %v5028_v38 = vadd.f32 %v5027_v33, %v4944_v31 }
0x12f1   : > { %v15590_v34 = vpop.f32.mrf.mxu0 }
0x12f2   : > { %v5033_v11 = vmax.f32 %v5028_v38, 0.0 }
0x12f3   : > { %v5030_v59 = vpop.f32.mrf.mxu0 }
0x12f4   : > { %v5034_v14 = vpack.c.bf16 %v5033_v11, %v5033_v11  ;;  %v16558_v11 = vld [vmem:[#allocation19 + $0xa8] sm:$0xff]   ;;  %v16559_v59 = vld [vmem:[#allocation19 + $0xa0] sm:$0xff]  }
0x12f5   : > { %v15591_v22 = vpop.f32.mrf.mxu0 }
0x12f6   : > { %v5036_v27 = vshrl.u32 %v5034_v14, 16  ;;  %v5039_v45 = vshll.u32 %v5034_v14, 16 }
0x12f8   : > { %v5038_v48 = vrot.slane %v5036_v27, 7 }
0x12fa   : > { %v5041_v41 = vor.u32 %v5039_v45, %v5038_v48 }
0x12fc   : > { %v5043_v20 = vsel %vm19216_vm1, 0, %v5041_v41 }
0x12fd   : > { %v5044_v24 = vsel %vm19429_vm4, %v5043_v20, 0 }
0x12fe   : > { %v5058_v46 = vshll.u32 %v5044_v24, 16  ;;  %v5056_v52 = vshrl.u32 %v5044_v24, 16  ;;  %v5177_v40 = vrot.slane %v5044_v24, 1 }
0x1300   : > { %v5060_v49 = vrot.slane %v5058_v46, 1 }
0x1302   : > { %v5061_v50 = vor.u32 %v5060_v49, %v5056_v52 }
0x1304   : > { %15597 = vmatmul.mubr.msk.bf16.vlgmr.msra.gmra.mxu1 %vm2777_vm11, %v5061_v50 }
0x1305   : > { %15601 = vmatpush3.bf16.msra.mxu1 %v16544_v23  ;;  %15604 = vmatprep.mubr.msk.bf16.mxu1 %vm18333_vm13, %v18332_v62 }
0x1306   : > { %15602 = vmatprep.subr.bf16.mxu1 %v18332_v62 }
0x1309   : > { %15603 = vmatpush3.bf16.msra.mxu1 %v16545_v57 }
0x130a   : > { %15608 = vmatprep.subr.bf16.mxu1 %v18332_v62 }
0x130c   : > { %15605 = vmatmul.mubr.msk.bf16.vlgmr.msra.gmra.mxu1 %vm2777_vm11, %v5044_v24 }
0x130d   : > { %15609 = vmatpush3.bf16.msra.mxu1 %v16546_v10  ;;  %15612 = vmatprep.mubr.msk.bf16.mxu1 %vm18333_vm13, %v18332_v62 }
0x130e   : > { %15610 = vmatprep.subr.bf16.mxu1 %v18332_v62 }
0x1311   : > { %15611 = vmatpush3.bf16.msra.mxu1 %v16547_v28 }
0x1312   : > { %15616 = vmatprep.subr.bf16.mxu1 %v18332_v62 }
0x1314   : > { %15613 = vmatmul.mubr.msk.bf16.vlgmr.msra.gmra.mxu1 %vm2777_vm11, %v5177_v40 }
0x1315   : > { %15620 = vmatprep.mubr.msk.bf16.mxu1 %vm18333_vm13, %v18332_v62  ;;  %15617 = vmatpush3.bf16.msra.mxu1 %v16548_v0  ;;  %v16560_v0 = vld [vmem:[#allocation19 + $0x98] sm:$0xff]  }
0x1316   : > { %15618 = vmatprep.subr.bf16.mxu1 %v18332_v62 }
0x1319   : > { %15619 = vmatpush3.bf16.msra.mxu1 %v16549_v53 }
0x131a   : > { %15644 = vmatprep.subr.bf16.mxu1 %v18332_v62 }
0x13c4   : > { %v5111_v35 = vpop.f32.mrf.mxu1 }
0x13c6   : > { %v15598_v3 = vpop.f32.mrf.mxu1 }
0x13c7   : > { %v16567_v3 = vld [vmem:[#allocation28 + $0x30] sm:$0xff]  }
0x13c8   : > { %v5114_v8 = vpop.f32.mrf.mxu1 }
0x13c9   : > { %v16568_v8 = vld [vmem:[#allocation28 + $0x28] sm:$0xff]  }
0x13ca   : > { %v15599_v42 = vpop.f32.mrf.mxu1 }
0x13cb   : > { %v16569_v42 = vld [vmem:[#allocation28 + $0x20] sm:$0xff]  }
0x13cc   : > { %v5165_v54 = vpop.f32.mrf.mxu1 }
0x13cd   : > { %v5166_v51 = vadd.f32 %v5165_v54, %v5111_v35  ;;  %v16566_v35 = vld [vmem:[#allocation28 + $0x38] sm:$0xff]  }
0x13ce   : > { %v15606_v9 = vpop.f32.mrf.mxu1  ;;  %v16570_v54 = vld [vmem:[#allocation28 + $0x18] sm:$0xff]  }
0x13cf   : > { %v16571_v9 = vld [vmem:[#allocation28 + $0x10] sm:$0xff]  }
0x13d0   : > { %v5168_v63 = vpop.f32.mrf.mxu1 }
0x13d2   : > { %v15607_v61 = vpop.f32.mrf.mxu1 }
0x13d4   : > { %v5227_v4 = vpop.f32.mrf.mxu1 }
0x13d5   : > { %v5233_v44 = vadd.f32 %v5227_v4, %v5166_v51 }
0x13d6   : > { %v15614_v47 = vpop.f32.mrf.mxu1 }
0x13d7   : > { %v5238_v2 = vadd.f32 %v5237_v1, %v5233_v44 }
0x13d8   : > { %v5230_v5 = vpop.f32.mrf.mxu1 }
0x13d9   : > { %v5239_v6 = vmax.f32 %v5238_v2, 0.0 }
0x13da   : > { %v15615_v60 = vpop.f32.mrf.mxu1 }
0x13db   : > { %v5240_v15 = vpack.c.bf16 %v5239_v6, %v5239_v6 }
0x13dd   : > { %15621 = vmatmul.mubr.msk.bf16.vlgmr.msra.gmra.mxu1 %vm2777_vm11, %v5240_v15 }
0x13de   : > { %15648 = vmatprep.mubr.msk.bf16.mxu1 %vm18333_vm13, %v18332_v62  ;;  %15645 = vmatpush3.bf16.msra.mxu1 %v16558_v11 }
0x13df   : > { %15646 = vmatprep.subr.bf16.mxu1 %v18332_v62 }
0x13e2   : > { %15647 = vmatpush3.bf16.msra.mxu1 %v16559_v59 }
0x13e3   : > { %15652 = vmatprep.subr.bf16.mxu1 %v18332_v62 }
0x149d   : > { %v5302_v30 = vpop.f32.mrf.mxu1 }
0x149e   : > { %v5303_v36 = vadd.f32 %v13958_v19, %v5302_v30 }
0x149f   : > { %v15622_v26 = vpop.f32.mrf.mxu1 }
0x14a0   : > { %v5308_v56 = vadd.f32 %v5303_v36, %v19466_v18  ;;  %v19519_v18 = vld [vmem:[#allocation23 + $0x6] sm:$0x3] }
0x14a1   : > { %v5305_v31 = vpop.f32.mrf.mxu1  ;;  %v5332_v14 = vrot.slane %v19519_v18, %v19212_v7  ;;  %v5625_v6 = vrot.slane %v19519_v18, %v19242_v58 }
0x14a2   : > { %v19511_v33 = vmax.f32 %v5308_v56, 0.0  ;;  %v16572_v56 = vld [vmem:[#allocation28 + $0x8] sm:$0xff]   ;;  %v16573_v31 = vld [vmem:[#allocation28] sm:$0xff]  }
0x14a3   : > { %v15623_v38 = vpop.f32.mrf.mxu1 }
0x14a4   : > { %v5312_v34 = vpack.c.bf16 %v19511_v33, %v19511_v33  ;;  %v13979_v38 = vld [vmem:[#allocation25 + $0x3] ss:$0 sm:$0xff] }
0x14a6   : > { %15641 = vmatmul.mubr.bf16.vlgmr.msra.gmra.mxu0 %v5312_v34 }
0x14a7   : > { %15692 = vmatprep.mubr.msk.bf16.mxu0 %vm18333_vm13, %v18332_v62  ;;  %15677 = vmatpush3.bf16.msra.mxu0 %v16566_v35 }
0x14a8   : > { %15678 = vmatprep.subr.bf16.mxu0 %v18332_v62 }
0x14ab   : > { %15679 = vmatpush3.bf16.msra.mxu0 %v16567_v3 }
0x14ac   : > { %15680 = vmatprep.subr.bf16.mxu0 %v18332_v62 }
0x14af   : > { %15681 = vmatpush3.bf16.msra.mxu0 %v16568_v8 }
0x14b0   : > { %15682 = vmatprep.subr.bf16.mxu0 %v18332_v62 }
0x14b3   : > { %15683 = vmatpush3.bf16.msra.mxu0 %v16569_v42 }
0x14b4   : > { %15684 = vmatprep.subr.bf16.mxu0 %v18332_v62 }
0x14b7   : > { %15685 = vmatpush3.bf16.msra.mxu0 %v16570_v54 }
0x14b8   : > { %15686 = vmatprep.subr.bf16.mxu0 %v18332_v62 }
0x14bb   : > { %15687 = vmatpush3.bf16.msra.mxu0 %v16571_v9  ;;  %v16582_v9 = vld [vmem:[#allocation29 + $0x18] sm:$0xff]  }
0x14bc   : > { %15688 = vmatprep.subr.bf16.mxu0 %v18332_v62 }
0x14bf   : > { %15689 = vmatpush3.bf16.msra.mxu0 %v16572_v56  ;;  %v16615_v56 = vld [vmem:[%s20263_s11 + $0x4] ss:$8 sps:$4 sm:$0xff]  }
0x14c0   : > { %15690 = vmatprep.subr.bf16.mxu0 %v18332_v62 }
0x14c3   : > { %15691 = vmatpush3.bf16.msra.mxu0 %v16573_v31  ;;  %v16613_v31 = vld [vmem:[%s20263_s11] ss:$8 sps:$4 sm:$0xff]  }
0x14c4   : > { %15720 = vmatprep.subr.bf16.mxu0 %v18332_v62 }
0x1566   : > { %v5415_v22 = vpop.f32.mrf.mxu0 }
0x1567   : > { %v5416_v27 = vadd.f32 %v5415_v22, %v5332_v14 }
0x1568   : > { %v15642_v48 = vpop.f32.mrf.mxu0 }
0x1569   : > { %v5421_v45 = vmax.f32 %v5416_v27, 0.0 }
0x156a   : > { %v5418_v41 = vpop.f32.mrf.mxu0 }
0x156b   : > { %v5422_v20 = vpack.c.bf16 %v5421_v45, %v5421_v45  ;;  %v16574_v45 = vld [vmem:[#allocation29 + $0x58] sm:$0xff]  }
0x156c   : > { %v15643_v24 = vpop.f32.mrf.mxu0  ;;  %v16575_v41 = vld [vmem:[#allocation29 + $0x38] sm:$0xff]  }
0x156d   : > { %v5424_v46 = vshrl.u32 %v5422_v20, 16  ;;  %v5427_v49 = vshll.u32 %v5422_v20, 16  ;;  %v16576_v20 = vld [vmem:[#allocation29 + $0x50] sm:$0xff]   ;;  %v16578_v24 = vld [vmem:[#allocation29 + $0x48] sm:$0xff]  }
0x156f   : > { %v5426_v52 = vrot.slane %v5424_v46, 7  ;;  %v16579_v46 = vld [vmem:[#allocation29 + $0x28] sm:$0xff]  }
0x1571   : > { %v5429_v23 = vor.u32 %v5427_v49, %v5426_v52  ;;  %v16580_v52 = vld [vmem:[#allocation29 + $0x40] sm:$0xff]  }
0x1572   : > { %v16581_v49 = vld [vmem:[#allocation29 + $0x20] sm:$0xff]  }
0x1573   : > { %v5431_v50 = vsel %vm19216_vm1, 0, %v5429_v23  ;;  %v19566_v23 = vld [vmem:[#allocation32] sm:$0x3] }
0x1574   : > { %v5432_v57 = vsel %vm19429_vm4, %v5431_v50, 0  ;;  %v5720_v50 = vrot.slane %v19566_v23, %v19212_v7 }
0x1575   : > { %v5446_v10 = vshll.u32 %v5432_v57, 16  ;;  %v5444_v28 = vshrl.u32 %v5432_v57, 16  ;;  %v5565_v39 = vrot.slane %v5432_v57, 1 }
0x1577   : > { %v5448_v40 = vrot.slane %v5446_v10, 1 }
0x1579   : > { %v5449_v53 = vor.u32 %v5448_v40, %v5444_v28 }
0x157b   : > { %15649 = vmatmul.mubr.msk.bf16.vlgmr.msra.gmra.mxu1 %vm2777_vm11, %v5449_v53 }
0x157c   : > { %15653 = vmatpush3.bf16.msra.mxu1 %v16560_v0  ;;  %15656 = vmatprep.mubr.msk.bf16.mxu1 %vm18333_vm13, %v18332_v62 }
0x157d   : > { %15654 = vmatprep.subr.bf16.mxu1 %v18332_v62 }
0x1580   : > { %15655 = vmatpush3.bf16.msra.mxu1 %v16561_v21 }
0x1581   : > { %15660 = vmatprep.subr.bf16.mxu1 %v18332_v62 }
0x1583   : > { %15657 = vmatmul.mubr.msk.bf16.vlgmr.msra.gmra.mxu1 %vm2777_vm11, %v5432_v57 }
0x1584   : > { %15661 = vmatpush3.bf16.msra.mxu1 %v16562_v25  ;;  %15664 = vmatprep.mubr.msk.bf16.mxu1 %vm18333_vm13, %v18332_v62 }
0x1585   : > { %15662 = vmatprep.subr.bf16.mxu1 %v18332_v62 }
0x1588   : > { %15663 = vmatpush3.bf16.msra.mxu1 %v16563_v29 }
0x1589   : > { %15668 = vmatprep.subr.bf16.mxu1 %v18332_v62 }
0x158b   : > { %15665 = vmatmul.mubr.msk.bf16.vlgmr.msra.gmra.mxu1 %vm2777_vm11, %v5565_v39 }
0x158c   : > { %15672 = vmatprep.mubr.msk.bf16.mxu1 %vm18333_vm13, %v18332_v62  ;;  %15669 = vmatpush3.bf16.msra.mxu1 %v16564_v55 }
0x158d   : > { %15670 = vmatprep.subr.bf16.mxu1 %v18332_v62 }
0x1590   : > { %15671 = vmatpush3.bf16.msra.mxu1 %v16565_v43 }
0x1591   : > { %15696 = vmatprep.subr.bf16.mxu1 %v18332_v62 }
0x163b   : > { %v5499_v63 = vpop.f32.mrf.mxu1 }
0x163d   : > { %v15650_v61 = vpop.f32.mrf.mxu1 }
0x163e   : > { %v16583_v61 = vld [vmem:[#allocation29 + $0x10] sm:$0xff]  }
0x163f   : > { %v5502_v51 = vpop.f32.mrf.mxu1 }
0x1640   : > { %v16585_v51 = vld [vmem:[#allocation29] sm:$0xff]  }
0x1641   : > { %v15651_v1 = vpop.f32.mrf.mxu1 }
0x1642   : > { %v5698_v1 = vld [vmem:[#allocation35] sm:$0xf] }
0x1643   : > { %v5553_v4 = vpop.f32.mrf.mxu1 }
0x1644   : > { %v5554_v5 = vadd.f32 %v5553_v4, %v5499_v63  ;;  %v16586_v4 = vld [vmem:[%s20262_s23 + $0x70] ss:$8 sps:$4 sm:$0xff]  }
0x1645   : > { %v15658_v44 = vpop.f32.mrf.mxu1 }
0x1646   : > { %v16588_v44 = vld [vmem:[%s20263_s11 + $0x74] ss:$8 sps:$4 sm:$0xff]  }
0x1647   : > { %v5556_v47 = vpop.f32.mrf.mxu1 }
0x1648   : > { %v16591_v47 = vld [vmem:[%s20263_s11 + $0x64] ss:$8 sps:$4 sm:$0xff]  }
0x1649   : > { %v15659_v2 = vpop.f32.mrf.mxu1 }
0x164a   : > { %v16589_v2 = vld [vmem:[%s20263_s11 + $0x60] ss:$8 sps:$4 sm:$0xff]  }
0x164b   : > { %v5615_v60 = vpop.f32.mrf.mxu1 }
0x164c   : > { %v5621_v15 = vadd.f32 %v5615_v60, %v5554_v5  ;;  %v16594_v5 = vld [vmem:[%s20263_s11 + $0x54] ss:$8 sps:$4 sm:$0xff]   ;;  %v16597_v60 = vld [vmem:[%s20263_s11 + $0x44] ss:$8 sps:$4 sm:$0xff]  }
0x164d   : > { %v15666_v16 = vpop.f32.mrf.mxu1 }
0x164e   : > { %v5626_v17 = vadd.f32 %v5625_v6, %v5621_v15  ;;  %v16592_v6 = vld [vmem:[%s20263_s11 + $0x50] ss:$8 sps:$4 sm:$0xff]   ;;  %v16595_v15 = vld [vmem:[%s20263_s11 + $0x40] ss:$8 sps:$4 sm:$0xff]   ;;  %v16600_v16 = vld [vmem:[%s20263_s11 + $0x34] ss:$8 sps:$4 sm:$0xff]  }
0x164f   : > { %v5618_v19 = vpop.f32.mrf.mxu1 }
0x1650   : > { %v5627_v30 = vmax.f32 %v5626_v17, 0.0  ;;  %v16598_v17 = vld [vmem:[%s20263_s11 + $0x30] ss:$8 sps:$4 sm:$0xff]   ;;  %v16603_v19 = vld [vmem:[%s20263_s11 + $0x24] ss:$8 sps:$4 sm:$0xff]  }
0x1651   : > { %v15667_v36 = vpop.f32.mrf.mxu1 }
0x1652   : > { %v5628_v26 = vpack.c.bf16 %v5627_v30, %v5627_v30  ;;  %v16601_v30 = vld [vmem:[%s20263_s11 + $0x20] ss:$8 sps:$4 sm:$0xff]   ;;  %v16609_v36 = vld [vmem:[%s20263_s11 + $0x14] ss:$8 sps:$4 sm:$0xff]  }
0x1654   : > { %15673 = vmatmul.mubr.msk.bf16.vlgmr.msra.gmra.mxu1 %vm2777_vm11, %v5628_v26  ;;  %v16607_v26 = vld [vmem:[%s20263_s11 + $0x10] ss:$8 sps:$4 sm:$0xff]   ;;  %vm9692_vm11 = vcmask 31744  }
0x1655   : > { %15704 = vmatprep.mubr.msk.bf16.mxu1 %vm18333_vm13, %v18332_v62  ;;  %15697 = vmatpush3.bf16.msra.mxu1 %v16575_v41 }
0x1656   : > { %15698 = vmatprep.subr.bf16.mxu1 %v18332_v62 }
0x1714   : > { %v5690_v34 = vpop.f32.mrf.mxu1 }
0x1715   : > { %v5691_v11 = vadd.f32 %v13979_v38, %v5690_v34 }
0x1716   : > { %v15674_v59 = vpop.f32.mrf.mxu1 }
0x1717   : > { %v5696_v18 = vadd.f32 %v5691_v11, %v19511_v33  ;;  %v16577_v33 = vld [vmem:[#allocation29 + $0x30] sm:$0xff]  }
0x1718   : > { %v5693_v14 = vpop.f32.mrf.mxu1  ;;  %15699 = vmatpush3.bf16.msra.mxu1 %v16577_v33 }
0x1719   : > { %v5697_v22 = vmax.f32 %v5696_v18, 0.0  ;;  %15700 = vmatprep.subr.bf16.mxu1 %v18332_v62 }
0x171a   : > { %v15675_v27 = vpop.f32.mrf.mxu1 }
0x171b   : > { %v5700_v48 = vpack.c.bf16 %v5697_v22, %v5697_v22 }
0x171c   : > { %15701 = vmatpush3.bf16.msra.mxu1 %v16579_v46 }
0x171d   : > { %15693 = vmatmul.mubr.bf16.vlgmr.msra.gmra.mxu0 %v5700_v48  ;;  %15702 = vmatprep.subr.bf16.mxu1 %v18332_v62 }
0x171e   : > { %15728 = vmatprep.mubr.msk.bf16.mxu0 %vm18333_vm13, %v18332_v62  ;;  %15721 = vmatpush3.bf16.msra.mxu0 %v16574_v45 }
0x171f   : > { %15722 = vmatprep.subr.bf16.mxu0 %v18332_v62 }
0x1720   : > { %15703 = vmatpush3.bf16.msra.mxu1 %v16581_v49 }
0x1721   : > { %15708 = vmatprep.subr.bf16.mxu1 %v18332_v62 }
0x1722   : > { %15723 = vmatpush3.bf16.msra.mxu0 %v16576_v20  ;;  %v16606_v20 = vld [vmem:[#allocation31 + $0x34] ss:$8 sps:$4 sm:$0xff]  }
0x1723   : > { %15724 = vmatprep.subr.bf16.mxu0 %v18332_v62 }
0x1726   : > { %15725 = vmatpush3.bf16.msra.mxu0 %v16578_v24  ;;  %v16604_v24 = vld [vmem:[#allocation31 + $0x30] ss:$8 sps:$4 sm:$0xff]  }
0x1727   : > { %15726 = vmatprep.subr.bf16.mxu0 %v18332_v62 }
0x172a   : > { %15727 = vmatpush3.bf16.msra.mxu0 %v16580_v52  ;;  %v16612_v52 = vld [vmem:[#allocation31 + $0x24] ss:$8 sps:$4 sm:$0xff]  }
0x172b   : > { %15737 = vmatprep.subr.mxu0 %v18332_v62 }
0x17dd   : > { %v5803_v57 = vpop.f32.mrf.mxu0 }
0x17de   : > { %v5804_v10 = vadd.f32 %v5803_v57, %v5720_v50  ;;  %v16610_v50 = vld [vmem:[#allocation31 + $0x20] ss:$8 sps:$4 sm:$0xff]   ;;  %v16618_v57 = vld [vmem:[#allocation31 + $0x14] ss:$8 sps:$4 sm:$0xff]  }
0x17df   : > { %v15694_v28 = vpop.f32.mrf.mxu0 }
0x17e0   : > { %v5809_v40 = vmax.f32 %v5804_v10, 0.0  ;;  %v16616_v10 = vld [vmem:[#allocation31 + $0x10] ss:$8 sps:$4 sm:$0xff]  }
0x17e1   : > { %v5806_v0 = vpop.f32.mrf.mxu0 }
0x17e2   : > { %v5810_v53 = vpack.c.bf16 %v5809_v40, %v5809_v40  ;;  %v18334_v0 = vmov 0  }
0x17e3   : > { %v15695_v21 = vpop.f32.mrf.mxu0 }
0x17e4   : > { %v5812_v25 = vshrl.u32 %v5810_v53, 16  ;;  %v5815_v39 = vshll.u32 %v5810_v53, 16  ;;  %v16621_v21 = vld [vmem:[#allocation31 + $0x4] ss:$8 sps:$4 sm:$0xff]  }
0x17e6   : > { %v5814_v29 = vrot.slane %v5812_v25, 7  ;;  %v16619_v25 = vld [vmem:[#allocation31] ss:$8 sps:$4 sm:$0xff]  }
0x17e8   : > { %v5817_v55 = vor.u32 %v5815_v39, %v5814_v29  ;;  %v16622_v29 = vld [vmem:[#allocation28 + $0xb8] sm:$0xff]   ;;  %v6060_v39 = vrot.slane %v19566_v23, %v19242_v58 }
0x17e9   : > { %v16630_v23 = vld [vmem:[#allocation28 + $0x98] sm:$0xff]  }
0x17ea   : > { %v5819_v43 = vsel %vm19216_vm1, 0, %v5817_v55 }
0x17eb   : > { %v5820_v35 = vsel %vm19429_vm4, %v5819_v43, 0 }
0x17ec   : > { %v5841_v3 = vshll.u32 %v5820_v35, 16  ;;  %v5988_v8 = vrot.slane %v5820_v35, 1  ;;  %v5839_v42 = vshrl.u32 %v5820_v35, 16 }
0x17ee   : > { %v5843_v54 = vrot.slane %v5841_v3, 1  ;;  %15729 = vmatmul.mubr.msk.bf16.vlgmr.msra.gmra.mxu0 %vm2617_vm10, %v5988_v8  ;;  %v16623_v8 = vld [vmem:[#allocation28 + $0x78] sm:$0xff]  }
0x17ef   : > { %15738 = vmatpush3.msra.mxu0 %v5697_v22  ;;  %15739 = vmatprep.mubr.msk.f32.mxu0 %vm18333_vm13, %v18332_v62 }
0x17f0   : > { %v5844_v63 = vor.u32 %v5843_v54, %v5839_v42  ;;  %6421 = vmatprep.subr.bf16.mxu0 %v16588_v44  ;;  %v16624_v54 = vld [vmem:[#allocation28 + $0xb0] sm:$0xff]  }
0x17f2   : > { %15705 = vmatmul.mubr.msk.bf16.vlgmr.msra.gmra.mxu1 %vm2617_vm10, %v5844_v63  ;;  %v16626_v63 = vld [vmem:[#allocation28 + $0xa8] sm:$0xff]  }
0x17f3   : > { %15709 = vmatpush3.bf16.msra.mxu1 %v16582_v9  ;;  %15716 = vmatprep.mubr.msk.bf16.mxu1 %vm18333_vm13, %v18332_v62  ;;  %v16625_v9 = vld [vmem:[#allocation28 + $0x70] sm:$0xff]  }
0x17f4   : > { %15710 = vmatprep.subr.bf16.mxu1 %v18332_v62 }
0x17f6   : > { %15740 = vmatmul.mubr.msk.f32.vlgmr.msra.gmra.mxu0 %vm6061_vm6, %v5698_v1 }
0x17f7   : > { %15711 = vmatpush3.bf16.msra.mxu1 %v16583_v61  ;;  %6422 = vmatpush1.bf16.msra.mxu0 %v16586_v4  ;;  %v16627_v61 = vld [vmem:[#allocation28 + $0x68] sm:$0xff]  }
0x17f8   : > { %15712 = vmatprep.subr.bf16.mxu1 %v18332_v62  ;;  %6423 = vmatprep.subr.bf16.mxu0 %v16591_v47 }
0x17f9   : > { %6453 = vmatprep.mubr.bf16.mxu0 %v18334_v0 }
0x17fb   : > { %15713 = vmatpush3.bf16.msra.mxu1 %v16584_v13  ;;  %6424 = vmatpush1.bf16.msra.mxu0 %v16589_v2  ;;  %v16628_v13 = vld [vmem:[#allocation28 + $0xa0] sm:$0xff]   ;;  %v16632_v2 = vld [vmem:[#allocation28 + $0x90] sm:$0xff]  }
0x17fc   : > { %15714 = vmatprep.subr.bf16.mxu1 %v18332_v62  ;;  %6425 = vmatprep.subr.bf16.mxu0 %v16594_v5  ;;  %v16633_v5 = vld [vmem:[#allocation28 + $0x50] sm:$0xff]  }
0x17ff   : > { %15715 = vmatpush3.bf16.msra.mxu1 %v16585_v51  ;;  %6426 = vmatpush1.bf16.msra.mxu0 %v16592_v6  ;;  %v16629_v51 = vld [vmem:[#allocation28 + $0x60] sm:$0xff]  }
0x1800   : > { %15732 = vmatprep.subr.mxu1 %v18332_v62  ;;  %6427 = vmatprep.subr.bf16.mxu0 %v16597_v60  ;;  %v16634_v60 = vld [vmem:[#allocation28 + $0x88] sm:$0xff]  }
0x1802   : > { %15717 = vmatmul.mubr.msk.bf16.vlgmr.msra.gmra.mxu1 %vm2617_vm10, %v5820_v35 }
0x1803   : > { %15734 = vmatprep.mubr.msk.f32.mxu1 %vm18333_vm13, %v18332_v62  ;;  %6428 = vmatpush1.bf16.msra.mxu0 %v16595_v15  ;;  %v16635_v15 = vld [vmem:[#allocation28 + $0x48] sm:$0xff]  }
0x1804   : > { %6429 = vmatprep.subr.bf16.mxu0 %v16600_v16  ;;  %v16636_v16 = vld [vmem:[#allocation28 + $0x80] sm:$0xff]  }
0x1807   : > { %6430 = vmatpush1.bf16.msra.mxu0 %v16598_v17  ;;  %v16637_v17 = vld [vmem:[#allocation28 + $0x40] sm:$0xff]  }
0x1808   : > { %6431 = vmatprep.subr.bf16.mxu0 %v16603_v19  ;;  %v6329_v19 = vld [vmem:[#allocation34 + $0xc] sm:$0x3] }
0x180b   : > { %6432 = vmatpush1.bf16.msra.mxu0 %v16601_v30  ;;  %v6145_v30 = vld [vmem:[#allocation34] sm:$0x3] }
0x180c   : > { %6433 = vmatprep.subr.bf16.mxu0 %v16609_v36  ;;  %v6334_v36 = vrot.slane %v6329_v19, %v19212_v7 }
0x180f   : > { %6434 = vmatpush1.bf16.msra.mxu0 %v16607_v26  ;;  %v6150_v26 = vrot.slane %v6145_v30, %v19212_v7 }
0x1810   : > { %6435 = vmatprep.subr.bf16.mxu0 %v16615_v56 }
0x1813   : > { %6436 = vmatpush1.bf16.msra.mxu0 %v16613_v31  ;;  %v6338_v31 = vrot.slane %v6329_v19, %v19242_v58  ;;  %v16653_v19 = vld [vmem:[#allocation31 + $0x60] ss:$8 sps:$4 sm:$0xff]  }
0x1814   : > { %15742 = vmatprep.subr.bf16.mxu0 %v18332_v62 }
0x18ae   : > { %v6050_v38 = vpop.f32.mrf.mxu0 }
0x18b0   : > { %v15730_v34 = vpop.f32.mrf.mxu0 }
0x18b2   : > { %v5906_v11 = vpop.f32.mrf.mxu1  ;;  %v6053_v59 = vpop.f32.mrf.mxu0 }
0x18b4   : > { %v15706_v18 = vpop.f32.mrf.mxu1  ;;  %v15731_v14 = vpop.f32.mrf.mxu0 }
0x18b6   : > { %v5909_v22 = vpop.f32.mrf.mxu1  ;;  %v6307_v28 = vpop.f32.mrf.mxu0 }
0x18b7   : > { %v6311_v40 = vpack.c.bf16 %v6307_v28, %v6307_v28  ;;  %v16644_v28 = vld [vmem:[#allocation29 + $0x88] sm:$0xff]  }
0x18b8   : > { %v15707_v27 = vpop.f32.mrf.mxu1  ;;  %v15741_v53 = vpop.f32.mrf.mxu0 }
0x18b9   : > { %6454 = vmatmul.mubr.bf16.vlgmr.msra.gmra.mxu0 %v6311_v40  ;;  %v16645_v40 = vld [vmem:[#allocation29 + $0x80] sm:$0xff]  }
0x18ba   : > { %15750 = vmatprep.mubr.msk.bf16.mxu0 %vm18333_vm13, %v18332_v62  ;;  %v19635_v53 = vld [vmem:[#allocation32 + $0x2] sm:$0x3] }
0x18c2   : > { %v5972_v48 = vpop.f32.mrf.mxu1 }
0x18c3   : > { %v5973_v45 = vadd.f32 %v5972_v48, %v5906_v11 }
0x18c4   : > { %v15718_v41 = vpop.f32.mrf.mxu1 }
0x18c5   : > { %v6056_v33 = vadd.f32 %v6050_v38, %v5973_v45  ;;  %v6154_v38 = vrot.slane %v6145_v30, %v19242_v58  ;;  %v16658_v30 = vld [vmem:[#allocation31 + $0x54] ss:$8 sps:$4 sm:$0xff]  }
0x18c6   : > { %v5975_v46 = vpop.f32.mrf.mxu1 }
0x18c7   : > { %15733 = vmatpush3.msra.mxu1 %v6056_v33  ;;  %v16638_v46 = vld [vmem:[#allocation29 + $0x78] sm:$0xff]  }
0x18c8   : > { %v15719_v49 = vpop.f32.mrf.mxu1  ;;  %15735 = vmatmul.mubr.msk.f32.vlgmr.msra.gmra.mxu1 %vm6061_vm6, %v5698_v1  ;;  %6208 = vmatprep.subr.bf16.mxu1 %v16606_v20  ;;  %v16631_v1 = vld [vmem:[#allocation28 + $0x58] sm:$0xff]  }
0x18c9   : > { %6209 = vmatpush1.bf16.msra.mxu1 %v16604_v24  ;;  %6232 = vmatprep.mubr.bf16.mxu1 %v18334_v0  ;;  %v16640_v49 = vld [vmem:[#allocation29 + $0x98] sm:$0xff]  }
0x18ca   : > { %6210 = vmatprep.subr.bf16.mxu1 %v16612_v52  ;;  %v16639_v52 = vld [vmem:[#allocation29 + $0x70] sm:$0xff]   ;;  %15743 = vmatpush3.bf16.msra.mxu0 %v16640_v49 }
0x18cb   : > { %15744 = vmatprep.subr.bf16.mxu0 %v18332_v62 }
0x18cd   : > { %6211 = vmatpush1.bf16.msra.mxu1 %v16610_v50  ;;  %v16641_v50 = vld [vmem:[#allocation29 + $0x68] sm:$0xff]  }
0x18ce   : > { %6212 = vmatprep.subr.bf16.mxu1 %v16618_v57  ;;  %v16642_v57 = vld [vmem:[#allocation29 + $0x90] sm:$0xff]  }
0x18cf   : > { %15745 = vmatpush3.bf16.msra.mxu0 %v16642_v57 }
0x18d0   : > { %15746 = vmatprep.subr.bf16.mxu0 %v18332_v62 }
0x18d1   : > { %6213 = vmatpush1.bf16.msra.mxu1 %v16616_v10  ;;  %v16643_v10 = vld [vmem:[#allocation29 + $0x60] sm:$0xff]  }
0x18d2   : > { %6214 = vmatprep.subr.bf16.mxu1 %v16621_v21 }
0x18d3   : > { %15747 = vmatpush3.bf16.msra.mxu0 %v16644_v28  ;;  %v6897_v28 = vrot.slane %v19635_v53, %v19242_v58 }
0x18d4   : > { %15748 = vmatprep.subr.bf16.mxu0 %v18332_v62 }
0x18d5   : > { %6215 = vmatpush1.bf16.msra.mxu1 %v16619_v25  ;;  %v6505_v25 = vrot.slane %v19635_v53, %v19212_v7  ;;  %v16676_v53 = vld [vmem:[#allocation28 + $0x100] sm:$0xff]  }
0x18d6   : > { %14808 = vmatprep.subr.bf16.mxu1 %v16622_v29 }
0x18d7   : > { %15749 = vmatpush3.bf16.msra.mxu0 %v16645_v40 }
0x18d8   : > { %15766 = vmatprep.subr.bf16.mxu0 %v18332_v62 }
0x1979   : > { %v6455_v4 = vpop.f32.mrf.mxu0 }
0x197a   : > { %v6456_v56 = vadd.f32 %v6455_v4, %v6334_v36  ;;  %v16656_v36 = vld [vmem:[#allocation31 + $0x50] ss:$8 sps:$4 sm:$0xff]  }
0x197b   : > { %v6457_v44 = vpop.f32.mrf.mxu0 }
0x197c   : > { %v6458_v18 = vadd.f32 %v6457_v44, %v6338_v31  ;;  %v16646_v44 = vld [vmem:[#allocation29 + $0xb8] sm:$0xff]  }
0x197d   : > { %v6459_v47 = vpop.f32.mrf.mxu0  ;;  %v16662_v31 = vld [vmem:[#allocation28 + $0x138] sm:$0xff]  }
0x197f   : > { %v6460_v6 = vpop.f32.mrf.mxu0 }
0x1980   : > { %v16649_v6 = vld [vmem:[#allocation29 + $0xa0] sm:$0xff]  }
0x1988   : > { %v6131_v55 = vpop.f32.mrf.mxu1 }
0x1989   : > { %v6132_v43 = vadd.f32 %v6131_v55, %v6060_v39 }
0x198a   : > { %v15736_v35 = vpop.f32.mrf.mxu1 }
0x198b   : > { %v6135_v3 = vmax.f32 %v6132_v43, 0.0 }
0x198d   : > { %v6136_v42 = vpack.c.bf16 %v6135_v3, %v6135_v3 }
0x198f   : > { %14015 = vmatmul.mubr.msk.bf16.vlgmr.msra.gmra.mxu1 %vm2617_vm10, %v6136_v42 }
0x1990   : > { %14809 = vmatpush3.bf16.msra.mxu1 %v16623_v8 }
0x1991   : > { %14810 = vmatprep.subr.bf16.mxu1 %v16624_v54 }
0x1994   : > { %14811 = vmatpush3.bf16.msra.mxu1 %v16625_v9 }
0x1995   : > { %14812 = vmatprep.subr.bf16.mxu1 %v16626_v63 }
0x1998   : > { %14813 = vmatpush3.bf16.msra.mxu1 %v16627_v61  ;;  %v16856_v61 = vld [vmem:[#allocation38 + $0xa8] sm:$0xff]  }
0x1999   : > { %14814 = vmatprep.subr.bf16.mxu1 %v16628_v13 }
0x199c   : > { %14815 = vmatpush3.bf16.msra.mxu1 %v16629_v51 }
0x199d   : > { %14816 = vmatprep.subr.bf16.mxu1 %v16630_v23 }
0x19a0   : > { %14817 = vmatpush3.bf16.msra.mxu1 %v16631_v1 }
0x19a1   : > { %14818 = vmatprep.subr.bf16.mxu1 %v16632_v2  ;;  %v16647_v2 = vld [vmem:[#allocation29 + $0xb0] sm:$0xff]  }
0x19a4   : > { %14819 = vmatpush3.bf16.msra.mxu1 %v16633_v5  ;;  %v16648_v5 = vld [vmem:[#allocation29 + $0xa8] sm:$0xff]  }
0x19a5   : > { %14820 = vmatprep.subr.bf16.mxu1 %v16634_v60 }
0x19a8   : > { %14821 = vmatpush3.bf16.msra.mxu1 %v16635_v15  ;;  %v16650_v15 = vld [vmem:[#allocation31 + $0x70] ss:$8 sps:$4 sm:$0xff]  }
0x19a9   : > { %14822 = vmatprep.subr.bf16.mxu1 %v16636_v16  ;;  %v16652_v16 = vld [vmem:[#allocation31 + $0x74] ss:$8 sps:$4 sm:$0xff]  }
0x19ac   : > { %14823 = vmatpush3.bf16.msra.mxu1 %v16637_v17  ;;  %v16655_v17 = vld [vmem:[#allocation31 + $0x64] ss:$8 sps:$4 sm:$0xff]  }
0x19ad   : > { %15754 = vmatprep.subr.bf16.mxu1 %v18332_v62 }
0x1a4f   : > { %v6234_v34 = vpop.f32.mrf.mxu1 }
0x1a50   : > { %v6235_v11 = vadd.f32 %v6234_v34, %v6150_v26  ;;  %v16661_v26 = vld [vmem:[#allocation31 + $0x44] ss:$8 sps:$4 sm:$0xff]   ;;  %v16664_v34 = vld [vmem:[#allocation28 + $0x130] sm:$0xff]  }
0x1a51   : > { %v6236_v59 = vpop.f32.mrf.mxu1 }
0x1a52   : > { %v6462_v14 = vadd.f32 %v6456_v56, %v6235_v11  ;;  %v6237_v22 = vadd.f32 %v6236_v59, %v6154_v38  ;;  %v16659_v56 = vld [vmem:[#allocation31 + $0x40] ss:$8 sps:$4 sm:$0xff]   ;;  %v16663_v38 = vld [vmem:[#allocation28 + $0xf8] sm:$0xff]   ;;  %v16665_v11 = vld [vmem:[#allocation28 + $0xf0] sm:$0xff]  }
0x1a53   : > { %v6238_v27 = vpop.f32.mrf.mxu1  ;;  %v16666_v59 = vld [vmem:[#allocation28 + $0x128] sm:$0xff]  }
0x1a54   : > { %v6463_v48 = vadd.f32 %v6458_v18, %v6237_v22  ;;  %v19618_v45 = vmax.f32 %v6462_v14, 0.0  ;;  %v16667_v18 = vld [vmem:[#allocation28 + $0xe8] sm:$0xff]   ;;  %v16668_v14 = vld [vmem:[#allocation28 + $0x120] sm:$0xff]   ;;  %v16670_v27 = vld [vmem:[#allocation28 + $0x118] sm:$0xff]  }
0x1a55   : > { %v6239_v41 = vpop.f32.mrf.mxu1  ;;  %v16669_v22 = vld [vmem:[#allocation28 + $0xe0] sm:$0xff]  }
0x1a56   : > { %v19620_v20 = vmax.f32 %v6463_v48, 0.0  ;;  %v6468_v24 = vpack.c.bf16 %v19618_v45, %v19618_v45  ;;  %v16671_v48 = vld [vmem:[#allocation28 + $0xd8] sm:$0xff]  }
0x1a58   : > { %v6469_v33 = vpack.c.bf16 %v19620_v20, %v19620_v20 }
0x1a5a   : > { %6634 = vmatprep.mubr.bf16.mxu1 %v6469_v33 }
0x1a5b   : > { %6635 = vmatmul.mubr.bf16.vlgmr.msra.gmra.mxu1 %v6468_v24 }
0x1a5c   : > { %15762 = vmatprep.mubr.msk.bf16.mxu1 %vm18333_vm13, %v18332_v62  ;;  %15755 = vmatpush3.bf16.msra.mxu1 %v16638_v46 }
0x1a5d   : > { %15756 = vmatprep.subr.bf16.mxu1 %v18332_v62 }
0x1a60   : > { %15757 = vmatpush3.bf16.msra.mxu1 %v16639_v52 }
0x1a61   : > { %15758 = vmatprep.subr.bf16.mxu1 %v18332_v62 }
0x1a64   : > { %15759 = vmatpush3.bf16.msra.mxu1 %v16641_v50 }
0x1a65   : > { %15760 = vmatprep.subr.bf16.mxu1 %v18332_v62 }
0x1a68   : > { %15761 = vmatpush3.bf16.msra.mxu1 %v16643_v10 }
0x1a69   : > { %6973 = vmatprep.subr.bf16.mxu1 %v16652_v16 }
0x1b1b   : > { %v14824_v21 = vpop.f32.mrf.mxu1 }
0x1b1d   : > { %v14825_v29 = vpop.f32.mrf.mxu1 }
0x1b1e   : > { %v14826_v39 = vadd.f32 %v14825_v29, %v14824_v21 }
0x1b1f   : > { %v14827_v55 = vpop.f32.mrf.mxu1 }
0x1b20   : > { %v6637_v43 = vadd.f32 %v14826_v39, %v6505_v25 }
0x1b21   : > { %v14828_v35 = vpop.f32.mrf.mxu1 }
0x1b22   : > { %v6642_v3 = vmax.f32 %v6637_v43, 0.0 }
0x1b24   : > { %v6643_v8 = vpack.c.bf16 %v6642_v3, %v6642_v3  ;;  %v16672_v3 = vld [vmem:[#allocation28 + $0x110] sm:$0xff]  }
0x1b26   : > { %v6645_v42 = vshrl.u32 %v6643_v8, 16  ;;  %v6648_v9 = vshll.u32 %v6643_v8, 16  ;;  %v16673_v8 = vld [vmem:[#allocation28 + $0xd0] sm:$0xff]  }
0x1b28   : > { %v6647_v54 = vrot.slane %v6645_v42, 7  ;;  %v16674_v42 = vld [vmem:[#allocation28 + $0x108] sm:$0xff]  }
0x1b2a   : > { %v6650_v63 = vor.u32 %v6648_v9, %v6647_v54  ;;  %v16675_v54 = vld [vmem:[#allocation28 + $0xc8] sm:$0xff]   ;;  %v16677_v9 = vld [vmem:[#allocation28 + $0xc0] sm:$0xff]  }
0x1b2c   : > { %v6652_v13 = vsel %vm19216_vm1, 0, %v6650_v63  ;;  %v6910_v63 = vld [vmem:[#allocation34 + $0x2] sm:$0x3] }
0x1b2d   : > { %v6656_v51 = vsel %vm19639_vm9, %v6652_v13, 0  ;;  %v6915_v13 = vrot.slane %v6910_v63, %v19212_v7 }
0x1b2e   : > { %v6678_v23 = vshll.u32 %v6656_v51, 16  ;;  %15763 = vmatmul.mubr.msk.bf16.vlgmr.msra.gmra.mxu1 %vm2617_vm10, %v6656_v51  ;;  %v6676_v1 = vshrl.u32 %v6656_v51, 16  ;;  %v6825_v60 = vrot.slane %v6656_v51, 1  ;;  %v6919_v51 = vrot.slane %v6910_v63, %v19242_v58  ;;  %v16702_v63 = vld [vmem:[#allocation28 + $0x1b8] sm:$0xff]  }
0x1b2f   : > { %6997 = vmatprep.mubr.bf16.mxu1 %v18334_v0  ;;  %6974 = vmatpush1.bf16.msra.mxu1 %v16650_v15 }
0x1b30   : > { %v6680_v4 = vrot.slane %v6678_v23, 1  ;;  %6975 = vmatprep.subr.bf16.mxu1 %v16655_v17 }
0x1b32   : > { %v6681_v47 = vor.u32 %v6680_v4, %v6676_v1 }
0x1b33   : > { %6976 = vmatpush1.bf16.msra.mxu1 %v16653_v19  ;;  %v16679_v19 = vld [vmem:[#allocation29 + $0xf8] sm:$0xff]  }
0x1b34   : > { %15751 = vmatmul.mubr.msk.bf16.vlgmr.msra.gmra.mxu0 %vm2617_vm10, %v6681_v47  ;;  %6977 = vmatprep.subr.bf16.mxu1 %v16658_v30  ;;  %v16681_v30 = vld [vmem:[#allocation29 + $0xf0] sm:$0xff]  }
0x1b35   : > { %15767 = vmatpush3.bf16.msra.mxu0 %v16646_v44  ;;  %15774 = vmatprep.mubr.msk.bf16.mxu0 %vm18333_vm13, %v18332_v62 }
0x1b36   : > { %15768 = vmatprep.subr.bf16.mxu0 %v18332_v62 }
0x1b37   : > { %6978 = vmatpush1.bf16.msra.mxu1 %v16656_v36  ;;  %v16682_v36 = vld [vmem:[#allocation29 + $0x108] sm:$0xff]  }
0x1b38   : > { %6979 = vmatprep.subr.bf16.mxu1 %v16661_v26  ;;  %v16683_v26 = vld [vmem:[#allocation29 + $0xe8] sm:$0xff]  }
0x1b39   : > { %15769 = vmatpush3.bf16.msra.mxu0 %v16647_v2 }
0x1b3a   : > { %15770 = vmatprep.subr.bf16.mxu0 %v18332_v62 }
0x1b3b   : > { %6980 = vmatpush1.bf16.msra.mxu1 %v16659_v56  ;;  %v16684_v56 = vld [vmem:[#allocation29 + $0x100] sm:$0xff]  }
0x1b3c   : > { %15778 = vmatprep.subr.bf16.mxu1 %v18332_v62 }
0x1b3d   : > { %15771 = vmatpush3.bf16.msra.mxu0 %v16648_v5 }
0x1b3e   : > { %15772 = vmatprep.subr.bf16.mxu0 %v18332_v62 }
0x1b41   : > { %15773 = vmatpush3.bf16.msra.mxu0 %v16649_v6 }
0x1b42   : > { %14845 = vmatprep.subr.bf16.mxu0 %v16662_v31  ;;  %v16685_v31 = vld [vmem:[#allocation29 + $0xe0] sm:$0xff]  }
0x1b44   : > { %15775 = vmatmul.mubr.msk.bf16.vlgmr.msra.gmra.mxu0 %vm2617_vm10, %v6825_v60 }
0x1b45   : > { %14846 = vmatpush3.bf16.msra.mxu0 %v16663_v38  ;;  %v19684_v38 = vld [vmem:[#allocation32 + $0x4] sm:$0x3] }
0x1b46   : > { %14847 = vmatprep.subr.bf16.mxu0 %v16664_v34 }
0x1b49   : > { %14848 = vmatpush3.bf16.msra.mxu0 %v16665_v11  ;;  %v7049_v11 = vrot.slane %v19684_v38, %v19212_v7 }
0x1b4a   : > { %14849 = vmatprep.subr.bf16.mxu0 %v16666_v59 }
0x1b4d   : > { %14850 = vmatpush3.bf16.msra.mxu0 %v16667_v18 }
0x1b4e   : > { %14851 = vmatprep.subr.bf16.mxu0 %v16668_v14 }
0x1b51   : > { %14852 = vmatpush3.bf16.msra.mxu0 %v16669_v22 }
0x1b52   : > { %14853 = vmatprep.subr.bf16.mxu0 %v16670_v27 }
0x1b55   : > { %14854 = vmatpush3.bf16.msra.mxu0 %v16671_v48 }
0x1b56   : > { %14855 = vmatprep.subr.bf16.mxu0 %v16672_v3  ;;  %v16695_v3 = vld [vmem:[#allocation31 + $0xa4] ss:$8 sps:$4 sm:$0xff]  }
0x1b59   : > { %14856 = vmatpush3.bf16.msra.mxu0 %v16673_v8  ;;  %v16693_v8 = vld [vmem:[#allocation31 + $0xa0] ss:$8 sps:$4 sm:$0xff]  }
0x1b5a   : > { %14857 = vmatprep.subr.bf16.mxu0 %v16674_v42  ;;  %v16698_v42 = vld [vmem:[#allocation31 + $0x94] ss:$8 sps:$4 sm:$0xff]  }
0x1b5d   : > { %14858 = vmatpush3.bf16.msra.mxu0 %v16675_v54  ;;  %v16696_v54 = vld [vmem:[#allocation31 + $0x90] ss:$8 sps:$4 sm:$0xff]  }
0x1b5e   : > { %14859 = vmatprep.subr.bf16.mxu0 %v16676_v53  ;;  %v16701_v53 = vld [vmem:[#allocation31 + $0x84] ss:$8 sps:$4 sm:$0xff]  }
0x1b61   : > { %14860 = vmatpush3.bf16.msra.mxu0 %v16677_v9  ;;  %v16699_v9 = vld [vmem:[#allocation31 + $0x80] ss:$8 sps:$4 sm:$0xff]  }
0x1b62   : > { %15802 = vmatprep.subr.bf16.mxu0 %v18332_v62 }
0x1bee   : > { %v6809_v41 = vpop.f32.mrf.mxu1 }
0x1bf0   : > { %v15764_v33 = vpop.f32.mrf.mxu1 }
0x1bf2   : > { %v6812_v24 = vpop.f32.mrf.mxu1 }
0x1bf4   : > { %v6743_v46 = vpop.f32.mrf.mxu0  ;;  %v15765_v52 = vpop.f32.mrf.mxu1 }
0x1bf5   : > { %v6810_v10 = vadd.f32 %v6809_v41, %v6743_v46 }
0x1bf6   : > { %v15752_v49 = vpop.f32.mrf.mxu0 }
0x1bf8   : > { %v6746_v50 = vpop.f32.mrf.mxu0 }
0x1bfa   : > { %v15753_v57 = vpop.f32.mrf.mxu0 }
0x1c04   : > { %v6887_v40 = vpop.f32.mrf.mxu0 }
0x1c05   : > { %v6893_v21 = vadd.f32 %v6887_v40, %v6810_v10 }
0x1c06   : > { %v15776_v25 = vpop.f32.mrf.mxu0 }
0x1c07   : > { %v6898_v29 = vadd.f32 %v6897_v28, %v6893_v21  ;;  %v16686_v21 = vld [vmem:[#allocation29 + $0xd8] sm:$0xff]  }
0x1c08   : > { %v6890_v39 = vpop.f32.mrf.mxu0 }
0x1c09   : > { %v6899_v55 = vmax.f32 %v6898_v29, 0.0  ;;  %v16687_v29 = vld [vmem:[#allocation29 + $0xd0] sm:$0xff]   ;;  %v16688_v39 = vld [vmem:[#allocation29 + $0xc8] sm:$0xff]  }
0x1c0a   : > { %v15777_v43 = vpop.f32.mrf.mxu0 }
0x1c0b   : > { %v6900_v35 = vpack.c.bf16 %v6899_v55, %v6899_v55  ;;  %v16689_v55 = vld [vmem:[#allocation29 + $0xc0] sm:$0xff]   ;;  %v16690_v43 = vld [vmem:[#allocation31 + $0xb0] ss:$8 sps:$4 sm:$0xff]  }
0x1c0d   : > { %14072 = vmatmul.mubr.msk.bf16.vlgmr.msra.gmra.mxu1 %vm2617_vm10, %v6900_v35  ;;  %v16692_v35 = vld [vmem:[#allocation31 + $0xb4] ss:$8 sps:$4 sm:$0xff]  }
0x1c0e   : > { %15786 = vmatprep.mubr.msk.bf16.mxu1 %vm18333_vm13, %v18332_v62  ;;  %15779 = vmatpush3.bf16.msra.mxu1 %v16679_v19 }
0x1c0f   : > { %15780 = vmatprep.subr.bf16.mxu1 %v18332_v62 }
0x1c12   : > { %15781 = vmatpush3.bf16.msra.mxu1 %v16681_v30 }
0x1c13   : > { %15782 = vmatprep.subr.bf16.mxu1 %v18332_v62 }
0x1c16   : > { %15783 = vmatpush3.bf16.msra.mxu1 %v16683_v26 }
0x1c17   : > { %15784 = vmatprep.subr.bf16.mxu1 %v18332_v62 }
0x1c1a   : > { %15785 = vmatpush3.bf16.msra.mxu1 %v16685_v31  ;;  %v7438_v31 = vrot.slane %v19684_v38, %v19242_v58  ;;  %v16716_v38 = vld [vmem:[#allocation28 + $0x180] sm:$0xff]  }
0x1c1b   : > { %15790 = vmatprep.subr.bf16.mxu1 %v18332_v62 }
0x1ccd   : > { %v6999_v23 = vpop.f32.mrf.mxu1 }
0x1cce   : > { %v7000_v1 = vadd.f32 %v6999_v23, %v6915_v13  ;;  %v16703_v13 = vld [vmem:[#allocation28 + $0x178] sm:$0xff]   ;;  %v16705_v23 = vld [vmem:[#allocation28 + $0x170] sm:$0xff]  }
0x1ccf   : > { %v7001_v4 = vpop.f32.mrf.mxu1 }
0x1cd0   : > { %v7006_v44 = vadd.f32 %v7000_v1, %v19618_v45  ;;  %v7002_v47 = vadd.f32 %v7001_v4, %v6919_v51  ;;  %v16678_v45 = vld [vmem:[#allocation29 + $0x118] sm:$0xff]   ;;  %v16704_v51 = vld [vmem:[#allocation28 + $0x1b0] sm:$0xff]   ;;  %v16706_v1 = vld [vmem:[#allocation28 + $0x1a8] sm:$0xff]  }
0x1cd1   : > { %v7003_v2 = vpop.f32.mrf.mxu1  ;;  %v16707_v4 = vld [vmem:[#allocation28 + $0x168] sm:$0xff]  }
0x1cd2   : > { %v7007_v5 = vadd.f32 %v7002_v47, %v19620_v20  ;;  %v19667_v6 = vmax.f32 %v7006_v44, 0.0  ;;  %v16680_v20 = vld [vmem:[#allocation29 + $0x110] sm:$0xff]   ;;  %v16708_v44 = vld [vmem:[#allocation28 + $0x1a0] sm:$0xff]   ;;  %v16710_v2 = vld [vmem:[#allocation28 + $0x198] sm:$0xff]  }
0x1cd3   : > { %v7004_v60 = vpop.f32.mrf.mxu1  ;;  %v16709_v47 = vld [vmem:[#allocation28 + $0x160] sm:$0xff]  }
0x1cd4   : > { %v19669_v15 = vmax.f32 %v7007_v5, 0.0  ;;  %v7012_v17 = vpack.c.bf16 %v19667_v6, %v19667_v6  ;;  %v16711_v5 = vld [vmem:[#allocation28 + $0x158] sm:$0xff]  }
0x1cd6   : > { %v7013_v16 = vpack.c.bf16 %v19669_v15, %v19669_v15 }
0x1cd8   : > { %7178 = vmatprep.mubr.bf16.mxu0 %v7013_v16 }
0x1cd9   : > { %7179 = vmatmul.mubr.bf16.vlgmr.msra.gmra.mxu0 %v7012_v17 }
0x1cda   : > { %15810 = vmatprep.mubr.msk.bf16.mxu0 %vm18333_vm13, %v18332_v62  ;;  %15803 = vmatpush3.bf16.msra.mxu0 %v16678_v45 }
0x1cdb   : > { %15804 = vmatprep.subr.bf16.mxu0 %v18332_v62 }
0x1cde   : > { %15805 = vmatpush3.bf16.msra.mxu0 %v16680_v20 }
0x1cdf   : > { %15806 = vmatprep.subr.bf16.mxu0 %v18332_v62 }
0x1ce2   : > { %15807 = vmatpush3.bf16.msra.mxu0 %v16682_v36 }
0x1ce3   : > { %15808 = vmatprep.subr.bf16.mxu0 %v18332_v62 }
0x1ce6   : > { %15809 = vmatpush3.bf16.msra.mxu0 %v16684_v56 }
0x1ce7   : > { %14882 = vmatprep.subr.bf16.mxu0 %v16702_v63  ;;  %v16725_v63 = vld [vmem:[#allocation29 + $0x140] sm:$0xff]  }
0x1d99   : > { %v14861_v34 = vpop.f32.mrf.mxu0 }
0x1d9b   : > { %v14862_v59 = vpop.f32.mrf.mxu0 }
0x1d9c   : > { %v14863_v18 = vadd.f32 %v14862_v59, %v14861_v34 }
0x1d9d   : > { %v14864_v14 = vpop.f32.mrf.mxu0 }
0x1d9e   : > { %v7181_v22 = vadd.f32 %v14863_v18, %v7049_v11 }
0x1d9f   : > { %v14865_v27 = vpop.f32.mrf.mxu0 }
0x1da0   : > { %v7186_v48 = vmax.f32 %v7181_v22, 0.0 }
0x1da2   : > { %v7187_v41 = vpack.c.bf16 %v7186_v48, %v7186_v48  ;;  %v16712_v48 = vld [vmem:[#allocation28 + $0x190] sm:$0xff]  }
0x1da4   : > { %v7189_v33 = vshrl.u32 %v7187_v41, 16  ;;  %v7192_v46 = vshll.u32 %v7187_v41, 16  ;;  %v16713_v41 = vld [vmem:[#allocation28 + $0x150] sm:$0xff]  }
0x1da6   : > { %v7191_v24 = vrot.slane %v7189_v33, 7  ;;  %v16714_v33 = vld [vmem:[#allocation28 + $0x188] sm:$0xff]  }
0x1da8   : > { %v7194_v52 = vor.u32 %v7192_v46, %v7191_v24  ;;  %v16715_v24 = vld [vmem:[#allocation28 + $0x148] sm:$0xff]   ;;  %v16717_v46 = vld [vmem:[#allocation28 + $0x140] sm:$0xff]  }
0x1daa   : > { %v7196_v49 = vsel %vm19216_vm1, 0, %v7194_v52  ;;  %v7451_v52 = vld [vmem:[#allocation34 + $0x4] sm:$0x3] }
0x1dab   : > { %v7197_v50 = vsel %vm19639_vm9, %v7196_v49, 0  ;;  %v7456_v49 = vrot.slane %v7451_v52, %v19212_v7 }
0x1dac   : > { %v7219_v57 = vshll.u32 %v7197_v50, 16  ;;  %v7366_v10 = vrot.slane %v7197_v50, 1  ;;  %v7217_v28 = vshrl.u32 %v7197_v50, 16 }
0x1dae   : > { %v7221_v40 = vrot.slane %v7219_v57, 1  ;;  %15811 = vmatmul.mubr.msk.bf16.vlgmr.msra.gmra.mxu0 %vm2617_vm10, %v7366_v10 }
0x1daf   : > { %14883 = vmatpush3.bf16.msra.mxu0 %v16703_v13  ;;  %v19729_v13 = vld [vmem:[#allocation32 + $0x6] sm:$0x3] }
0x1db0   : > { %v7222_v25 = vor.u32 %v7221_v40, %v7217_v28  ;;  %14884 = vmatprep.subr.bf16.mxu0 %v16704_v51 }
0x1db2   : > { %15787 = vmatmul.mubr.msk.bf16.vlgmr.msra.gmra.mxu1 %vm2617_vm10, %v7222_v25 }
0x1db3   : > { %15791 = vmatpush3.bf16.msra.mxu1 %v16686_v21  ;;  %15798 = vmatprep.mubr.msk.bf16.mxu1 %vm18333_vm13, %v18332_v62 }
0x1db4   : > { %15792 = vmatprep.subr.bf16.mxu1 %v18332_v62  ;;  %14885 = vmatpush3.bf16.msra.mxu0 %v16705_v23  ;;  %v7590_v23 = vrot.slane %v19729_v13, %v19212_v7 }
0x1db5   : > { %14886 = vmatprep.subr.bf16.mxu0 %v16706_v1 }
0x1db7   : > { %15793 = vmatpush3.bf16.msra.mxu1 %v16687_v29 }
0x1db8   : > { %15794 = vmatprep.subr.bf16.mxu1 %v18332_v62  ;;  %14887 = vmatpush3.bf16.msra.mxu0 %v16707_v4 }
0x1db9   : > { %14888 = vmatprep.subr.bf16.mxu0 %v16708_v44 }
0x1dbb   : > { %15795 = vmatpush3.bf16.msra.mxu1 %v16688_v39 }
0x1dbc   : > { %15796 = vmatprep.subr.bf16.mxu1 %v18332_v62  ;;  %14889 = vmatpush3.bf16.msra.mxu0 %v16709_v47 }
0x1dbd   : > { %14890 = vmatprep.subr.bf16.mxu0 %v16710_v2 }
0x1dbf   : > { %15797 = vmatpush3.bf16.msra.mxu1 %v16689_v55 }
0x1dc0   : > { %7514 = vmatprep.subr.bf16.mxu1 %v16692_v35  ;;  %14891 = vmatpush3.bf16.msra.mxu0 %v16711_v5 }
0x1dc1   : > { %14892 = vmatprep.subr.bf16.mxu0 %v16712_v48  ;;  %v16735_v48 = vld [vmem:[#allocation31 + $0xe4] ss:$8 sps:$4 sm:$0xff]  }
0x1dc2   : > { %15799 = vmatmul.mubr.msk.bf16.vlgmr.msra.gmra.mxu1 %vm2617_vm10, %v7197_v50  ;;  %v7460_v50 = vrot.slane %v7451_v52, %v19242_v58  ;;  %v16742_v52 = vld [vmem:[#allocation28 + $0x238] sm:$0xff]  }
0x1dc3   : > { %7538 = vmatprep.mubr.bf16.mxu1 %v18334_v0  ;;  %7515 = vmatpush1.bf16.msra.mxu1 %v16690_v43 }
0x1dc4   : > { %7516 = vmatprep.subr.bf16.mxu1 %v16695_v3  ;;  %14893 = vmatpush3.bf16.msra.mxu0 %v16713_v41  ;;  %v16733_v41 = vld [vmem:[#allocation31 + $0xe0] ss:$8 sps:$4 sm:$0xff]  }
0x1dc5   : > { %14894 = vmatprep.subr.bf16.mxu0 %v16714_v33  ;;  %v16738_v33 = vld [vmem:[#allocation31 + $0xd4] ss:$8 sps:$4 sm:$0xff]  }
0x1dc7   : > { %7517 = vmatpush1.bf16.msra.mxu1 %v16693_v8  ;;  %v16719_v8 = vld [vmem:[#allocation29 + $0x158] sm:$0xff]  }
0x1dc8   : > { %7518 = vmatprep.subr.bf16.mxu1 %v16698_v42  ;;  %14895 = vmatpush3.bf16.msra.mxu0 %v16715_v24  ;;  %v16721_v42 = vld [vmem:[#allocation29 + $0x150] sm:$0xff]  }
0x1dc9   : > { %14896 = vmatprep.subr.bf16.mxu0 %v16716_v38  ;;  %v16736_v24 = vld [vmem:[#allocation31 + $0xd0] ss:$8 sps:$4 sm:$0xff]   ;;  %v16741_v38 = vld [vmem:[#allocation31 + $0xc4] ss:$8 sps:$4 sm:$0xff]  }
0x1dcb   : > { %7519 = vmatpush1.bf16.msra.mxu1 %v16696_v54  ;;  %v16722_v54 = vld [vmem:[#allocation29 + $0x168] sm:$0xff]  }
0x1dcc   : > { %7520 = vmatprep.subr.bf16.mxu1 %v16701_v53  ;;  %14897 = vmatpush3.bf16.msra.mxu0 %v16717_v46  ;;  %v16723_v53 = vld [vmem:[#allocation29 + $0x148] sm:$0xff]  }
0x1dcd   : > { %15838 = vmatprep.subr.bf16.mxu0 %v18332_v62  ;;  %v16739_v46 = vld [vmem:[#allocation31 + $0xc0] ss:$8 sps:$4 sm:$0xff]  }
0x1dcf   : > { %7521 = vmatpush1.bf16.msra.mxu1 %v16699_v9  ;;  %v16724_v9 = vld [vmem:[#allocation29 + $0x160] sm:$0xff]  }
0x1dd0   : > { %15814 = vmatprep.subr.bf16.mxu1 %v18332_v62 }
0x1e6e   : > { %v7428_v60 = vpop.f32.mrf.mxu0 }
0x1e70   : > { %v15812_v16 = vpop.f32.mrf.mxu0 }
0x1e72   : > { %v7284_v17 = vpop.f32.mrf.mxu1  ;;  %v7431_v45 = vpop.f32.mrf.mxu0 }
0x1e74   : > { %v15788_v19 = vpop.f32.mrf.mxu1  ;;  %v15813_v20 = vpop.f32.mrf.mxu0 }
0x1e76   : > { %v7287_v30 = vpop.f32.mrf.mxu1 }
0x1e78   : > { %v15789_v36 = vpop.f32.mrf.mxu1 }
0x1e82   : > { %v7350_v26 = vpop.f32.mrf.mxu1 }
0x1e83   : > { %v7351_v56 = vadd.f32 %v7350_v26, %v7284_v17 }
0x1e84   : > { %v15800_v34 = vpop.f32.mrf.mxu1 }
0x1e85   : > { %v7434_v11 = vadd.f32 %v7428_v60, %v7351_v56  ;;  %v16726_v34 = vld [vmem:[#allocation29 + $0x138] sm:$0xff]  }
0x1e86   : > { %v7353_v59 = vpop.f32.mrf.mxu1 }
0x1e87   : > { %v7439_v18 = vadd.f32 %v7438_v31, %v7434_v11  ;;  %v16727_v59 = vld [vmem:[#allocation29 + $0x130] sm:$0xff]  }
0x1e88   : > { %v15801_v14 = vpop.f32.mrf.mxu1 }
0x1e89   : > { %v7440_v22 = vmax.f32 %v7439_v18, 0.0  ;;  %v16728_v18 = vld [vmem:[#allocation29 + $0x128] sm:$0xff]   ;;  %v16729_v14 = vld [vmem:[#allocation29 + $0x120] sm:$0xff]  }
0x1e8b   : > { %v7441_v27 = vpack.c.bf16 %v7440_v22, %v7440_v22  ;;  %v16730_v22 = vld [vmem:[#allocation31 + $0xf0] ss:$8 sps:$4 sm:$0xff]  }
0x1e8d   : > { %14112 = vmatmul.mubr.msk.bf16.vlgmr.msra.gmra.mxu1 %vm2617_vm10, %v7441_v27  ;;  %v16732_v27 = vld [vmem:[#allocation31 + $0xf4] ss:$8 sps:$4 sm:$0xff]  }
0x1e8e   : > { %15822 = vmatprep.mubr.msk.bf16.mxu1 %vm18333_vm13, %v18332_v62  ;;  %15815 = vmatpush3.bf16.msra.mxu1 %v16719_v8 }
0x1e8f   : > { %15816 = vmatprep.subr.bf16.mxu1 %v18332_v62 }
0x1e92   : > { %15817 = vmatpush3.bf16.msra.mxu1 %v16721_v42 }
0x1e93   : > { %15818 = vmatprep.subr.bf16.mxu1 %v18332_v62 }
0x1e96   : > { %15819 = vmatpush3.bf16.msra.mxu1 %v16723_v53 }
0x1e97   : > { %15820 = vmatprep.subr.bf16.mxu1 %v18332_v62 }
0x1e9a   : > { %15821 = vmatpush3.bf16.msra.mxu1 %v16725_v63  ;;  %v7979_v63 = vrot.slane %v19729_v13, %v19242_v58  ;;  %v16756_v13 = vld [vmem:[#allocation28 + $0x200] sm:$0xff]  }
0x1e9b   : > { %15826 = vmatprep.subr.bf16.mxu1 %v18332_v62 }
0x1f4d   : > { %v7540_v57 = vpop.f32.mrf.mxu1 }
0x1f4e   : > { %v7541_v10 = vadd.f32 %v7540_v57, %v7456_v49  ;;  %v16743_v49 = vld [vmem:[#allocation28 + $0x1f8] sm:$0xff]   ;;  %v16745_v57 = vld [vmem:[#allocation28 + $0x1f0] sm:$0xff]  }
0x1f4f   : > { %v7542_v28 = vpop.f32.mrf.mxu1 }
0x1f50   : > { %v7547_v40 = vadd.f32 %v7541_v10, %v19667_v6  ;;  %v7543_v21 = vadd.f32 %v7542_v28, %v7460_v50  ;;  %v16718_v6 = vld [vmem:[#allocation29 + $0x178] sm:$0xff]   ;;  %v16744_v50 = vld [vmem:[#allocation28 + $0x230] sm:$0xff]   ;;  %v16746_v10 = vld [vmem:[#allocation28 + $0x228] sm:$0xff]  }
0x1f51   : > { %v7544_v25 = vpop.f32.mrf.mxu1  ;;  %v16747_v28 = vld [vmem:[#allocation28 + $0x1e8] sm:$0xff]  }
0x1f52   : > { %v7548_v29 = vadd.f32 %v7543_v21, %v19669_v15  ;;  %v19712_v39 = vmax.f32 %v7547_v40, 0.0  ;;  %v16720_v15 = vld [vmem:[#allocation29 + $0x170] sm:$0xff]   ;;  %v16748_v40 = vld [vmem:[#allocation28 + $0x220] sm:$0xff]   ;;  %v16750_v25 = vld [vmem:[#allocation28 + $0x218] sm:$0xff]  }
0x1f53   : > { %v7545_v55 = vpop.f32.mrf.mxu1  ;;  %v16749_v21 = vld [vmem:[#allocation28 + $0x1e0] sm:$0xff]  }
0x1f54   : > { %v19714_v43 = vmax.f32 %v7548_v29, 0.0  ;;  %v7553_v3 = vpack.c.bf16 %v19712_v39, %v19712_v39  ;;  %v16751_v29 = vld [vmem:[#allocation28 + $0x1d8] sm:$0xff]  }
0x1f56   : > { %v7554_v35 = vpack.c.bf16 %v19714_v43, %v19714_v43 }
0x1f58   : > { %7719 = vmatprep.mubr.bf16.mxu0 %v7554_v35 }
0x1f59   : > { %7720 = vmatmul.mubr.bf16.vlgmr.msra.gmra.mxu0 %v7553_v3 }
0x1f5a   : > { %15846 = vmatprep.mubr.msk.bf16.mxu0 %vm18333_vm13, %v18332_v62  ;;  %15839 = vmatpush3.bf16.msra.mxu0 %v16718_v6 }
0x1f5b   : > { %15840 = vmatprep.subr.bf16.mxu0 %v18332_v62 }
0x1f5e   : > { %15841 = vmatpush3.bf16.msra.mxu0 %v16720_v15 }
0x1f5f   : > { %15842 = vmatprep.subr.bf16.mxu0 %v18332_v62 }
0x1f62   : > { %15843 = vmatpush3.bf16.msra.mxu0 %v16722_v54 }
0x1f63   : > { %15844 = vmatprep.subr.bf16.mxu0 %v18332_v62 }
0x1f66   : > { %15845 = vmatpush3.bf16.msra.mxu0 %v16724_v9 }
0x1f67   : > { %14919 = vmatprep.subr.bf16.mxu0 %v16742_v52  ;;  %v16765_v52 = vld [vmem:[#allocation29 + $0x1a0] sm:$0xff]  }
0x2019   : > { %v14898_v51 = vpop.f32.mrf.mxu0 }
0x201b   : > { %v14899_v1 = vpop.f32.mrf.mxu0 }
0x201c   : > { %v14900_v4 = vadd.f32 %v14899_v1, %v14898_v51 }
0x201d   : > { %v14901_v44 = vpop.f32.mrf.mxu0 }
0x201e   : > { %v7722_v47 = vadd.f32 %v14900_v4, %v7590_v23 }
0x201f   : > { %v14902_v2 = vpop.f32.mrf.mxu0 }
0x2020   : > { %v7727_v5 = vmax.f32 %v7722_v47, 0.0 }
0x2022   : > { %v7728_v60 = vpack.c.bf16 %v7727_v5, %v7727_v5  ;;  %v16752_v5 = vld [vmem:[#allocation28 + $0x210] sm:$0xff]  }
0x2024   : > { %v7730_v16 = vshrl.u32 %v7728_v60, 16  ;;  %v7733_v45 = vshll.u32 %v7728_v60, 16  ;;  %v16753_v60 = vld [vmem:[#allocation28 + $0x1d0] sm:$0xff]  }
0x2026   : > { %v7732_v17 = vrot.slane %v7730_v16, 7  ;;  %v16754_v16 = vld [vmem:[#allocation28 + $0x208] sm:$0xff]  }
0x2028   : > { %v7735_v19 = vor.u32 %v7733_v45, %v7732_v17  ;;  %v16755_v17 = vld [vmem:[#allocation28 + $0x1c8] sm:$0xff]   ;;  %v16757_v45 = vld [vmem:[#allocation28 + $0x1c0] sm:$0xff]  }
0x202a   : > { %v7737_v20 = vsel %vm19216_vm1, 0, %v7735_v19  ;;  %v7992_v19 = vld [vmem:[#allocation34 + $0x6] sm:$0x3] }
0x202b   : > { %v7738_v30 = vsel %vm19639_vm9, %v7737_v20, 0  ;;  %v7997_v20 = vrot.slane %v7992_v19, %v19212_v7 }
0x202c   : > { %v7760_v36 = vshll.u32 %v7738_v30, 16  ;;  %v7907_v26 = vrot.slane %v7738_v30, 1  ;;  %v7758_v56 = vshrl.u32 %v7738_v30, 16 }
0x202e   : > { %v7762_v31 = vrot.slane %v7760_v36, 1  ;;  %15847 = vmatmul.mubr.msk.bf16.vlgmr.msra.gmra.mxu0 %vm2617_vm10, %v7907_v26 }
0x202f   : > { %14920 = vmatpush3.bf16.msra.mxu0 %v16743_v49  ;;  %v19774_v49 = vld [vmem:[#allocation32 + $0x8] sm:$0x3] }
0x2030   : > { %v7763_v11 = vor.u32 %v7762_v31, %v7758_v56  ;;  %14921 = vmatprep.subr.bf16.mxu0 %v16744_v50 }
0x2032   : > { %15823 = vmatmul.mubr.msk.bf16.vlgmr.msra.gmra.mxu1 %vm2617_vm10, %v7763_v11 }
0x2033   : > { %15827 = vmatpush3.bf16.msra.mxu1 %v16726_v34  ;;  %15834 = vmatprep.mubr.msk.bf16.mxu1 %vm18333_vm13, %v18332_v62 }
0x2034   : > { %15828 = vmatprep.subr.bf16.mxu1 %v18332_v62  ;;  %14922 = vmatpush3.bf16.msra.mxu0 %v16745_v57  ;;  %v8131_v57 = vrot.slane %v19774_v49, %v19212_v7 }
0x2035   : > { %14923 = vmatprep.subr.bf16.mxu0 %v16746_v10 }
0x2037   : > { %15829 = vmatpush3.bf16.msra.mxu1 %v16727_v59 }
0x2038   : > { %15830 = vmatprep.subr.bf16.mxu1 %v18332_v62  ;;  %14924 = vmatpush3.bf16.msra.mxu0 %v16747_v28 }
0x2039   : > { %14925 = vmatprep.subr.bf16.mxu0 %v16748_v40 }
0x203b   : > { %15831 = vmatpush3.bf16.msra.mxu1 %v16728_v18 }
0x203c   : > { %15832 = vmatprep.subr.bf16.mxu1 %v18332_v62  ;;  %14926 = vmatpush3.bf16.msra.mxu0 %v16749_v21 }
0x203d   : > { %14927 = vmatprep.subr.bf16.mxu0 %v16750_v25 }
0x203f   : > { %15833 = vmatpush3.bf16.msra.mxu1 %v16729_v14 }
0x2040   : > { %8055 = vmatprep.subr.bf16.mxu1 %v16732_v27  ;;  %14928 = vmatpush3.bf16.msra.mxu0 %v16751_v29 }
0x2041   : > { %14929 = vmatprep.subr.bf16.mxu0 %v16752_v5  ;;  %v16775_v5 = vld [vmem:[#allocation31 + $0x124] ss:$8 sps:$4 sm:$0xff]  }
0x2042   : > { %15835 = vmatmul.mubr.msk.bf16.vlgmr.msra.gmra.mxu1 %vm2617_vm10, %v7738_v30  ;;  %v8001_v30 = vrot.slane %v7992_v19, %v19242_v58  ;;  %v16782_v19 = vld [vmem:[#allocation28 + $0x2b8] sm:$0xff]  }
0x2043   : > { %8079 = vmatprep.mubr.bf16.mxu1 %v18334_v0  ;;  %8056 = vmatpush1.bf16.msra.mxu1 %v16730_v22 }
0x2044   : > { %8057 = vmatprep.subr.bf16.mxu1 %v16735_v48  ;;  %14930 = vmatpush3.bf16.msra.mxu0 %v16753_v60  ;;  %v16773_v60 = vld [vmem:[#allocation31 + $0x120] ss:$8 sps:$4 sm:$0xff]  }
0x2045   : > { %14931 = vmatprep.subr.bf16.mxu0 %v16754_v16  ;;  %v16778_v16 = vld [vmem:[#allocation31 + $0x114] ss:$8 sps:$4 sm:$0xff]  }
0x2047   : > { %8058 = vmatpush1.bf16.msra.mxu1 %v16733_v41  ;;  %v16759_v41 = vld [vmem:[#allocation29 + $0x1b8] sm:$0xff]  }
0x2048   : > { %8059 = vmatprep.subr.bf16.mxu1 %v16738_v33  ;;  %14932 = vmatpush3.bf16.msra.mxu0 %v16755_v17  ;;  %v16761_v33 = vld [vmem:[#allocation29 + $0x1b0] sm:$0xff]  }
0x2049   : > { %14933 = vmatprep.subr.bf16.mxu0 %v16756_v13  ;;  %v16776_v17 = vld [vmem:[#allocation31 + $0x110] ss:$8 sps:$4 sm:$0xff]   ;;  %v16781_v13 = vld [vmem:[#allocation31 + $0x104] ss:$8 sps:$4 sm:$0xff]  }
0x204b   : > { %8060 = vmatpush1.bf16.msra.mxu1 %v16736_v24  ;;  %v16762_v24 = vld [vmem:[#allocation29 + $0x1c8] sm:$0xff]  }
0x204c   : > { %8061 = vmatprep.subr.bf16.mxu1 %v16741_v38  ;;  %14934 = vmatpush3.bf16.msra.mxu0 %v16757_v45  ;;  %v16763_v38 = vld [vmem:[#allocation29 + $0x1a8] sm:$0xff]  }
0x204d   : > { %15874 = vmatprep.subr.bf16.mxu0 %v18332_v62  ;;  %v16779_v45 = vld [vmem:[#allocation31 + $0x100] ss:$8 sps:$4 sm:$0xff]  }
0x204f   : > { %8062 = vmatpush1.bf16.msra.mxu1 %v16739_v46  ;;  %v16764_v46 = vld [vmem:[#allocation29 + $0x1c0] sm:$0xff]  }
0x2050   : > { %15850 = vmatprep.subr.bf16.mxu1 %v18332_v62 }
0x20ee   : > { %v7969_v55 = vpop.f32.mrf.mxu0 }
0x20f0   : > { %v15848_v35 = vpop.f32.mrf.mxu0 }
0x20f2   : > { %v7825_v3 = vpop.f32.mrf.mxu1  ;;  %v7972_v6 = vpop.f32.mrf.mxu0 }
0x20f4   : > { %v15824_v8 = vpop.f32.mrf.mxu1  ;;  %v15849_v15 = vpop.f32.mrf.mxu0 }
0x20f6   : > { %v7828_v42 = vpop.f32.mrf.mxu1 }
0x20f8   : > { %v15825_v54 = vpop.f32.mrf.mxu1 }
0x2102   : > { %v7891_v53 = vpop.f32.mrf.mxu1 }
0x2103   : > { %v7892_v9 = vadd.f32 %v7891_v53, %v7825_v3 }
0x2104   : > { %v15836_v51 = vpop.f32.mrf.mxu1 }
0x2105   : > { %v7975_v23 = vadd.f32 %v7969_v55, %v7892_v9  ;;  %v16766_v51 = vld [vmem:[#allocation29 + $0x198] sm:$0xff]  }
0x2106   : > { %v7894_v1 = vpop.f32.mrf.mxu1 }
0x2107   : > { %v7980_v4 = vadd.f32 %v7979_v63, %v7975_v23  ;;  %v16767_v1 = vld [vmem:[#allocation29 + $0x190] sm:$0xff]  }
0x2108   : > { %v15837_v44 = vpop.f32.mrf.mxu1 }
0x2109   : > { %v7981_v47 = vmax.f32 %v7980_v4, 0.0  ;;  %v16768_v4 = vld [vmem:[#allocation29 + $0x188] sm:$0xff]   ;;  %v16769_v44 = vld [vmem:[#allocation29 + $0x180] sm:$0xff]  }
0x210b   : > { %v7982_v2 = vpack.c.bf16 %v7981_v47, %v7981_v47  ;;  %v16770_v47 = vld [vmem:[#allocation31 + $0x130] ss:$8 sps:$4 sm:$0xff]  }
0x210d   : > { %14152 = vmatmul.mubr.msk.bf16.vlgmr.msra.gmra.mxu1 %vm2617_vm10, %v7982_v2  ;;  %v16772_v2 = vld [vmem:[#allocation31 + $0x134] ss:$8 sps:$4 sm:$0xff]  }
0x210e   : > { %15858 = vmatprep.mubr.msk.bf16.mxu1 %vm18333_vm13, %v18332_v62  ;;  %15851 = vmatpush3.bf16.msra.mxu1 %v16759_v41 }
0x210f   : > { %15852 = vmatprep.subr.bf16.mxu1 %v18332_v62 }
0x2112   : > { %15853 = vmatpush3.bf16.msra.mxu1 %v16761_v33 }
0x2113   : > { %15854 = vmatprep.subr.bf16.mxu1 %v18332_v62 }
0x2116   : > { %15855 = vmatpush3.bf16.msra.mxu1 %v16763_v38 }
0x2117   : > { %15856 = vmatprep.subr.bf16.mxu1 %v18332_v62 }
0x211a   : > { %15857 = vmatpush3.bf16.msra.mxu1 %v16765_v52  ;;  %v8520_v52 = vrot.slane %v19774_v49, %v19242_v58  ;;  %v16796_v49 = vld [vmem:[#allocation28 + $0x280] sm:$0xff]  }
0x211b   : > { %15862 = vmatprep.subr.bf16.mxu1 %v18332_v62 }
0x21cd   : > { %v8081_v36 = vpop.f32.mrf.mxu1 }
0x21ce   : > { %v8082_v26 = vadd.f32 %v8081_v36, %v7997_v20  ;;  %v16783_v20 = vld [vmem:[#allocation28 + $0x278] sm:$0xff]   ;;  %v16785_v36 = vld [vmem:[#allocation28 + $0x270] sm:$0xff]  }
0x21cf   : > { %v8083_v56 = vpop.f32.mrf.mxu1 }
0x21d0   : > { %v8088_v31 = vadd.f32 %v8082_v26, %v19712_v39  ;;  %v8084_v34 = vadd.f32 %v8083_v56, %v8001_v30  ;;  %v16758_v39 = vld [vmem:[#allocation29 + $0x1d8] sm:$0xff]   ;;  %v16784_v30 = vld [vmem:[#allocation28 + $0x2b0] sm:$0xff]   ;;  %v16786_v26 = vld [vmem:[#allocation28 + $0x2a8] sm:$0xff]  }
0x21d1   : > { %v8085_v11 = vpop.f32.mrf.mxu1  ;;  %v16787_v56 = vld [vmem:[#allocation28 + $0x268] sm:$0xff]  }
0x21d2   : > { %v8089_v59 = vadd.f32 %v8084_v34, %v19714_v43  ;;  %v19757_v18 = vmax.f32 %v8088_v31, 0.0  ;;  %v16760_v43 = vld [vmem:[#allocation29 + $0x1d0] sm:$0xff]   ;;  %v16788_v31 = vld [vmem:[#allocation28 + $0x2a0] sm:$0xff]   ;;  %v16790_v11 = vld [vmem:[#allocation28 + $0x298] sm:$0xff]  }
0x21d3   : > { %v8086_v14 = vpop.f32.mrf.mxu1  ;;  %v16789_v34 = vld [vmem:[#allocation28 + $0x260] sm:$0xff]  }
0x21d4   : > { %v19759_v22 = vmax.f32 %v8089_v59, 0.0  ;;  %v8094_v48 = vpack.c.bf16 %v19757_v18, %v19757_v18  ;;  %v16791_v59 = vld [vmem:[#allocation28 + $0x258] sm:$0xff]  }
0x21d6   : > { %v8095_v27 = vpack.c.bf16 %v19759_v22, %v19759_v22 }
0x21d8   : > { %8260 = vmatprep.mubr.bf16.mxu0 %v8095_v27 }
0x21d9   : > { %8261 = vmatmul.mubr.bf16.vlgmr.msra.gmra.mxu0 %v8094_v48 }
0x21da   : > { %15882 = vmatprep.mubr.msk.bf16.mxu0 %vm18333_vm13, %v18332_v62  ;;  %15875 = vmatpush3.bf16.msra.mxu0 %v16758_v39 }
0x21db   : > { %15876 = vmatprep.subr.bf16.mxu0 %v18332_v62 }
0x21de   : > { %15877 = vmatpush3.bf16.msra.mxu0 %v16760_v43 }
0x21df   : > { %15878 = vmatprep.subr.bf16.mxu0 %v18332_v62 }
0x21e2   : > { %15879 = vmatpush3.bf16.msra.mxu0 %v16762_v24 }
0x21e3   : > { %15880 = vmatprep.subr.bf16.mxu0 %v18332_v62 }
0x21e6   : > { %15881 = vmatpush3.bf16.msra.mxu0 %v16764_v46 }
0x21e7   : > { %14956 = vmatprep.subr.bf16.mxu0 %v16782_v19  ;;  %v16805_v19 = vld [vmem:[#allocation29 + $0x200] sm:$0xff]  }
0x2299   : > { %v14935_v50 = vpop.f32.mrf.mxu0 }
0x229b   : > { %v14936_v10 = vpop.f32.mrf.mxu0 }
0x229c   : > { %v14937_v28 = vadd.f32 %v14936_v10, %v14935_v50 }
0x229d   : > { %v14938_v40 = vpop.f32.mrf.mxu0 }
0x229e   : > { %v8263_v21 = vadd.f32 %v14937_v28, %v8131_v57 }
0x229f   : > { %v14939_v25 = vpop.f32.mrf.mxu0 }
0x22a0   : > { %v8268_v29 = vmax.f32 %v8263_v21, 0.0 }
0x22a2   : > { %v8269_v55 = vpack.c.bf16 %v8268_v29, %v8268_v29  ;;  %v16792_v29 = vld [vmem:[#allocation28 + $0x290] sm:$0xff]  }
0x22a4   : > { %v8271_v35 = vshrl.u32 %v8269_v55, 16  ;;  %v8274_v6 = vshll.u32 %v8269_v55, 16  ;;  %v16793_v55 = vld [vmem:[#allocation28 + $0x250] sm:$0xff]  }
0x22a6   : > { %v8273_v3 = vrot.slane %v8271_v35, 7  ;;  %v16794_v35 = vld [vmem:[#allocation28 + $0x288] sm:$0xff]  }
0x22a8   : > { %v8276_v8 = vor.u32 %v8274_v6, %v8273_v3  ;;  %v16795_v3 = vld [vmem:[#allocation28 + $0x248] sm:$0xff]   ;;  %v16797_v6 = vld [vmem:[#allocation28 + $0x240] sm:$0xff]  }
0x22aa   : > { %v8278_v15 = vsel %vm19216_vm1, 0, %v8276_v8  ;;  %v8533_v8 = vld [vmem:[#allocation34 + $0x8] sm:$0x3] }
0x22ab   : > { %v8279_v42 = vsel %vm19639_vm9, %v8278_v15, 0  ;;  %v8538_v15 = vrot.slane %v8533_v8, %v19212_v7 }
0x22ac   : > { %v8301_v54 = vshll.u32 %v8279_v42, 16  ;;  %v8448_v53 = vrot.slane %v8279_v42, 1  ;;  %v8299_v9 = vshrl.u32 %v8279_v42, 16 }
0x22ae   : > { %v8303_v63 = vrot.slane %v8301_v54, 1  ;;  %15883 = vmatmul.mubr.msk.bf16.vlgmr.msra.gmra.mxu0 %vm2617_vm10, %v8448_v53 }
0x22af   : > { %14957 = vmatpush3.bf16.msra.mxu0 %v16783_v20  ;;  %v19819_v20 = vld [vmem:[#allocation32 + $0xa] sm:$0x3] }
0x22b0   : > { %v8304_v23 = vor.u32 %v8303_v63, %v8299_v9  ;;  %14958 = vmatprep.subr.bf16.mxu0 %v16784_v30 }
0x22b2   : > { %15859 = vmatmul.mubr.msk.bf16.vlgmr.msra.gmra.mxu1 %vm2617_vm10, %v8304_v23 }
0x22b3   : > { %15863 = vmatpush3.bf16.msra.mxu1 %v16766_v51  ;;  %15870 = vmatprep.mubr.msk.bf16.mxu1 %vm18333_vm13, %v18332_v62 }
0x22b4   : > { %15864 = vmatprep.subr.bf16.mxu1 %v18332_v62  ;;  %14959 = vmatpush3.bf16.msra.mxu0 %v16785_v36  ;;  %v8672_v36 = vrot.slane %v19819_v20, %v19212_v7 }
0x22b5   : > { %14960 = vmatprep.subr.bf16.mxu0 %v16786_v26 }
0x22b7   : > { %15865 = vmatpush3.bf16.msra.mxu1 %v16767_v1 }
0x22b8   : > { %15866 = vmatprep.subr.bf16.mxu1 %v18332_v62  ;;  %14961 = vmatpush3.bf16.msra.mxu0 %v16787_v56 }
0x22b9   : > { %14962 = vmatprep.subr.bf16.mxu0 %v16788_v31 }
0x22bb   : > { %15867 = vmatpush3.bf16.msra.mxu1 %v16768_v4 }
0x22bc   : > { %15868 = vmatprep.subr.bf16.mxu1 %v18332_v62  ;;  %14963 = vmatpush3.bf16.msra.mxu0 %v16789_v34 }
0x22bd   : > { %14964 = vmatprep.subr.bf16.mxu0 %v16790_v11 }
0x22bf   : > { %15869 = vmatpush3.bf16.msra.mxu1 %v16769_v44 }
0x22c0   : > { %8596 = vmatprep.subr.bf16.mxu1 %v16772_v2  ;;  %14965 = vmatpush3.bf16.msra.mxu0 %v16791_v59 }
0x22c1   : > { %14966 = vmatprep.subr.bf16.mxu0 %v16792_v29  ;;  %v16815_v29 = vld [vmem:[#allocation31 + $0x164] ss:$8 sps:$4 sm:$0xff]  }
0x22c2   : > { %15871 = vmatmul.mubr.msk.bf16.vlgmr.msra.gmra.mxu1 %vm2617_vm10, %v8279_v42  ;;  %v8542_v42 = vrot.slane %v8533_v8, %v19242_v58  ;;  %v16822_v8 = vld [vmem:[#allocation37 + $0x78] sm:$0xff]  }
0x22c3   : > { %8620 = vmatprep.mubr.bf16.mxu1 %v18334_v0  ;;  %8597 = vmatpush1.bf16.msra.mxu1 %v16770_v47 }
0x22c4   : > { %8598 = vmatprep.subr.bf16.mxu1 %v16775_v5  ;;  %14967 = vmatpush3.bf16.msra.mxu0 %v16793_v55  ;;  %v16813_v55 = vld [vmem:[#allocation31 + $0x160] ss:$8 sps:$4 sm:$0xff]  }
0x22c5   : > { %14968 = vmatprep.subr.bf16.mxu0 %v16794_v35  ;;  %v16818_v35 = vld [vmem:[#allocation31 + $0x154] ss:$8 sps:$4 sm:$0xff]  }
0x22c7   : > { %8599 = vmatpush1.bf16.msra.mxu1 %v16773_v60  ;;  %v16799_v60 = vld [vmem:[#allocation29 + $0x218] sm:$0xff]  }
0x22c8   : > { %8600 = vmatprep.subr.bf16.mxu1 %v16778_v16  ;;  %14969 = vmatpush3.bf16.msra.mxu0 %v16795_v3  ;;  %v16801_v16 = vld [vmem:[#allocation29 + $0x210] sm:$0xff]  }
0x22c9   : > { %14970 = vmatprep.subr.bf16.mxu0 %v16796_v49  ;;  %v16816_v3 = vld [vmem:[#allocation31 + $0x150] ss:$8 sps:$4 sm:$0xff]   ;;  %v16821_v49 = vld [vmem:[#allocation31 + $0x144] ss:$8 sps:$4 sm:$0xff]  }
0x22cb   : > { %8601 = vmatpush1.bf16.msra.mxu1 %v16776_v17  ;;  %v16802_v17 = vld [vmem:[#allocation29 + $0x228] sm:$0xff]  }
0x22cc   : > { %8602 = vmatprep.subr.bf16.mxu1 %v16781_v13  ;;  %14971 = vmatpush3.bf16.msra.mxu0 %v16797_v6  ;;  %v16803_v13 = vld [vmem:[#allocation29 + $0x208] sm:$0xff]  }
0x22cd   : > { %15910 = vmatprep.subr.bf16.mxu0 %v18332_v62  ;;  %v16819_v6 = vld [vmem:[#allocation31 + $0x140] ss:$8 sps:$4 sm:$0xff]  }
0x22cf   : > { %8603 = vmatpush1.bf16.msra.mxu1 %v16779_v45  ;;  %v16804_v45 = vld [vmem:[#allocation29 + $0x220] sm:$0xff]  }
0x22d0   : > { %15886 = vmatprep.subr.bf16.mxu1 %v18332_v62 }
0x236e   : > { %v8510_v14 = vpop.f32.mrf.mxu0 }
0x2370   : > { %v15884_v27 = vpop.f32.mrf.mxu0 }
0x2372   : > { %v8366_v48 = vpop.f32.mrf.mxu1  ;;  %v8513_v39 = vpop.f32.mrf.mxu0 }
0x2374   : > { %v15860_v41 = vpop.f32.mrf.mxu1  ;;  %v15885_v43 = vpop.f32.mrf.mxu0 }
0x2376   : > { %v8369_v33 = vpop.f32.mrf.mxu1 }
0x2378   : > { %v15861_v24 = vpop.f32.mrf.mxu1 }
0x2382   : > { %v8432_v38 = vpop.f32.mrf.mxu1 }
0x2383   : > { %v8433_v46 = vadd.f32 %v8432_v38, %v8366_v48 }
0x2384   : > { %v15872_v50 = vpop.f32.mrf.mxu1 }
0x2385   : > { %v8516_v57 = vadd.f32 %v8510_v14, %v8433_v46  ;;  %v16806_v50 = vld [vmem:[#allocation29 + $0x1f8] sm:$0xff]  }
0x2386   : > { %v8435_v10 = vpop.f32.mrf.mxu1 }
0x2387   : > { %v8521_v28 = vadd.f32 %v8520_v52, %v8516_v57  ;;  %v16807_v10 = vld [vmem:[#allocation29 + $0x1f0] sm:$0xff]  }
0x2388   : > { %v15873_v40 = vpop.f32.mrf.mxu1 }
0x2389   : > { %v8522_v21 = vmax.f32 %v8521_v28, 0.0  ;;  %v16808_v28 = vld [vmem:[#allocation29 + $0x1e8] sm:$0xff]   ;;  %v16809_v40 = vld [vmem:[#allocation29 + $0x1e0] sm:$0xff]  }
0x238b   : > { %v8523_v25 = vpack.c.bf16 %v8522_v21, %v8522_v21  ;;  %v16810_v21 = vld [vmem:[#allocation31 + $0x170] ss:$8 sps:$4 sm:$0xff]  }
0x238d   : > { %14192 = vmatmul.mubr.msk.bf16.vlgmr.msra.gmra.mxu1 %vm2617_vm10, %v8523_v25  ;;  %v16812_v25 = vld [vmem:[#allocation31 + $0x174] ss:$8 sps:$4 sm:$0xff]  }
0x238e   : > { %15894 = vmatprep.mubr.msk.bf16.mxu1 %vm18333_vm13, %v18332_v62  ;;  %15887 = vmatpush3.bf16.msra.mxu1 %v16799_v60 }
0x238f   : > { %15888 = vmatprep.subr.bf16.mxu1 %v18332_v62 }
0x2392   : > { %15889 = vmatpush3.bf16.msra.mxu1 %v16801_v16 }
0x2393   : > { %15890 = vmatprep.subr.bf16.mxu1 %v18332_v62 }
0x2396   : > { %15891 = vmatpush3.bf16.msra.mxu1 %v16803_v13 }
0x2397   : > { %15892 = vmatprep.subr.bf16.mxu1 %v18332_v62 }
0x239a   : > { %15893 = vmatpush3.bf16.msra.mxu1 %v16805_v19  ;;  %v9061_v19 = vrot.slane %v19819_v20, %v19242_v58  ;;  %v16836_v20 = vld [vmem:[#allocation37 + $0x40] sm:$0xff]  }
0x239b   : > { %15898 = vmatprep.subr.bf16.mxu1 %v18332_v62 }
0x244d   : > { %v8622_v54 = vpop.f32.mrf.mxu1 }
0x244e   : > { %v8623_v53 = vadd.f32 %v8622_v54, %v8538_v15  ;;  %v16823_v15 = vld [vmem:[#allocation37 + $0x38] sm:$0xff]   ;;  %v16825_v54 = vld [vmem:[#allocation37 + $0x30] sm:$0xff]  }
0x244f   : > { %v8624_v9 = vpop.f32.mrf.mxu1 }
0x2450   : > { %v8629_v63 = vadd.f32 %v8623_v53, %v19757_v18  ;;  %v8625_v51 = vadd.f32 %v8624_v9, %v8542_v42  ;;  %v16798_v18 = vld [vmem:[#allocation29 + $0x238] sm:$0xff]   ;;  %v16824_v42 = vld [vmem:[#allocation37 + $0x70] sm:$0xff]   ;;  %v16826_v53 = vld [vmem:[#allocation37 + $0x68] sm:$0xff]  }
0x2451   : > { %v8626_v23 = vpop.f32.mrf.mxu1  ;;  %v16827_v9 = vld [vmem:[#allocation37 + $0x28] sm:$0xff]  }
0x2452   : > { %v8630_v1 = vadd.f32 %v8625_v51, %v19759_v22  ;;  %v19802_v4 = vmax.f32 %v8629_v63, 0.0  ;;  %v16800_v22 = vld [vmem:[#allocation29 + $0x230] sm:$0xff]   ;;  %v16828_v63 = vld [vmem:[#allocation37 + $0x60] sm:$0xff]  }
0x2453   : > { %v8627_v44 = vpop.f32.mrf.mxu1  ;;  %v16829_v51 = vld [vmem:[#allocation37 + $0x20] sm:$0xff]   ;;  %v16830_v23 = vld [vmem:[#allocation37 + $0x58] sm:$0xff]  }
0x2454   : > { %v19804_v47 = vmax.f32 %v8630_v1, 0.0  ;;  %v8635_v5 = vpack.c.bf16 %v19802_v4, %v19802_v4  ;;  %v16831_v1 = vld [vmem:[#allocation37 + $0x18] sm:$0xff]  }
0x2456   : > { %v8636_v2 = vpack.c.bf16 %v19804_v47, %v19804_v47 }
0x2458   : > { %8801 = vmatprep.mubr.bf16.mxu0 %v8636_v2 }
0x2459   : > { %8802 = vmatmul.mubr.bf16.vlgmr.msra.gmra.mxu0 %v8635_v5 }
0x245a   : > { %15918 = vmatprep.mubr.msk.bf16.mxu0 %vm18333_vm13, %v18332_v62  ;;  %15911 = vmatpush3.bf16.msra.mxu0 %v16798_v18 }
0x245b   : > { %15912 = vmatprep.subr.bf16.mxu0 %v18332_v62 }
0x245e   : > { %15913 = vmatpush3.bf16.msra.mxu0 %v16800_v22 }
0x245f   : > { %15914 = vmatprep.subr.bf16.mxu0 %v18332_v62 }
0x2462   : > { %15915 = vmatpush3.bf16.msra.mxu0 %v16802_v17 }
0x2463   : > { %15916 = vmatprep.subr.bf16.mxu0 %v18332_v62 }
0x2466   : > { %15917 = vmatpush3.bf16.msra.mxu0 %v16804_v45 }
0x2467   : > { %14993 = vmatprep.subr.bf16.mxu0 %v16822_v8  ;;  %v16845_v8 = vld [vmem:[#allocation38 + $0x18] sm:$0xff]  }
0x2519   : > { %v14972_v30 = vpop.f32.mrf.mxu0 }
0x251b   : > { %v14973_v26 = vpop.f32.mrf.mxu0 }
0x251c   : > { %v14974_v56 = vadd.f32 %v14973_v26, %v14972_v30 }
0x251d   : > { %v14975_v31 = vpop.f32.mrf.mxu0 }
0x251e   : > { %v8804_v34 = vadd.f32 %v14974_v56, %v8672_v36 }
0x251f   : > { %v14976_v11 = vpop.f32.mrf.mxu0 }
0x2520   : > { %v8809_v59 = vmax.f32 %v8804_v34, 0.0 }
0x2522   : > { %v8810_v14 = vpack.c.bf16 %v8809_v59, %v8809_v59  ;;  %v16832_v59 = vld [vmem:[#allocation37 + $0x50] sm:$0xff]  }
0x2524   : > { %v8812_v27 = vshrl.u32 %v8810_v14, 16  ;;  %v8815_v39 = vshll.u32 %v8810_v14, 16  ;;  %v16833_v14 = vld [vmem:[#allocation37 + $0x10] sm:$0xff]  }
0x2526   : > { %v8814_v48 = vrot.slane %v8812_v27, 7  ;;  %v16834_v27 = vld [vmem:[#allocation37 + $0x48] sm:$0xff]  }
0x2528   : > { %v8817_v41 = vor.u32 %v8815_v39, %v8814_v48  ;;  %v16835_v48 = vld [vmem:[#allocation37 + $0x8] sm:$0xff]   ;;  %v16837_v39 = vld [vmem:[#allocation37] sm:$0xff]  }
0x252a   : > { %v8819_v43 = vsel %vm19216_vm1, 0, %v8817_v41  ;;  %v16840_v41 = vld [vmem:[#allocation38 + $0x78] sm:$0xff]  }
0x252b   : > { %v8820_v33 = vsel %vm19639_vm9, %v8819_v43, 0  ;;  %v16842_v43 = vld [vmem:[#allocation38 + $0x70] sm:$0xff]  }
0x252c   : > { %v8842_v24 = vshll.u32 %v8820_v33, 16  ;;  %v8989_v38 = vrot.slane %v8820_v33, 1  ;;  %v8840_v46 = vshrl.u32 %v8820_v33, 16 }
0x252e   : > { %v8844_v52 = vrot.slane %v8842_v24, 1  ;;  %15919 = vmatmul.mubr.msk.bf16.vlgmr.msra.gmra.mxu0 %vm2617_vm10, %v8989_v38 }
0x252f   : > { %14994 = vmatpush3.bf16.msra.mxu0 %v16823_v15  ;;  %v16846_v15 = vld [vmem:[#allocation38 + $0x60] sm:$0xff]  }
0x2530   : > { %v8845_v57 = vor.u32 %v8844_v52, %v8840_v46  ;;  %14995 = vmatprep.subr.bf16.mxu0 %v16824_v42  ;;  %v16847_v42 = vld [vmem:[#allocation38 + $0x10] sm:$0xff]  }
0x2532   : > { %15895 = vmatmul.mubr.msk.bf16.vlgmr.msra.gmra.mxu1 %vm2617_vm10, %v8845_v57 }
0x2533   : > { %15899 = vmatpush3.bf16.msra.mxu1 %v16806_v50  ;;  %15906 = vmatprep.mubr.msk.bf16.mxu1 %vm18333_vm13, %v18332_v62 }
0x2534   : > { %15900 = vmatprep.subr.bf16.mxu1 %v18332_v62  ;;  %14996 = vmatpush3.bf16.msra.mxu0 %v16825_v54  ;;  %v16848_v54 = vld [vmem:[#allocation38 + $0x58] sm:$0xff]  }
0x2535   : > { %14997 = vmatprep.subr.bf16.mxu0 %v16826_v53  ;;  %v16849_v53 = vld [vmem:[#allocation38 + $0x8] sm:$0xff]  }
0x2537   : > { %15901 = vmatpush3.bf16.msra.mxu1 %v16807_v10 }
0x2538   : > { %15902 = vmatprep.subr.bf16.mxu1 %v18332_v62  ;;  %14998 = vmatpush3.bf16.msra.mxu0 %v16827_v9  ;;  %v16850_v9 = vld [vmem:[#allocation38 + $0x50] sm:$0xff]  }
0x2539   : > { %14999 = vmatprep.subr.bf16.mxu0 %v16828_v63  ;;  %v16851_v63 = vld [vmem:[#allocation38] sm:$0xff]  }
0x253b   : > { %15903 = vmatpush3.bf16.msra.mxu1 %v16808_v28 }
0x253c   : > { %15904 = vmatprep.subr.bf16.mxu1 %v18332_v62  ;;  %15000 = vmatpush3.bf16.msra.mxu0 %v16829_v51  ;;  %v16852_v51 = vld [vmem:[#allocation38 + $0x48] sm:$0xff]  }
0x253d   : > { %15001 = vmatprep.subr.bf16.mxu0 %v16830_v23  ;;  %v16853_v23 = vld [vmem:[#allocation38 + $0x40] sm:$0xff]  }
0x253f   : > { %15905 = vmatpush3.bf16.msra.mxu1 %v16809_v40 }
0x2540   : > { %9137 = vmatprep.subr.bf16.mxu1 %v16812_v25  ;;  %15002 = vmatpush3.bf16.msra.mxu0 %v16831_v1  ;;  %v19873_v1 = vld [vmem:[#allocation43] sm:$0x3] }
0x2541   : > { %15003 = vmatprep.subr.bf16.mxu0 %v16832_v59  ;;  %v16854_v59 = vld [vmem:[#allocation38 + $0xb8] sm:$0xff]  }
0x2542   : > { %15907 = vmatmul.mubr.msk.bf16.vlgmr.msra.gmra.mxu1 %vm2617_vm10, %v8820_v33  ;;  %v9074_v33 = vld [vmem:[#allocation34 + $0xa] sm:$0x3] }
0x2543   : > { %9161 = vmatprep.mubr.bf16.mxu1 %v18334_v0  ;;  %9138 = vmatpush1.bf16.msra.mxu1 %v16810_v21  ;;  %v9079_v24 = vrot.slane %v9074_v33, %v19212_v7  ;;  %v9083_v38 = vrot.slane %v9074_v33, %v19242_v58  ;;  %v16864_v33 = vld [vmem:[#allocation40 + $0xe4] ss:$16 sps:$4 sm:$0xff]  }
0x2544   : > { %9139 = vmatprep.subr.bf16.mxu1 %v16815_v29  ;;  %15004 = vmatpush3.bf16.msra.mxu0 %v16833_v14 }
0x2545   : > { %15005 = vmatprep.subr.bf16.mxu0 %v16834_v27  ;;  %v16855_v27 = vld [vmem:[#allocation38 + $0xb0] sm:$0xff]  }
0x2547   : > { %9140 = vmatpush1.bf16.msra.mxu1 %v16813_v55 }
0x2548   : > { %9141 = vmatprep.subr.bf16.mxu1 %v16818_v35  ;;  %15006 = vmatpush3.bf16.msra.mxu0 %v16835_v48  ;;  %v16838_v35 = vld [vmem:[#allocation38 + $0x38] sm:$0xff]   ;;  %v16857_v48 = vld [vmem:[#allocation38 + $0xa0] sm:$0xff]  }
0x2549   : > { %15007 = vmatprep.subr.bf16.mxu0 %v16836_v20  ;;  %v16858_v20 = vld [vmem:[#allocation38 + $0x98] sm:$0xff]  }
0x254b   : > { %9142 = vmatpush1.bf16.msra.mxu1 %v16816_v3 }
0x254c   : > { %9143 = vmatprep.subr.bf16.mxu1 %v16821_v49  ;;  %15008 = vmatpush3.bf16.msra.mxu0 %v16837_v39  ;;  %v16843_v49 = vld [vmem:[#allocation38 + $0x20] sm:$0xff]   ;;  %v16859_v39 = vld [vmem:[#allocation38 + $0x90] sm:$0xff]  }
0x254d   : > { %15942 = vmatprep.subr.bf16.mxu0 %v18332_v62 }
0x254f   : > { %9144 = vmatpush1.bf16.msra.mxu1 %v16819_v6  ;;  %v16844_v6 = vld [vmem:[#allocation38 + $0x68] sm:$0xff]  }
0x2550   : > { %15922 = vmatprep.subr.bf16.mxu1 %v18332_v62 }
0x25ee   : > { %v9051_v44 = vpop.f32.mrf.mxu0 }
0x25f0   : > { %v15920_v2 = vpop.f32.mrf.mxu0 }
0x25f1   : > { %v9213_v2 = vrot.slane %v19873_v1, %v19212_v7 }
0x25f2   : > { %v8907_v5 = vpop.f32.mrf.mxu1  ;;  %v9054_v18 = vpop.f32.mrf.mxu0 }
0x25f4   : > { %v15896_v60 = vpop.f32.mrf.mxu1  ;;  %v15921_v22 = vpop.f32.mrf.mxu0 }
0x25f6   : > { %v8910_v16 = vpop.f32.mrf.mxu1 }
0x25f8   : > { %v15897_v17 = vpop.f32.mrf.mxu1 }
0x2602   : > { %v8973_v13 = vpop.f32.mrf.mxu1 }
0x2603   : > { %v8974_v45 = vadd.f32 %v8973_v13, %v8907_v5 }
0x2604   : > { %v15908_v30 = vpop.f32.mrf.mxu1 }
0x2605   : > { %v9057_v36 = vadd.f32 %v9051_v44, %v8974_v45 }
0x2606   : > { %v8976_v26 = vpop.f32.mrf.mxu1 }
0x2607   : > { %v9062_v56 = vadd.f32 %v9061_v19, %v9057_v36 }
0x2608   : > { %v15909_v31 = vpop.f32.mrf.mxu1 }
0x2609   : > { %v9063_v34 = vmax.f32 %v9062_v56, 0.0 }
0x260b   : > { %v9064_v11 = vpack.c.bf16 %v9063_v34, %v9063_v34 }
0x260d   : > { %14232 = vmatmul.mubr.msk.bf16.vlgmr.msra.gmra.mxu1 %vm2617_vm10, %v9064_v11  ;;  %vm9696_vm10 = vcmask 1043456  }
0x260e   : > { %15938 = vmatprep.mubr.msk.bf16.mxu1 %vm18333_vm13, %v18332_v62  ;;  %15923 = vmatpush3.bf16.msra.mxu1 %v16840_v41  ;;  %v16860_v41 = vld [vmem:[#allocation38 + $0x88] sm:$0xff]  }
0x260f   : > { %15924 = vmatprep.subr.bf16.mxu1 %v18332_v62 }
0x2612   : > { %15925 = vmatpush3.bf16.msra.mxu1 %v16842_v43  ;;  %v16861_v43 = vld [vmem:[#allocation38 + $0x80] sm:$0xff]  }
0x2613   : > { %15926 = vmatprep.subr.bf16.mxu1 %v18332_v62 }
0x2616   : > { %15927 = vmatpush3.bf16.msra.mxu1 %v16844_v6 }
0x2617   : > { %15928 = vmatprep.subr.bf16.mxu1 %v18332_v62 }
0x261a   : > { %15929 = vmatpush3.bf16.msra.mxu1 %v16846_v15 }
0x261b   : > { %15930 = vmatprep.subr.bf16.mxu1 %v18332_v62 }
0x261e   : > { %15931 = vmatpush3.bf16.msra.mxu1 %v16848_v54 }
0x261f   : > { %15932 = vmatprep.subr.bf16.mxu1 %v18332_v62 }
0x2622   : > { %15933 = vmatpush3.bf16.msra.mxu1 %v16850_v9 }
0x2623   : > { %15934 = vmatprep.subr.bf16.mxu1 %v18332_v62 }
0x2626   : > { %15935 = vmatpush3.bf16.msra.mxu1 %v16852_v51 }
0x2627   : > { %15936 = vmatprep.subr.bf16.mxu1 %v18332_v62 }
0x262a   : > { %15937 = vmatpush3.bf16.msra.mxu1 %v16853_v23 }
0x262b   : > { %15962 = vmatprep.subr.bf16.mxu1 %v18332_v62 }
0x26cd   : > { %v9163_v46 = vpop.f32.mrf.mxu1 }
0x26ce   : > { %v9164_v52 = vadd.f32 %v9163_v46, %v9079_v24  ;;  %v16862_v24 = vld [vmem:[#allocation40 + $0xe0] ss:$16 sps:$4 sm:$0xff]   ;;  %v16867_v46 = vld [vmem:[#allocation40 + $0xc4] ss:$16 sps:$4 sm:$0xff]  }
0x26cf   : > { %v9165_v50 = vpop.f32.mrf.mxu1 }
0x26d0   : > { %v9170_v57 = vadd.f32 %v9164_v52, %v19802_v4  ;;  %v9166_v10 = vadd.f32 %v9165_v50, %v9083_v38  ;;  %v16839_v4 = vld [vmem:[#allocation38 + $0x30] sm:$0xff]  }
0x26d1   : > { %v9167_v28 = vpop.f32.mrf.mxu1  ;;  %v16865_v52 = vld [vmem:[#allocation40 + $0xc0] ss:$16 sps:$4 sm:$0xff]   ;;  %v16870_v50 = vld [vmem:[#allocation40 + $0xa4] ss:$16 sps:$4 sm:$0xff]  }
0x26d2   : > { %v9171_v40 = vadd.f32 %v9166_v10, %v19804_v47  ;;  %v19849_v21 = vmax.f32 %v9170_v57, 0.0  ;;  %v16841_v47 = vld [vmem:[#allocation38 + $0x28] sm:$0xff]   ;;  %v16868_v57 = vld [vmem:[#allocation40 + $0xa0] ss:$16 sps:$4 sm:$0xff]   ;;  %v16873_v10 = vld [vmem:[#allocation40 + $0x84] ss:$16 sps:$4 sm:$0xff]  }
0x26d3   : > { %v9168_v25 = vpop.f32.mrf.mxu1  ;;  %v16871_v28 = vld [vmem:[#allocation40 + $0x80] ss:$16 sps:$4 sm:$0xff]  }
0x26d4   : > { %v19851_v29 = vmax.f32 %v9171_v40, 0.0  ;;  %v9176_v3 = vpack.c.bf16 %v19849_v21, %v19849_v21  ;;  %v16876_v40 = vld [vmem:[#allocation40 + $0x64] ss:$16 sps:$4 sm:$0xff]   ;;  %v16874_v25 = vld [vmem:[#allocation40 + $0x60] ss:$16 sps:$4 sm:$0xff]  }
0x26d6   : > { %v9177_v55 = vpack.c.bf16 %v19851_v29, %v19851_v29 }
0x26d8   : > { %9342 = vmatprep.mubr.bf16.mxu0 %v9177_v55  ;;  %v16879_v55 = vld [vmem:[#allocation40 + $0x44] ss:$16 sps:$4 sm:$0xff]  }
0x26d9   : > { %9343 = vmatmul.mubr.bf16.vlgmr.msra.gmra.mxu0 %v9176_v3  ;;  %v16882_v3 = vld [vmem:[#allocation40 + $0x24] ss:$16 sps:$4 sm:$0xff]  }
0x26da   : > { %15943 = vmatpush3.bf16.msra.mxu0 %v16838_v35  ;;  %15958 = vmatprep.mubr.msk.bf16.mxu0 %vm18333_vm13, %v18332_v62  ;;  %v16877_v35 = vld [vmem:[#allocation40 + $0x40] ss:$16 sps:$4 sm:$0xff]  }
0x26db   : > { %15944 = vmatprep.subr.bf16.mxu0 %v18332_v62 }
0x26de   : > { %15945 = vmatpush3.bf16.msra.mxu0 %v16839_v4  ;;  %v16880_v4 = vld [vmem:[#allocation40 + $0x20] ss:$16 sps:$4 sm:$0xff]  }
0x26df   : > { %15946 = vmatprep.subr.bf16.mxu0 %v18332_v62 }
0x26e2   : > { %15947 = vmatpush3.bf16.msra.mxu0 %v16841_v47  ;;  %v16885_v47 = vld [vmem:[#allocation40 + $0x4] ss:$16 sps:$4 sm:$0xff]  }
0x26e3   : > { %15948 = vmatprep.subr.bf16.mxu0 %v18332_v62 }
0x26e6   : > { %15949 = vmatpush3.bf16.msra.mxu0 %v16843_v49  ;;  %v16883_v49 = vld [vmem:[#allocation40] ss:$16 sps:$4 sm:$0xff]  }
0x26e7   : > { %15950 = vmatprep.subr.bf16.mxu0 %v18332_v62 }
0x26ea   : > { %15951 = vmatpush3.bf16.msra.mxu0 %v16845_v8 }
0x26eb   : > { %15952 = vmatprep.subr.bf16.mxu0 %v18332_v62 }
0x26ee   : > { %15953 = vmatpush3.bf16.msra.mxu0 %v16847_v42 }
0x26ef   : > { %15954 = vmatprep.subr.bf16.mxu0 %v18332_v62 }
0x26f2   : > { %15955 = vmatpush3.bf16.msra.mxu0 %v16849_v53 }
0x26f3   : > { %15956 = vmatprep.subr.bf16.mxu0 %v18332_v62 }
0x26f6   : > { %15957 = vmatpush3.bf16.msra.mxu0 %v16851_v63 }
0x26f7   : > { %15982 = vmatprep.subr.mxu0 %v18332_v62 }
0x2799   : > { %v15009_v44 = vpop.f32.mrf.mxu0 }
0x279b   : > { %v15010_v5 = vpop.f32.mrf.mxu0 }
0x279c   : > { %v15011_v18 = vadd.f32 %v15010_v5, %v15009_v44  ;;  %v16888_v44 = vld [vmem:[#allocation40 + $0xec] ss:$16 sps:$4 sm:$0xff]   ;;  %v19895_v5 = vld [vmem:[#allocation46] sm:$0x3] }
0x279d   : > { %v15012_v60 = vpop.f32.mrf.mxu0 }
0x279e   : > { %v9345_v22 = vadd.f32 %v15011_v18, %v9213_v2  ;;  %v16886_v18 = vld [vmem:[#allocation40 + $0xe8] ss:$16 sps:$4 sm:$0xff]  }
0x279f   : > { %v15013_v16 = vpop.f32.mrf.mxu0 }
0x27a0   : > { %v9350_v17 = vmax.f32 %v9345_v22, 0.0  ;;  %v16891_v22 = vld [vmem:[#allocation40 + $0xcc] ss:$16 sps:$4 sm:$0xff]   ;;  %v16889_v16 = vld [vmem:[#allocation40 + $0xc8] ss:$16 sps:$4 sm:$0xff]  }
0x27a2   : > { %v9351_v13 = vpack.c.bf16 %v9350_v17, %v9350_v17 }
0x27a4   : > { %v9353_v45 = vshrl.u32 %v9351_v13, 16  ;;  %v9356_v30 = vshll.u32 %v9351_v13, 16  ;;  %v16894_v13 = vld [vmem:[#allocation40 + $0xac] ss:$16 sps:$4 sm:$0xff]  }
0x27a6   : > { %v9355_v19 = vrot.slane %v9353_v45, 7  ;;  %v16892_v45 = vld [vmem:[#allocation40 + $0xa8] ss:$16 sps:$4 sm:$0xff]  }
0x27a8   : > { %v9358_v36 = vor.u32 %v9356_v30, %v9355_v19  ;;  %v16897_v19 = vld [vmem:[#allocation40 + $0x8c] ss:$16 sps:$4 sm:$0xff]   ;;  %v16895_v30 = vld [vmem:[#allocation40 + $0x88] ss:$16 sps:$4 sm:$0xff]  }
0x27aa   : > { %v9360_v26 = vsel %vm19216_vm1, 0, %v9358_v36  ;;  %v16900_v36 = vld [vmem:[#allocation40 + $0x6c] ss:$16 sps:$4 sm:$0xff]  }
0x27ab   : > { %v9361_v56 = vsel %vm19639_vm9, %v9360_v26, 0  ;;  %v16898_v26 = vld [vmem:[#allocation40 + $0x68] ss:$16 sps:$4 sm:$0xff]  }
0x27ac   : > { %v9398_v31 = vshll.u32 %v9361_v56, 16  ;;  %15959 = vmatmul.mubr.bf16.vlgmr.msra.gmra.mxu0 %v9361_v56  ;;  %v9396_v34 = vshrl.u32 %v9361_v56, 16  ;;  %v9597_v38 = vrot.slane %v9361_v56, 1  ;;  %v16903_v56 = vld [vmem:[#allocation40 + $0x4c] ss:$16 sps:$4 sm:$0xff]  }
0x27ad   : > { %15984 = vmatprep.mubr.msk.f32.mxu0 %vm18333_vm13, %v18332_v62 }
0x27ae   : > { %v9400_v11 = vrot.slane %v9398_v31, 1  ;;  %v16901_v31 = vld [vmem:[#allocation40 + $0x48] ss:$16 sps:$4 sm:$0xff]  }
0x27b0   : > { %v9401_v14 = vor.u32 %v9400_v11, %v9396_v34  ;;  %v16906_v34 = vld [vmem:[#allocation40 + $0x2c] ss:$16 sps:$4 sm:$0xff]   ;;  %v16904_v11 = vld [vmem:[#allocation40 + $0x28] ss:$16 sps:$4 sm:$0xff]  }
0x27b2   : > { %15939 = vmatmul.mubr.bf16.vlgmr.msra.gmra.mxu1 %v9401_v14  ;;  %v16907_v14 = vld [vmem:[#allocation40 + $0x8] ss:$16 sps:$4 sm:$0xff]  }
0x27b3   : > { %15963 = vmatpush3.bf16.msra.mxu1 %v16854_v59  ;;  %15978 = vmatprep.mubr.msk.bf16.mxu1 %vm18333_vm13, %v18332_v62  ;;  %v16909_v59 = vld [vmem:[#allocation40 + $0xc] ss:$16 sps:$4 sm:$0xff]  }
0x27b4   : > { %15964 = vmatprep.subr.bf16.mxu1 %v18332_v62 }
0x27b7   : > { %15965 = vmatpush3.bf16.msra.mxu1 %v16855_v27  ;;  %v16912_v27 = vld [vmem:[#allocation41 + $0xe4] ss:$16 sps:$4 sm:$0xff]  }
0x27b8   : > { %15966 = vmatprep.subr.bf16.mxu1 %v18332_v62 }
0x27bb   : > { %15967 = vmatpush3.bf16.msra.mxu1 %v16856_v61  ;;  %v9691_v61 = vrot.slane %v19873_v1, %v19242_v58  ;;  %v16924_v1 = vld [vmem:[#allocation41 + $0xa4] ss:$16 sps:$4 sm:$0xff]  }
0x27bc   : > { %15968 = vmatprep.subr.bf16.mxu1 %v18332_v62 }
0x27bf   : > { %15969 = vmatpush3.bf16.msra.mxu1 %v16857_v48 }
0x27c0   : > { %15970 = vmatprep.subr.bf16.mxu1 %v18332_v62 }
0x27c3   : > { %15971 = vmatpush3.bf16.msra.mxu1 %v16858_v20 }
0x27c4   : > { %15972 = vmatprep.subr.bf16.mxu1 %v18332_v62 }
0x27c7   : > { %15973 = vmatpush3.bf16.msra.mxu1 %v16859_v39 }
0x27c8   : > { %15974 = vmatprep.subr.bf16.mxu1 %v18332_v62 }
0x27cb   : > { %15975 = vmatpush3.bf16.msra.mxu1 %v16860_v41 }
0x27cc   : > { %15976 = vmatprep.subr.bf16.mxu1 %v18332_v62 }
0x27cf   : > { %15977 = vmatpush3.bf16.msra.mxu1 %v16861_v43 }
0x27d0   : > { %9986 = vmatprep.subr.bf16.mxu1 %v16864_v33  ;;  %v16910_v33 = vld [vmem:[#allocation41 + $0xe0] ss:$16 sps:$4 sm:$0xff]  }
0x27d2   : > { %15979 = vmatmul.mubr.bf16.vlgmr.msra.gmra.mxu1 %v9597_v38  ;;  %v16918_v38 = vld [vmem:[#allocation41 + $0xc4] ss:$16 sps:$4 sm:$0xff]  }
0x27d3   : > { %9987 = vmatpush1.bf16.msra.mxu1 %v16862_v24  ;;  %10018 = vmatprep.mubr.bf16.mxu1 %v18334_v0  ;;  %v16915_v24 = vld [vmem:[#allocation41 + $0xec] ss:$16 sps:$4 sm:$0xff]  }
0x27d4   : > { %9988 = vmatprep.subr.bf16.mxu1 %v16867_v46  ;;  %v16916_v46 = vld [vmem:[#allocation41 + $0xc0] ss:$16 sps:$4 sm:$0xff]  }
0x27d7   : > { %9989 = vmatpush1.bf16.msra.mxu1 %v16865_v52  ;;  %v16913_v52 = vld [vmem:[#allocation41 + $0xe8] ss:$16 sps:$4 sm:$0xff]  }
0x27d8   : > { %9990 = vmatprep.subr.bf16.mxu1 %v16870_v50  ;;  %v16921_v50 = vld [vmem:[#allocation41 + $0xcc] ss:$16 sps:$4 sm:$0xff]  }
0x27db   : > { %9991 = vmatpush1.bf16.msra.mxu1 %v16868_v57  ;;  %v16922_v57 = vld [vmem:[#allocation41 + $0xa0] ss:$16 sps:$4 sm:$0xff]  }
0x27dc   : > { %9992 = vmatprep.subr.bf16.mxu1 %v16873_v10  ;;  %v16930_v10 = vld [vmem:[#allocation41 + $0x84] ss:$16 sps:$4 sm:$0xff]  }
0x27df   : > { %9993 = vmatpush1.bf16.msra.mxu1 %v16871_v28  ;;  %v16919_v28 = vld [vmem:[#allocation41 + $0xc8] ss:$16 sps:$4 sm:$0xff]  }
0x27e0   : > { %9994 = vmatprep.subr.bf16.mxu1 %v16876_v40  ;;  %v16928_v40 = vld [vmem:[#allocation41 + $0x80] ss:$16 sps:$4 sm:$0xff]  }
0x27e3   : > { %9995 = vmatpush1.bf16.msra.mxu1 %v16874_v25  ;;  %v16936_v25 = vld [vmem:[#allocation41 + $0x64] ss:$16 sps:$4 sm:$0xff]  }
0x27e4   : > { %9996 = vmatprep.subr.bf16.mxu1 %v16879_v55  ;;  %v16925_v55 = vld [vmem:[#allocation41 + $0xa8] ss:$16 sps:$4 sm:$0xff]  }
0x27e7   : > { %9997 = vmatpush1.bf16.msra.mxu1 %v16877_v35  ;;  %v16933_v35 = vld [vmem:[#allocation41 + $0x8c] ss:$16 sps:$4 sm:$0xff]  }
0x27e8   : > { %9998 = vmatprep.subr.bf16.mxu1 %v16882_v3  ;;  %v16934_v3 = vld [vmem:[#allocation41 + $0x60] ss:$16 sps:$4 sm:$0xff]  }
0x27eb   : > { %9999 = vmatpush1.bf16.msra.mxu1 %v16880_v4  ;;  %v16942_v4 = vld [vmem:[#allocation41 + $0x44] ss:$16 sps:$4 sm:$0xff]  }
0x27ec   : > { %10000 = vmatprep.subr.bf16.mxu1 %v16885_v47  ;;  %v16931_v47 = vld [vmem:[#allocation41 + $0x88] ss:$16 sps:$4 sm:$0xff]  }
0x27ef   : > { %10001 = vmatpush1.bf16.msra.mxu1 %v16883_v49  ;;  %v16939_v49 = vld [vmem:[#allocation41 + $0x6c] ss:$16 sps:$4 sm:$0xff]  }
0x27f0   : > { %14307 = vmatprep.subr.msk.mxu1 %vm9696_vm10, %v19851_v29 }
0x286c   : > { %v9573_v6 = vpop.f32.mrf.mxu0 }
0x286e   : > { %v15960_v8 = vpop.f32.mrf.mxu0 }
0x286f   : > { %v16948_v8 = vld [vmem:[#allocation41 + $0x24] ss:$16 sps:$4 sm:$0xff]  }
0x2870   : > { %v9576_v15 = vpop.f32.mrf.mxu0 }
0x2871   : > { %v16937_v15 = vld [vmem:[#allocation41 + $0x68] ss:$16 sps:$4 sm:$0xff]  }
0x2872   : > { %v9485_v42 = vpop.f32.mrf.mxu1  ;;  %v15961_v54 = vpop.f32.mrf.mxu0 }
0x2873   : > { %v9574_v51 = vadd.f32 %v9573_v6, %v9485_v42  ;;  %v16940_v6 = vld [vmem:[#allocation41 + $0x40] ss:$16 sps:$4 sm:$0xff]   ;;  %v16945_v42 = vld [vmem:[#allocation41 + $0x4c] ss:$16 sps:$4 sm:$0xff]  }
0x2874   : > { %v15940_v53 = vpop.f32.mrf.mxu1  ;;  %v16946_v54 = vld [vmem:[#allocation41 + $0x20] ss:$16 sps:$4 sm:$0xff]  }
0x2875   : > { %v16954_v53 = vld [vmem:[#allocation41 + $0x4] ss:$16 sps:$4 sm:$0xff]  }
0x2876   : > { %v9488_v9 = vpop.f32.mrf.mxu1 }
0x2877   : > { %v16943_v9 = vld [vmem:[#allocation41 + $0x48] ss:$16 sps:$4 sm:$0xff]  }
0x2878   : > { %v15941_v63 = vpop.f32.mrf.mxu1 }
0x2879   : > { %v16951_v63 = vld [vmem:[#allocation41 + $0x2c] ss:$16 sps:$4 sm:$0xff]  }
0x2892   : > { %v9681_v23 = vpop.f32.mrf.mxu1 }
0x2893   : > { %v9687_v2 = vadd.f32 %v9681_v23, %v9574_v51  ;;  %v16952_v51 = vld [vmem:[#allocation41] ss:$16 sps:$4 sm:$0xff]   ;;  %v16960_v23 = vld [vmem:[#allocation41 + $0x1e4] ss:$16 sps:$4 sm:$0xff]  }
0x2894   : > { %v15980_v60 = vpop.f32.mrf.mxu1 }
0x2895   : > { %15983 = vmatpush3.msk.msra.mxu0 %vm9696_vm10, %v9687_v2  ;;  %v16957_v2 = vld [vmem:[#allocation41 + $0xc] ss:$16 sps:$4 sm:$0xff]   ;;  %v16955_v60 = vld [vmem:[#allocation41 + $0x8] ss:$16 sps:$4 sm:$0xff]  }
0x2896   : > { %v9684_v29 = vpop.f32.mrf.mxu1  ;;  %15985 = vmatmul.mubr.msk.f32.vlgmr.msra.gmra.mxu0 %vm9692_vm11, %v19895_v5  ;;  %10027 = vmatprep.subr.bf16.mxu0 %v16888_v44  ;;  %v16949_v44 = vld [vmem:[#allocation41 + $0x28] ss:$16 sps:$4 sm:$0xff]  }
0x2897   : > { %10028 = vmatpush1.bf16.msra.mxu0 %v16886_v18  ;;  %10059 = vmatprep.mubr.bf16.mxu0 %v18334_v0  ;;  %v16966_v18 = vld [vmem:[#allocation41 + $0x1c4] ss:$16 sps:$4 sm:$0xff]   ;;  %v16964_v29 = vld [vmem:[#allocation41 + $0x1c0] ss:$16 sps:$4 sm:$0xff]  }
0x2898   : > { %v15981_v17 = vpop.f32.mrf.mxu1  ;;  %10029 = vmatprep.subr.bf16.mxu0 %v16891_v22  ;;  %v16963_v22 = vld [vmem:[#allocation41 + $0x1ec] ss:$16 sps:$4 sm:$0xff]  }
0x2899   : > { %v16961_v17 = vld [vmem:[#allocation41 + $0x1e8] ss:$16 sps:$4 sm:$0xff]  }
0x289b   : > { %10030 = vmatpush1.bf16.msra.mxu0 %v16889_v16  ;;  %v16972_v16 = vld [vmem:[#allocation41 + $0x1a4] ss:$16 sps:$4 sm:$0xff]  }
0x289c   : > { %10031 = vmatprep.subr.bf16.mxu0 %v16894_v13  ;;  %v16969_v13 = vld [vmem:[#allocation41 + $0x1cc] ss:$16 sps:$4 sm:$0xff]  }
0x289f   : > { %10032 = vmatpush1.bf16.msra.mxu0 %v16892_v45  ;;  %v16970_v45 = vld [vmem:[#allocation41 + $0x1a0] ss:$16 sps:$4 sm:$0xff]  }
0x28a0   : > { %10033 = vmatprep.subr.bf16.mxu0 %v16897_v19  ;;  %v16978_v19 = vld [vmem:[#allocation41 + $0x184] ss:$16 sps:$4 sm:$0xff]  }
0x28a3   : > { %10034 = vmatpush1.bf16.msra.mxu0 %v16895_v30  ;;  %v16967_v30 = vld [vmem:[#allocation41 + $0x1c8] ss:$16 sps:$4 sm:$0xff]  }
0x28a4   : > { %10035 = vmatprep.subr.bf16.mxu0 %v16900_v36  ;;  %v16975_v36 = vld [vmem:[#allocation41 + $0x1ac] ss:$16 sps:$4 sm:$0xff]  }
0x28a7   : > { %10036 = vmatpush1.bf16.msra.mxu0 %v16898_v26  ;;  %v16976_v26 = vld [vmem:[#allocation41 + $0x180] ss:$16 sps:$4 sm:$0xff]  }
0x28a8   : > { %10037 = vmatprep.subr.bf16.mxu0 %v16903_v56  ;;  %v16984_v56 = vld [vmem:[#allocation41 + $0x164] ss:$16 sps:$4 sm:$0xff]  }
0x28ab   : > { %10038 = vmatpush1.bf16.msra.mxu0 %v16901_v31  ;;  %v16973_v31 = vld [vmem:[#allocation41 + $0x1a8] ss:$16 sps:$4 sm:$0xff]  }
0x28ac   : > { %10039 = vmatprep.subr.bf16.mxu0 %v16906_v34  ;;  %v16981_v34 = vld [vmem:[#allocation41 + $0x18c] ss:$16 sps:$4 sm:$0xff]  }
0x28af   : > { %10040 = vmatpush1.bf16.msra.mxu0 %v16904_v11  ;;  %v16982_v11 = vld [vmem:[#allocation41 + $0x160] ss:$16 sps:$4 sm:$0xff]  }
0x28b0   : > { %10041 = vmatprep.subr.bf16.mxu0 %v16909_v59  ;;  %v16979_v59 = vld [vmem:[#allocation41 + $0x188] ss:$16 sps:$4 sm:$0xff]  }
0x28b3   : > { %10042 = vmatpush1.bf16.msra.mxu0 %v16907_v14  ;;  %v16987_v14 = vld [vmem:[#allocation41 + $0x16c] ss:$16 sps:$4 sm:$0xff]  }
0x28b4   : > { %10554 = vmatprep.subr.bf16.mxu0 %v16912_v27  ;;  %v16985_v27 = vld [vmem:[#allocation41 + $0x168] ss:$16 sps:$4 sm:$0xff]  }
0x2956   : > { %v9766_v48 = vpop.f32.mrf.mxu0 }
0x2957   : > { %v9767_v20 = vadd.f32 %v9766_v48, %v9691_v61  ;;  %v16990_v61 = vld [vmem:[#allocation41 + $0x144] ss:$16 sps:$4 sm:$0xff]   ;;  %v16993_v48 = vld [vmem:[#allocation41 + $0x14c] ss:$16 sps:$4 sm:$0xff]  }
0x2958   : > { %v15986_v39 = vpop.f32.mrf.mxu0 }
0x2959   : > { %v9770_v41 = vmax.f32 %v9767_v20, 0.0  ;;  %v16988_v20 = vld [vmem:[#allocation41 + $0x140] ss:$16 sps:$4 sm:$0xff]   ;;  %v16991_v39 = vld [vmem:[#allocation41 + $0x148] ss:$16 sps:$4 sm:$0xff]  }
0x295b   : > { %v9771_v43 = vpack.c.bf16 %v9770_v41, %v9770_v41  ;;  %v16996_v41 = vld [vmem:[#allocation41 + $0x124] ss:$16 sps:$4 sm:$0xff]  }
0x295d   : > { %10019 = vmatmul.mubr.bf16.vlgmr.msra.gmra.mxu1 %v9771_v43  ;;  %10060 = vmatmul.mubr.bf16.vlgmr.msra.gmra.mxu0 %v9771_v43  ;;  %v16999_v43 = vld [vmem:[#allocation41 + $0x12c] ss:$16 sps:$4 sm:$0xff]  }
0x295e   : > { %14308 = vmatpush1.msk.msra.mxu1 %vm9696_vm10, %v19849_v21  ;;  %10138 = vmatprep.mubr.f32.mxu1 %v18332_v62  ;;  %v16927_v21 = vld [vmem:[#allocation41 + $0xac] ss:$16 sps:$4 sm:$0xff]  }
0x295f   : > { %10595 = vmatprep.subr.bf16.mxu1 %v16915_v24  ;;  %10555 = vmatpush1.bf16.msra.mxu0 %v16910_v33  ;;  %v16994_v33 = vld [vmem:[#allocation41 + $0x120] ss:$16 sps:$4 sm:$0xff]   ;;  %v16997_v24 = vld [vmem:[#allocation41 + $0x128] ss:$16 sps:$4 sm:$0xff]  }
0x2960   : > { %10556 = vmatprep.subr.bf16.mxu0 %v16918_v38  ;;  %v17002_v38 = vld [vmem:[#allocation41 + $0x104] ss:$16 sps:$4 sm:$0xff]  }
0x2963   : > { %10557 = vmatpush1.bf16.msra.mxu0 %v16916_v46  ;;  %v17005_v46 = vld [vmem:[#allocation41 + $0x10c] ss:$16 sps:$4 sm:$0xff]  }
0x2964   : > { %10558 = vmatprep.subr.bf16.mxu0 %v16924_v1  ;;  %v17000_v1 = vld [vmem:[#allocation41 + $0x100] ss:$16 sps:$4 sm:$0xff]  }
0x2965   : > { %14309 = vmatmul.mubr.msk.f32.vlgmr.msra.gmra.mxu1 %vm9692_vm11, %v19895_v5  ;;  %v16958_v5 = vld [vmem:[#allocation41 + $0x1e0] ss:$16 sps:$4 sm:$0xff]  }
0x2966   : > { %10596 = vmatpush1.bf16.msra.mxu1 %v16913_v52  ;;  %v17003_v52 = vld [vmem:[#allocation41 + $0x108] ss:$16 sps:$4 sm:$0xff]  }
0x2967   : > { %10597 = vmatprep.subr.bf16.mxu1 %v16921_v50  ;;  %10559 = vmatpush1.bf16.msra.mxu0 %v16922_v57  ;;  %v17006_v50 = vld [vmem:[#allocation37 + $0xf8] sm:$0xff]  }
0x2968   : > { %10560 = vmatprep.subr.bf16.mxu0 %v16930_v10  ;;  %v17007_v57 = vld [vmem:[#allocation37 + $0x178] sm:$0xff]  }
0x296a   : > { %10598 = vmatpush1.bf16.msra.mxu1 %v16919_v28 }
0x296b   : > { %10599 = vmatprep.subr.bf16.mxu1 %v16927_v21  ;;  %10561 = vmatpush1.bf16.msra.mxu0 %v16928_v40 }
0x296c   : > { %10562 = vmatprep.subr.bf16.mxu0 %v16936_v25 }
0x296e   : > { %10600 = vmatpush1.bf16.msra.mxu1 %v16925_v55 }
0x296f   : > { %10601 = vmatprep.subr.bf16.mxu1 %v16933_v35  ;;  %10563 = vmatpush1.bf16.msra.mxu0 %v16934_v3 }
0x2970   : > { %10564 = vmatprep.subr.bf16.mxu0 %v16942_v4 }
0x2972   : > { %10602 = vmatpush1.bf16.msra.mxu1 %v16931_v47 }
0x2973   : > { %10603 = vmatprep.subr.bf16.mxu1 %v16939_v49  ;;  %10565 = vmatpush1.bf16.msra.mxu0 %v16940_v6  ;;  %v17008_v6 = vld [vmem:[#allocation37 + $0xb8] sm:$0xff]  }
0x2974   : > { %10566 = vmatprep.subr.bf16.mxu0 %v16948_v8  ;;  %v17009_v8 = vld [vmem:[#allocation37 + $0x138] sm:$0xff]  }
0x2976   : > { %10604 = vmatpush1.bf16.msra.mxu1 %v16937_v15 }
0x2977   : > { %10605 = vmatprep.subr.bf16.mxu1 %v16945_v42  ;;  %10567 = vmatpush1.bf16.msra.mxu0 %v16946_v54  ;;  %v17010_v42 = vld [vmem:[#allocation37 + $0xf0] sm:$0xff]  }
0x2978   : > { %10568 = vmatprep.subr.bf16.mxu0 %v16954_v53  ;;  %v17011_v54 = vld [vmem:[#allocation37 + $0x170] sm:$0xff]  }
0x2979   : > { %v17012_v53 = vld [vmem:[#allocation37 + $0xb0] sm:$0xff]  }
0x297a   : > { %10606 = vmatpush1.bf16.msra.mxu1 %v16943_v9  ;;  %v17013_v9 = vld [vmem:[#allocation37 + $0x130] sm:$0xff]  }
0x297b   : > { %10607 = vmatprep.subr.bf16.mxu1 %v16951_v63  ;;  %10569 = vmatpush1.bf16.msra.mxu0 %v16952_v51  ;;  %v17014_v63 = vld [vmem:[#allocation37 + $0xe8] sm:$0xff]  }
0x297c   : > { %10570 = vmatprep.subr.bf16.mxu0 %v16960_v23  ;;  %v17015_v51 = vld [vmem:[#allocation37 + $0x168] sm:$0xff]  }
0x297d   : > { %v17016_v23 = vld [vmem:[#allocation37 + $0xa8] sm:$0xff]  }
0x297e   : > { %10608 = vmatpush1.bf16.msra.mxu1 %v16949_v44  ;;  %v17017_v44 = vld [vmem:[#allocation37 + $0x128] sm:$0xff]  }
0x297f   : > { %10609 = vmatprep.subr.bf16.mxu1 %v16957_v2  ;;  %10571 = vmatpush2.bf16.msra.mxu0 %v16958_v5  ;;  %v17018_v2 = vld [vmem:[#allocation37 + $0xe0] sm:$0xff]  }
0x2980   : > { %10572 = vmatprep.subr.bf16.mxu0 %v16966_v18  ;;  %v17019_v5 = vld [vmem:[#allocation37 + $0x160] sm:$0xff]  }
0x2981   : > { %v17020_v18 = vld [vmem:[#allocation37 + $0xa0] sm:$0xff]  }
0x2982   : > { %10610 = vmatpush1.bf16.msra.mxu1 %v16955_v60  ;;  %v17021_v60 = vld [vmem:[#allocation37 + $0x120] sm:$0xff]  }
0x2983   : > { %10611 = vmatprep.subr.bf16.mxu1 %v16963_v22  ;;  %10573 = vmatpush2.bf16.msra.mxu0 %v16964_v29  ;;  %v17022_v22 = vld [vmem:[#allocation37 + $0xd8] sm:$0xff]  }
0x2984   : > { %10574 = vmatprep.subr.bf16.mxu0 %v16972_v16  ;;  %v17023_v29 = vld [vmem:[#allocation37 + $0x158] sm:$0xff]  }
0x2985   : > { %v17024_v16 = vld [vmem:[#allocation37 + $0x98] sm:$0xff]  }
0x2986   : > { %10612 = vmatpush2.bf16.msra.mxu1 %v16961_v17  ;;  %v17025_v17 = vld [vmem:[#allocation37 + $0x118] sm:$0xff]  }
0x2987   : > { %10613 = vmatprep.subr.bf16.mxu1 %v16969_v13  ;;  %10575 = vmatpush2.bf16.msra.mxu0 %v16970_v45  ;;  %v17026_v13 = vld [vmem:[#allocation37 + $0xd0] sm:$0xff]  }
0x2988   : > { %10576 = vmatprep.subr.bf16.mxu0 %v16978_v19  ;;  %v17027_v45 = vld [vmem:[#allocation37 + $0x150] sm:$0xff]  }
0x2989   : > { %v17028_v19 = vld [vmem:[#allocation37 + $0x90] sm:$0xff]  }
0x298a   : > { %10614 = vmatpush2.bf16.msra.mxu1 %v16967_v30  ;;  %v17029_v30 = vld [vmem:[#allocation37 + $0x110] sm:$0xff]  }
0x298b   : > { %10615 = vmatprep.subr.bf16.mxu1 %v16975_v36  ;;  %10577 = vmatpush2.bf16.msra.mxu0 %v16976_v26  ;;  %v17030_v36 = vld [vmem:[#allocation37 + $0xc8] sm:$0xff]  }
0x298c   : > { %10578 = vmatprep.subr.bf16.mxu0 %v16984_v56  ;;  %v17031_v26 = vld [vmem:[#allocation37 + $0x148] sm:$0xff]  }
0x298d   : > { %v17032_v56 = vld [vmem:[#allocation37 + $0x88] sm:$0xff]  }
0x298e   : > { %10616 = vmatpush2.bf16.msra.mxu1 %v16973_v31  ;;  %v17033_v31 = vld [vmem:[#allocation37 + $0x108] sm:$0xff]  }
0x298f   : > { %10617 = vmatprep.subr.bf16.mxu1 %v16981_v34  ;;  %10579 = vmatpush2.bf16.msra.mxu0 %v16982_v11  ;;  %v17034_v34 = vld [vmem:[#allocation37 + $0xc0] sm:$0xff]  }
0x2990   : > { %10580 = vmatprep.subr.bf16.mxu0 %v16990_v61  ;;  %v17035_v11 = vld [vmem:[#allocation37 + $0x140] sm:$0xff]  }
0x2991   : > { %v9804_v61 = vld [vmem:[#allocation44] sm:$0xf] }
0x2992   : > { %10618 = vmatpush2.bf16.msra.mxu1 %v16979_v59  ;;  %v17036_v59 = vld [vmem:[#allocation37 + $0x80] sm:$0xff]  }
0x2993   : > { %10619 = vmatprep.subr.bf16.mxu1 %v16987_v14  ;;  %10581 = vmatpush2.bf16.msra.mxu0 %v16988_v20  ;;  %v17037_v14 = vld [vmem:[#allocation37 + $0x100] sm:$0xff]   ;;  %v10212_v20 = vld [vmem:[#allocation44 + $0xc] sm:$0xf] }
0x2994   : > { %10582 = vmatprep.subr.bf16.mxu0 %v16996_v41 }
0x2996   : > { %10620 = vmatpush2.bf16.msra.mxu1 %v16985_v27  ;;  %v19919_v27 = vsub.s32 2, %v19209_v37 }
0x2997   : > { %10621 = vmatprep.subr.bf16.mxu1 %v16993_v48  ;;  %10583 = vmatpush2.bf16.msra.mxu0 %v16994_v33  ;;  %v19922_v48 = vsub.s32 3, %v19209_v37 }
0x2998   : > { %10584 = vmatprep.subr.bf16.mxu0 %v17002_v38  ;;  %v9817_v41 = vrot.slane %v9804_v61, %v19919_v27  ;;  %v10225_v33 = vrot.slane %v10212_v20, %v19919_v27 }
0x2999   : > { %v9821_v38 = vrot.slane %v9804_v61, %v19922_v48 }
0x299a   : > { %10622 = vmatpush2.bf16.msra.mxu1 %v16991_v39  ;;  %v9809_v39 = vrot.slane %v9804_v61, %v19212_v7 }
0x299b   : > { %10623 = vmatprep.subr.bf16.mxu1 %v16999_v43  ;;  %10585 = vmatpush2.bf16.msra.mxu0 %v17000_v1  ;;  %v10217_v43 = vrot.slane %v10212_v20, %v19212_v7  ;;  %v10229_v1 = vrot.slane %v10212_v20, %v19922_v48 }
0x299c   : > { %15044 = vmatprep.subr.bf16.mxu0 %v17006_v50 }
0x299e   : > { %10624 = vmatpush2.bf16.msra.mxu1 %v16997_v24  ;;  %v9813_v24 = vrot.slane %v9804_v61, %v19242_v58 }
0x299f   : > { %10625 = vmatprep.subr.bf16.mxu1 %v17005_v46  ;;  %v10221_v46 = vrot.slane %v10212_v20, %v19242_v58 }
0x29a2   : > { %10626 = vmatpush2.bf16.msra.mxu1 %v17003_v52 }
0x29a3   : > { %15066 = vmatprep.subr.bf16.mxu1 %v17007_v57 }
0x2a1d   : > { %v19908_v10 = vpop.f32.mrf.mxu1  ;;  %v19910_v28 = vpop.f32.mrf.mxu0 }
0x2a1e   : > { %v10021_v50 = vadd.f32 %v19908_v10, %v9809_v39  ;;  %v10062_v57 = vadd.f32 %v19910_v28, %v9817_v41 }
0x2a1f   : > { %v19912_v21 = vpop.f32.mrf.mxu1  ;;  %v19914_v40 = vpop.f32.mrf.mxu0 }
0x2a21   : > { %v10024_v25 = vpop.f32.mrf.mxu1  ;;  %v10065_v55 = vpop.f32.mrf.mxu0 }
0x2a23   : > { %v10025_v35 = vpop.f32.mrf.mxu1  ;;  %v10066_v3 = vpop.f32.mrf.mxu0 }
0x2a24   : > { %v10023_v35 = vadd.f32 %v19912_v21, %v9813_v24  ;;  %v10064_v3 = vadd.f32 %v19914_v40, %v9821_v38 }
0x2a25   : > { %v10140_v4 = vpop.f32.mrf.mxu1 }
0x2a26   : > { %v10145_v15 = vpack.c.bf16 %v10140_v4, %v10140_v4 }
0x2a27   : > { %v10142_v47 = vpop.f32.mrf.mxu1 }
0x2a28   : > { %v10146_v49 = vpack.c.bf16 %v10142_v47, %v10142_v47 }
0x2a2a   : > { %10586 = vmatprep.mubr.bf16.mxu0 %v10146_v49  ;;  %10627 = vmatprep.mubr.bf16.mxu1 %v10146_v49 }
0x2a2b   : > { %10587 = vmatmul.mubr.bf16.vlgmr.msra.gmra.mxu0 %v10145_v15  ;;  %10628 = vmatmul.mubr.bf16.vlgmr.msra.gmra.mxu1 %v10145_v15 }
0x2a2c   : > { %15045 = vmatpush3.bf16.msra.mxu0 %v17008_v6  ;;  %15067 = vmatpush3.bf16.msra.mxu1 %v17009_v8 }
0x2a2d   : > { %15046 = vmatprep.subr.bf16.mxu0 %v17010_v42  ;;  %15068 = vmatprep.subr.bf16.mxu1 %v17011_v54 }
0x2a30   : > { %15047 = vmatpush3.bf16.msra.mxu0 %v17012_v53  ;;  %15069 = vmatpush3.bf16.msra.mxu1 %v17013_v9 }
0x2a31   : > { %15048 = vmatprep.subr.bf16.mxu0 %v17014_v63  ;;  %15070 = vmatprep.subr.bf16.mxu1 %v17015_v51 }
0x2a34   : > { %15049 = vmatpush3.bf16.msra.mxu0 %v17016_v23  ;;  %15071 = vmatpush3.bf16.msra.mxu1 %v17017_v44 }
0x2a35   : > { %15050 = vmatprep.subr.bf16.mxu0 %v17018_v2  ;;  %15072 = vmatprep.subr.bf16.mxu1 %v17019_v5  ;;  %v17038_v2 = vld [vmem:[#allocation38 + $0xf8] sm:$0xff]  }
0x2a36   : > { %v17040_v5 = vld [vmem:[#allocation38 + $0x138] sm:$0xff]  }
0x2a38   : > { %15051 = vmatpush3.bf16.msra.mxu0 %v17020_v18  ;;  %15073 = vmatpush3.bf16.msra.mxu1 %v17021_v60 }
0x2a39   : > { %15052 = vmatprep.subr.bf16.mxu0 %v17022_v22  ;;  %15074 = vmatprep.subr.bf16.mxu1 %v17023_v29  ;;  %v17039_v22 = vld [vmem:[#allocation38 + $0xf0] sm:$0xff]  }
0x2a3a   : > { %v17042_v29 = vld [vmem:[#allocation38 + $0x130] sm:$0xff]  }
0x2a3c   : > { %15053 = vmatpush3.bf16.msra.mxu0 %v17024_v16  ;;  %15075 = vmatpush3.bf16.msra.mxu1 %v17025_v17  ;;  %v17041_v16 = vld [vmem:[#allocation38 + $0xe8] sm:$0xff]   ;;  %v17043_v17 = vld [vmem:[#allocation38 + $0xe0] sm:$0xff]  }
0x2a3d   : > { %15054 = vmatprep.subr.bf16.mxu0 %v17026_v13  ;;  %15076 = vmatprep.subr.bf16.mxu1 %v17027_v45  ;;  %v17044_v13 = vld [vmem:[#allocation38 + $0x128] sm:$0xff]   ;;  %v17045_v45 = vld [vmem:[#allocation38 + $0xd8] sm:$0xff]  }
0x2a40   : > { %15055 = vmatpush3.bf16.msra.mxu0 %v17028_v19  ;;  %15077 = vmatpush3.bf16.msra.mxu1 %v17029_v30  ;;  %v17046_v19 = vld [vmem:[#allocation38 + $0x120] sm:$0xff]   ;;  %v17047_v30 = vld [vmem:[#allocation38 + $0xd0] sm:$0xff]  }
0x2a41   : > { %15056 = vmatprep.subr.bf16.mxu0 %v17030_v36  ;;  %15078 = vmatprep.subr.bf16.mxu1 %v17031_v26  ;;  %v17048_v36 = vld [vmem:[#allocation38 + $0x118] sm:$0xff]   ;;  %v17049_v26 = vld [vmem:[#allocation38 + $0xc8] sm:$0xff]  }
0x2a44   : > { %15057 = vmatpush3.bf16.msra.mxu0 %v17032_v56  ;;  %15079 = vmatpush3.bf16.msra.mxu1 %v17033_v31  ;;  %v17050_v56 = vld [vmem:[#allocation38 + $0x110] sm:$0xff]   ;;  %v17051_v31 = vld [vmem:[#allocation38 + $0xc0] sm:$0xff]  }
0x2a45   : > { %15058 = vmatprep.subr.bf16.mxu0 %v17034_v34  ;;  %15080 = vmatprep.subr.bf16.mxu1 %v17035_v11  ;;  %v17052_v34 = vld [vmem:[#allocation38 + $0x108] sm:$0xff]   ;;  %v17053_v11 = vld [vmem:[#allocation38 + $0x100] sm:$0xff]  }
0x2a48   : > { %15059 = vmatpush3.bf16.msra.mxu0 %v17036_v59  ;;  %15081 = vmatpush3.bf16.msra.mxu1 %v17037_v14  ;;  %v19971_v59 = vld [vmem:[#allocation43 + $0x2] sm:$0x3] }
0x2a49   : > { %16007 = vmatprep.subr.bf16.mxu1 %v18332_v62  ;;  %15987 = vmatprep.subr.bf16.mxu0 %v18332_v62  ;;  %v10717_v20 = vrot.slane %v19971_v59, %v19212_v7 }
0x2aeb   : > { %v10588_v52 = vpop.f32.mrf.mxu0  ;;  %v10629_v37 = vpop.f32.mrf.mxu1 }
0x2aec   : > { %v10589_v25 = vadd.f32 %v10588_v52, %v10217_v43  ;;  %v10630_v55 = vadd.f32 %v10629_v37, %v10225_v33 }
0x2aed   : > { %v10590_v4 = vpop.f32.mrf.mxu0  ;;  %v10631_v47 = vpop.f32.mrf.mxu1 }
0x2aee   : > { %v10636_v49 = vadd.f32 %v10589_v25, %v10021_v50  ;;  %v10638_v6 = vadd.f32 %v10630_v55, %v10062_v57  ;;  %v10591_v8 = vadd.f32 %v10590_v4, %v10221_v46  ;;  %v10632_v15 = vadd.f32 %v10631_v47, %v10229_v1 }
0x2aef   : > { %v10592_v42 = vpop.f32.mrf.mxu0  ;;  %v10633_v54 = vpop.f32.mrf.mxu1 }
0x2af0   : > { %v10637_v53 = vadd.f32 %v10591_v8, %v10023_v35  ;;  %v10639_v9 = vadd.f32 %v10632_v15, %v10064_v3  ;;  %v19936_v63 = vmax.f32 %v10636_v49, 0.0  ;;  %v19938_v10 = vmax.f32 %v10638_v6, 0.0  ;;  %v17054_v15 = vld [vmem:[#allocation38 + $0x178] sm:$0xff]   ;;  %v17055_v54 = vld [vmem:[#allocation38 + $0x170] sm:$0xff]  }
0x2af1   : > { %v10593_v28 = vpop.f32.mrf.mxu0  ;;  %v10634_v51 = vpop.f32.mrf.mxu1 }
0x2af2   : > { %v19940_v23 = vmax.f32 %v10637_v53, 0.0  ;;  %v19942_v21 = vmax.f32 %v10639_v9, 0.0  ;;  %v10646_v18 = vpack.c.bf16 %v19936_v63, %v19936_v63  ;;  %v10648_v60 = vpack.c.bf16 %v19938_v10, %v19938_v10  ;;  %v17056_v53 = vld [vmem:[#allocation38 + $0x168] sm:$0xff]   ;;  %v17057_v9 = vld [vmem:[#allocation38 + $0x160] sm:$0xff]   ;;  %v17058_v28 = vld [vmem:[#allocation38 + $0x158] sm:$0xff]  }
0x2af3   : > { %v17059_v51 = vld [vmem:[#allocation38 + $0x150] sm:$0xff]  }
0x2af4   : > { %v10647_v40 = vpack.c.bf16 %v19940_v23, %v19940_v23  ;;  %v10649_v44 = vpack.c.bf16 %v19942_v21, %v19942_v21 }
0x2af6   : > { %10942 = vmatprep.mubr.bf16.mxu0 %v10647_v40  ;;  %10982 = vmatprep.mubr.bf16.mxu1 %v10649_v44  ;;  %v17060_v40 = vld [vmem:[#allocation38 + $0x148] sm:$0xff]   ;;  %v17061_v44 = vld [vmem:[#allocation38 + $0x140] sm:$0xff]  }
0x2af7   : > { %10943 = vmatmul.mubr.bf16.vlgmr.msra.gmra.mxu0 %v10646_v18  ;;  %10983 = vmatmul.mubr.bf16.vlgmr.msra.gmra.mxu1 %v10648_v60  ;;  %v17064_v18 = vld [vmem:[#allocation40 + $0x1e4] ss:$16 sps:$4 sm:$0xff]   ;;  %v17065_v60 = vld [vmem:[#allocation40 + $0x1e8] ss:$16 sps:$4 sm:$0xff]  }
0x2af8   : > { %16008 = vmatpush3.bf16.msra.mxu1 %v17038_v2  ;;  %15988 = vmatpush3.bf16.msra.mxu0 %v17040_v5  ;;  %v17062_v5 = vld [vmem:[#allocation40 + $0x1e0] ss:$16 sps:$4 sm:$0xff]  }
0x2af9   : > { %16009 = vmatprep.subr.bf16.mxu1 %v18332_v62  ;;  %15989 = vmatprep.subr.bf16.mxu0 %v18332_v62 }
0x2afa   : > { %16023 = vmatprep.mubr.msk.bf16.mxu1 %vm18333_vm13, %v18332_v62  ;;  %16003 = vmatprep.mubr.msk.bf16.mxu0 %vm18333_vm13, %v18332_v62 }
0x2afc   : > { %16010 = vmatpush3.bf16.msra.mxu1 %v17039_v22  ;;  %15990 = vmatpush3.bf16.msra.mxu0 %v17042_v29  ;;  %v17067_v22 = vld [vmem:[#allocation40 + $0x1ec] ss:$16 sps:$4 sm:$0xff]   ;;  %v17070_v29 = vld [vmem:[#allocation40 + $0x1c4] ss:$16 sps:$4 sm:$0xff]  }
0x2afd   : > { %16011 = vmatprep.subr.bf16.mxu1 %v18332_v62  ;;  %15991 = vmatprep.subr.bf16.mxu0 %v18332_v62 }
0x2b00   : > { %16012 = vmatpush3.bf16.msra.mxu1 %v17041_v16  ;;  %15992 = vmatpush3.bf16.msra.mxu0 %v17044_v13  ;;  %v17073_v16 = vld [vmem:[#allocation40 + $0x1cc] ss:$16 sps:$4 sm:$0xff]   ;;  %v17071_v13 = vld [vmem:[#allocation40 + $0x1c8] ss:$16 sps:$4 sm:$0xff]  }
0x2b01   : > { %16013 = vmatprep.subr.bf16.mxu1 %v18332_v62  ;;  %15993 = vmatprep.subr.bf16.mxu0 %v18332_v62 }
0x2b04   : > { %16014 = vmatpush3.bf16.msra.mxu1 %v17043_v17  ;;  %15994 = vmatpush3.bf16.msra.mxu0 %v17046_v19  ;;  %v17068_v17 = vld [vmem:[#allocation40 + $0x1c0] ss:$16 sps:$4 sm:$0xff]   ;;  %v17079_v19 = vld [vmem:[#allocation40 + $0x1ac] ss:$16 sps:$4 sm:$0xff]  }
0x2b05   : > { %16015 = vmatprep.subr.bf16.mxu1 %v18332_v62  ;;  %15995 = vmatprep.subr.bf16.mxu0 %v18332_v62 }
0x2b08   : > { %16016 = vmatpush3.bf16.msra.mxu1 %v17045_v45  ;;  %15996 = vmatpush3.bf16.msra.mxu0 %v17048_v36  ;;  %v17076_v45 = vld [vmem:[#allocation40 + $0x1a4] ss:$16 sps:$4 sm:$0xff]   ;;  %v17077_v36 = vld [vmem:[#allocation40 + $0x1a8] ss:$16 sps:$4 sm:$0xff]  }
0x2b09   : > { %16017 = vmatprep.subr.bf16.mxu1 %v18332_v62  ;;  %15997 = vmatprep.subr.bf16.mxu0 %v18332_v62 }
0x2b0c   : > { %16018 = vmatpush3.bf16.msra.mxu1 %v17047_v30  ;;  %15998 = vmatpush3.bf16.msra.mxu0 %v17050_v56  ;;  %v17074_v30 = vld [vmem:[#allocation40 + $0x1a0] ss:$16 sps:$4 sm:$0xff]   ;;  %v17085_v56 = vld [vmem:[#allocation40 + $0x18c] ss:$16 sps:$4 sm:$0xff]  }
0x2b0d   : > { %16019 = vmatprep.subr.bf16.mxu1 %v18332_v62  ;;  %15999 = vmatprep.subr.bf16.mxu0 %v18332_v62 }
0x2b10   : > { %16020 = vmatpush3.bf16.msra.mxu1 %v17049_v26  ;;  %16000 = vmatpush3.bf16.msra.mxu0 %v17052_v34  ;;  %v17082_v26 = vld [vmem:[#allocation40 + $0x184] ss:$16 sps:$4 sm:$0xff]   ;;  %v17083_v34 = vld [vmem:[#allocation40 + $0x188] ss:$16 sps:$4 sm:$0xff]  }
0x2b11   : > { %16021 = vmatprep.subr.bf16.mxu1 %v18332_v62  ;;  %16001 = vmatprep.subr.bf16.mxu0 %v18332_v62 }
0x2b14   : > { %16022 = vmatpush3.bf16.msra.mxu1 %v17051_v31  ;;  %16002 = vmatpush3.bf16.msra.mxu0 %v17053_v11  ;;  %v17080_v31 = vld [vmem:[#allocation40 + $0x180] ss:$16 sps:$4 sm:$0xff]   ;;  %v17088_v11 = vld [vmem:[#allocation40 + $0x164] ss:$16 sps:$4 sm:$0xff]  }
0x2b15   : > { %16027 = vmatprep.subr.bf16.mxu0 %v18332_v62  ;;  %11551 = vmatprep.subr.bf16.mxu1 %v17064_v18  ;;  %v17113_v18 = vld [vmem:[#allocation37 + $0x238] sm:$0xff]  }
0x2bb7   : > { %v15060_v14 = vpop.f32.mrf.mxu0  ;;  %v15082_v61 = vpop.f32.mrf.mxu1 }
0x2bb9   : > { %v15061_v39 = vpop.f32.mrf.mxu0  ;;  %v15083_v41 = vpop.f32.mrf.mxu1 }
0x2bba   : > { %v15062_v43 = vadd.f32 %v15061_v39, %v15060_v14  ;;  %v15084_v46 = vadd.f32 %v15083_v41, %v15082_v61  ;;  %v17091_v14 = vld [vmem:[#allocation40 + $0x16c] ss:$16 sps:$4 sm:$0xff]   ;;  %v17086_v61 = vld [vmem:[#allocation40 + $0x160] ss:$16 sps:$4 sm:$0xff]   ;;  %v17094_v39 = vld [vmem:[#allocation40 + $0x144] ss:$16 sps:$4 sm:$0xff]  }
0x2bbb   : > { %v15063_v33 = vpop.f32.mrf.mxu0  ;;  %v15085_v24 = vpop.f32.mrf.mxu1  ;;  %v17097_v41 = vld [vmem:[#allocation40 + $0x14c] ss:$16 sps:$4 sm:$0xff]  }
0x2bbc   : > { %v10945_v38 = vadd.f32 %v15062_v43, %v10717_v20  ;;  %v17089_v20 = vld [vmem:[#allocation40 + $0x168] ss:$16 sps:$4 sm:$0xff]   ;;  %v17092_v43 = vld [vmem:[#allocation40 + $0x140] ss:$16 sps:$4 sm:$0xff]   ;;  %v17100_v24 = vld [vmem:[#allocation40 + $0x124] ss:$16 sps:$4 sm:$0xff]  }
0x2bbd   : > { %v15064_v1 = vpop.f32.mrf.mxu0  ;;  %v15086_v52 = vpop.f32.mrf.mxu1  ;;  %v17095_v33 = vld [vmem:[#allocation40 + $0x148] ss:$16 sps:$4 sm:$0xff]  }
0x2bbe   : > { %v10985_v37 = vadd.f32 %v15084_v46, %v10945_v38  ;;  %v17103_v38 = vld [vmem:[#allocation40 + $0x12c] ss:$16 sps:$4 sm:$0xff]   ;;  %v17098_v46 = vld [vmem:[#allocation40 + $0x120] ss:$16 sps:$4 sm:$0xff]   ;;  %v17101_v1 = vld [vmem:[#allocation40 + $0x128] ss:$16 sps:$4 sm:$0xff]  }
0x2bbf   : > { %v17106_v52 = vld [vmem:[#allocation40 + $0x104] ss:$16 sps:$4 sm:$0xff]  }
0x2bc0   : > { %v10990_v50 = vmax.f32 %v10985_v37, 0.0  ;;  %v17109_v37 = vld [vmem:[#allocation40 + $0x10c] ss:$16 sps:$4 sm:$0xff]  }
0x2bc2   : > { %v10991_v57 = vpack.c.bf16 %v10990_v50, %v10990_v50  ;;  %v17104_v50 = vld [vmem:[#allocation40 + $0x100] ss:$16 sps:$4 sm:$0xff]  }
0x2bc4   : > { %v10993_v25 = vshrl.u32 %v10991_v57, 16  ;;  %v10996_v35 = vshll.u32 %v10991_v57, 16  ;;  %v17107_v57 = vld [vmem:[#allocation40 + $0x108] ss:$16 sps:$4 sm:$0xff]  }
0x2bc6   : > { %v10995_v55 = vrot.slane %v10993_v25, 7  ;;  %v17110_v25 = vld [vmem:[#allocation37 + $0x1f8] sm:$0xff]  }
0x2bc8   : > { %v10998_v3 = vor.u32 %v10996_v35, %v10995_v55  ;;  %v17111_v55 = vld [vmem:[#allocation37 + $0x278] sm:$0xff]  }
0x2bca   : > { %v11000_v4 = vsel %vm19216_vm1, 0, %v10998_v3 }
0x2bcb   : > { %v11001_v47 = vsel %vm18968_vm5, %v11000_v4, 0 }
0x2bcc   : > { %v11039_v49 = vshll.u32 %v11001_v47, 16  ;;  %16024 = vmatmul.mubr.bf16.vlgmr.msra.gmra.mxu1 %v11001_v47  ;;  %v11037_v6 = vshrl.u32 %v11001_v47, 16  ;;  %v11238_v2 = vrot.slane %v11001_v47, 1 }
0x2bcd   : > { %11583 = vmatprep.mubr.bf16.mxu1 %v18334_v0  ;;  %11552 = vmatpush1.bf16.msra.mxu1 %v17062_v5  ;;  %v17112_v5 = vld [vmem:[#allocation37 + $0x1b8] sm:$0xff]  }
0x2bce   : > { %v11041_v8 = vrot.slane %v11039_v49, 1  ;;  %11553 = vmatprep.subr.bf16.mxu1 %v17070_v29  ;;  %v17115_v29 = vld [vmem:[#allocation37 + $0x270] sm:$0xff]  }
0x2bd0   : > { %v11042_v42 = vor.u32 %v11041_v8, %v11037_v6 }
0x2bd1   : > { %11554 = vmatpush1.bf16.msra.mxu1 %v17068_v17  ;;  %v17117_v17 = vld [vmem:[#allocation37 + $0x230] sm:$0xff]  }
0x2bd2   : > { %16004 = vmatmul.mubr.bf16.vlgmr.msra.gmra.mxu0 %v11042_v42  ;;  %11555 = vmatprep.subr.bf16.mxu1 %v17076_v45  ;;  %v17120_v45 = vld [vmem:[#allocation37 + $0x1a8] sm:$0xff]  }
0x2bd3   : > { %16028 = vmatpush3.bf16.msra.mxu0 %v17054_v15  ;;  %16043 = vmatprep.mubr.msk.bf16.mxu0 %vm18333_vm13, %v18332_v62 }
0x2bd4   : > { %16029 = vmatprep.subr.bf16.mxu0 %v18332_v62 }
0x2bd5   : > { %11556 = vmatpush1.bf16.msra.mxu1 %v17074_v30  ;;  %v17122_v30 = vld [vmem:[#allocation37 + $0x1e0] sm:$0xff]  }
0x2bd6   : > { %11557 = vmatprep.subr.bf16.mxu1 %v17082_v26  ;;  %v17124_v26 = vld [vmem:[#allocation37 + $0x1a0] sm:$0xff]  }
0x2bd7   : > { %16030 = vmatpush3.bf16.msra.mxu0 %v17055_v54  ;;  %v11332_v54 = vrot.slane %v19971_v59, %v19242_v58  ;;  %v17118_v59 = vld [vmem:[#allocation37 + $0x1e8] sm:$0xff]  }
0x2bd8   : > { %16031 = vmatprep.subr.bf16.mxu0 %v18332_v62 }
0x2bd9   : > { %11558 = vmatpush1.bf16.msra.mxu1 %v17080_v31  ;;  %v17126_v31 = vld [vmem:[#allocation37 + $0x1d8] sm:$0xff]  }
0x2bda   : > { %11559 = vmatprep.subr.bf16.mxu1 %v17088_v11  ;;  %v17128_v11 = vld [vmem:[#allocation37 + $0x198] sm:$0xff]  }
0x2bdb   : > { %16032 = vmatpush3.bf16.msra.mxu0 %v17056_v53 }
0x2bdc   : > { %16033 = vmatprep.subr.bf16.mxu0 %v18332_v62 }
0x2bdd   : > { %11560 = vmatpush1.bf16.msra.mxu1 %v17086_v61  ;;  %v17130_v61 = vld [vmem:[#allocation37 + $0x1d0] sm:$0xff]  }
0x2bde   : > { %11561 = vmatprep.subr.bf16.mxu1 %v17094_v39  ;;  %v17132_v39 = vld [vmem:[#allocation37 + $0x190] sm:$0xff]  }
0x2bdf   : > { %16034 = vmatpush3.bf16.msra.mxu0 %v17057_v9 }
0x2be0   : > { %16035 = vmatprep.subr.bf16.mxu0 %v18332_v62 }
0x2be1   : > { %11562 = vmatpush1.bf16.msra.mxu1 %v17092_v43  ;;  %v17134_v43 = vld [vmem:[#allocation37 + $0x1c8] sm:$0xff]  }
0x2be2   : > { %11563 = vmatprep.subr.bf16.mxu1 %v17100_v24  ;;  %v17136_v24 = vld [vmem:[#allocation37 + $0x188] sm:$0xff]  }
0x2be3   : > { %16036 = vmatpush3.bf16.msra.mxu0 %v17058_v28 }
0x2be4   : > { %16037 = vmatprep.subr.bf16.mxu0 %v18332_v62 }
0x2be5   : > { %11564 = vmatpush1.bf16.msra.mxu1 %v17098_v46  ;;  %v17138_v46 = vld [vmem:[#allocation37 + $0x1c0] sm:$0xff]  }
0x2be6   : > { %11565 = vmatprep.subr.bf16.mxu1 %v17106_v52  ;;  %v17140_v52 = vld [vmem:[#allocation37 + $0x180] sm:$0xff]  }
0x2be7   : > { %16038 = vmatpush3.bf16.msra.mxu0 %v17059_v51 }
0x2be8   : > { %16039 = vmatprep.subr.bf16.mxu0 %v18332_v62 }
0x2be9   : > { %11566 = vmatpush1.bf16.msra.mxu1 %v17104_v50  ;;  %v11369_v50 = vld [vmem:[#allocation44 + $0x4] sm:$0xf] }
0x2bea   : > { %15115 = vmatprep.subr.bf16.mxu1 %v17110_v25  ;;  %v11382_v25 = vrot.slane %v11369_v50, %v19919_v27 }
0x2beb   : > { %16040 = vmatpush3.bf16.msra.mxu0 %v17060_v40 }
0x2bec   : > { %16041 = vmatprep.subr.bf16.mxu0 %v18332_v62 }
0x2bef   : > { %16042 = vmatpush3.bf16.msra.mxu0 %v17061_v44 }
0x2bf0   : > { %11592 = vmatprep.subr.bf16.mxu0 %v17067_v22  ;;  %v17114_v22 = vld [vmem:[#allocation37 + $0x1f0] sm:$0xff]  }
0x2bf2   : > { %16044 = vmatmul.mubr.bf16.vlgmr.msra.gmra.mxu0 %v11238_v2 }
0x2bf3   : > { %11624 = vmatprep.mubr.bf16.mxu0 %v18334_v0  ;;  %11593 = vmatpush1.bf16.msra.mxu0 %v17065_v60 }
0x2bf4   : > { %11594 = vmatprep.subr.bf16.mxu0 %v17073_v16  ;;  %v17116_v16 = vld [vmem:[#allocation37 + $0x1b0] sm:$0xff]  }
0x2bf7   : > { %11595 = vmatpush1.bf16.msra.mxu0 %v17071_v13  ;;  %v17119_v13 = vld [vmem:[#allocation37 + $0x268] sm:$0xff]  }
0x2bf8   : > { %11596 = vmatprep.subr.bf16.mxu0 %v17079_v19  ;;  %v17121_v19 = vld [vmem:[#allocation37 + $0x228] sm:$0xff]  }
0x2bfb   : > { %11597 = vmatpush1.bf16.msra.mxu0 %v17077_v36  ;;  %v17123_v36 = vld [vmem:[#allocation37 + $0x260] sm:$0xff]  }
0x2bfc   : > { %11598 = vmatprep.subr.bf16.mxu0 %v17085_v56  ;;  %v17125_v56 = vld [vmem:[#allocation37 + $0x220] sm:$0xff]  }
0x2bff   : > { %11599 = vmatpush1.bf16.msra.mxu0 %v17083_v34  ;;  %v17127_v34 = vld [vmem:[#allocation37 + $0x258] sm:$0xff]  }
0x2c00   : > { %11600 = vmatprep.subr.bf16.mxu0 %v17091_v14  ;;  %v17129_v14 = vld [vmem:[#allocation37 + $0x218] sm:$0xff]  }
0x2c03   : > { %11601 = vmatpush1.bf16.msra.mxu0 %v17089_v20  ;;  %v17131_v20 = vld [vmem:[#allocation37 + $0x250] sm:$0xff]  }
0x2c04   : > { %11602 = vmatprep.subr.bf16.mxu0 %v17097_v41  ;;  %v17133_v41 = vld [vmem:[#allocation37 + $0x210] sm:$0xff]  }
0x2c07   : > { %11603 = vmatpush1.bf16.msra.mxu0 %v17095_v33  ;;  %v17135_v33 = vld [vmem:[#allocation37 + $0x248] sm:$0xff]  }
0x2c08   : > { %11604 = vmatprep.subr.bf16.mxu0 %v17103_v38  ;;  %v17137_v38 = vld [vmem:[#allocation37 + $0x208] sm:$0xff]  }
0x2c0b   : > { %11605 = vmatpush1.bf16.msra.mxu0 %v17101_v1  ;;  %v17139_v1 = vld [vmem:[#allocation37 + $0x240] sm:$0xff]  }
0x2c0c   : > { %11606 = vmatprep.subr.bf16.mxu0 %v17109_v37  ;;  %v17141_v37 = vld [vmem:[#allocation37 + $0x200] sm:$0xff]  }
0x2c0f   : > { %11607 = vmatpush1.bf16.msra.mxu0 %v17107_v57  ;;  %v11374_v57 = vrot.slane %v11369_v50, %v19212_v7 }
0x2c10   : > { %15137 = vmatprep.subr.bf16.mxu0 %v17111_v55  ;;  %v11378_v55 = vrot.slane %v11369_v50, %v19242_v58 }
0x2c8c   : > { %v11214_v35 = vpop.f32.mrf.mxu1 }
0x2c8e   : > { %v16025_v3 = vpop.f32.mrf.mxu1 }
0x2c90   : > { %v11217_v4 = vpop.f32.mrf.mxu1 }
0x2c92   : > { %v11126_v47 = vpop.f32.mrf.mxu0  ;;  %v16026_v49 = vpop.f32.mrf.mxu1 }
0x2c93   : > { %v11215_v42 = vadd.f32 %v11214_v35, %v11126_v47  ;;  %v11386_v35 = vrot.slane %v11369_v50, %v19922_v48 }
0x2c94   : > { %v16005_v6 = vpop.f32.mrf.mxu0 }
0x2c96   : > { %v11129_v8 = vpop.f32.mrf.mxu0 }
0x2c98   : > { %v16006_v15 = vpop.f32.mrf.mxu0 }
0x2cb2   : > { %v11322_v53 = vpop.f32.mrf.mxu0 }
0x2cb3   : > { %v11328_v9 = vadd.f32 %v11322_v53, %v11215_v42 }
0x2cb4   : > { %v16045_v28 = vpop.f32.mrf.mxu0 }
0x2cb5   : > { %v11333_v51 = vadd.f32 %v11332_v54, %v11328_v9 }
0x2cb6   : > { %v11325_v40 = vpop.f32.mrf.mxu0 }
0x2cb7   : > { %v11334_v44 = vmax.f32 %v11333_v51, 0.0 }
0x2cb8   : > { %v16046_v2 = vpop.f32.mrf.mxu0 }
0x2cb9   : > { %v11335_v60 = vpack.c.bf16 %v11334_v44, %v11334_v44 }
0x2cbb   : > { %11584 = vmatmul.mubr.bf16.vlgmr.msra.gmra.mxu1 %v11335_v60  ;;  %11625 = vmatmul.mubr.bf16.vlgmr.msra.gmra.mxu0 %v11335_v60 }
0x2cbc   : > { %15116 = vmatpush3.bf16.msra.mxu1 %v17112_v5  ;;  %15138 = vmatpush3.bf16.msra.mxu0 %v17113_v18 }
0x2cbd   : > { %15117 = vmatprep.subr.bf16.mxu1 %v17114_v22  ;;  %15139 = vmatprep.subr.bf16.mxu0 %v17115_v29  ;;  %v17142_v29 = vld [vmem:[#allocation38 + $0x1b8] sm:$0xff]  }
0x2cc0   : > { %15118 = vmatpush3.bf16.msra.mxu1 %v17116_v16  ;;  %15140 = vmatpush3.bf16.msra.mxu0 %v17117_v17  ;;  %v17143_v17 = vld [vmem:[#allocation38 + $0x1b0] sm:$0xff]  }
0x2cc1   : > { %15119 = vmatprep.subr.bf16.mxu1 %v17118_v59  ;;  %15141 = vmatprep.subr.bf16.mxu0 %v17119_v13  ;;  %v17146_v59 = vld [vmem:[#allocation38 + $0x1f0] sm:$0xff]   ;;  %v17145_v13 = vld [vmem:[#allocation38 + $0x1a8] sm:$0xff]  }
0x2cc4   : > { %15120 = vmatpush3.bf16.msra.mxu1 %v17120_v45  ;;  %15142 = vmatpush3.bf16.msra.mxu0 %v17121_v19  ;;  %v17147_v45 = vld [vmem:[#allocation38 + $0x1a0] sm:$0xff]   ;;  %v17148_v19 = vld [vmem:[#allocation38 + $0x1e8] sm:$0xff]  }
0x2cc5   : > { %15121 = vmatprep.subr.bf16.mxu1 %v17122_v30  ;;  %15143 = vmatprep.subr.bf16.mxu0 %v17123_v36  ;;  %v17149_v30 = vld [vmem:[#allocation38 + $0x198] sm:$0xff]   ;;  %v17150_v36 = vld [vmem:[#allocation38 + $0x1e0] sm:$0xff]  }
0x2cc8   : > { %15122 = vmatpush3.bf16.msra.mxu1 %v17124_v26  ;;  %15144 = vmatpush3.bf16.msra.mxu0 %v17125_v56  ;;  %v17151_v26 = vld [vmem:[#allocation38 + $0x190] sm:$0xff]   ;;  %v17152_v56 = vld [vmem:[#allocation38 + $0x1d8] sm:$0xff]  }
0x2cc9   : > { %15123 = vmatprep.subr.bf16.mxu1 %v17126_v31  ;;  %15145 = vmatprep.subr.bf16.mxu0 %v17127_v34  ;;  %v17153_v31 = vld [vmem:[#allocation38 + $0x188] sm:$0xff]   ;;  %v17154_v34 = vld [vmem:[#allocation38 + $0x1d0] sm:$0xff]  }
0x2ccc   : > { %15124 = vmatpush3.bf16.msra.mxu1 %v17128_v11  ;;  %15146 = vmatpush3.bf16.msra.mxu0 %v17129_v14  ;;  %v17155_v11 = vld [vmem:[#allocation38 + $0x180] sm:$0xff]   ;;  %v17156_v14 = vld [vmem:[#allocation38 + $0x1c8] sm:$0xff]  }
0x2ccd   : > { %15125 = vmatprep.subr.bf16.mxu1 %v17130_v61  ;;  %15147 = vmatprep.subr.bf16.mxu0 %v17131_v20  ;;  %v17157_v61 = vld [vmem:[#allocation38 + $0x1c0] sm:$0xff]  }
0x2cce   : > { %v20037_v20 = vld [vmem:[#allocation43 + $0x4] sm:$0x3] }
0x2cd0   : > { %15126 = vmatpush3.bf16.msra.mxu1 %v17132_v39  ;;  %15148 = vmatpush3.bf16.msra.mxu0 %v17133_v41 }
0x2cd1   : > { %15127 = vmatprep.subr.bf16.mxu1 %v17134_v43  ;;  %15149 = vmatprep.subr.bf16.mxu0 %v17135_v33  ;;  %v11714_v43 = vrot.slane %v20037_v20, %v19212_v7 }
0x2cd4   : > { %15128 = vmatpush3.bf16.msra.mxu1 %v17136_v24  ;;  %15150 = vmatpush3.bf16.msra.mxu0 %v17137_v38 }
0x2cd5   : > { %15129 = vmatprep.subr.bf16.mxu1 %v17138_v46  ;;  %15151 = vmatprep.subr.bf16.mxu0 %v17139_v1 }
0x2cd8   : > { %15130 = vmatpush3.bf16.msra.mxu1 %v17140_v52  ;;  %15152 = vmatpush3.bf16.msra.mxu0 %v17141_v37 }
0x2cd9   : > { %16067 = vmatprep.subr.bf16.mxu0 %v18332_v62  ;;  %16047 = vmatprep.subr.bf16.mxu1 %v18332_v62 }
0x2d7b   : > { %v11585_v3 = vpop.f32.mrf.mxu1  ;;  %v11626_v4 = vpop.f32.mrf.mxu0 }
0x2d7c   : > { %v11586_v47 = vadd.f32 %v11585_v3, %v11374_v57  ;;  %v11627_v49 = vadd.f32 %v11626_v4, %v11382_v25 }
0x2d7d   : > { %v11587_v6 = vpop.f32.mrf.mxu1  ;;  %v11628_v8 = vpop.f32.mrf.mxu0 }
0x2d7e   : > { %v11633_v15 = vadd.f32 %v11586_v47, %v19936_v63  ;;  %v11635_v42 = vadd.f32 %v11627_v49, %v19938_v10  ;;  %v11588_v54 = vadd.f32 %v11587_v6, %v11378_v55  ;;  %v11629_v53 = vadd.f32 %v11628_v8, %v11386_v35 }
0x2d7f   : > { %v11589_v9 = vpop.f32.mrf.mxu1  ;;  %v11630_v28 = vpop.f32.mrf.mxu0 }
0x2d80   : > { %v11634_v51 = vadd.f32 %v11588_v54, %v19940_v23  ;;  %v11636_v40 = vadd.f32 %v11629_v53, %v19942_v21  ;;  %v20002_v44 = vmax.f32 %v11633_v15, 0.0  ;;  %v20004_v2 = vmax.f32 %v11635_v42, 0.0  ;;  %v17144_v23 = vld [vmem:[#allocation38 + $0x1f8] sm:$0xff]   ;;  %v17159_v28 = vld [vmem:[#allocation38 + $0x230] sm:$0xff]  }
0x2d81   : > { %v11590_v5 = vpop.f32.mrf.mxu1  ;;  %v11631_v18 = vpop.f32.mrf.mxu0  ;;  %v17158_v53 = vld [vmem:[#allocation38 + $0x238] sm:$0xff]  }
0x2d82   : > { %v20006_v60 = vmax.f32 %v11634_v51, 0.0  ;;  %v20008_v22 = vmax.f32 %v11636_v40, 0.0  ;;  %v11643_v21 = vpack.c.bf16 %v20002_v44, %v20002_v44  ;;  %v11645_v16 = vpack.c.bf16 %v20004_v2, %v20004_v2  ;;  %v17162_v51 = vld [vmem:[#allocation38 + $0x218] sm:$0xff]   ;;  %v17163_v40 = vld [vmem:[#allocation38 + $0x210] sm:$0xff]   ;;  %v17164_v5 = vld [vmem:[#allocation38 + $0x208] sm:$0xff]  }
0x2d83   : > { %v17165_v18 = vld [vmem:[#allocation38 + $0x200] sm:$0xff]  }
0x2d84   : > { %v11644_v63 = vpack.c.bf16 %v20006_v60, %v20006_v60  ;;  %v11646_v10 = vpack.c.bf16 %v20008_v22, %v20008_v22 }
0x2d86   : > { %11939 = vmatprep.mubr.bf16.mxu1 %v11644_v63  ;;  %11979 = vmatprep.mubr.bf16.mxu0 %v11646_v10  ;;  %v17166_v10 = vld [vmem:[#allocation40 + $0x2e0] ss:$16 sps:$4 sm:$0xff]  }
0x2d87   : > { %11940 = vmatmul.mubr.bf16.vlgmr.msra.gmra.mxu1 %v11643_v21  ;;  %11980 = vmatmul.mubr.bf16.vlgmr.msra.gmra.mxu0 %v11645_v16  ;;  %v17171_v21 = vld [vmem:[#allocation40 + $0x2ec] ss:$16 sps:$4 sm:$0xff]   ;;  %v17174_v16 = vld [vmem:[#allocation40 + $0x2c4] ss:$16 sps:$4 sm:$0xff]  }
0x2d88   : > { %16068 = vmatpush3.bf16.msra.mxu0 %v17142_v29  ;;  %16048 = vmatpush3.bf16.msra.mxu1 %v17144_v23  ;;  %v17168_v29 = vld [vmem:[#allocation40 + $0x2e4] ss:$16 sps:$4 sm:$0xff]   ;;  %v17169_v23 = vld [vmem:[#allocation40 + $0x2e8] ss:$16 sps:$4 sm:$0xff]  }
0x2d89   : > { %16069 = vmatprep.subr.bf16.mxu0 %v18332_v62  ;;  %16049 = vmatprep.subr.bf16.mxu1 %v18332_v62 }
0x2d8a   : > { %16083 = vmatprep.mubr.msk.bf16.mxu0 %vm18333_vm13, %v18332_v62  ;;  %16063 = vmatprep.mubr.msk.bf16.mxu1 %vm18333_vm13, %v18332_v62 }
0x2d8c   : > { %16070 = vmatpush3.bf16.msra.mxu0 %v17143_v17  ;;  %16050 = vmatpush3.bf16.msra.mxu1 %v17146_v59  ;;  %v17177_v17 = vld [vmem:[#allocation40 + $0x2cc] ss:$16 sps:$4 sm:$0xff]   ;;  %v17172_v59 = vld [vmem:[#allocation40 + $0x2c0] ss:$16 sps:$4 sm:$0xff]  }
0x2d8d   : > { %16071 = vmatprep.subr.bf16.mxu0 %v18332_v62  ;;  %16051 = vmatprep.subr.bf16.mxu1 %v18332_v62 }
0x2d90   : > { %16072 = vmatpush3.bf16.msra.mxu0 %v17145_v13  ;;  %16052 = vmatpush3.bf16.msra.mxu1 %v17148_v19  ;;  %v17175_v13 = vld [vmem:[#allocation40 + $0x2c8] ss:$16 sps:$4 sm:$0xff]   ;;  %v17183_v19 = vld [vmem:[#allocation40 + $0x2ac] ss:$16 sps:$4 sm:$0xff]  }
0x2d91   : > { %16073 = vmatprep.subr.bf16.mxu0 %v18332_v62  ;;  %16053 = vmatprep.subr.bf16.mxu1 %v18332_v62 }
0x2d94   : > { %16074 = vmatpush3.bf16.msra.mxu0 %v17147_v45  ;;  %16054 = vmatpush3.bf16.msra.mxu1 %v17150_v36  ;;  %v17180_v45 = vld [vmem:[#allocation40 + $0x2a4] ss:$16 sps:$4 sm:$0xff]  }
0x2d95   : > { %16075 = vmatprep.subr.bf16.mxu0 %v18332_v62  ;;  %16055 = vmatprep.subr.bf16.mxu1 %v18332_v62  ;;  %v17186_v36 = vld [vmem:[#allocation40 + $0x284] ss:$16 sps:$4 sm:$0xff]  }
0x2d98   : > { %16076 = vmatpush3.bf16.msra.mxu0 %v17149_v30  ;;  %16056 = vmatpush3.bf16.msra.mxu1 %v17152_v56  ;;  %v17178_v30 = vld [vmem:[#allocation40 + $0x2a0] ss:$16 sps:$4 sm:$0xff]  }
0x2d99   : > { %16077 = vmatprep.subr.bf16.mxu0 %v18332_v62  ;;  %16057 = vmatprep.subr.bf16.mxu1 %v18332_v62  ;;  %v17184_v56 = vld [vmem:[#allocation40 + $0x280] ss:$16 sps:$4 sm:$0xff]  }
0x2d9c   : > { %16078 = vmatpush3.bf16.msra.mxu0 %v17151_v26  ;;  %16058 = vmatpush3.bf16.msra.mxu1 %v17154_v34  ;;  %v17189_v26 = vld [vmem:[#allocation40 + $0x28c] ss:$16 sps:$4 sm:$0xff]   ;;  %v17192_v34 = vld [vmem:[#allocation40 + $0x264] ss:$16 sps:$4 sm:$0xff]  }
0x2d9d   : > { %16079 = vmatprep.subr.bf16.mxu0 %v18332_v62  ;;  %16059 = vmatprep.subr.bf16.mxu1 %v18332_v62 }
0x2da0   : > { %16080 = vmatpush3.bf16.msra.mxu0 %v17153_v31  ;;  %16060 = vmatpush3.bf16.msra.mxu1 %v17156_v14  ;;  %v17187_v31 = vld [vmem:[#allocation40 + $0x288] ss:$16 sps:$4 sm:$0xff]   ;;  %v17190_v14 = vld [vmem:[#allocation40 + $0x260] ss:$16 sps:$4 sm:$0xff]  }
0x2da1   : > { %16081 = vmatprep.subr.bf16.mxu0 %v18332_v62  ;;  %16061 = vmatprep.subr.bf16.mxu1 %v18332_v62 }
0x2da4   : > { %16082 = vmatpush3.bf16.msra.mxu0 %v17155_v11  ;;  %16062 = vmatpush3.bf16.msra.mxu1 %v17157_v61  ;;  %v17195_v11 = vld [vmem:[#allocation40 + $0x26c] ss:$16 sps:$4 sm:$0xff]   ;;  %v17193_v61 = vld [vmem:[#allocation40 + $0x268] ss:$16 sps:$4 sm:$0xff]  }
0x2da5   : > { %16087 = vmatprep.subr.bf16.mxu1 %v18332_v62  ;;  %12548 = vmatprep.subr.bf16.mxu0 %v17168_v29  ;;  %v17219_v29 = vld [vmem:[#allocation47 + $0xf0] sm:$0xff]  }
0x2e47   : > { %v15131_v39 = vpop.f32.mrf.mxu1  ;;  %v15153_v41 = vpop.f32.mrf.mxu0 }
0x2e49   : > { %v15132_v33 = vpop.f32.mrf.mxu1  ;;  %v15154_v24 = vpop.f32.mrf.mxu0 }
0x2e4a   : > { %v15133_v38 = vadd.f32 %v15132_v33, %v15131_v39  ;;  %v15155_v37 = vadd.f32 %v15154_v24, %v15153_v41  ;;  %v17198_v39 = vld [vmem:[#allocation40 + $0x244] ss:$16 sps:$4 sm:$0xff]   ;;  %v17201_v41 = vld [vmem:[#allocation40 + $0x24c] ss:$16 sps:$4 sm:$0xff]   ;;  %v17199_v33 = vld [vmem:[#allocation40 + $0x248] ss:$16 sps:$4 sm:$0xff]  }
0x2e4b   : > { %v15134_v46 = vpop.f32.mrf.mxu1  ;;  %v15156_v1 = vpop.f32.mrf.mxu0  ;;  %v17204_v24 = vld [vmem:[#allocation40 + $0x224] ss:$16 sps:$4 sm:$0xff]  }
0x2e4c   : > { %v11942_v52 = vadd.f32 %v15133_v38, %v11714_v43  ;;  %v17196_v43 = vld [vmem:[#allocation40 + $0x240] ss:$16 sps:$4 sm:$0xff]   ;;  %v17207_v38 = vld [vmem:[#allocation40 + $0x22c] ss:$16 sps:$4 sm:$0xff]   ;;  %v17205_v1 = vld [vmem:[#allocation40 + $0x228] ss:$16 sps:$4 sm:$0xff]  }
0x2e4d   : > { %v15135_v50 = vpop.f32.mrf.mxu1  ;;  %v15157_v57 = vpop.f32.mrf.mxu0  ;;  %v17202_v46 = vld [vmem:[#allocation40 + $0x220] ss:$16 sps:$4 sm:$0xff]  }
0x2e4e   : > { %v11982_v25 = vadd.f32 %v15155_v37, %v11942_v52  ;;  %v17210_v52 = vld [vmem:[#allocation40 + $0x204] ss:$16 sps:$4 sm:$0xff]   ;;  %v17213_v37 = vld [vmem:[#allocation40 + $0x20c] ss:$16 sps:$4 sm:$0xff]   ;;  %v17208_v50 = vld [vmem:[#allocation40 + $0x200] ss:$16 sps:$4 sm:$0xff]  }
0x2e4f   : > { %v17211_v57 = vld [vmem:[#allocation40 + $0x208] ss:$16 sps:$4 sm:$0xff]  }
0x2e50   : > { %v11987_v55 = vmax.f32 %v11982_v25, 0.0  ;;  %v17214_v25 = vld [vmem:[#allocation47 + $0x78] sm:$0xff]  }
0x2e52   : > { %v11988_v35 = vpack.c.bf16 %v11987_v55, %v11987_v55  ;;  %v17215_v55 = vld [vmem:[#allocation47 + $0xf8] sm:$0xff]  }
0x2e54   : > { %v11990_v3 = vshrl.u32 %v11988_v35, 16  ;;  %v11993_v47 = vshll.u32 %v11988_v35, 16 }
0x2e56   : > { %v11992_v4 = vrot.slane %v11990_v3, 7 }
0x2e58   : > { %v11995_v49 = vor.u32 %v11993_v47, %v11992_v4 }
0x2e5a   : > { %v11997_v6 = vsel %vm19216_vm1, 0, %v11995_v49 }
0x2e5b   : > { %v11998_v8 = vsel %vm18968_vm5, %v11997_v6, 0 }
0x2e5c   : > { %v12036_v15 = vshll.u32 %v11998_v8, 16  ;;  %16084 = vmatmul.mubr.bf16.vlgmr.msra.gmra.mxu0 %v11998_v8  ;;  %v12034_v42 = vshrl.u32 %v11998_v8, 16  ;;  %v12235_v63 = vrot.slane %v11998_v8, 1 }
0x2e5d   : > { %12580 = vmatprep.mubr.bf16.mxu0 %v18334_v0  ;;  %12549 = vmatpush1.bf16.msra.mxu0 %v17166_v10  ;;  %v17218_v10 = vld [vmem:[#allocation47 + $0x70] sm:$0xff]  }
0x2e5e   : > { %v12038_v54 = vrot.slane %v12036_v15, 1  ;;  %12550 = vmatprep.subr.bf16.mxu0 %v17174_v16  ;;  %v17223_v16 = vld [vmem:[#allocation47 + $0xe8] sm:$0xff]  }
0x2e60   : > { %v12039_v9 = vor.u32 %v12038_v54, %v12034_v42  ;;  %v12329_v54 = vrot.slane %v20037_v20, %v19242_v58  ;;  %v17221_v20 = vld [vmem:[#allocation47 + $0xb0] sm:$0xff]  }
0x2e61   : > { %12551 = vmatpush1.bf16.msra.mxu0 %v17172_v59  ;;  %v17225_v59 = vld [vmem:[#allocation47 + $0xa8] sm:$0xff]  }
0x2e62   : > { %16064 = vmatmul.mubr.bf16.vlgmr.msra.gmra.mxu1 %v12039_v9  ;;  %12552 = vmatprep.subr.bf16.mxu0 %v17180_v45  ;;  %v17227_v45 = vld [vmem:[#allocation47 + $0xe0] sm:$0xff]  }
0x2e63   : > { %16088 = vmatpush3.bf16.msra.mxu1 %v17158_v53  ;;  %16103 = vmatprep.mubr.msk.bf16.mxu1 %vm18333_vm13, %v18332_v62 }
0x2e64   : > { %16089 = vmatprep.subr.bf16.mxu1 %v18332_v62 }
0x2e65   : > { %12553 = vmatpush1.bf16.msra.mxu0 %v17178_v30  ;;  %v17229_v30 = vld [vmem:[#allocation47 + $0xa0] sm:$0xff]  }
0x2e66   : > { %12554 = vmatprep.subr.bf16.mxu0 %v17186_v36  ;;  %v17231_v36 = vld [vmem:[#allocation47 + $0xd8] sm:$0xff]  }
0x2e67   : > { %16090 = vmatpush3.bf16.msra.mxu1 %v17159_v28 }
0x2e68   : > { %16091 = vmatprep.subr.bf16.mxu1 %v18332_v62 }
0x2e69   : > { %12555 = vmatpush1.bf16.msra.mxu0 %v17184_v56  ;;  %v17233_v56 = vld [vmem:[#allocation47 + $0x98] sm:$0xff]  }
0x2e6a   : > { %12556 = vmatprep.subr.bf16.mxu0 %v17192_v34  ;;  %v17235_v34 = vld [vmem:[#allocation47 + $0xd0] sm:$0xff]  }
0x2e6b   : > { %16092 = vmatpush3.bf16.msra.mxu1 %v17160_v12 }
0x2e6c   : > { %16093 = vmatprep.subr.bf16.mxu1 %v18332_v62 }
0x2e6d   : > { %12557 = vmatpush1.bf16.msra.mxu0 %v17190_v14  ;;  %v17237_v14 = vld [vmem:[#allocation47 + $0x90] sm:$0xff]  }
0x2e6e   : > { %12558 = vmatprep.subr.bf16.mxu0 %v17198_v39  ;;  %v17239_v39 = vld [vmem:[#allocation47 + $0xc8] sm:$0xff]  }
0x2e6f   : > { %16094 = vmatpush3.bf16.msra.mxu1 %v17161_v32 }
0x2e70   : > { %16095 = vmatprep.subr.bf16.mxu1 %v18332_v62 }
0x2e71   : > { %12559 = vmatpush1.bf16.msra.mxu0 %v17196_v43  ;;  %v17241_v43 = vld [vmem:[#allocation47 + $0x88] sm:$0xff]  }
0x2e72   : > { %12560 = vmatprep.subr.bf16.mxu0 %v17204_v24  ;;  %v17243_v24 = vld [vmem:[#allocation47 + $0xc0] sm:$0xff]  }
0x2e73   : > { %16096 = vmatpush3.bf16.msra.mxu1 %v17162_v51 }
0x2e74   : > { %16097 = vmatprep.subr.bf16.mxu1 %v18332_v62 }
0x2e75   : > { %12561 = vmatpush1.bf16.msra.mxu0 %v17202_v46  ;;  %v17245_v46 = vld [vmem:[#allocation47 + $0x80] sm:$0xff]  }
0x2e76   : > { %12562 = vmatprep.subr.bf16.mxu0 %v17210_v52 }
0x2e77   : > { %16098 = vmatpush3.bf16.msra.mxu1 %v17163_v40 }
0x2e78   : > { %16099 = vmatprep.subr.bf16.mxu1 %v18332_v62 }
0x2e79   : > { %12563 = vmatpush1.bf16.msra.mxu0 %v17208_v50 }
0x2e7a   : > { %15186 = vmatprep.subr.bf16.mxu0 %v17214_v25 }
0x2e7b   : > { %16100 = vmatpush3.bf16.msra.mxu1 %v17164_v5  ;;  %v17216_v5 = vld [vmem:[#allocation47 + $0x38] sm:$0xff]  }
0x2e7c   : > { %16101 = vmatprep.subr.bf16.mxu1 %v18332_v62 }
0x2e7f   : > { %16102 = vmatpush3.bf16.msra.mxu1 %v17165_v18  ;;  %v17217_v18 = vld [vmem:[#allocation47 + $0xb8] sm:$0xff]  }
0x2e80   : > { %12589 = vmatprep.subr.bf16.mxu1 %v17171_v21  ;;  %v17222_v21 = vld [vmem:[#allocation47 + $0x68] sm:$0xff]  }
0x2e82   : > { %16104 = vmatmul.mubr.bf16.vlgmr.msra.gmra.mxu1 %v12235_v63 }
0x2e83   : > { %12621 = vmatprep.mubr.bf16.mxu1 %v18334_v0  ;;  %12590 = vmatpush1.bf16.msra.mxu1 %v17169_v23  ;;  %v17181_v0 = vld [vmem:[#allocation40 + $0x2a8] ss:$16 sps:$4 sm:$0xff]  }
0x2e84   : > { %12591 = vmatprep.subr.bf16.mxu1 %v17177_v17  ;;  %v17220_v23 = vld [vmem:[#allocation47 + $0x30] sm:$0xff]   ;;  %v17224_v17 = vld [vmem:[#allocation47 + $0x28] sm:$0xff]  }
0x2e87   : > { %12592 = vmatpush1.bf16.msra.mxu1 %v17175_v13  ;;  %v17226_v13 = vld [vmem:[#allocation47 + $0x60] sm:$0xff]  }
0x2e88   : > { %12593 = vmatprep.subr.bf16.mxu1 %v17183_v19  ;;  %v17228_v19 = vld [vmem:[#allocation47 + $0x20] sm:$0xff]  }
0x2e8b   : > { %12594 = vmatpush1.bf16.msra.mxu1 %v17181_v0  ;;  %v17230_v0 = vld [vmem:[#allocation47 + $0x58] sm:$0xff]  }
0x2e8c   : > { %12595 = vmatprep.subr.bf16.mxu1 %v17189_v26  ;;  %v17232_v26 = vld [vmem:[#allocation47 + $0x18] sm:$0xff]  }
0x2e8f   : > { %12596 = vmatpush1.bf16.msra.mxu1 %v17187_v31  ;;  %v17234_v31 = vld [vmem:[#allocation47 + $0x50] sm:$0xff]  }
0x2e90   : > { %12597 = vmatprep.subr.bf16.mxu1 %v17195_v11  ;;  %v17236_v11 = vld [vmem:[#allocation47 + $0x10] sm:$0xff]  }
0x2e93   : > { %12598 = vmatpush1.bf16.msra.mxu1 %v17193_v61  ;;  %v17238_v61 = vld [vmem:[#allocation47 + $0x48] sm:$0xff]  }
0x2e94   : > { %12599 = vmatprep.subr.bf16.mxu1 %v17201_v41  ;;  %v17240_v41 = vld [vmem:[#allocation47 + $0x8] sm:$0xff]  }
0x2e97   : > { %12600 = vmatpush1.bf16.msra.mxu1 %v17199_v33  ;;  %v17242_v33 = vld [vmem:[#allocation47 + $0x40] sm:$0xff]  }
0x2e98   : > { %12601 = vmatprep.subr.bf16.mxu1 %v17207_v38  ;;  %v17244_v38 = vld [vmem:[#allocation47] sm:$0xff]  }
0x2e9b   : > { %12602 = vmatpush1.bf16.msra.mxu1 %v17205_v1  ;;  %v12366_v1 = vld [vmem:[#allocation44 + $0x8] sm:$0xf] }
0x2e9c   : > { %12603 = vmatprep.subr.bf16.mxu1 %v17213_v37  ;;  %v12371_v52 = vrot.slane %v12366_v1, %v19212_v7  ;;  %v12379_v37 = vrot.slane %v12366_v1, %v19919_v27  ;;  %v12375_v50 = vrot.slane %v12366_v1, %v19242_v58 }
0x2e9f   : > { %12604 = vmatpush1.bf16.msra.mxu1 %v17211_v57  ;;  %v12383_v57 = vrot.slane %v12366_v1, %v19922_v48  ;;  %v12740_v1 = vld [vmem:[#allocation49] sm:$0x1] }
0x2ea0   : > { %15208 = vmatprep.subr.bf16.mxu1 %v17215_v55 }
0x2f1c   : > { %v12211_v35 = vpop.f32.mrf.mxu0 }
0x2f1e   : > { %v16085_v3 = vpop.f32.mrf.mxu0 }
0x2f20   : > { %v12214_v4 = vpop.f32.mrf.mxu0 }
0x2f22   : > { %v12123_v47 = vpop.f32.mrf.mxu1  ;;  %v16086_v49 = vpop.f32.mrf.mxu0 }
0x2f23   : > { %v12212_v42 = vadd.f32 %v12211_v35, %v12123_v47 }
0x2f24   : > { %v16065_v6 = vpop.f32.mrf.mxu1 }
0x2f26   : > { %v12126_v8 = vpop.f32.mrf.mxu1 }
0x2f28   : > { %v16066_v15 = vpop.f32.mrf.mxu1 }
0x2f42   : > { %v12319_v53 = vpop.f32.mrf.mxu1 }
0x2f43   : > { %v12325_v9 = vadd.f32 %v12319_v53, %v12212_v42 }
0x2f44   : > { %v16105_v28 = vpop.f32.mrf.mxu1 }
0x2f45   : > { %v12330_v12 = vadd.f32 %v12329_v54, %v12325_v9 }
0x2f46   : > { %v12322_v32 = vpop.f32.mrf.mxu1 }
0x2f47   : > { %v12331_v51 = vmax.f32 %v12330_v12, 0.0 }
0x2f48   : > { %v16106_v40 = vpop.f32.mrf.mxu1 }
0x2f49   : > { %v12332_v63 = vpack.c.bf16 %v12331_v51, %v12331_v51 }
0x2f4b   : > { %12581 = vmatmul.mubr.bf16.vlgmr.msra.gmra.mxu0 %v12332_v63  ;;  %12622 = vmatmul.mubr.bf16.vlgmr.msra.gmra.mxu1 %v12332_v63 }
0x2f4c   : > { %15187 = vmatpush3.bf16.msra.mxu0 %v17216_v5  ;;  %15209 = vmatpush3.bf16.msra.mxu1 %v17217_v18 }
0x2f4d   : > { %15188 = vmatprep.subr.bf16.mxu0 %v17218_v10  ;;  %15210 = vmatprep.subr.bf16.mxu1 %v17219_v29 }
0x2f50   : > { %15189 = vmatpush3.bf16.msra.mxu0 %v17220_v23  ;;  %15211 = vmatpush3.bf16.msra.mxu1 %v17221_v20 }
0x2f51   : > { %15190 = vmatprep.subr.bf16.mxu0 %v17222_v21  ;;  %15212 = vmatprep.subr.bf16.mxu1 %v17223_v16 }
0x2f54   : > { %15191 = vmatpush3.bf16.msra.mxu0 %v17224_v17  ;;  %15213 = vmatpush3.bf16.msra.mxu1 %v17225_v59 }
0x2f55   : > { %15192 = vmatprep.subr.bf16.mxu0 %v17226_v13  ;;  %15214 = vmatprep.subr.bf16.mxu1 %v17227_v45 }
0x2f58   : > { %15193 = vmatpush3.bf16.msra.mxu0 %v17228_v19  ;;  %15215 = vmatpush3.bf16.msra.mxu1 %v17229_v30 }
0x2f59   : > { %15194 = vmatprep.subr.bf16.mxu0 %v17230_v0  ;;  %15216 = vmatprep.subr.bf16.mxu1 %v17231_v36 }
0x2f5c   : > { %15195 = vmatpush3.bf16.msra.mxu0 %v17232_v26  ;;  %15217 = vmatpush3.bf16.msra.mxu1 %v17233_v56 }
0x2f5d   : > { %15196 = vmatprep.subr.bf16.mxu0 %v17234_v31  ;;  %15218 = vmatprep.subr.bf16.mxu1 %v17235_v34 }
0x2f60   : > { %15197 = vmatpush3.bf16.msra.mxu0 %v17236_v11  ;;  %15219 = vmatpush3.bf16.msra.mxu1 %v17237_v14 }
0x2f61   : > { %15198 = vmatprep.subr.bf16.mxu0 %v17238_v61  ;;  %15220 = vmatprep.subr.bf16.mxu1 %v17239_v39 }
0x2f64   : > { %15199 = vmatpush3.bf16.msra.mxu0 %v17240_v41  ;;  %15221 = vmatpush3.bf16.msra.mxu1 %v17241_v43 }
0x2f65   : > { %15200 = vmatprep.subr.bf16.mxu0 %v17242_v33  ;;  %15222 = vmatprep.subr.bf16.mxu1 %v17243_v24 }
0x2f68   : > { %15201 = vmatpush3.bf16.msra.mxu0 %v17244_v38  ;;  %15223 = vmatpush3.bf16.msra.mxu1 %v17245_v46 }
0x2f69   : > { %16107 = vmatprep.subr.bf16.mxu0 %v18332_v62  ;;  %16115 = vmatprep.subr.bf16.mxu1 %v18332_v62 }
0x300b   : > { %v12582_v25 = vpop.f32.mrf.mxu0  ;;  %v12623_v55 = vpop.f32.mrf.mxu1 }
0x300c   : > { %v12583_v35 = vadd.f32 %v12582_v25, %v12371_v52  ;;  %v12624_v3 = vadd.f32 %v12623_v55, %v12379_v37 }
0x300d   : > { %v12584_v4 = vpop.f32.mrf.mxu0  ;;  %v12625_v47 = vpop.f32.mrf.mxu1 }
0x300e   : > { %v12630_v49 = vadd.f32 %v12583_v35, %v20002_v44  ;;  %v12632_v6 = vadd.f32 %v12624_v3, %v20004_v2  ;;  %v12585_v8 = vadd.f32 %v12584_v4, %v12375_v50  ;;  %v12626_v15 = vadd.f32 %v12625_v47, %v12383_v57 }
0x300f   : > { %v12586_v42 = vpop.f32.mrf.mxu0  ;;  %v12627_v7 = vpop.f32.mrf.mxu1 }
0x3010   : > { %v12634_v54 = vmax.f32 %v12630_v49, 0.0  ;;  %v12636_v27 = vmax.f32 %v12632_v6, 0.0  ;;  %v12631_v58 = vadd.f32 %v12585_v8, %v20006_v60  ;;  %v12633_v48 = vadd.f32 %v12626_v15, %v20008_v22  ;;  %v13019_v15 = vld [vmem:[#allocation50] sm:$0x1] }
0x3011   : > { %v12587_v53 = vpop.f32.mrf.mxu0  ;;  %v12628_v9 = vpop.f32.mrf.mxu1 }
0x3012   : > { %v12639_v28 = vsel %vm1835_vm3, %v12634_v54, 0.0  ;;  %v12653_v12 = vsel %vm1835_vm3, %v12636_v27, 0.0  ;;  %v12635_v32 = vmax.f32 %v12631_v58, 0.0  ;;  %v12637_v44 = vmax.f32 %v12633_v48, 0.0  ;;  %v17246_v9 = vld [vmem:[#allocation52 + $0x8] sm:$0x1f]  }
0x3013   : > { %v12640_v51 = vrot.slane %v12639_v28, 4  ;;  %v12654_v2 = vrot.slane %v12653_v12, 4  ;;  %v20266_v58 = vmov 65535  }
0x3014   : > { %v12646_v40 = vsel %vm1835_vm3, %v12635_v32, 0.0  ;;  %v12660_v5 = vsel %vm1835_vm3, %v12637_v44, 0.0  ;;  %v13057_v48 = vsel %vm9696_vm10, 4294967295, %v20266_v58  ;;  %vm13274_vm3 = vcmask 8192  }
0x3015   : > { %v12641_v18 = vadd.f32 %v12640_v51, %v12639_v28  ;;  %v12655_v63 = vadd.f32 %v12654_v2, %v12653_v12  ;;  %v12647_v10 = vrot.slane %v12646_v40, 4  ;;  %v12661_v60 = vrot.slane %v12660_v5, 4  ;;  %v17247_v12 = vld [vmem:[#allocation52] sm:$0xff]  }
0x3016   : > { %v20080_v53 = vsel %vm1899_vm0, %v13057_v48, 0  ;;  %vm13053_vm0 = vcmask 203776  }
0x3017   : > { %v12642_v29 = vrot.slane %v12641_v18, 2  ;;  %v12656_v22 = vrot.slane %v12655_v63, 2  ;;  %v12648_v23 = vadd.f32 %v12647_v10, %v12646_v40  ;;  %v12662_v20 = vadd.f32 %v12661_v60, %v12660_v5 }
0x3018   : > { %v13060_v28 = vand.u32 %v17246_v9, %v20080_v53 }
0x3019   : > { %v12643_v21 = vadd.f32 %v12642_v29, %v12641_v18  ;;  %v12657_v16 = vadd.f32 %v12656_v22, %v12655_v63  ;;  %v12649_v17 = vrot.slane %v12648_v23, 2  ;;  %v12663_v59 = vrot.slane %v12662_v20, 2  ;;  %v13038_v18 = vld [vmem:[#allocation53] sm:$0x1] }
0x301b   : > { %v12644_v13 = vrot.slane %v12643_v21, 1  ;;  %v12658_v45 = vrot.slane %v12657_v16, 1  ;;  %v12650_v19 = vadd.f32 %v12649_v17, %v12648_v23  ;;  %v12664_v30 = vadd.f32 %v12663_v59, %v12662_v20 }
0x301d   : > { %v12645_v0 = vadd.f32 %v12644_v13, %v12643_v21  ;;  %v12659_v36 = vadd.f32 %v12658_v45, %v12657_v16  ;;  %v12651_v26 = vrot.slane %v12650_v19, 1  ;;  %v12665_v56 = vrot.slane %v12664_v30, 1  ;;  %v13108_v16 = vld [vmem:[#allocation55] sm:$0x1] }
0x301f   : > { %v12652_v31 = vadd.f32 %v12651_v26, %v12650_v19  ;;  %v12666_v34 = vadd.f32 %v12665_v56, %v12664_v30  ;;  %v12668_v11 = vmul.f32 0.5, %v12645_v0  ;;  %v12670_v14 = vmul.f32 0.5, %v12659_v36  ;;  %v17248_v19 = vld [vmem:[%s20267_s9 + $0x8] sm:$0x1f]   ;;  %v17249_v0 = vld [vmem:[%s20267_s9] sm:$0xff]  }
0x3020   : > { %v13146_v30 = vand.u32 %v17248_v19, %v20080_v53 }
0x3021   : > { %v12669_v61 = vmul.f32 0.5, %v12652_v31  ;;  %v12671_v39 = vmul.f32 0.5, %v12666_v34  ;;  %v12672_v33 = vpack.c.bf16 %v12668_v11, %v12668_v11  ;;  %v12674_v24 = vpack.c.bf16 %v12670_v14, %v12670_v14  ;;  %v13127_v14 = vld [vmem:[%s20268_s14] sm:$0x1] }
0x3023   : > { %v12673_v41 = vpack.c.bf16 %v12669_v61, %v12669_v61  ;;  %v12675_v43 = vpack.c.bf16 %v12671_v39, %v12671_v39 }
0x3025   : > { %12965 = vmatprep.mubr.bf16.mxu0 %v12673_v41  ;;  %13005 = vmatprep.mubr.bf16.mxu1 %v12675_v43 }
0x3026   : > { %12966 = vmatmul.mubr.bf16.vlgmr.msra.gmra.mxu0 %v12672_v33  ;;  %13006 = vmatmul.mubr.bf16.vlgmr.msra.gmra.mxu1 %v12674_v24 }
0x3027   : > { %16111 = vmatprep.mubr.msk.bf16.mxu0 %vm18333_vm13, %v18332_v62  ;;  %16119 = vmatprep.mubr.msk.bf16.mxu1 %vm18333_vm13, %v18332_v62 }
0x3028   : > { %16108 = vmatpush3.bf16.msra.mxu0 %v13060_v28  ;;  %16116 = vmatpush3.bf16.msra.mxu1 %v13146_v30 }
0x3029   : > { %16109 = vmatprep.subr.bf16.mxu0 %v18332_v62  ;;  %16117 = vmatprep.subr.bf16.mxu1 %v18332_v62 }
0x302c   : > { %16110 = vmatpush3.bf16.msra.mxu0 %v17247_v12  ;;  %16118 = vmatpush3.bf16.msra.mxu1 %v17249_v0 }
0x302d   : > { %16123 = vmatprep.subr.bf16.mxu0 %v18332_v62 }
0x30e6   : > { %v15202_v38 = vpop.f32.mrf.mxu0  ;;  %v15224_v46 = vpop.f32.mrf.mxu1 }
0x30e8   : > { %v15203_v52 = vpop.f32.mrf.mxu0  ;;  %v15225_v37 = vpop.f32.mrf.mxu1 }
0x30e9   : > { %v15204_v50 = vadd.f32 %v15203_v52, %v15202_v38  ;;  %v15226_v35 = vadd.f32 %v15225_v37, %v15224_v46 }
0x30ea   : > { %v15205_v57 = vpop.f32.mrf.mxu0  ;;  %v15227_v25 = vpop.f32.mrf.mxu1 }
0x30eb   : > { %v12968_v55 = vadd.f32 %v15204_v50, %v12740_v1  ;;  %v13194_v1 = vld [vmem:[%s18546_s21] sm:$0x1]  ;;  %v17250_v25 = vld [vmem:[%s18551_s12 + $0x8] sm:$0x1f]  }
0x30ec   : > { %v15206_v3 = vpop.f32.mrf.mxu0  ;;  %v15228_v4 = vpop.f32.mrf.mxu1 }
0x30ed   : > { %v13008_v47 = vadd.f32 %v15226_v35, %v12968_v55  ;;  %v13232_v55 = vand.u32 %v17250_v25, %v20080_v53  ;;  %v17251_v35 = vld [vmem:[%s18551_s12] sm:$0xff]  }
0x30ef   : > { %v14582_v49 = vmul.f32 -1.442695, %v13008_v47 }
0x30f1   : > { %17252 = vpow2.f32 %v14582_v49 }
0x30fe   : > { %v17253_v6 = vpop.eup %17252 }
0x30ff   : > { %v13016_v8 = vadd.f32 1.0, %v17253_v6 }
0x3101   : > { %17254 = vrcp.f32 %v13016_v8 }
0x310e   : > { %v17255_v42 = vpop.eup %17254 }
0x310f   : > { %v13020_v7 = vmul.f32 %v17255_v42, %v13019_v15  ;;  %v13027_v44 = vsub.f32 1.0, %v17255_v42  ;;  %v13213_v15 = vld [vmem:[%s18556_s13] sm:$0x1] }
0x3111   : > { %13022 = vrot.lane.b32.xlu0 %v13020_v7, %s18335_s1 }
0x3183   : > { %v13023_v54 = vpop.permute.xlu0 %13022 }
0x3184   : > { %v13025_v27 = vadd.f32 %v13023_v54, %v13008_v47 }
0x3186   : > { %17256 = vtanh.f32 %v13025_v27 }
0x3193   : > { %v17257_v32 = vpop.eup %17256 }
0x3194   : > { %13029 = vrot.lane.b32.xlu0 %v17257_v32, %s18336_s4 }
0x3206   : > { %v13030_v51 = vpop.permute.xlu0 %13029 }
0x3207   : > { %v13032_v2 = vmul.f32 %v13030_v51, %v13027_v44 }
0x3209   : > { %v13033_v40 = vpack.c.bf16 %v13032_v2, %v13032_v2 }
0x320b   : > { %13040 = vrot.lane.b32.xlu1 %v13033_v40, %s18336_s4 }
0x327d   : > { %v13041_v5 = vpop.permute.xlu1 %13040 }
0x327e   : > { %16112 = vmatmul.mubr.msk.bf16.vlgmr.msra.gmra.mxu0 %vm13053_vm0, %v13041_v5 }
0x327f   : > { %16127 = vmatprep.mubr.msk.bf16.mxu0 %vm18333_vm13, %v18332_v62  ;;  %16124 = vmatpush3.bf16.msra.mxu0 %v13232_v55 }
0x3280   : > { %16125 = vmatprep.subr.bf16.mxu0 %v18332_v62 }
0x3283   : > { %16126 = vmatpush3.bf16.msra.mxu0 %v17251_v35 }
0x333e   : > { %v13096_v63 = vpop.f32.mrf.mxu0 }
0x333f   : > { %v13097_v10 = vadd.f32 %v13096_v63, %v13038_v18 }
0x3340   : > { %v16113_v60 = vpop.f32.mrf.mxu0 }
0x3341   : > { %v14586_v29 = vmul.f32 -1.442695, %v13097_v10 }
0x3342   : > { %v13099_v22 = vpop.f32.mrf.mxu0 }
0x3343   : > { %17258 = vpow2.f32 %v14586_v29 }
0x3344   : > { %v16114_v23 = vpop.f32.mrf.mxu0 }
0x3350   : > { %v17259_v20 = vpop.eup %17258 }
0x3351   : > { %v13105_v21 = vadd.f32 1.0, %v17259_v20 }
0x3353   : > { %17260 = vrcp.f32 %v13105_v21 }
0x3360   : > { %v17261_v17 = vpop.eup %17260 }
0x3361   : > { %v13109_v59 = vmul.f32 %v17261_v17, %v13108_v16  ;;  %v13116_v26 = vsub.f32 1.0, %v17261_v17 }
0x3363   : > { %13111 = vrot.lane.b32.xlu1 %v13109_v59, %s18335_s1 }
0x33d5   : > { %v13112_v13 = vpop.permute.xlu1 %13111 }
0x33d6   : > { %v13114_v45 = vadd.f32 %v13112_v13, %v13097_v10 }
0x33d8   : > { %17262 = vtanh.f32 %v13114_v45 }
0x33e5   : > { %v17263_v36 = vpop.eup %17262 }
0x33e6   : > { %13118 = vrot.lane.b32.xlu0 %v17263_v36, %s18336_s4 }
0x3458   : > { %v13119_v56 = vpop.permute.xlu0 %13118 }
0x3459   : > { %v13121_v31 = vmul.f32 %v13119_v56, %v13116_v26 }
0x345b   : > { %v13122_v34 = vpack.c.bf16 %v13121_v31, %v13121_v31 }
0x345d   : > { %13129 = vrot.lane.b32.xlu1 %v13122_v34, %s18336_s4 }
0x34cf   : > { %v13130_v11 = vpop.permute.xlu1 %13129 }
0x34d0   : > { %16120 = vmatmul.mubr.msk.bf16.vlgmr.msra.gmra.mxu1 %vm13053_vm0, %v13130_v11 }
0x3590   : > { %v13182_v61 = vpop.f32.mrf.mxu1 }
0x3591   : > { %v13183_v39 = vadd.f32 %v13182_v61, %v13127_v14 }
0x3592   : > { %v16121_v41 = vpop.f32.mrf.mxu1 }
0x3593   : > { %v14590_v43 = vmul.f32 -1.442695, %v13183_v39 }
0x3594   : > { %v13185_v33 = vpop.f32.mrf.mxu1 }
0x3595   : > { %17264 = vpow2.f32 %v14590_v43 }
0x3596   : > { %v16122_v24 = vpop.f32.mrf.mxu1 }
0x35a2   : > { %v17265_v38 = vpop.eup %17264 }
0x35a3   : > { %v13191_v46 = vadd.f32 1.0, %v17265_v38 }
0x35a5   : > { %17266 = vrcp.f32 %v13191_v46 }
0x35b2   : > { %v17267_v52 = vpop.eup %17266 }
0x35b3   : > { %v13195_v37 = vmul.f32 %v17267_v52, %v13194_v1  ;;  %v13202_v4 = vsub.f32 1.0, %v17267_v52 }
0x35b5   : > { %13197 = vrot.lane.b32.xlu0 %v13195_v37, %s18335_s1 }
0x3627   : > { %v13198_v50 = vpop.permute.xlu0 %13197 }
0x3628   : > { %v13200_v57 = vadd.f32 %v13198_v50, %v13183_v39 }
0x362a   : > { %17268 = vtanh.f32 %v13200_v57 }
0x3637   : > { %v17269_v3 = vpop.eup %17268 }
0x3638   : > { %13204 = vrot.lane.b32.xlu1 %v17269_v3, %s18336_s4 }
0x36aa   : > { %v13205_v47 = vpop.permute.xlu1 %13204 }
0x36ab   : > { %v13207_v49 = vmul.f32 %v13205_v47, %v13202_v4 }
0x36ad   : > { %v13208_v6 = vpack.c.bf16 %v13207_v49, %v13207_v49 }
0x36af   : > { %13215 = vrot.lane.b32.xlu0 %v13208_v6, %s18336_s4 }
0x3721   : > { %v13216_v8 = vpop.permute.xlu0 %13215 }
0x3722   : > { %16128 = vmatmul.mubr.msk.bf16.vlgmr.msra.gmra.mxu0 %vm13053_vm0, %v13216_v8 }
0x37e2   : > { %v13268_v62 = vpop.f32.mrf.mxu0 }
0x37e3   : > { %v13269_v42 = vadd.f32 %v13268_v62, %v13213_v15 }
0x37e4   : > { %v16129_v7 = vpop.f32.mrf.mxu0 }
0x37e5   : > { %13275 = vst.msk [vmem:[%s1778_s16] sm:$0x1] %vm13274_vm3, %v13269_v42 }
0x37e6   : > { %v13271_v54 = vpop.f32.mrf.mxu0 }
0x37e7   : > { %18123 = shalt.err (!%p18120_p3)
}
0x37e8   : > { %s18124_s7 = scalar_lea.hbm %s20112_s10, 16  ;;  %s18128_s23 = scalar_lea.hbm %s18561_s30, 32 }
0x37e9   : > { %p18125_p6 = scmp.ne.s32.totalorder %s20112_s10, %s18124_s7  ;;  %p18129_p7 = scmp.lt.s32.totalorder %s20112_s10, %s18561_s30 }
0x37ea   : > { %p18130_p11 = scmp.lt.s32.totalorder %s18128_s23, %s18124_s7 }
0x37eb   : > { %p18126_p5 = pnand %p18125_p6, %p20269_p13 }
0x37ec   : > { %p18131_p9 = por %p18130_p11, %p18129_p7 }
0x37ed   : > { %p18127_p8 = pneg %p18126_p5 }
0x37ef   : > { %p18132_p10 = pnand %p18131_p9, %p18127_p8 }
0x37f1   : > { %18135 = shalt.err (!%p18132_p10)
}
0x37f2   : > { %16271 = dma.vmem_to_hbm [thread:$0]  (%p20269_p13), %s20114_s0, 16, %s20112_s10, %s13277_s5   ;;  %v16130_v27 = vpop.f32.mrf.mxu0 }
0x37f3 PF: > { %s20270_s1 = sld [smem:[#allocation110_spill]]  ;;  %p16347_p12 = scmp.ge.s32.totalorder %s18242_s26, 2 }
0x37f4   : > { %s20271_s4 = sld [smem:[#allocation114_spill]] }
0x37f9   : > { %s13301_s14 = sand.u32 1, %s20270_s1  }
0x37fa   : > { %p20272_p0 = scmp.ne.s32.totalorder %s20271_s4, 0  ;;  %s13302_s8 = scalar_lea.sflag [#allocation4], %s13301_s14 }
0x37fc   : > { %p16274_p2 = pnand %p16347_p12, %p20272_p0 }
0x37fe   : > { %p16275_p1 = pneg %p16274_p2 }
0x3800   : > { %18225 = dma.done.wait (%p16275_p1), %s13302_s8, 16  }
0x3801   : > { %18227 = vsyncadd (%p16275_p1), %s13302_s8, 4294967280  ;;  %s20273_s26 = sld [smem:[#allocation112_spill]]  ;;  %s20276_s0 = smov %s18234_s22 }
0x3802   : > { %s20274_s6 = sld [smem:[#allocation111_spill]] }
0x3803   : > { %s20275_s23 = sld [smem:[#allocation113_spill]] }
0x3807   : > { %p115_p4 = scmp.ge.s32.totalorder %s20273_s26, 4  }
0x3808   : > { %s20277_s22 = smov %s20274_s6 }
0x3809   :  { %117 = sbr.rel (!%p115_p4) target bundleno = 100 (0x64), region = 489 }
0x380e   :  { %13306 = vsyncpa [#allocation3], 1 }
0x380f   :  { %13308 = vsyncpa [#allocation3 + $0x1], 1 }
0x3810   :  { %13309 = vsyncpa [#allocation6], 1 }
0x3811   :  { %13310 = vsyncpa [#allocation9], 1 }
0x3812   :  { %13311 = vsyncpa [#allocation12], 1 }
0x3813   :  { %13312 = vsyncpa [#allocation15], 1 }
0x3814   :  { %13313 = vsyncpa [#allocation18], 1 }
0x3815   :  { %13314 = vsyncpa [#allocation21], 1 }
0x3816   :  { %13315 = vsyncpa [#allocation24], 1 }
0x3817   :  { %13316 = vsyncpa [#allocation27], 1 }
0x3818   :  { %13317 = vsyncpa [#allocation30], 1 }
0x3819   :  { %13318 = vsyncpa [#allocation33], 1 }
0x381a   :  { %13319 = vsyncpa [#allocation36], 1 }
0x381b   :  { %13320 = vsyncpa [#allocation39], 1 }
0x381c   :  { %13321 = vsyncpa [#allocation42], 1 }
0x381d   :  { %13322 = vsyncpa [#allocation45], 1 }
0x381e   :  { %13323 = vsyncpa [#allocation48], 1 }
0x381f   :  { %13324 = vsyncpa [#allocation51], 1 }
0x3820   :  { %13325 = vsyncpa [#allocation54], 1 }
0x3821   :  { %13326 = vsyncpa [#allocation4], 1 }
0x3822   :  { %13328 = vsyncpa [#allocation4 + $0x1], 1 }

</bundles_post_ra>
